<compile_context>
chip_gen: v6e
topology: v6e:2x2x1
jax: 0.10.0
libtpu: 0.0.40
codegen_flags: <defaults>
</compile_context>

<pallas_src>
import jax
import jax.numpy as jnp
import numpy as np
from jax.experimental import pallas as pl
from jax.experimental.pallas import tpu as pltpu

C = 384              # embed dim (hard-coded in the PyTorch module)
NUM_HEADS = 6
HEAD_DIM = C // NUM_HEADS
HIDDEN = 1536        # MLP hidden dim
SCALE = 0.125        # attention scale (module hard-codes it; == 1/sqrt(64))
LN_EPS = 1e-5        # nn.LayerNorm default
DEPTH = 12           # number of blocks

_PARAM_ORDER = ("ln1_g", "ln1_b", "qkv_w", "proj_w", "proj_b",
                "ln2_g", "ln2_b", "fc1_w", "fc1_b", "fc2_w", "fc2_b")
_BF16_PARAMS = ("qkv_w", "proj_w", "fc1_w", "fc2_w")


# ----------------------------- math helpers (pure jnp, usable in-kernel) ----

def _layernorm(h, g, b):
    mu = jnp.mean(h, axis=-1, keepdims=True)
    xc = h - mu
    var = jnp.mean(xc * xc, axis=-1, keepdims=True)
    return xc * jax.lax.rsqrt(var + LN_EPS) * g + b


def _gelu_tanh(x):
    # tanh-approximation GELU (tanh lowers to the EUP slot on TPU).
    c = 0.7978845608028654  # sqrt(2/pi)
    return 0.5 * x * (1.0 + jnp.tanh(c * (x + 0.044715 * x * x * x)))


# ----------------------------- fused Pallas kernel ---------------------------

def _encoder_block_kernel(x_ref, pos_ref, mask_ref,
                          ln1_g, ln1_b, qkv_w, proj_w, proj_b,
                          ln2_g, ln2_b, fc1_w, fc1_b, fc2_w, fc2_b,
                          o_ref):
    d = pl.program_id(0)

    # o_ref's block index is constant across the grid, so it stays resident in
    # VMEM for all 12 layers -> use it directly as the activation state.
    @pl.when(d == 0)
    def _init():
        o_ref[...] = x_ref[...]

    # PyTorch: x = block(x + pos)  -> pos is re-added at every layer.
    h = o_ref[...] + pos_ref[...]                          # (BN, C) f32
    rows = h.shape[0]

    # ---------------- attention branch ----------------
    ln1 = _layernorm(h, ln1_g[...], ln1_b[...])
    qkv = jnp.dot(ln1.astype(jnp.bfloat16), qkv_w[...],
                  preferred_element_type=jnp.float32)      # (BN, 3C)
    q = qkv[:, 0 * C:1 * C]
    k = qkv[:, 1 * C:2 * C]
    v = qkv[:, 2 * C:3 * C]

    add_mask = mask_ref[...]                               # (BN, BN) 0 / -1e30
    proj_wv = proj_w[...]                                  # (C, C) bf16
    attn_out = jnp.zeros((rows, C), jnp.float32)
    for hd in range(NUM_HEADS):
        sl = slice(hd * HEAD_DIM, (hd + 1) * HEAD_DIM)
        qh, kh, vh = q[:, sl], k[:, sl], v[:, sl]
        s = jax.lax.dot_general(qh, kh, (((1,), (1,)), ((), ())),
                                preferred_element_type=jnp.float32) * SCALE
        s = s + add_mask                                   # block-diag batch mask
        s = s - jnp.max(s, axis=-1, keepdims=True)
        e = jnp.exp(s)
        p = e * pl.reciprocal(jnp.sum(e, axis=-1, keepdims=True), approx=True)
        ctx = jnp.dot(p, vh, preferred_element_type=jnp.float32)   # (BN, HD)
        # Fold head-concat into the projection: sum_h ctx_h @ proj_w[h*HD:(h+1)*HD]
        attn_out = attn_out + jnp.dot(ctx.astype(jnp.bfloat16), proj_wv[sl, :],
                                      preferred_element_type=jnp.float32)
    # proj_drop has p=0.0 -> identity
    x1 = h + attn_out + proj_b[...]

    # ---------------- MLP branch ----------------
    ln2 = _layernorm(x1, ln2_g[...], ln2_b[...])
    hid = jnp.dot(ln2.astype(jnp.bfloat16), fc1_w[...],
                  preferred_element_type=jnp.float32) + fc1_b[...]
    hid = _gelu_tanh(hid)
    mlp = jnp.dot(hid.astype(jnp.bfloat16), fc2_w[...],
                  preferred_element_type=jnp.float32) + fc2_b[...]

    o_ref[...] = x1 + mlp


def transformer_encoder(x, pos, blocks_params):
    """x, pos: (B, N, C) f32; blocks_params: list of per-layer param dicts."""
    B, N, _ = x.shape
    BN = B * N
    depth = len(blocks_params)

    # Stack per-layer params along a leading DEPTH axis; big matrices in bf16.
    stacked = {}
    for name in _PARAM_ORDER:
        arr = jnp.stack([p[name] for p in blocks_params], axis=0)
        if name in _BF16_PARAMS:
            arr = arr.astype(jnp.bfloat16)
        stacked[name] = arr
    param_list = [stacked[name] for name in _PARAM_ORDER]

    # Additive block-diagonal mask: attention stays within each length-N sequence.
    seq_id = jnp.arange(BN, dtype=jnp.int32) // N
    add_mask = jnp.where(seq_id[:, None] == seq_id[None, :], 0.0, -1e30)
    add_mask = add_mask.astype(jnp.float32)

    act_spec = pl.BlockSpec((BN, C), lambda d: (0, 0))
    mask_spec = pl.BlockSpec((BN, BN), lambda d: (0, 0))
    weight_specs = [
        pl.BlockSpec((None,) + tuple(a.shape[1:]), lambda d: (d, 0, 0))
        for a in param_list
    ]

    out2d = pl.pallas_call(
        _encoder_block_kernel,
        out_shape=jax.ShapeDtypeStruct((BN, C), jnp.float32),
        grid_spec=pltpu.PrefetchScalarGridSpec(
            num_scalar_prefetch=0,
            grid=(depth,),
            in_specs=[act_spec, act_spec, mask_spec] + weight_specs,
            out_specs=act_spec,
        ),
        compiler_params=pltpu.CompilerParams(
            dimension_semantics=("arbitrary",),     # layer axis is sequential
            vmem_limit_bytes=48 * 1024 * 1024,      # ~8-10 MB actually used
        ),
    )(x.reshape(BN, C), pos.reshape(BN, C), add_mask, *param_list)
    return out2d.reshape(B, N, C)


# ----------------------------- reference (plain JAX, f32, exact GELU) --------

def _ln_ref(h, g, b):
    mu = jnp.mean(h, axis=-1, keepdims=True)
    xc = h - mu
    var = jnp.mean(xc * xc, axis=-1, keepdims=True)
    return xc * jax.lax.rsqrt(var + LN_EPS) * g + b


def reference_encoder(x, pos, blocks_params):
    B, N, _ = x.shape
    for p in blocks_params:
        h = x + pos
        ln1 = _ln_ref(h, p["ln1_g"], p["ln1_b"])
        qkv = jnp.einsum("bnc,cd->bnd", ln1, p["qkv_w"])
        qkv = qkv.reshape(B, N, 3, NUM_HEADS, HEAD_DIM).transpose(2, 0, 3, 1, 4)
        q, k, v = qkv[0], qkv[1], qkv[2]                       # (B, H, N, D)
        s = jnp.einsum("bhnd,bhmd->bhnm", q, k) * SCALE
        a = jax.nn.softmax(s, axis=-1)
        ctx = jnp.einsum("bhnm,bhmd->bhnd", a, v)
        ctx = ctx.transpose(0, 2, 1, 3).reshape(B, N, C)
        attn = jnp.einsum("bnc,cd->bnd", ctx, p["proj_w"]) + p["proj_b"]
        x1 = h + attn
        ln2 = _ln_ref(x1, p["ln2_g"], p["ln2_b"])
        hid = jnp.einsum("bnc,ch->bnh", ln2, p["fc1_w"]) + p["fc1_b"]
        hid = jax.nn.gelu(hid, approximate=False)              # exact erf GELU (torch default)
        mlp = jnp.einsum("bnh,hc->bnc", hid, p["fc2_w"]) + p["fc2_b"]
        x = x1 + mlp
    return x


# ----------------------------- parameters ------------------------------------

def init_block_params(key):
    ks = jax.random.split(key, 4)
    s = 0.02
    f32 = jnp.float32
    return dict(
        ln1_g=jnp.ones((1, C), f32),
        ln1_b=jnp.zeros((1, C), f32),
        qkv_w=(s * jax.random.normal(ks[0], (C, 3 * C))).astype(f32),
        proj_w=(s * jax.random.normal(ks[1], (C, C))).astype(f32),
        proj_b=jnp.zeros((1, C), f32),
        ln2_g=jnp.ones((1, C), f32),
        ln2_b=jnp.zeros((1, C), f32),
        fc1_w=(s * jax.random.normal(ks[2], (C, HIDDEN))).astype(f32),
        fc1_b=jnp.zeros((1, HIDDEN), f32),
        fc2_w=(s * jax.random.normal(ks[3], (HIDDEN, C))).astype(f32),
        fc2_b=jnp.zeros((1, C), f32),
    )


if __name__ == "__main__":
    key = jax.random.PRNGKey(0)
    kx, kp, kw = jax.random.split(key, 3)
    B, N = 2, 16
    x = jax.random.normal(kx, (B, N, C), jnp.float32)
    pos = jax.random.normal(kp, (B, N, C), jnp.float32)
    params = [init_block_params(k) for k in jax.random.split(kw, DEPTH)]

    out = jax.block_until_ready(transformer_encoder(x, pos, params))
    ref = jax.block_until_ready(jax.jit(reference_encoder)(x, pos, params))

    assert out.shape == (B, N, C)
    assert bool(jnp.all(jnp.isfinite(out)))
    # Kernel uses bf16 weights at the MXU, tanh-GELU and an approx softmax
    # reciprocal; the f32/erf reference accumulates ~1e-2 absolute drift over
    # 12 layers, so compare at 5e-2.
    assert np.allclose(np.asarray(out), np.asarray(ref), atol=5e-2, rtol=5e-2)
    print("KERNEL_OK")
</pallas_src>

<mosaic_0001>
module attributes {stable_mosaic.version = 11 : i64} {
  func.func @_encoder_block_kernel(%arg0: i32, %arg1: memref<32x384xf32, #tpu.memory_space<vmem>>, %arg2: memref<32x384xf32, #tpu.memory_space<vmem>>, %arg3: memref<32x32xf32, #tpu.memory_space<vmem>>, %arg4: memref<1x1x384xf32, #tpu.memory_space<vmem>>, %arg5: memref<1x1x384xf32, #tpu.memory_space<vmem>>, %arg6: memref<1x384x1152xbf16, #tpu.memory_space<vmem>>, %arg7: memref<1x384x384xbf16, #tpu.memory_space<vmem>>, %arg8: memref<1x1x384xf32, #tpu.memory_space<vmem>>, %arg9: memref<1x1x384xf32, #tpu.memory_space<vmem>>, %arg10: memref<1x1x384xf32, #tpu.memory_space<vmem>>, %arg11: memref<1x384x1536xbf16, #tpu.memory_space<vmem>>, %arg12: memref<1x1x1536xf32, #tpu.memory_space<vmem>>, %arg13: memref<1x1536x384xbf16, #tpu.memory_space<vmem>>, %arg14: memref<1x1x384xf32, #tpu.memory_space<vmem>>, %arg15: memref<32x384xf32, #tpu.memory_space<vmem>>) attributes {dimension_semantics = [#tpu.dimension_semantics<arbitrary>], iteration_bounds = array<i64: 12>, scalar_prefetch = 0 : i64, scratch_operands = 0 : i64, tpu.core_type = #tpu.core_type<tc>, window_params = [{pipeline_mode = #tpu.pipeline_mode<synchronous>, transform_indices = @transform_0, window_bounds = array<i64: 32, 384>}, {pipeline_mode = #tpu.pipeline_mode<synchronous>, transform_indices = @transform_1, window_bounds = array<i64: 32, 384>}, {pipeline_mode = #tpu.pipeline_mode<synchronous>, transform_indices = @transform_2, window_bounds = array<i64: 32, 32>}, {transform_indices = @transform_3, window_bounds = array<i64: 1, 1, 384>}, {transform_indices = @transform_4, window_bounds = array<i64: 1, 1, 384>}, {transform_indices = @transform_5, window_bounds = array<i64: 1, 384, 1152>}, {transform_indices = @transform_6, window_bounds = array<i64: 1, 384, 384>}, {transform_indices = @transform_7, window_bounds = array<i64: 1, 1, 384>}, {transform_indices = @transform_8, window_bounds = array<i64: 1, 1, 384>}, {transform_indices = @transform_9, window_bounds = array<i64: 1, 1, 384>}, {transform_indices = @transform_10, window_bounds = array<i64: 1, 384, 1536>}, {transform_indices = @transform_11, window_bounds = array<i64: 1, 1, 1536>}, {transform_indices = @transform_12, window_bounds = array<i64: 1, 1536, 384>}, {transform_indices = @transform_13, window_bounds = array<i64: 1, 1, 384>}, {pipeline_mode = #tpu.pipeline_mode<synchronous>, transform_indices = @transform_14, window_bounds = array<i64: 32, 384>}]} {
    %c0_i32 = arith.constant 0 : i32
    %0 = arith.cmpi eq, %arg0, %c0_i32 : i32
    %1 = arith.extui %0 : i1 to i32
    %c0_i32_0 = arith.constant 0 : i32
    %2 = arith.cmpi ne, %1, %c0_i32_0 : i32
    scf.if %2 {
      %c0_94 = arith.constant 0 : index
      %c0_95 = arith.constant 0 : index
      %233 = vector.load %arg1[%c0_94, %c0_95] : memref<32x384xf32, #tpu.memory_space<vmem>>, vector<32x384xf32>
      %c0_96 = arith.constant 0 : index
      %c0_97 = arith.constant 0 : index
      %234 = vector.load %arg15[%c0_96, %c0_97] : memref<32x384xf32, #tpu.memory_space<vmem>>, vector<32x384xf32>
      tpu.vector_store %arg15[%c0_96, %c0_97], %233 {strides = array<i32>} : memref<32x384xf32, #tpu.memory_space<vmem>>, vector<32x384xf32>,
    } else {
    }
    %c0 = arith.constant 0 : index
    %c0_1 = arith.constant 0 : index
    %3 = vector.load %arg15[%c0, %c0_1] : memref<32x384xf32, #tpu.memory_space<vmem>>, vector<32x384xf32>
    %c0_2 = arith.constant 0 : index
    %c0_3 = arith.constant 0 : index
    %4 = vector.load %arg2[%c0_2, %c0_3] : memref<32x384xf32, #tpu.memory_space<vmem>>, vector<32x384xf32>
    %5 = arith.addf %3, %4 : vector<32x384xf32>
    %c0_4 = arith.constant 0 : index
    %c0_5 = arith.constant 0 : index
    %c0_6 = arith.constant 0 : index
    %6 = vector.load %arg4[%c0_4, %c0_5, %c0_6] : memref<1x1x384xf32, #tpu.memory_space<vmem>>, vector<1x1x384xf32>
    %7 = vector.shape_cast %6 : vector<1x1x384xf32> to vector<1x384xf32>
    %c0_7 = arith.constant 0 : index
    %c0_8 = arith.constant 0 : index
    %c0_9 = arith.constant 0 : index
    %8 = vector.load %arg5[%c0_7, %c0_8, %c0_9] : memref<1x1x384xf32, #tpu.memory_space<vmem>>, vector<1x1x384xf32>
    %9 = vector.shape_cast %8 : vector<1x1x384xf32> to vector<1x384xf32>
    %cst = arith.constant dense<0.000000e+00> : vector<32xf32>
    %10 = vector.multi_reduction <add>, %5, %cst [1] : vector<32x384xf32> to vector<32xf32>
    %11 = vector.shape_cast %10 : vector<32xf32> to vector<32x1xf32>
    %cst_10 = arith.constant 3.840000e+02 : f32
    %12 = vector.broadcast %cst_10 : f32 to vector<32x1xf32>
    %13 = arith.divf %11, %12 : vector<32x1xf32>
    %14 = vector.broadcast %13 : vector<32x1xf32> to vector<32x384xf32>
    %15 = arith.subf %5, %14 : vector<32x384xf32>
    %16 = arith.mulf %15, %15 : vector<32x384xf32>
    %cst_11 = arith.constant dense<0.000000e+00> : vector<32xf32>
    %17 = vector.multi_reduction <add>, %16, %cst_11 [1] : vector<32x384xf32> to vector<32xf32>
    %18 = vector.shape_cast %17 : vector<32xf32> to vector<32x1xf32>
    %cst_12 = arith.constant 3.840000e+02 : f32
    %19 = vector.broadcast %cst_12 : f32 to vector<32x1xf32>
    %20 = arith.divf %18, %19 : vector<32x1xf32>
    %cst_13 = arith.constant 9.99999974E-6 : f32
    %21 = vector.broadcast %cst_13 : f32 to vector<32x1xf32>
    %22 = arith.addf %20, %21 : vector<32x1xf32>
    %23 = math.rsqrt %22 : vector<32x1xf32>
    %24 = vector.broadcast %23 : vector<32x1xf32> to vector<32x384xf32>
    %25 = arith.mulf %15, %24 : vector<32x384xf32>
    %26 = vector.broadcast %7 : vector<1x384xf32> to vector<32x384xf32>
    %27 = arith.mulf %25, %26 : vector<32x384xf32>
    %28 = vector.broadcast %9 : vector<1x384xf32> to vector<32x384xf32>
    %29 = arith.addf %27, %28 : vector<32x384xf32>
    %30 = arith.truncf %29 : vector<32x384xf32> to vector<32x384xbf16>
    %c0_14 = arith.constant 0 : index
    %c0_15 = arith.constant 0 : index
    %c0_16 = arith.constant 0 : index
    %31 = vector.load %arg6[%c0_14, %c0_15, %c0_16] : memref<1x384x1152xbf16, #tpu.memory_space<vmem>>, vector<1x384x1152xbf16>
    %32 = vector.shape_cast %31 : vector<1x384x1152xbf16> to vector<384x1152xbf16>
    %cst_17 = arith.constant dense<0.000000e+00> : vector<32x1152xf32>
    %33 = tpu.matmul %30, %32, %cst_17 {dimension_numbers = #tpu.dot_dimension_numbers<[1], [0], [0], [1], [0, 0, 1, 1], [], []>} : vector<32x384xbf16>, vector<384x1152xbf16>, vector<32x1152xf32> -> vector<32x1152xf32>
    %34 = vector.extract_strided_slice %33 {offsets = [0, 0], sizes = [32, 384], strides = [1, 1]} : vector<32x1152xf32> to vector<32x384xf32>
    %35 = vector.extract_strided_slice %33 {offsets = [0, 384], sizes = [32, 384], strides = [1, 1]} : vector<32x1152xf32> to vector<32x384xf32>
    %36 = vector.extract_strided_slice %33 {offsets = [0, 768], sizes = [32, 384], strides = [1, 1]} : vector<32x1152xf32> to vector<32x384xf32>
    %c0_18 = arith.constant 0 : index
    %c0_19 = arith.constant 0 : index
    %37 = vector.load %arg3[%c0_18, %c0_19] : memref<32x32xf32, #tpu.memory_space<vmem>>, vector<32x32xf32>
    %c0_20 = arith.constant 0 : index
    %c0_21 = arith.constant 0 : index
    %c0_22 = arith.constant 0 : index
    %38 = vector.load %arg7[%c0_20, %c0_21, %c0_22] : memref<1x384x384xbf16, #tpu.memory_space<vmem>>, vector<1x384x384xbf16>
    %39 = vector.shape_cast %38 : vector<1x384x384xbf16> to vector<384x384xbf16>
    %cst_23 = arith.constant 0.000000e+00 : f32
    %40 = vector.broadcast %cst_23 : f32 to vector<32x384xf32>
    %41 = vector.extract_strided_slice %34 {offsets = [0, 0], sizes = [32, 64], strides = [1, 1]} : vector<32x384xf32> to vector<32x64xf32>
    %42 = vector.extract_strided_slice %35 {offsets = [0, 0], sizes = [32, 64], strides = [1, 1]} : vector<32x384xf32> to vector<32x64xf32>
    %43 = vector.extract_strided_slice %36 {offsets = [0, 0], sizes = [32, 64], strides = [1, 1]} : vector<32x384xf32> to vector<32x64xf32>
    %cst_24 = arith.constant dense<0.000000e+00> : vector<32x32xf32>
    %44 = tpu.matmul %41, %42, %cst_24 {dimension_numbers = #tpu.dot_dimension_numbers<[1], [1], [0], [0], [0, 0, 1, 0], [], []>} : vector<32x64xf32>, vector<32x64xf32>, vector<32x32xf32> -> vector<32x32xf32>
    %cst_25 = arith.constant 1.250000e-01 : f32
    %45 = vector.broadcast %cst_25 : f32 to vector<32x32xf32>
    %46 = arith.mulf %44, %45 : vector<32x32xf32>
    %47 = arith.addf %46, %37 : vector<32x32xf32>
    %cst_26 = arith.constant dense<0xFF800000> : vector<32xf32>
    %48 = vector.multi_reduction <maximumf>, %47, %cst_26 [1] : vector<32x32xf32> to vector<32xf32>
    %49 = vector.shape_cast %48 : vector<32xf32> to vector<32x1xf32>
    %50 = vector.broadcast %49 : vector<32x1xf32> to vector<32x32xf32>
    %51 = arith.subf %47, %50 : vector<32x32xf32>
    %52 = math.exp %51 : vector<32x32xf32>
    %cst_27 = arith.constant dense<0.000000e+00> : vector<32xf32>
    %53 = vector.multi_reduction <add>, %52, %cst_27 [1] : vector<32x32xf32> to vector<32xf32>
    %54 = vector.shape_cast %53 : vector<32xf32> to vector<32x1xf32>
    %55 = tpu.reciprocal %54 {approx = true} : vector<32x1xf32> -> vector<32x1xf32>
    %56 = vector.broadcast %55 : vector<32x1xf32> to vector<32x32xf32>
    %57 = arith.mulf %52, %56 : vector<32x32xf32>
    %cst_28 = arith.constant dense<0.000000e+00> : vector<32x64xf32>
    %58 = tpu.matmul %57, %43, %cst_28 {dimension_numbers = #tpu.dot_dimension_numbers<[1], [0], [0], [1], [0, 0, 1, 1], [], []>} : vector<32x32xf32>, vector<32x64xf32>, vector<32x64xf32> -> vector<32x64xf32>
    %59 = arith.truncf %58 : vector<32x64xf32> to vector<32x64xbf16>
    %60 = vector.extract_strided_slice %39 {offsets = [0, 0], sizes = [64, 384], strides = [1, 1]} : vector<384x384xbf16> to vector<64x384xbf16>
    %cst_29 = arith.constant dense<0.000000e+00> : vector<32x384xf32>
    %61 = tpu.matmul %59, %60, %cst_29 {dimension_numbers = #tpu.dot_dimension_numbers<[1], [0], [0], [1], [0, 0, 1, 1], [], []>} : vector<32x64xbf16>, vector<64x384xbf16>, vector<32x384xf32> -> vector<32x384xf32>
    %62 = arith.addf %40, %61 : vector<32x384xf32>
    %63 = vector.extract_strided_slice %34 {offsets = [0, 64], sizes = [32, 64], strides = [1, 1]} : vector<32x384xf32> to vector<32x64xf32>
    %64 = vector.extract_strided_slice %35 {offsets = [0, 64], sizes = [32, 64], strides = [1, 1]} : vector<32x384xf32> to vector<32x64xf32>
    %65 = vector.extract_strided_slice %36 {offsets = [0, 64], sizes = [32, 64], strides = [1, 1]} : vector<32x384xf32> to vector<32x64xf32>
    %cst_30 = arith.constant dense<0.000000e+00> : vector<32x32xf32>
    %66 = tpu.matmul %63, %64, %cst_30 {dimension_numbers = #tpu.dot_dimension_numbers<[1], [1], [0], [0], [0, 0, 1, 0], [], []>} : vector<32x64xf32>, vector<32x64xf32>, vector<32x32xf32> -> vector<32x32xf32>
    %cst_31 = arith.constant 1.250000e-01 : f32
    %67 = vector.broadcast %cst_31 : f32 to vector<32x32xf32>
    %68 = arith.mulf %66, %67 : vector<32x32xf32>
    %69 = arith.addf %68, %37 : vector<32x32xf32>
    %cst_32 = arith.constant dense<0xFF800000> : vector<32xf32>
    %70 = vector.multi_reduction <maximumf>, %69, %cst_32 [1] : vector<32x32xf32> to vector<32xf32>
    %71 = vector.shape_cast %70 : vector<32xf32> to vector<32x1xf32>
    %72 = vector.broadcast %71 : vector<32x1xf32> to vector<32x32xf32>
    %73 = arith.subf %69, %72 : vector<32x32xf32>
    %74 = math.exp %73 : vector<32x32xf32>
    %cst_33 = arith.constant dense<0.000000e+00> : vector<32xf32>
    %75 = vector.multi_reduction <add>, %74, %cst_33 [1] : vector<32x32xf32> to vector<32xf32>
    %76 = vector.shape_cast %75 : vector<32xf32> to vector<32x1xf32>
    %77 = tpu.reciprocal %76 {approx = true} : vector<32x1xf32> -> vector<32x1xf32>
    %78 = vector.broadcast %77 : vector<32x1xf32> to vector<32x32xf32>
    %79 = arith.mulf %74, %78 : vector<32x32xf32>
    %cst_34 = arith.constant dense<0.000000e+00> : vector<32x64xf32>
    %80 = tpu.matmul %79, %65, %cst_34 {dimension_numbers = #tpu.dot_dimension_numbers<[1], [0], [0], [1], [0, 0, 1, 1], [], []>} : vector<32x32xf32>, vector<32x64xf32>, vector<32x64xf32> -> vector<32x64xf32>
    %81 = arith.truncf %80 : vector<32x64xf32> to vector<32x64xbf16>
    %82 = vector.extract_strided_slice %39 {offsets = [64, 0], sizes = [64, 384], strides = [1, 1]} : vector<384x384xbf16> to vector<64x384xbf16>
    %cst_35 = arith.constant dense<0.000000e+00> : vector<32x384xf32>
    %83 = tpu.matmul %81, %82, %cst_35 {dimension_numbers = #tpu.dot_dimension_numbers<[1], [0], [0], [1], [0, 0, 1, 1], [], []>} : vector<32x64xbf16>, vector<64x384xbf16>, vector<32x384xf32> -> vector<32x384xf32>
    %84 = arith.addf %62, %83 : vector<32x384xf32>
    %85 = vector.extract_strided_slice %34 {offsets = [0, 128], sizes = [32, 64], strides = [1, 1]} : vector<32x384xf32> to vector<32x64xf32>
    %86 = vector.extract_strided_slice %35 {offsets = [0, 128], sizes = [32, 64], strides = [1, 1]} : vector<32x384xf32> to vector<32x64xf32>
    %87 = vector.extract_strided_slice %36 {offsets = [0, 128], sizes = [32, 64], strides = [1, 1]} : vector<32x384xf32> to vector<32x64xf32>
    %cst_36 = arith.constant dense<0.000000e+00> : vector<32x32xf32>
    %88 = tpu.matmul %85, %86, %cst_36 {dimension_numbers = #tpu.dot_dimension_numbers<[1], [1], [0], [0], [0, 0, 1, 0], [], []>} : vector<32x64xf32>, vector<32x64xf32>, vector<32x32xf32> -> vector<32x32xf32>
    %cst_37 = arith.constant 1.250000e-01 : f32
    %89 = vector.broadcast %cst_37 : f32 to vector<32x32xf32>
    %90 = arith.mulf %88, %89 : vector<32x32xf32>
    %91 = arith.addf %90, %37 : vector<32x32xf32>
    %cst_38 = arith.constant dense<0xFF800000> : vector<32xf32>
    %92 = vector.multi_reduction <maximumf>, %91, %cst_38 [1] : vector<32x32xf32> to vector<32xf32>
    %93 = vector.shape_cast %92 : vector<32xf32> to vector<32x1xf32>
    %94 = vector.broadcast %93 : vector<32x1xf32> to vector<32x32xf32>
    %95 = arith.subf %91, %94 : vector<32x32xf32>
    %96 = math.exp %95 : vector<32x32xf32>
    %cst_39 = arith.constant dense<0.000000e+00> : vector<32xf32>
    %97 = vector.multi_reduction <add>, %96, %cst_39 [1] : vector<32x32xf32> to vector<32xf32>
    %98 = vector.shape_cast %97 : vector<32xf32> to vector<32x1xf32>
    %99 = tpu.reciprocal %98 {approx = true} : vector<32x1xf32> -> vector<32x1xf32>
    %100 = vector.broadcast %99 : vector<32x1xf32> to vector<32x32xf32>
    %101 = arith.mulf %96, %100 : vector<32x32xf32>
    %cst_40 = arith.constant dense<0.000000e+00> : vector<32x64xf32>
    %102 = tpu.matmul %101, %87, %cst_40 {dimension_numbers = #tpu.dot_dimension_numbers<[1], [0], [0], [1], [0, 0, 1, 1], [], []>} : vector<32x32xf32>, vector<32x64xf32>, vector<32x64xf32> -> vector<32x64xf32>
    %103 = arith.truncf %102 : vector<32x64xf32> to vector<32x64xbf16>
    %104 = vector.extract_strided_slice %39 {offsets = [128, 0], sizes = [64, 384], strides = [1, 1]} : vector<384x384xbf16> to vector<64x384xbf16>
    %cst_41 = arith.constant dense<0.000000e+00> : vector<32x384xf32>
    %105 = tpu.matmul %103, %104, %cst_41 {dimension_numbers = #tpu.dot_dimension_numbers<[1], [0], [0], [1], [0, 0, 1, 1], [], []>} : vector<32x64xbf16>, vector<64x384xbf16>, vector<32x384xf32> -> vector<32x384xf32>
    %106 = arith.addf %84, %105 : vector<32x384xf32>
    %107 = vector.extract_strided_slice %34 {offsets = [0, 192], sizes = [32, 64], strides = [1, 1]} : vector<32x384xf32> to vector<32x64xf32>
    %108 = vector.extract_strided_slice %35 {offsets = [0, 192], sizes = [32, 64], strides = [1, 1]} : vector<32x384xf32> to vector<32x64xf32>
    %109 = vector.extract_strided_slice %36 {offsets = [0, 192], sizes = [32, 64], strides = [1, 1]} : vector<32x384xf32> to vector<32x64xf32>
    %cst_42 = arith.constant dense<0.000000e+00> : vector<32x32xf32>
    %110 = tpu.matmul %107, %108, %cst_42 {dimension_numbers = #tpu.dot_dimension_numbers<[1], [1], [0], [0], [0, 0, 1, 0], [], []>} : vector<32x64xf32>, vector<32x64xf32>, vector<32x32xf32> -> vector<32x32xf32>
    %cst_43 = arith.constant 1.250000e-01 : f32
    %111 = vector.broadcast %cst_43 : f32 to vector<32x32xf32>
    %112 = arith.mulf %110, %111 : vector<32x32xf32>
    %113 = arith.addf %112, %37 : vector<32x32xf32>
    %cst_44 = arith.constant dense<0xFF800000> : vector<32xf32>
    %114 = vector.multi_reduction <maximumf>, %113, %cst_44 [1] : vector<32x32xf32> to vector<32xf32>
    %115 = vector.shape_cast %114 : vector<32xf32> to vector<32x1xf32>
    %116 = vector.broadcast %115 : vector<32x1xf32> to vector<32x32xf32>
    %117 = arith.subf %113, %116 : vector<32x32xf32>
    %118 = math.exp %117 : vector<32x32xf32>
    %cst_45 = arith.constant dense<0.000000e+00> : vector<32xf32>
    %119 = vector.multi_reduction <add>, %118, %cst_45 [1] : vector<32x32xf32> to vector<32xf32>
    %120 = vector.shape_cast %119 : vector<32xf32> to vector<32x1xf32>
    %121 = tpu.reciprocal %120 {approx = true} : vector<32x1xf32> -> vector<32x1xf32>
    %122 = vector.broadcast %121 : vector<32x1xf32> to vector<32x32xf32>
    %123 = arith.mulf %118, %122 : vector<32x32xf32>
    %cst_46 = arith.constant dense<0.000000e+00> : vector<32x64xf32>
    %124 = tpu.matmul %123, %109, %cst_46 {dimension_numbers = #tpu.dot_dimension_numbers<[1], [0], [0], [1], [0, 0, 1, 1], [], []>} : vector<32x32xf32>, vector<32x64xf32>, vector<32x64xf32> -> vector<32x64xf32>
    %125 = arith.truncf %124 : vector<32x64xf32> to vector<32x64xbf16>
    %126 = vector.extract_strided_slice %39 {offsets = [192, 0], sizes = [64, 384], strides = [1, 1]} : vector<384x384xbf16> to vector<64x384xbf16>
    %cst_47 = arith.constant dense<0.000000e+00> : vector<32x384xf32>
    %127 = tpu.matmul %125, %126, %cst_47 {dimension_numbers = #tpu.dot_dimension_numbers<[1], [0], [0], [1], [0, 0, 1, 1], [], []>} : vector<32x64xbf16>, vector<64x384xbf16>, vector<32x384xf32> -> vector<32x384xf32>
    %128 = arith.addf %106, %127 : vector<32x384xf32>
    %129 = vector.extract_strided_slice %34 {offsets = [0, 256], sizes = [32, 64], strides = [1, 1]} : vector<32x384xf32> to vector<32x64xf32>
    %130 = vector.extract_strided_slice %35 {offsets = [0, 256], sizes = [32, 64], strides = [1, 1]} : vector<32x384xf32> to vector<32x64xf32>
    %131 = vector.extract_strided_slice %36 {offsets = [0, 256], sizes = [32, 64], strides = [1, 1]} : vector<32x384xf32> to vector<32x64xf32>
    %cst_48 = arith.constant dense<0.000000e+00> : vector<32x32xf32>
    %132 = tpu.matmul %129, %130, %cst_48 {dimension_numbers = #tpu.dot_dimension_numbers<[1], [1], [0], [0], [0, 0, 1, 0], [], []>} : vector<32x64xf32>, vector<32x64xf32>, vector<32x32xf32> -> vector<32x32xf32>
    %cst_49 = arith.constant 1.250000e-01 : f32
    %133 = vector.broadcast %cst_49 : f32 to vector<32x32xf32>
    %134 = arith.mulf %132, %133 : vector<32x32xf32>
    %135 = arith.addf %134, %37 : vector<32x32xf32>
    %cst_50 = arith.constant dense<0xFF800000> : vector<32xf32>
    %136 = vector.multi_reduction <maximumf>, %135, %cst_50 [1] : vector<32x32xf32> to vector<32xf32>
    %137 = vector.shape_cast %136 : vector<32xf32> to vector<32x1xf32>
    %138 = vector.broadcast %137 : vector<32x1xf32> to vector<32x32xf32>
    %139 = arith.subf %135, %138 : vector<32x32xf32>
    %140 = math.exp %139 : vector<32x32xf32>
    %cst_51 = arith.constant dense<0.000000e+00> : vector<32xf32>
    %141 = vector.multi_reduction <add>, %140, %cst_51 [1] : vector<32x32xf32> to vector<32xf32>
    %142 = vector.shape_cast %141 : vector<32xf32> to vector<32x1xf32>
    %143 = tpu.reciprocal %142 {approx = true} : vector<32x1xf32> -> vector<32x1xf32>
    %144 = vector.broadcast %143 : vector<32x1xf32> to vector<32x32xf32>
    %145 = arith.mulf %140, %144 : vector<32x32xf32>
    %cst_52 = arith.constant dense<0.000000e+00> : vector<32x64xf32>
    %146 = tpu.matmul %145, %131, %cst_52 {dimension_numbers = #tpu.dot_dimension_numbers<[1], [0], [0], [1], [0, 0, 1, 1], [], []>} : vector<32x32xf32>, vector<32x64xf32>, vector<32x64xf32> -> vector<32x64xf32>
    %147 = arith.truncf %146 : vector<32x64xf32> to vector<32x64xbf16>
    %148 = vector.extract_strided_slice %39 {offsets = [256, 0], sizes = [64, 384], strides = [1, 1]} : vector<384x384xbf16> to vector<64x384xbf16>
    %cst_53 = arith.constant dense<0.000000e+00> : vector<32x384xf32>
    %149 = tpu.matmul %147, %148, %cst_53 {dimension_numbers = #tpu.dot_dimension_numbers<[1], [0], [0], [1], [0, 0, 1, 1], [], []>} : vector<32x64xbf16>, vector<64x384xbf16>, vector<32x384xf32> -> vector<32x384xf32>
    %150 = arith.addf %128, %149 : vector<32x384xf32>
    %151 = vector.extract_strided_slice %34 {offsets = [0, 320], sizes = [32, 64], strides = [1, 1]} : vector<32x384xf32> to vector<32x64xf32>
    %152 = vector.extract_strided_slice %35 {offsets = [0, 320], sizes = [32, 64], strides = [1, 1]} : vector<32x384xf32> to vector<32x64xf32>
    %153 = vector.extract_strided_slice %36 {offsets = [0, 320], sizes = [32, 64], strides = [1, 1]} : vector<32x384xf32> to vector<32x64xf32>
    %cst_54 = arith.constant dense<0.000000e+00> : vector<32x32xf32>
    %154 = tpu.matmul %151, %152, %cst_54 {dimension_numbers = #tpu.dot_dimension_numbers<[1], [1], [0], [0], [0, 0, 1, 0], [], []>} : vector<32x64xf32>, vector<32x64xf32>, vector<32x32xf32> -> vector<32x32xf32>
    %cst_55 = arith.constant 1.250000e-01 : f32
    %155 = vector.broadcast %cst_55 : f32 to vector<32x32xf32>
    %156 = arith.mulf %154, %155 : vector<32x32xf32>
    %157 = arith.addf %156, %37 : vector<32x32xf32>
    %cst_56 = arith.constant dense<0xFF800000> : vector<32xf32>
    %158 = vector.multi_reduction <maximumf>, %157, %cst_56 [1] : vector<32x32xf32> to vector<32xf32>
    %159 = vector.shape_cast %158 : vector<32xf32> to vector<32x1xf32>
    %160 = vector.broadcast %159 : vector<32x1xf32> to vector<32x32xf32>
    %161 = arith.subf %157, %160 : vector<32x32xf32>
    %162 = math.exp %161 : vector<32x32xf32>
    %cst_57 = arith.constant dense<0.000000e+00> : vector<32xf32>
    %163 = vector.multi_reduction <add>, %162, %cst_57 [1] : vector<32x32xf32> to vector<32xf32>
    %164 = vector.shape_cast %163 : vector<32xf32> to vector<32x1xf32>
    %165 = tpu.reciprocal %164 {approx = true} : vector<32x1xf32> -> vector<32x1xf32>
    %166 = vector.broadcast %165 : vector<32x1xf32> to vector<32x32xf32>
    %167 = arith.mulf %162, %166 : vector<32x32xf32>
    %cst_58 = arith.constant dense<0.000000e+00> : vector<32x64xf32>
    %168 = tpu.matmul %167, %153, %cst_58 {dimension_numbers = #tpu.dot_dimension_numbers<[1], [0], [0], [1], [0, 0, 1, 1], [], []>} : vector<32x32xf32>, vector<32x64xf32>, vector<32x64xf32> -> vector<32x64xf32>
    %169 = arith.truncf %168 : vector<32x64xf32> to vector<32x64xbf16>
    %170 = vector.extract_strided_slice %39 {offsets = [320, 0], sizes = [64, 384], strides = [1, 1]} : vector<384x384xbf16> to vector<64x384xbf16>
    %cst_59 = arith.constant dense<0.000000e+00> : vector<32x384xf32>
    %171 = tpu.matmul %169, %170, %cst_59 {dimension_numbers = #tpu.dot_dimension_numbers<[1], [0], [0], [1], [0, 0, 1, 1], [], []>} : vector<32x64xbf16>, vector<64x384xbf16>, vector<32x384xf32> -> vector<32x384xf32>
    %172 = arith.addf %150, %171 : vector<32x384xf32>
    %173 = arith.addf %5, %172 : vector<32x384xf32>
    %c0_60 = arith.constant 0 : index
    %c0_61 = arith.constant 0 : index
    %c0_62 = arith.constant 0 : index
    %174 = vector.load %arg8[%c0_60, %c0_61, %c0_62] : memref<1x1x384xf32, #tpu.memory_space<vmem>>, vector<1x1x384xf32>
    %175 = vector.shape_cast %174 : vector<1x1x384xf32> to vector<1x384xf32>
    %176 = vector.broadcast %175 : vector<1x384xf32> to vector<32x384xf32>
    %177 = arith.addf %173, %176 : vector<32x384xf32>
    %c0_63 = arith.constant 0 : index
    %c0_64 = arith.constant 0 : index
    %c0_65 = arith.constant 0 : index
    %178 = vector.load %arg9[%c0_63, %c0_64, %c0_65] : memref<1x1x384xf32, #tpu.memory_space<vmem>>, vector<1x1x384xf32>
    %179 = vector.shape_cast %178 : vector<1x1x384xf32> to vector<1x384xf32>
    %c0_66 = arith.constant 0 : index
    %c0_67 = arith.constant 0 : index
    %c0_68 = arith.constant 0 : index
    %180 = vector.load %arg10[%c0_66, %c0_67, %c0_68] : memref<1x1x384xf32, #tpu.memory_space<vmem>>, vector<1x1x384xf32>
    %181 = vector.shape_cast %180 : vector<1x1x384xf32> to vector<1x384xf32>
    %cst_69 = arith.constant dense<0.000000e+00> : vector<32xf32>
    %182 = vector.multi_reduction <add>, %177, %cst_69 [1] : vector<32x384xf32> to vector<32xf32>
    %183 = vector.shape_cast %182 : vector<32xf32> to vector<32x1xf32>
    %cst_70 = arith.constant 3.840000e+02 : f32
    %184 = vector.broadcast %cst_70 : f32 to vector<32x1xf32>
    %185 = arith.divf %183, %184 : vector<32x1xf32>
    %186 = vector.broadcast %185 : vector<32x1xf32> to vector<32x384xf32>
    %187 = arith.subf %177, %186 : vector<32x384xf32>
    %188 = arith.mulf %187, %187 : vector<32x384xf32>
    %cst_71 = arith.constant dense<0.000000e+00> : vector<32xf32>
    %189 = vector.multi_reduction <add>, %188, %cst_71 [1] : vector<32x384xf32> to vector<32xf32>
    %190 = vector.shape_cast %189 : vector<32xf32> to vector<32x1xf32>
    %cst_72 = arith.constant 3.840000e+02 : f32
    %191 = vector.broadcast %cst_72 : f32 to vector<32x1xf32>
    %192 = arith.divf %190, %191 : vector<32x1xf32>
    %cst_73 = arith.constant 9.99999974E-6 : f32
    %193 = vector.broadcast %cst_73 : f32 to vector<32x1xf32>
    %194 = arith.addf %192, %193 : vector<32x1xf32>
    %195 = math.rsqrt %194 : vector<32x1xf32>
    %196 = vector.broadcast %195 : vector<32x1xf32> to vector<32x384xf32>
    %197 = arith.mulf %187, %196 : vector<32x384xf32>
    %198 = vector.broadcast %179 : vector<1x384xf32> to vector<32x384xf32>
    %199 = arith.mulf %197, %198 : vector<32x384xf32>
    %200 = vector.broadcast %181 : vector<1x384xf32> to vector<32x384xf32>
    %201 = arith.addf %199, %200 : vector<32x384xf32>
    %202 = arith.truncf %201 : vector<32x384xf32> to vector<32x384xbf16>
    %c0_74 = arith.constant 0 : index
    %c0_75 = arith.constant 0 : index
    %c0_76 = arith.constant 0 : index
    %203 = vector.load %arg11[%c0_74, %c0_75, %c0_76] : memref<1x384x1536xbf16, #tpu.memory_space<vmem>>, vector<1x384x1536xbf16>
    %204 = vector.shape_cast %203 : vector<1x384x1536xbf16> to vector<384x1536xbf16>
    %cst_77 = arith.constant dense<0.000000e+00> : vector<32x1536xf32>
    %205 = tpu.matmul %202, %204, %cst_77 {dimension_numbers = #tpu.dot_dimension_numbers<[1], [0], [0], [1], [0, 0, 1, 1], [], []>} : vector<32x384xbf16>, vector<384x1536xbf16>, vector<32x1536xf32> -> vector<32x1536xf32>
    %c0_78 = arith.constant 0 : index
    %c0_79 = arith.constant 0 : index
    %c0_80 = arith.constant 0 : index
    %206 = vector.load %arg12[%c0_78, %c0_79, %c0_80] : memref<1x1x1536xf32, #tpu.memory_space<vmem>>, vector<1x1x1536xf32>
    %207 = vector.shape_cast %206 : vector<1x1x1536xf32> to vector<1x1536xf32>
    %208 = vector.broadcast %207 : vector<1x1536xf32> to vector<32x1536xf32>
    %209 = arith.addf %205, %208 : vector<32x1536xf32>
    %cst_81 = arith.constant 5.000000e-01 : f32
    %210 = vector.broadcast %cst_81 : f32 to vector<32x1536xf32>
    %211 = arith.mulf %210, %209 : vector<32x1536xf32>
    %cst_82 = arith.constant 4.471500e-02 : f32
    %212 = vector.broadcast %cst_82 : f32 to vector<32x1536xf32>
    %213 = arith.mulf %212, %209 : vector<32x1536xf32>
    %214 = arith.mulf %213, %209 : vector<32x1536xf32>
    %215 = arith.mulf %214, %209 : vector<32x1536xf32>
    %216 = arith.addf %209, %215 : vector<32x1536xf32>
    %cst_83 = arith.constant 0.797884583 : f32
    %217 = vector.broadcast %cst_83 : f32 to vector<32x1536xf32>
    %218 = arith.mulf %217, %216 : vector<32x1536xf32>
    %219 = math.tanh %218 : vector<32x1536xf32>
    %cst_84 = arith.constant 1.000000e+00 : f32
    %220 = vector.broadcast %cst_84 : f32 to vector<32x1536xf32>
    %221 = arith.addf %220, %219 : vector<32x1536xf32>
    %222 = arith.mulf %211, %221 : vector<32x1536xf32>
    %223 = arith.truncf %222 : vector<32x1536xf32> to vector<32x1536xbf16>
    %c0_85 = arith.constant 0 : index
    %c0_86 = arith.constant 0 : index
    %c0_87 = arith.constant 0 : index
    %224 = vector.load %arg13[%c0_85, %c0_86, %c0_87] : memref<1x1536x384xbf16, #tpu.memory_space<vmem>>, vector<1x1536x384xbf16>
    %225 = vector.shape_cast %224 : vector<1x1536x384xbf16> to vector<1536x384xbf16>
    %cst_88 = arith.constant dense<0.000000e+00> : vector<32x384xf32>
    %226 = tpu.matmul %223, %225, %cst_88 {dimension_numbers = #tpu.dot_dimension_numbers<[1], [0], [0], [1], [0, 0, 1, 1], [], []>} : vector<32x1536xbf16>, vector<1536x384xbf16>, vector<32x384xf32> -> vector<32x384xf32>
    %c0_89 = arith.constant 0 : index
    %c0_90 = arith.constant 0 : index
    %c0_91 = arith.constant 0 : index
    %227 = vector.load %arg14[%c0_89, %c0_90, %c0_91] : memref<1x1x384xf32, #tpu.memory_space<vmem>>, vector<1x1x384xf32>
    %228 = vector.shape_cast %227 : vector<1x1x384xf32> to vector<1x384xf32>
    %229 = vector.broadcast %228 : vector<1x384xf32> to vector<32x384xf32>
    %230 = arith.addf %226, %229 : vector<32x384xf32>
    %231 = arith.addf %177, %230 : vector<32x384xf32>
    %c0_92 = arith.constant 0 : index
    %c0_93 = arith.constant 0 : index
    %232 = vector.load %arg15[%c0_92, %c0_93] : memref<32x384xf32, #tpu.memory_space<vmem>>, vector<32x384xf32>
    tpu.vector_store %arg15[%c0_92, %c0_93], %231 {strides = array<i32>} : memref<32x384xf32, #tpu.memory_space<vmem>>, vector<32x384xf32>,
    return
  }
  func.func @transform_0(%arg0: i32) -> (i32, i32) {
    %c0_i32 = arith.constant 0 : i32
    %c0_i32_0 = arith.constant 0 : i32
    %c0_i32_1 = arith.constant 0 : i32
    return %c0_i32, %c0_i32_0 : i32, i32
  }
  func.func @transform_1(%arg0: i32) -> (i32, i32) {
    %c0_i32 = arith.constant 0 : i32
    %c0_i32_0 = arith.constant 0 : i32
    %c0_i32_1 = arith.constant 0 : i32
    return %c0_i32, %c0_i32_0 : i32, i32
  }
  func.func @transform_2(%arg0: i32) -> (i32, i32) {
    %c0_i32 = arith.constant 0 : i32
    %c0_i32_0 = arith.constant 0 : i32
    %c0_i32_1 = arith.constant 0 : i32
    return %c0_i32, %c0_i32_0 : i32, i32
  }
  func.func @transform_3(%arg0: i32) -> (i32, i32, i32) {
    %c0_i32 = arith.constant 0 : i32
    %c0_i32_0 = arith.constant 0 : i32
    %c0_i32_1 = arith.constant 0 : i32
    return %arg0, %c0_i32, %c0_i32_0 : i32, i32, i32
  }
  func.func @transform_4(%arg0: i32) -> (i32, i32, i32) {
    %c0_i32 = arith.constant 0 : i32
    %c0_i32_0 = arith.constant 0 : i32
    %c0_i32_1 = arith.constant 0 : i32
    return %arg0, %c0_i32, %c0_i32_0 : i32, i32, i32
  }
  func.func @transform_5(%arg0: i32) -> (i32, i32, i32) {
    %c0_i32 = arith.constant 0 : i32
    %c0_i32_0 = arith.constant 0 : i32
    %c0_i32_1 = arith.constant 0 : i32
    return %arg0, %c0_i32, %c0_i32_0 : i32, i32, i32
  }
  func.func @transform_6(%arg0: i32) -> (i32, i32, i32) {
    %c0_i32 = arith.constant 0 : i32
    %c0_i32_0 = arith.constant 0 : i32
    %c0_i32_1 = arith.constant 0 : i32
    return %arg0, %c0_i32, %c0_i32_0 : i32, i32, i32
  }
  func.func @transform_7(%arg0: i32) -> (i32, i32, i32) {
    %c0_i32 = arith.constant 0 : i32
    %c0_i32_0 = arith.constant 0 : i32
    %c0_i32_1 = arith.constant 0 : i32
    return %arg0, %c0_i32, %c0_i32_0 : i32, i32, i32
  }
  func.func @transform_8(%arg0: i32) -> (i32, i32, i32) {
    %c0_i32 = arith.constant 0 : i32
    %c0_i32_0 = arith.constant 0 : i32
    %c0_i32_1 = arith.constant 0 : i32
    return %arg0, %c0_i32, %c0_i32_0 : i32, i32, i32
  }
  func.func @transform_9(%arg0: i32) -> (i32, i32, i32) {
    %c0_i32 = arith.constant 0 : i32
    %c0_i32_0 = arith.constant 0 : i32
    %c0_i32_1 = arith.constant 0 : i32
    return %arg0, %c0_i32, %c0_i32_0 : i32, i32, i32
  }
  func.func @transform_10(%arg0: i32) -> (i32, i32, i32) {
    %c0_i32 = arith.constant 0 : i32
    %c0_i32_0 = arith.constant 0 : i32
    %c0_i32_1 = arith.constant 0 : i32
    return %arg0, %c0_i32, %c0_i32_0 : i32, i32, i32
  }
  func.func @transform_11(%arg0: i32) -> (i32, i32, i32) {
    %c0_i32 = arith.constant 0 : i32
    %c0_i32_0 = arith.constant 0 : i32
    %c0_i32_1 = arith.constant 0 : i32
    return %arg0, %c0_i32, %c0_i32_0 : i32, i32, i32
  }
  func.func @transform_12(%arg0: i32) -> (i32, i32, i32) {
    %c0_i32 = arith.constant 0 : i32
    %c0_i32_0 = arith.constant 0 : i32
    %c0_i32_1 = arith.constant 0 : i32
    return %arg0, %c0_i32, %c0_i32_0 : i32, i32, i32
  }
  func.func @transform_13(%arg0: i32) -> (i32, i32, i32) {
    %c0_i32 = arith.constant 0 : i32
    %c0_i32_0 = arith.constant 0 : i32
    %c0_i32_1 = arith.constant 0 : i32
    return %arg0, %c0_i32, %c0_i32_0 : i32, i32, i32
  }
  func.func @transform_14(%arg0: i32) -> (i32, i32) {
    %c0_i32 = arith.constant 0 : i32
    %c0_i32_0 = arith.constant 0 : i32
    %c0_i32_1 = arith.constant 0 : i32
    return %c0_i32, %c0_i32_0 : i32, i32
  }
}

</mosaic_0001>

<bundles_post_ra>
// kernel: tpu_custom_call.1
= control target key start
LH: loop header
LB: loop body
LE: loop exit
PB: predicated region body
PF: predicated region fallthrough
CT: control target
= control target key end

     0   :  { %s18491_s0 = inlined_call_operand.hbm [shape: f32[32,384], index: 0, kind: input, shape index: {}]   ;;  %s18492_s1 = inlined_call_operand.hbm [shape: f32[32,384], index: 1, kind: input, shape index: {}]   ;;  %s18493_s2 = inlined_call_operand.hbm [shape: f32[32,32], index: 2, kind: input, shape index: {}]   ;;  %s18494_s3 = inlined_call_operand.hbm [shape: f32[12,1,384], index: 3, kind: input, shape index: {}]   ;;  %s18495_s4 = inlined_call_operand.hbm [shape: f32[12,1,384], index: 4, kind: input, shape index: {}]   ;;  %s18496_s5 = inlined_call_operand.hbm [shape: bf16[12,384,1152], index: 5, kind: input, shape index: {}]   ;;  %s18497_s6 = inlined_call_operand.hbm [shape: bf16[12,384,384], index: 6, kind: input, shape index: {}]   ;;  %s18498_s7 = inlined_call_operand.hbm [shape: f32[12,1,384], index: 7, kind: input, shape index: {}]   ;;  %s18499_s8 = inlined_call_operand.hbm [shape: f32[12,1,384], index: 8, kind: input, shape index: {}]   ;;  %s18500_s9 = inlined_call_operand.hbm [shape: f32[12,1,384], index: 9, kind: input, shape index: {}]   ;;  %s18501_s10 = inlined_call_operand.hbm [shape: bf16[12,384,1536], index: 10, kind: input, shape index: {}]   ;;  %s18502_s11 = inlined_call_operand.hbm [shape: f32[12,1,1536], index: 11, kind: input, shape index: {}]   ;;  %s18503_s12 = inlined_call_operand.hbm [shape: bf16[12,1536,384], index: 12, kind: input, shape index: {}]   ;;  %s18504_s13 = inlined_call_operand.hbm [shape: f32[12,1,384], index: 13, kind: input, shape index: {}]   ;;  %s18505_s14 = inlined_call_operand.hbm [shape: f32[32,384], index: 14, kind: output, shape index: {}]  }
   0x1   :  { %18563 = sst [smem:[#allocation60_spill]] %s18491_s0 }
   0x2   :  { %18564 = sst [smem:[#allocation61_spill]] %s18492_s1 }
   0x3   :  { %18565 = sst [smem:[#allocation62_spill]] %s18494_s3 }
   0x4   :  { %18566 = sst [smem:[#allocation63_spill]] %s18496_s5 }
   0x5   :  { %18567 = sst [smem:[#allocation64_spill]] %s18503_s12 }
   0x6   :  { %18568 = sst [smem:[#allocation65_spill]] %s18504_s13 }
   0x7   :  { %18569 = sst [smem:[#allocation66_spill]] %s18505_s14 }
   0x8   :  { %19 = vsyncpa [#allocation3], 0 }
   0x9   :  { %20 = vsyncpa [#allocation6], 0 }
   0xa   :  { %21 = vsyncpa [#allocation9], 0 }
   0xb   :  { %23 = vsyncpa [#allocation9 + $0x1], 0 }
   0xc   :  { %24 = vsyncpa [#allocation12], 0 }
   0xd   :  { %26 = vsyncpa [#allocation12 + $0x1], 0 }
   0xe   :  { %27 = vsyncpa [#allocation15], 0 }
   0xf   :  { %29 = vsyncpa [#allocation15 + $0x1], 0 }
  0x10   :  { %30 = vsyncpa [#allocation18], 0 }
  0x11   :  { %32 = vsyncpa [#allocation18 + $0x1], 0 }
  0x12   :  { %33 = vsyncpa [#allocation21], 0 }
  0x13   :  { %35 = vsyncpa [#allocation21 + $0x1], 0 }
  0x14   :  { %36 = vsyncpa [#allocation24], 0 }
  0x15   :  { %38 = vsyncpa [#allocation24 + $0x1], 0 }
  0x16   :  { %39 = vsyncpa [#allocation4], 0  ;;  %s15505_s29 = smov 0   ;;  %s15507_s30 = smov 0  }
  0x17   :  { %s15509_s15 = smov 0   ;;  %s15511_s16 = smov 0  }
  0x18 LB: > { %18570 = sst [smem:[#allocation35_spill]] %s15391_s30  ;;  %s15524_s17 = sadd.s32 4294967295, %s15399_s16   ;;  %s15399_s16 = sphi %s15511_s16, %s18666_s16   ;;  %s15395_s15 = sphi %s15509_s15, %s18669_s15   ;;  %s15391_s30 = sphi %s15507_s30, %s18668_s30   ;;  %s15387_s29 = sphi %s15505_s29, %s18667_s29  }
  0x19   : > { %18571 = sst [smem:[#allocation36_spill]] %s15395_s15  ;;  %s15527_s18 = sadd.s32 1, %s15399_s16  }
  0x1a   : > { %18572 = sst [smem:[#allocation37_spill]] %s15524_s17  ;;  %s112_s19 = ssub.s32 %s15399_s16, %s15527_s18 }
  0x1b   : > { %18573 = sst [smem:[#allocation38_spill]] %s15527_s18  ;;  %s115_s20 = sadd.s32 1, %s15395_s15 }
  0x1c   : > { %p113_p0 = scmp.eq.s32.totalorder %s112_s19, 0  ;;  %p122_p1 = scmp.ne.s32.totalorder %s15395_s15, %s15391_s30 }
  0x1d   : > { %p123_p2 = scmp.eq.s32.totalorder %s15399_s16, 0  ;;  %p128_p3 = scmp.ne.s32.totalorder %s15391_s30, %s15387_s29 }
  0x1e   : > { %s15537_s21 = scalar_select %p113_p0, %s15395_s15, %s115_s20  }
  0x1f   : > { %p15539_p4 = por %p123_p2, %p122_p1  ;;  %p18506_p5 = scmp.eq.s32.totalorder %s15524_s17, 0 }
  0x20   : > { %18574 = sst [smem:[#allocation39_spill]] %s15537_s21  ;;  %p11735_p6 = scmp.ge.s32.totalorder %s15399_s16, 1 }
  0x21   : > { %p420_p7 = scmp.lt.s32.totalorder %s15399_s16, 13  ;;  %p15548_p8 = por %p18506_p5, %p128_p3 }
  0x22   : > { %s15401_s25 = smov [#allocation5]   ;;  %p13430_p13 = scmp.lt.s32.totalorder %s15399_s16, 12 }
  0x23   : > { %s18576_s23 = scalar_select %p15548_p8, 1, 0 }
  0x24   : > { %p15553_p10 = pnand %p11735_p6, %p420_p7  ;;  %s445_s26 = sshll.u32 %s15401_s25, 4  ;;  %s446_s26 = int_to_ptr.vmem [resolvable:$true] %s445_s26 }
  0x25   : > { %18577 = sst [smem:[#allocation40_spill]] %s18576_s23  ;;  %s15567_s28 = sand.u32 1, %s15395_s15  }
  0x26   : > { %s18578_s24 = scalar_select %p15553_p10, 1, 0 }
  0x27   : > { %p13383_p11 = pneg %p15553_p10  ;;  %s15570_s29 = sand.u32 1, %s15399_s16  }
  0x28   : > { %18579 = sst [smem:[#allocation41_spill]] %s18578_s24  ;;  %p15574_p0 = pnand %p13430_p13, %p15539_p4 }
  0x29   : > { %p15561_p12 = pnand %p13383_p11, %p18506_p5  ;;  %s14934_s20 = scalar_lea.vmem %s446_s26, 1536 }
  0x2a   : > { %p14935_p2 = scmp.ne.s32.totalorder %s446_s26, %s14934_s20  ;;  %p14942_p7 = scmp.lt.s32.totalorder %s446_s26, %s446_s26 }
  0x2b   : > { %s18580_s27 = scalar_select %p15561_p12, 1, 0 }
  0x2c   : > { %p18520_p1 = pneg %p15561_p12  ;;  %p14943_p11 = scmp.lt.s32.totalorder %s14934_s20, %s14934_s20 }
  0x2e   : > { %p14937_p3 = pnand %p14935_p2, %p18520_p1  ;;  %p14944_p9 = por %p14943_p11, %p14942_p7 }
  0x30   : > { %p14938_p6 = pneg %p14937_p3 }
  0x32   : > { %p14945_p5 = pnand %p14944_p9, %p14938_p6 }
  0x34   : > { %14948 = shalt.err (!%p14945_p5)
}
  0x35   : > { %s18518_s25 = smov 384   ;;  %s18519_s22 = smov 24  }
  0x36   : > { %s18582_s1 = sld [smem:[#allocation61_spill]]  ;;  %s15592_s20 = smul.u32 3, %s15567_s28 }
  0x37   : > { %s15595_s18 = smul.u32 48, %s15399_s16  ;;  %s18583_s3 = sld [smem:[#allocation62_spill]] }
  0x38   : > { %s476_s24 = scalar_lea.vmem [#allocation8], %s15592_s20  ;;  %p15610_p5 = pneg %p15574_p0 }
  0x39   : > { %s484_s13 = sshll.u32 %s476_s24, 4  ;;  %s485_s13 = int_to_ptr.vmem [resolvable:$true] %s484_s13 }
  0x3c   : > { %13389 = dma.hbm_to_vmem [thread:$0]  (!%p15561_p12), %s18582_s1, 1536, %s446_s26, [#allocation6], %s18518_s25, %s18518_s25, %s18519_s22  }
  0x3d   : > { %s15602_s17 = scalar_lea.hbm %s18583_s3, %s15595_s18  ;;  %s14954_s25 = scalar_lea.hbm %s18583_s3, 576 }
  0x3e   : > { %s14949_s21 = scalar_lea.hbm %s15602_s17, 48  ;;  %p14955_p2 = scmp.lt.s32.totalorder %s15602_s17, %s18583_s3 }
  0x3f   : > { %p14950_p4 = scmp.ne.s32.totalorder %s15602_s17, %s14949_s21  ;;  %p14956_p3 = scmp.lt.s32.totalorder %s14954_s25, %s14949_s21 }
  0x41   : > { %p14952_p9 = pnand %p15610_p5, %p14950_p4  ;;  %p14957_p6 = por %p14956_p3, %p14955_p2 }
  0x43   : > { %p14953_p13 = pneg %p14952_p9 }
  0x45   : > { %p14958_p7 = pnand %p14957_p6, %p14953_p13 }
  0x47   : > { %14961 = shalt.err (!%p14958_p7)
}
  0x48   : > { %s14962_s24 = scalar_lea.vmem %s485_s13, 48  ;;  %s15404_s15 = smov [#allocation8]  }
  0x49   : > { %p14963_p11 = scmp.ne.s32.totalorder %s485_s13, %s14962_s24  ;;  %s14967_s1 = sshll.u32 %s15404_s15, 4  ;;  %s14968_s1 = int_to_ptr.vmem [resolvable:$false] %s14967_s1 }
  0x4a   : > { %s14969_s12 = scalar_lea.vmem %s14968_s1, 96  ;;  %p14970_p4 = scmp.lt.s32.totalorder %s485_s13, %s14968_s1 }
  0x4b   : > { %p14965_p1 = pnand %p14963_p11, %p15610_p5  ;;  %p14971_p9 = scmp.lt.s32.totalorder %s14969_s12, %s14962_s24 }
  0x4d   : > { %p14966_p8 = pneg %p14965_p1  ;;  %p14972_p10 = por %p14971_p9, %p14970_p4 }
  0x4f   : > { %p14973_p12 = pnand %p14972_p10, %p14966_p8 }
  0x51   : > { %14976 = shalt.err (!%p14973_p12)
}
  0x52   : > { %s18585_s14 = scalar_lea.sflag [#allocation9], %s15570_s29  ;;  %s13323_s25 = smul.u32 27648, %s15399_s16 }
  0x53   : > { %13396 = dma.hbm_to_vmem [thread:$0]  (!%p15574_p0), %s15602_s17, 48, %s485_s13, %s18585_s14  }
  0x54   : > { %s18586_s22 = smul.u32 1728, %s15567_s28  ;;  %s18587_s5 = sld [smem:[#allocation63_spill]] }
  0x55   : > { %s18527_s23 = scalar_lea.sflag [#allocation12], %s15570_s29 }
  0x56   : > { %s514_s15 = scalar_lea.vmem [#allocation11], %s18586_s22 }
  0x57   : > { %s521_s21 = sshll.u32 %s514_s15, 4  ;;  %s15633_s21 = int_to_ptr.vmem [resolvable:$true] %s521_s21 }
  0x5a   : > { %s15638_s30 = scalar_lea.hbm %s18587_s5, %s13323_s25  ;;  %s14982_s14 = scalar_lea.hbm %s18587_s5, 331776 }
  0x5b   : > { %s14977_s24 = scalar_lea.hbm %s15638_s30, 27648  ;;  %p14983_p1 = scmp.lt.s32.totalorder %s15638_s30, %s18587_s5 }
  0x5c   : > { %p14978_p8 = scmp.ne.s32.totalorder %s15638_s30, %s14977_s24  ;;  %p14984_p13 = scmp.lt.s32.totalorder %s14982_s14, %s14977_s24 }
  0x5e   : > { %p14980_p10 = pnand %p14978_p8, %p15610_p5  ;;  %p14985_p2 = por %p14984_p13, %p14983_p1 }
  0x60   : > { %p14981_p12 = pneg %p14980_p10 }
  0x62   : > { %p14986_p3 = pnand %p14985_p2, %p14981_p12 }
  0x64   : > { %14989 = shalt.err (!%p14986_p3)
}
  0x65   : > { %s14990_s25 = scalar_lea.vmem %s15633_s21, 27648  ;;  %s15405_s1 = smov [#allocation11]  }
  0x66   : > { %p14991_p6 = scmp.ne.s32.totalorder %s15633_s21, %s14990_s25  ;;  %s14995_s12 = sshll.u32 %s15405_s1, 4  ;;  %s14996_s12 = int_to_ptr.vmem [resolvable:$false] %s14995_s12 }
  0x67   : > { %s14997_s13 = scalar_lea.vmem %s14996_s12, 55296  ;;  %p14998_p4 = scmp.lt.s32.totalorder %s15633_s21, %s14996_s12 }
  0x68   : > { %p14993_p7 = pnand %p14991_p6, %p15610_p5  ;;  %p14999_p9 = scmp.lt.s32.totalorder %s14997_s13, %s14990_s25 }
  0x6a   : > { %p14994_p11 = pneg %p14993_p7  ;;  %p15000_p8 = por %p14999_p9, %p14998_p4 }
  0x6c   : > { %p15001_p10 = pnand %p15000_p8, %p14994_p11 }
  0x6e   : > { %15004 = shalt.err (!%p15001_p10)
}
  0x6f   : > { %s15406_s24 = smov 576   ;;  %s15407_s17 = smov 36  }
  0x70   : > { %13402 = dma.hbm_to_vmem [thread:$0]  (!%p15574_p0), %s15638_s30, 27648, %s15633_s21, %s18527_s23, %s15406_s24, %s15406_s24, %s15407_s17  }
  0x71   : > { %s15667_s15 = scalar_lea.hbm %s18498_s7, %s15595_s18  ;;  %s556_s25 = scalar_lea.vmem [#allocation14], %s15592_s20 }
  0x72   : > { %s564_s1 = sshll.u32 %s556_s25, 4  ;;  %s18526_s12 = scalar_lea.sflag [#allocation15], %s15570_s29  ;;  %s565_s1 = int_to_ptr.vmem [resolvable:$true] %s564_s1 }
  0x73   : > { %s15005_s13 = scalar_lea.hbm %s15667_s15, 48  ;;  %s15010_s21 = scalar_lea.hbm %s18498_s7, 576 }
  0x74   : > { %p15006_p12 = scmp.ne.s32.totalorder %s15667_s15, %s15005_s13  ;;  %p15011_p2 = scmp.lt.s32.totalorder %s15667_s15, %s18498_s7 }
  0x75   : > { %p15012_p3 = scmp.lt.s32.totalorder %s15010_s21, %s15005_s13 }
  0x76   : > { %p15008_p1 = pnand %p15006_p12, %p15610_p5 }
  0x77   : > { %p15013_p6 = por %p15012_p3, %p15011_p2 }
  0x78   : > { %p15009_p13 = pneg %p15008_p1 }
  0x7a   : > { %p15014_p7 = pnand %p15013_p6, %p15009_p13 }
  0x7c   : > { %15017 = shalt.err (!%p15014_p7)
}
  0x7d   : > { %s15018_s17 = scalar_lea.vmem %s565_s1, 48  ;;  %s15408_s14 = smov [#allocation14]  }
  0x7e   : > { %p15019_p11 = scmp.ne.s32.totalorder %s565_s1, %s15018_s17  ;;  %s15023_s22 = sshll.u32 %s15408_s14, 4  ;;  %s15024_s22 = int_to_ptr.vmem [resolvable:$false] %s15023_s22 }
  0x7f   : > { %s15025_s25 = scalar_lea.vmem %s15024_s22, 96  ;;  %p15026_p8 = scmp.lt.s32.totalorder %s565_s1, %s15024_s22 }
  0x80   : > { %p15021_p4 = pnand %p15019_p11, %p15610_p5  ;;  %p15027_p10 = scmp.lt.s32.totalorder %s15025_s25, %s15018_s17 }
  0x82   : > { %p15022_p9 = pneg %p15021_p4  ;;  %p15028_p12 = por %p15027_p10, %p15026_p8 }
  0x84   : > { %p15029_p1 = pnand %p15028_p12, %p15022_p9 }
  0x86   : > { %15032 = shalt.err (!%p15029_p1)
}
  0x87   : > { %13408 = dma.hbm_to_vmem [thread:$0]  (!%p15574_p0), %s15667_s15, 48, %s565_s1, %s18526_s12  }
  0x88   : > { %s15693_s13 = scalar_lea.hbm %s18500_s9, %s15595_s18  ;;  %s594_s21 = scalar_lea.vmem [#allocation17], %s15592_s20 }
  0x89   : > { %s602_s30 = sshll.u32 %s594_s21, 4  ;;  %s18528_s24 = scalar_lea.sflag [#allocation18], %s15570_s29  ;;  %s603_s30 = int_to_ptr.vmem [resolvable:$true] %s602_s30 }
  0x8a   : > { %s15033_s17 = scalar_lea.hbm %s15693_s13, 48  ;;  %s15038_s15 = scalar_lea.hbm %s18500_s9, 576 }
  0x8b   : > { %p15034_p13 = scmp.ne.s32.totalorder %s15693_s13, %s15033_s17  ;;  %p15039_p6 = scmp.lt.s32.totalorder %s15693_s13, %s18500_s9 }
  0x8c   : > { %p15040_p7 = scmp.lt.s32.totalorder %s15038_s15, %s15033_s17 }
  0x8d   : > { %p15036_p2 = pnand %p15034_p13, %p15610_p5 }
  0x8e   : > { %p15041_p11 = por %p15040_p7, %p15039_p6 }
  0x8f   : > { %p15037_p3 = pneg %p15036_p2 }
  0x91   : > { %p15042_p4 = pnand %p15041_p11, %p15037_p3 }
  0x93   : > { %15045 = shalt.err (!%p15042_p4)
}
  0x94   : > { %s15046_s3 = scalar_lea.vmem %s603_s30, 48  ;;  %s15409_s5 = smov [#allocation17]  }
  0x95   : > { %p15047_p9 = scmp.ne.s32.totalorder %s603_s30, %s15046_s3  ;;  %s15051_s21 = sshll.u32 %s15409_s5, 4  ;;  %s15052_s21 = int_to_ptr.vmem [resolvable:$false] %s15051_s21 }
  0x96   : > { %s15053_s12 = scalar_lea.vmem %s15052_s21, 96  ;;  %p15054_p12 = scmp.lt.s32.totalorder %s603_s30, %s15052_s21 }
  0x97   : > { %p15049_p8 = pnand %p15047_p9, %p15610_p5  ;;  %p15055_p1 = scmp.lt.s32.totalorder %s15053_s12, %s15046_s3 }
  0x99   : > { %p15050_p10 = pneg %p15049_p8  ;;  %p15056_p13 = por %p15055_p1, %p15054_p12 }
  0x9b   : > { %p15057_p2 = pnand %p15056_p13, %p15050_p10 }
  0x9d   : > { %15060 = shalt.err (!%p15057_p2)
}
  0x9e   : > { %13414 = dma.hbm_to_vmem [thread:$0]  (!%p15574_p0), %s15693_s13, 48, %s603_s30, %s18528_s24  }
  0x9f   : > { %s13334_s17 = smul.u32 12, %s15567_s28  ;;  %s15410_s22 = smov [#allocation2]  }
  0xa0   : > { %s13335_s14 = smul.u32 192, %s15399_s16  ;;  %s432_s15 = sshll.u32 %s15410_s22, 4  ;;  %s15717_s15 = int_to_ptr.vmem [resolvable:$true] %s432_s15 }
  0xa1   : > { %s634_s3 = scalar_lea.vmem [#allocation20], %s13334_s17  ;;  %s18529_s21 = scalar_lea.sflag [#allocation21], %s15570_s29 }
  0xa2   : > { %s15722_s25 = scalar_lea.hbm %s18502_s11, %s13335_s14  ;;  %s642_s5 = sshll.u32 %s634_s3, 4  ;;  %s643_s5 = int_to_ptr.vmem [resolvable:$true] %s642_s5 }
  0xa3   : > { %s15061_s23 = scalar_lea.hbm %s15722_s25, 192  ;;  %s15066_s22 = scalar_lea.hbm %s18502_s11, 2304 }
  0xa4   : > { %p15062_p3 = scmp.ne.s32.totalorder %s15722_s25, %s15061_s23  ;;  %p15067_p11 = scmp.lt.s32.totalorder %s15722_s25, %s18502_s11 }
  0xa5   : > { %p15068_p4 = scmp.lt.s32.totalorder %s15066_s22, %s15061_s23 }
  0xa6   : > { %p15064_p6 = pnand %p15062_p3, %p15610_p5 }
  0xa7   : > { %p15069_p9 = por %p15068_p4, %p15067_p11 }
  0xa8   : > { %p15065_p7 = pneg %p15064_p6 }
  0xaa   : > { %p15070_p8 = pnand %p15069_p9, %p15065_p7 }
  0xac   : > { %15073 = shalt.err (!%p15070_p8)
}
  0xad   : > { %s15074_s17 = scalar_lea.vmem %s643_s5, 192  ;;  %s15411_s14 = smov [#allocation20]  }
  0xae   : > { %p15075_p10 = scmp.ne.s32.totalorder %s643_s5, %s15074_s17  ;;  %s15079_s1 = sshll.u32 %s15411_s14, 4  ;;  %s15080_s1 = int_to_ptr.vmem [resolvable:$false] %s15079_s1 }
  0xaf   : > { %s15081_s3 = scalar_lea.vmem %s15080_s1, 384  ;;  %p15082_p13 = scmp.lt.s32.totalorder %s643_s5, %s15080_s1 }
  0xb0   : > { %p15077_p12 = pnand %p15075_p10, %p15610_p5  ;;  %p15083_p2 = scmp.lt.s32.totalorder %s15081_s3, %s15074_s17 }
  0xb2   : > { %p15078_p1 = pneg %p15077_p12  ;;  %p15084_p3 = por %p15083_p2, %p15082_p13 }
  0xb4   : > { %p15085_p6 = pnand %p15084_p3, %p15078_p1 }
  0xb6   : > { %15088 = shalt.err (!%p15085_p6)
}
  0xb7   : > { %13420 = dma.hbm_to_vmem [thread:$0]  (!%p15574_p0), %s15722_s25, 192, %s643_s5, %s18529_s21  }
  0xb8   : > { %s15100_s23 = scalar_lea.vmem %s15717_s15, 1536  ;;  %p18588_p11 = scmp.ne.s32.totalorder %s18580_s27, 0 }
  0xb9   : > { %p15101_p7 = scmp.ne.s32.totalorder %s15717_s15, %s15100_s23  ;;  %p15108_p10 = scmp.lt.s32.totalorder %s15717_s15, %s15717_s15 }
  0xba   : > { %p18589_p4 = pneg %p18588_p11  ;;  %p15109_p12 = scmp.lt.s32.totalorder %s15100_s23, %s15100_s23 }
  0xbc   : > { %p15103_p9 = pnand %p15101_p7, %p18589_p4  ;;  %p15110_p1 = por %p15109_p12, %p15108_p10 }
  0xbe   : > { %p15104_p8 = pneg %p15103_p9 }
  0xc0   : > { %p15111_p13 = pnand %p15110_p1, %p15104_p8 }
  0xc2   : > { %15114 = shalt.err (!%p15111_p13)
}
  0xc3   : > { %s18590_s24 = smov 24   ;;  %s18591_s13 = smov 384  }
  0xc4   : > { %s18592_s0 = sld [smem:[#allocation60_spill]]  ;;  %s15412_s5 = smov [#allocation7]  }
  0xc5   : > { %s458_s22 = sshll.u32 %s15412_s5, 4  ;;  %p18593_p3 = pmov %p18589_p4  ;;  %s459_s22 = int_to_ptr.vmem [resolvable:$true] %s458_s22 }
  0xc6   : > { %s15126_s12 = scalar_lea.vmem %s459_s22, 512  ;;  %p15134_p4 = scmp.lt.s32.totalorder %s459_s22, %s459_s22 }
  0xc7   : > { %p15127_p2 = scmp.ne.s32.totalorder %s459_s22, %s15126_s12  ;;  %p15135_p9 = scmp.lt.s32.totalorder %s15126_s12, %s15126_s12 }
  0xc9   : > { %p15129_p6 = pnand %p15127_p2, %p18593_p3  ;;  %p15136_p8 = por %p15135_p9, %p15134_p4 }
  0xca   : > { %13386 = dma.hbm_to_vmem [thread:$0]  (!%p18588_p11), %s18592_s0, 1536, %s15717_s15, [#allocation3], %s18591_s13, %s18591_s13, %s18590_s24  }
  0xcb   : > { %p15130_p7 = pneg %p15129_p6 }
  0xcd   : > { %p15137_p10 = pnand %p15136_p8, %p15130_p7 }
  0xcf   : > { %15140 = shalt.err (!%p15137_p10)
}
  0xd0   : > { %s15413_s17 = smov 128   ;;  %s15414_s15 = smov 8  }
  0xd1   : > { %13392 = dma.hbm_to_vmem [thread:$0]  (!%p18588_p11), %s18493_s2, 512, %s459_s22, [#allocation6], %s15413_s17, %s15413_s17, %s15414_s15  }
  0xd2   : > { %s15771_s24 = scalar_lea.hbm %s18495_s4, %s15595_s18  ;;  %s495_s13 = scalar_lea.vmem [#allocation10], %s15592_s20 }
  0xd3   : > { %s503_s30 = sshll.u32 %s495_s13, 4  ;;  %s13324_s25 = smul.u32 576, %s15567_s28  ;;  %s504_s30 = int_to_ptr.vmem [resolvable:$true] %s503_s30 }
  0xd4   : > { %s13325_s5 = smul.u32 9216, %s15399_s16  ;;  %s15141_s12 = scalar_lea.hbm %s15771_s24, 48 }
  0xd5   : > { %p15142_p12 = scmp.ne.s32.totalorder %s15771_s24, %s15141_s12  ;;  %s15146_s17 = scalar_lea.hbm %s18495_s4, 576 }
  0xd6   : > { %p15147_p11 = scmp.lt.s32.totalorder %s15771_s24, %s18495_s4  ;;  %p15148_p2 = scmp.lt.s32.totalorder %s15146_s17, %s15141_s12 }
  0xd7   : > { %p15144_p1 = pnand %p15142_p12, %p15610_p5 }
  0xd8   : > { %p15149_p3 = por %p15148_p2, %p15147_p11 }
  0xd9   : > { %p15145_p13 = pneg %p15144_p1 }
  0xdb   : > { %p15150_p6 = pnand %p15149_p3, %p15145_p13 }
  0xdd   : > { %15153 = shalt.err (!%p15150_p6)
}
  0xde   : > { %s15154_s1 = scalar_lea.vmem %s504_s30, 48  ;;  %s15415_s3 = smov [#allocation10]  }
  0xdf   : > { %p15155_p7 = scmp.ne.s32.totalorder %s504_s30, %s15154_s1  ;;  %s15159_s23 = sshll.u32 %s15415_s3, 4  ;;  %s15160_s23 = int_to_ptr.vmem [resolvable:$false] %s15159_s23 }
  0xe0   : > { %s15161_s13 = scalar_lea.vmem %s15160_s23, 96  ;;  %p15162_p8 = scmp.lt.s32.totalorder %s504_s30, %s15160_s23 }
  0xe1   : > { %p15157_p4 = pnand %p15155_p7, %p15610_p5  ;;  %p15163_p10 = scmp.lt.s32.totalorder %s15161_s13, %s15154_s1 }
  0xe3   : > { %p15158_p9 = pneg %p15157_p4  ;;  %p15164_p12 = por %p15163_p10, %p15162_p8 }
  0xe5   : > { %p15165_p1 = pnand %p15164_p12, %p15158_p9 }
  0xe7   : > { %15168 = shalt.err (!%p15165_p1)
}
  0xe8   : > { %s18594_s12 = scalar_lea.sflag [#allocation9], %s15570_s29  ;;  %s15797_s17 = scalar_lea.hbm %s18497_s6, %s13325_s5 }
  0xe9   : > { %13399 = dma.hbm_to_vmem [thread:$0]  (!%p15574_p0), %s15771_s24, 48, %s504_s30, %s18594_s12  }
  0xea   : > { %s535_s15 = scalar_lea.vmem [#allocation13], %s13324_s25  ;;  %s15169_s1 = scalar_lea.hbm %s15797_s17, 9216 }
  0xeb   : > { %s542_s14 = sshll.u32 %s535_s15, 4  ;;  %p15170_p13 = scmp.ne.s32.totalorder %s15797_s17, %s15169_s1  ;;  %s15799_s14 = int_to_ptr.vmem [resolvable:$true] %s542_s14 }
  0xec   : > { %s15174_s24 = scalar_lea.hbm %s18497_s6, 110592  ;;  %p15175_p3 = scmp.lt.s32.totalorder %s15797_s17, %s18497_s6 }
  0xed   : > { %p15172_p11 = pnand %p15170_p13, %p15610_p5  ;;  %p15176_p6 = scmp.lt.s32.totalorder %s15174_s24, %s15169_s1 }
  0xef   : > { %p15173_p2 = pneg %p15172_p11  ;;  %p15177_p7 = por %p15176_p6, %p15175_p3 }
  0xf1   : > { %p15178_p4 = pnand %p15177_p7, %p15173_p2 }
  0xf3   : > { %15181 = shalt.err (!%p15178_p4)
}
  0xf4   : > { %s15182_s25 = scalar_lea.vmem %s15799_s14, 9216  ;;  %s15416_s5 = smov [#allocation13]  }
  0xf5   : > { %p15183_p9 = scmp.ne.s32.totalorder %s15799_s14, %s15182_s25  ;;  %s15187_s12 = sshll.u32 %s15416_s5, 4  ;;  %s15188_s12 = int_to_ptr.vmem [resolvable:$false] %s15187_s12 }
  0xf6   : > { %s15189_s27 = scalar_lea.vmem %s15188_s12, 18432  ;;  %p15190_p12 = scmp.lt.s32.totalorder %s15799_s14, %s15188_s12 }
  0xf7   : > { %p15185_p8 = pnand %p15183_p9, %p15610_p5  ;;  %p15191_p1 = scmp.lt.s32.totalorder %s15189_s27, %s15182_s25 }
  0xf9   : > { %p15186_p10 = pneg %p15185_p8  ;;  %p15192_p13 = por %p15191_p1, %p15190_p12 }
  0xfb   : > { %p15193_p11 = pnand %p15192_p13, %p15186_p10 }
  0xfd   : > { %15196 = shalt.err (!%p15193_p11)
}
  0xfe   : > { %s18530_s22 = smov 192   ;;  %s18531_s15 = smov 12  }
  0xff   : > { %s18595_s1 = scalar_lea.sflag [#allocation12], %s15570_s29  ;;  %s15830_s24 = scalar_lea.hbm %s18499_s8, %s15595_s18 }
 0x100   : > { %13405 = dma.hbm_to_vmem [thread:$0]  (!%p15574_p0), %s15797_s17, 9216, %s15799_s14, %s18595_s1, %s18530_s22, %s18530_s22, %s18531_s15  }
 0x101   : > { %s575_s30 = scalar_lea.vmem [#allocation16], %s15592_s20  ;;  %s13332_s25 = smul.u32 2304, %s15567_s28 }
 0x102   : > { %s583_s13 = sshll.u32 %s575_s30, 4  ;;  %s13333_s5 = smul.u32 36864, %s15399_s16  ;;  %s584_s13 = int_to_ptr.vmem [resolvable:$true] %s583_s13 }
 0x103   : > { %s15197_s12 = scalar_lea.hbm %s15830_s24, 48  ;;  %s15202_s14 = scalar_lea.hbm %s18499_s8, 576 }
 0x104   : > { %p15198_p2 = scmp.ne.s32.totalorder %s15830_s24, %s15197_s12  ;;  %p15203_p7 = scmp.lt.s32.totalorder %s15830_s24, %s18499_s8 }
 0x105   : > { %p15204_p4 = scmp.lt.s32.totalorder %s15202_s14, %s15197_s12 }
 0x106   : > { %p15200_p3 = pnand %p15198_p2, %p15610_p5 }
 0x107   : > { %p15205_p9 = por %p15204_p4, %p15203_p7 }
 0x108   : > { %p15201_p6 = pneg %p15200_p3 }
 0x10a   : > { %p15206_p8 = pnand %p15205_p9, %p15201_p6 }
 0x10c   : > { %15209 = shalt.err (!%p15206_p8)
}
 0x10d   : > { %s15210_s23 = scalar_lea.vmem %s584_s13, 48  ;;  %s15419_s30 = smov [#allocation16]  }
 0x10e   : > { %p15211_p10 = scmp.ne.s32.totalorder %s584_s13, %s15210_s23  ;;  %s15215_s21 = sshll.u32 %s15419_s30, 4  ;;  %s15216_s21 = int_to_ptr.vmem [resolvable:$false] %s15215_s21 }
 0x10f   : > { %s15217_s22 = scalar_lea.vmem %s15216_s21, 96  ;;  %p15218_p13 = scmp.lt.s32.totalorder %s584_s13, %s15216_s21 }
 0x110   : > { %p15213_p12 = pnand %p15211_p10, %p15610_p5  ;;  %p15219_p11 = scmp.lt.s32.totalorder %s15217_s22, %s15210_s23 }
 0x112   : > { %p15214_p1 = pneg %p15213_p12  ;;  %p15220_p2 = por %p15219_p11, %p15218_p13 }
 0x114   : > { %p15221_p3 = pnand %p15220_p2, %p15214_p1 }
 0x116   : > { %15224 = shalt.err (!%p15221_p3)
}
 0x117   : > { %s18596_s12 = scalar_lea.sflag [#allocation15], %s15570_s29  ;;  %s15858_s14 = scalar_lea.hbm %s18501_s10, %s13333_s5 }
 0x118   : > { %13411 = dma.hbm_to_vmem [thread:$0]  (!%p15574_p0), %s15830_s24, 48, %s584_s13, %s18596_s12  }
 0x119   : > { %s613_s21 = scalar_lea.vmem [#allocation19], %s13332_s25  ;;  %s15225_s1 = scalar_lea.hbm %s15858_s14, 36864 }
 0x11a   : > { %s620_s22 = sshll.u32 %s613_s21, 4  ;;  %p15226_p6 = scmp.ne.s32.totalorder %s15858_s14, %s15225_s1  ;;  %s15862_s22 = int_to_ptr.vmem [resolvable:$true] %s620_s22 }
 0x11b   : > { %s15230_s3 = scalar_lea.hbm %s18501_s10, 442368  ;;  %p15231_p9 = scmp.lt.s32.totalorder %s15858_s14, %s18501_s10 }
 0x11c   : > { %p15228_p7 = pnand %p15226_p6, %p15610_p5  ;;  %p15232_p8 = scmp.lt.s32.totalorder %s15230_s3, %s15225_s1 }
 0x11e   : > { %p15229_p4 = pneg %p15228_p7  ;;  %p15233_p10 = por %p15232_p8, %p15231_p9 }
 0x120   : > { %p15234_p12 = pnand %p15233_p10, %p15229_p4 }
 0x122   : > { %15237 = shalt.err (!%p15234_p12)
}
 0x123   : > { %s15238_s12 = scalar_lea.vmem %s15862_s22, 36864  ;;  %s15420_s27 = smov [#allocation19]  }
 0x124   : > { %p15239_p1 = scmp.ne.s32.totalorder %s15862_s22, %s15238_s12  ;;  %s15243_s17 = sshll.u32 %s15420_s27, 4  ;;  %s15244_s17 = int_to_ptr.vmem [resolvable:$false] %s15243_s17 }
 0x125   : > { %s15245_s21 = scalar_lea.vmem %s15244_s17, 73728  ;;  %p15246_p2 = scmp.lt.s32.totalorder %s15862_s22, %s15244_s17 }
 0x126   : > { %p15241_p13 = pnand %p15239_p1, %p15610_p5  ;;  %p15247_p3 = scmp.lt.s32.totalorder %s15245_s21, %s15238_s12 }
 0x128   : > { %p15242_p11 = pneg %p15241_p13  ;;  %p15248_p6 = por %p15247_p3, %p15246_p2 }
 0x12a   : > { %p15249_p7 = pnand %p15248_p6, %p15242_p11 }
 0x12c   : > { %15252 = shalt.err (!%p15249_p7)
}
 0x12d   : > { %s15421_s1 = smov 768   ;;  %s15422_s24 = smov 48  }
 0x12e   : > { %s18597_s13 = scalar_lea.sflag [#allocation18], %s15570_s29  ;;  %s18598_s30 = sld [smem:[#allocation64_spill]] }
 0x12f   : > { %13417 = dma.hbm_to_vmem [thread:$0]  (!%p15574_p0), %s15858_s14, 36864, %s15862_s22, %s18597_s13, %s15421_s1, %s15421_s1, %s15422_s24  }
 0x130   : > { %s653_s17 = scalar_lea.vmem [#allocation22], %s13332_s25 }
 0x131   : > { %s660_s21 = sshll.u32 %s653_s17, 4  ;;  %s661_s21 = int_to_ptr.vmem [resolvable:$true] %s660_s21 }
 0x134   : > { %s18599_s27 = smov %s18598_s30  ;;  %s15891_s12 = scalar_lea.hbm %s18598_s30, %s13333_s5 }
 0x135   : > { %s15253_s15 = scalar_lea.hbm %s15891_s12, 36864  ;;  %s15258_s16 = scalar_lea.hbm %s18599_s27, 442368 }
 0x136   : > { %p15254_p4 = scmp.ne.s32.totalorder %s15891_s12, %s15253_s15  ;;  %p15259_p10 = scmp.lt.s32.totalorder %s15891_s12, %s18599_s27 }
 0x137   : > { %p15260_p12 = scmp.lt.s32.totalorder %s15258_s16, %s15253_s15 }
 0x138   : > { %p15256_p9 = pnand %p15254_p4, %p15610_p5 }
 0x139   : > { %p15261_p1 = por %p15260_p12, %p15259_p10 }
 0x13a   : > { %p15257_p8 = pneg %p15256_p9 }
 0x13c   : > { %p15262_p13 = pnand %p15261_p1, %p15257_p8 }
 0x13e   : > { %15265 = shalt.err (!%p15262_p13)
}
 0x13f   : > { %s15266_s25 = scalar_lea.vmem %s661_s21, 36864  ;;  %s15423_s5 = smov [#allocation22]  }
 0x140   : > { %p15267_p11 = scmp.ne.s32.totalorder %s661_s21, %s15266_s25  ;;  %s15271_s24 = sshll.u32 %s15423_s5, 4  ;;  %s15272_s24 = int_to_ptr.vmem [resolvable:$false] %s15271_s24 }
 0x141   : > { %s15273_s13 = scalar_lea.vmem %s15272_s24, 73728  ;;  %p15274_p6 = scmp.lt.s32.totalorder %s661_s21, %s15272_s24 }
 0x142   : > { %p15269_p2 = pnand %p15267_p11, %p15610_p5  ;;  %p15275_p7 = scmp.lt.s32.totalorder %s15273_s13, %s15266_s25 }
 0x144   : > { %p15270_p3 = pneg %p15269_p2  ;;  %p15276_p4 = por %p15275_p7, %p15274_p6 }
 0x146   : > { %p15277_p9 = pnand %p15276_p4, %p15270_p3 }
 0x148   : > { %15280 = shalt.err (!%p15277_p9)
}
 0x149   : > { %s18600_s0 = smov 12   ;;  %s18601_s15 = smov 192  }
 0x14a   : > { %s18602_s3 = scalar_lea.sflag [#allocation21], %s15570_s29  ;;  %s18603_s17 = sld [smem:[#allocation65_spill]] }
 0x14b   : > { %13423 = dma.hbm_to_vmem [thread:$0]  (!%p15574_p0), %s15891_s12, 36864, %s661_s21, %s18602_s3, %s18601_s15, %s18601_s15, %s18600_s0  }
 0x14c   : > { %s674_s16 = scalar_lea.vmem [#allocation23], %s15592_s20  ;;  %s671_s1 = scalar_lea.sflag [#allocation24], %s15567_s28 }
 0x14d   : > { %s682_s22 = sshll.u32 %s674_s16, 4  ;;  %s683_s22 = int_to_ptr.vmem [resolvable:$true] %s682_s22 }
 0x150   : > { %s15920_s14 = scalar_lea.hbm %s18603_s17, %s15595_s18  ;;  %s15286_s12 = scalar_lea.hbm %s18603_s17, 576 }
 0x151   : > { %s15281_s25 = scalar_lea.hbm %s15920_s14, 48  ;;  %p15287_p1 = scmp.lt.s32.totalorder %s15920_s14, %s18603_s17 }
 0x152   : > { %p15282_p8 = scmp.ne.s32.totalorder %s15920_s14, %s15281_s25  ;;  %p15288_p13 = scmp.lt.s32.totalorder %s15286_s12, %s15281_s25 }
 0x154   : > { %p15284_p10 = pnand %p15282_p8, %p15610_p5  ;;  %p15289_p11 = por %p15288_p13, %p15287_p1 }
 0x156   : > { %p15285_p12 = pneg %p15284_p10 }
 0x158   : > { %p15290_p2 = pnand %p15289_p11, %p15285_p12 }
 0x15a   : > { %15293 = shalt.err (!%p15290_p2)
}
 0x15b   : > { %s15294_s18 = scalar_lea.vmem %s683_s22, 48  ;;  %s15424_s28 = smov [#allocation23]  }
 0x15c   : > { %p15295_p3 = scmp.ne.s32.totalorder %s683_s22, %s15294_s18  ;;  %s15299_s20 = sshll.u32 %s15424_s28, 4  ;;  %s15300_s20 = int_to_ptr.vmem [resolvable:$false] %s15299_s20 }
 0x15d   : > { %s15301_s13 = scalar_lea.vmem %s15300_s20, 96  ;;  %p15302_p4 = scmp.lt.s32.totalorder %s683_s22, %s15300_s20 }
 0x15e   : > { %p15297_p6 = pnand %p15295_p3, %p15610_p5  ;;  %p15303_p9 = scmp.lt.s32.totalorder %s15301_s13, %s15294_s18 }
 0x160   : > { %p15298_p7 = pneg %p15297_p6  ;;  %p15304_p8 = por %p15303_p9, %p15302_p4 }
 0x162   : > { %p15305_p10 = pnand %p15304_p8, %p15298_p7 }
 0x164   : > { %15308 = shalt.err (!%p15305_p10)
}
 0x165   : > { %13426 = dma.hbm_to_vmem [thread:$0]  (!%p15574_p0), %s15920_s14, 48, %s683_s22, %s671_s1  }
 0x166   : > { %s18604_s0 = sld [smem:[#allocation41_spill]] }
 0x16c   : > { %p18605_p12 = scmp.ne.s32.totalorder %s18604_s0, 0 }
 0x16e   : > { %691 = sbr.rel (%p18605_p12) target bundleno = 6546 (0x1992), region = 76 }
 0x173   : > { %s18606_s15 = sld [smem:[#allocation37_spill]] }
 0x179   : > { %p18607_p1 = scmp.eq.s32.totalorder %s18606_s15, 0 }
 0x17b   : > { %15350 = dma.done.wait (%p18607_p1), [#allocation3], 1536   ;;  %p18608_p5 = pmov %p18607_p1 }
 0x17c   : > { %p18609_p13 = pmov %p18607_p1 }
 0x17d   : > { %15352 = vsyncadd (%p18608_p5), [#allocation3], 4294965760 }
 0x17e   : > { %15354 = dma.done.wait (%p18609_p13), [#allocation6], 2048   ;;  %p18610_p11 = pmov %p18607_p1 }
 0x17f   : > { %s18611_s26 = sld [smem:[#allocation35_spill]]  ;;  %s15951_s3 = sand.u32 1, %s18606_s15  }
 0x180   : > { %15356 = vsyncadd (%p18610_p11), [#allocation6], 4294965248  ;;  %s18612_s19 = sld [smem:[#allocation40_spill]]  ;;  %s706_s14 = scalar_lea.sflag [#allocation9], %s15951_s3 }
 0x185   : > { %s15954_s23 = sand.u32 1, %s18611_s26  }
 0x186   : > { %s15957_s30 = smul.u32 3, %s15954_s23  ;;  %p18613_p0 = scmp.ne.s32.totalorder %s18612_s19, 0 }
 0x188   : > { %s709_s16 = scalar_lea.vmem [#allocation8], %s15957_s30 }
 0x189   : > { %15358 = dma.done.wait (%p18613_p0), %s706_s14, 96  }
 0x18a   : > { %15360 = vsyncadd (%p18613_p0), %s706_s14, 4294967200  ;;  %s13341_s22 = smul.u32 1728, %s15954_s23  ;;  %s718_s1 = scalar_lea.vmem [#allocation10], %s15957_s30 }
 0x18b   : > { %s724_s25 = scalar_lea.sflag [#allocation12], %s15951_s3 }
 0x18c   : > { %s15968_s29 = scalar_lea.vmem [#allocation11], %s13341_s22 }
 0x18d   : > { %15362 = dma.done.wait (%p18613_p0), %s724_s25, 36864  }
 0x18e   : > { %15364 = vsyncadd (%p18613_p0), %s724_s25, 4294930432  ;;  %s13342_s5 = smul.u32 576, %s15954_s23  ;;  %s742_s21 = scalar_lea.sflag [#allocation15], %s15951_s3 }
 0x18f   : > { %s745_s24 = scalar_lea.vmem [#allocation14], %s15957_s30 }
 0x190   : > { %s15975_s12 = scalar_lea.vmem [#allocation13], %s13342_s5 }
 0x191   : > { %15366 = dma.done.wait (%p18613_p0), %s742_s21, 96  }
 0x192   : > { %15368 = vsyncadd (%p18613_p0), %s742_s21, 4294967200  ;;  %s754_s18 = scalar_lea.vmem [#allocation16], %s15957_s30  ;;  %s760_s28 = scalar_lea.sflag [#allocation18], %s15951_s3 }
 0x193   : > { %s763_s20 = scalar_lea.vmem [#allocation17], %s15957_s30 }
 0x194   : > { %15370 = dma.done.wait (%p18613_p0), %s760_s28, 36912  }
 0x195   : > { %15372 = vsyncadd (%p18613_p0), %s760_s28, 4294930384  ;;  %s13343_s13 = smul.u32 2304, %s15954_s23  ;;  %s778_s14 = scalar_lea.sflag [#allocation21], %s15951_s3 }
 0x196   : > { %s13344_s0 = smul.u32 12, %s15954_s23 }
 0x197   : > { %s15992_s26 = scalar_lea.vmem [#allocation19], %s13343_s13 }
 0x198   : > { %s15995_s22 = scalar_lea.vmem [#allocation20], %s13344_s0 }
 0x199   : > { %15374 = dma.done.wait (%p18613_p0), %s778_s14, 37056  }
 0x19a   : > { %15376 = vsyncadd (%p18613_p0), %s778_s14, 4294930240  ;;  %s16001_s25 = scalar_lea.vmem [#allocation22], %s13343_s13  ;;  %s796_s5 = scalar_lea.sflag [#allocation24], %s15954_s23 }
 0x19b   : > { %s799_s21 = scalar_lea.vmem [#allocation23], %s15957_s30 }
 0x19c   : > { %15378 = dma.done.wait (%p18613_p0), %s796_s5, 48  }
 0x19d   : > { %15380 = vsyncadd (%p18613_p0), %s796_s5, 4294967248  ;;  %p18614_p2 = scmp.ne.s32.totalorder %s18606_s15, 0 }
 0x19f   : > { %893 = sbr.rel (%p18614_p2) target bundleno = 427 (0x1ab), region = 136 }
 0x1a4   : > { %v894_v0 = vld [vmem:[#allocation2] sm:$0xff]  ;;  %v895_v1 = vld [vmem:[#allocation2 + $0x8] sm:$0xff]  ;;  %v896_v2 = vld [vmem:[#allocation2 + $0x10] sm:$0xff] }
 0x1a5   : > { %906 = vst [vmem:[#allocation25] sm:$0xff] %v894_v0  ;;  %907 = vst [vmem:[#allocation25 + $0x8] sm:$0xff] %v895_v1  ;;  %v897_v3 = vld [vmem:[#allocation2 + $0x18] sm:$0xff]  ;;  %v898_v4 = vld [vmem:[#allocation2 + $0x20] sm:$0xff] }
 0x1a6   : > { %908 = vst [vmem:[#allocation25 + $0x10] sm:$0xff] %v896_v2  ;;  %v899_v5 = vld [vmem:[#allocation2 + $0x28] sm:$0xff]  ;;  %909 = vst [vmem:[#allocation25 + $0x18] sm:$0xff] %v897_v3  ;;  %v900_v6 = vld [vmem:[#allocation2 + $0x30] sm:$0xff] }
 0x1a7   : > { %910 = vst [vmem:[#allocation25 + $0x20] sm:$0xff] %v898_v4  ;;  %911 = vst [vmem:[#allocation25 + $0x28] sm:$0xff] %v899_v5  ;;  %v901_v7 = vld [vmem:[#allocation2 + $0x38] sm:$0xff]  ;;  %v902_v8 = vld [vmem:[#allocation2 + $0x40] sm:$0xff] }
 0x1a8   : > { %912 = vst [vmem:[#allocation25 + $0x30] sm:$0xff] %v900_v6  ;;  %913 = vst [vmem:[#allocation25 + $0x38] sm:$0xff] %v901_v7  ;;  %v903_v9 = vld [vmem:[#allocation2 + $0x48] sm:$0xff]  ;;  %v904_v10 = vld [vmem:[#allocation2 + $0x50] sm:$0xff] }
 0x1a9   : > { %914 = vst [vmem:[#allocation25 + $0x40] sm:$0xff] %v902_v8  ;;  %v905_v11 = vld [vmem:[#allocation2 + $0x58] sm:$0xff]  ;;  %915 = vst [vmem:[#allocation25 + $0x48] sm:$0xff] %v903_v9 }
 0x1aa   : > { %916 = vst [vmem:[#allocation25 + $0x50] sm:$0xff] %v904_v10  ;;  %917 = vst [vmem:[#allocation25 + $0x58] sm:$0xff] %v905_v11 }
 0x1ab PF: > { %v930_v15 = vld [vmem:[#allocation5] sm:$0xff]  ;;  %v931_v16 = vld [vmem:[#allocation5 + $0x8] sm:$0xff]  ;;  %v932_v17 = vld [vmem:[#allocation5 + $0x10] sm:$0xff]  ;;  %vm3069_vm0 = vcmask 523264   ;;  %vm3187_vm1 = vcmask 261120   ;;  %s15426_s15 = smov 64  }
 0x1ac   : > { %v918_v12 = vld [vmem:[#allocation25] sm:$0xff]  ;;  %v919_v13 = vld [vmem:[#allocation25 + $0x8] sm:$0xff]  ;;  %v936_v24 = vld [vmem:[#allocation5 + $0x30] sm:$0xff]  ;;  %s18662_s19 = sld [smem:[#allocation37_spill]]  ;;  %s15427_s3 = smov [#allocation25]  }
 0x1ad   : > { %v920_v14 = vld [vmem:[#allocation25 + $0x10] sm:$0xff]  ;;  %v16011_v18 = vadd.f32 %v930_v15, %v918_v12  ;;  %v16013_v19 = vadd.f32 %v931_v16, %v919_v13  ;;  %v937_v25 = vld [vmem:[#allocation5 + $0x38] sm:$0xff]  ;;  %v938_v26 = vld [vmem:[#allocation5 + $0x40] sm:$0xff]  ;;  %s11435_s23 = sshll.u32 %s15427_s3, 4  ;;  %s11436_s23 = int_to_ptr.vmem [resolvable:$true] %s11435_s23 }
 0x1ae   : > { %v16015_v20 = vadd.f32 %v932_v17, %v920_v14  ;;  %v921_v31 = vld [vmem:[#allocation25 + $0x18] sm:$0xff]  ;;  %v922_v32 = vld [vmem:[#allocation25 + $0x20] sm:$0xff]  ;;  %v923_v33 = vld [vmem:[#allocation25 + $0x28] sm:$0xff]  ;;  %s15309_s30 = scalar_lea.vmem %s11436_s23, 1536  ;;  %p15316_p9 = scmp.lt.s32.totalorder %s11436_s23, %s11436_s23 }
 0x1af   : > { %18615 = vst [vmem:[#allocation42_spill] sm:$0xff] %v16011_v18  ;;  %18616 = vst [vmem:[#allocation43_spill] sm:$0xff] %v16013_v19  ;;  %v924_v21 = vld [vmem:[#allocation25 + $0x30] sm:$0xff]  ;;  %v925_v22 = vld [vmem:[#allocation25 + $0x38] sm:$0xff]  ;;  %v956_v27 = vadd.f32 %v16013_v19, %v16011_v18  ;;  %p15310_p6 = scmp.ne.s32.totalorder %s11436_s23, %s15309_s30  ;;  %p15317_p8 = scmp.lt.s32.totalorder %s15309_s30, %s15309_s30 }
 0x1b0   : > { %18617 = vst [vmem:[#allocation44_spill] sm:$0xff] %v16015_v20  ;;  %v926_v23 = vld [vmem:[#allocation25 + $0x40] sm:$0xff]  ;;  %v16019_v28 = vadd.f32 %v936_v24, %v924_v21  ;;  %v16021_v29 = vadd.f32 %v937_v25, %v925_v22  ;;  %v935_v36 = vld [vmem:[#allocation5 + $0x28] sm:$0xff]  ;;  %v940_v46 = vld [vmem:[#allocation5 + $0x50] sm:$0xff] }
 0x1b1   : > { %v16023_v30 = vadd.f32 %v938_v26, %v926_v23  ;;  %v933_v34 = vld [vmem:[#allocation5 + $0x18] sm:$0xff]  ;;  %v934_v35 = vld [vmem:[#allocation5 + $0x20] sm:$0xff]  ;;  %v957_v37 = vadd.f32 %v956_v27, %v16015_v20  ;;  %v928_v42 = vld [vmem:[#allocation25 + $0x50] sm:$0xff]  ;;  %v16032_v44 = vadd.f32 %v935_v36, %v923_v33  ;;  %p15318_p10 = por %p15317_p8, %p15316_p9 }
 0x1b2   : > { %18618 = vst [vmem:[#allocation45_spill] sm:$0xff] %v16019_v28  ;;  %18619 = vst [vmem:[#allocation46_spill] sm:$0xff] %v16021_v29  ;;  %v964_v38 = vadd.f32 %v16021_v29, %v16019_v28  ;;  %v16028_v39 = vadd.f32 %v933_v34, %v921_v31  ;;  %v16030_v40 = vadd.f32 %v934_v35, %v922_v32  ;;  %v927_v41 = vld [vmem:[#allocation25 + $0x48] sm:$0xff]  ;;  %v929_v43 = vld [vmem:[#allocation25 + $0x58] sm:$0xff]  ;;  %p13434_p3 = scmp.eq.s32.totalorder %s18662_s19, 11 }
 0x1b3   : > { %18620 = vst [vmem:[#allocation47_spill] sm:$0xff] %v16023_v30  ;;  %18623 = vst [vmem:[#allocation50_spill] sm:$0xff] %v16032_v44  ;;  %v939_v45 = vld [vmem:[#allocation5 + $0x48] sm:$0xff]  ;;  %v941_v47 = vld [vmem:[#allocation5 + $0x58] sm:$0xff]  ;;  %958 = vadd.xlane.f32.xlu0 %v957_v37  ;;  %v16039_v51 = vadd.f32 %v940_v46, %v928_v42 }
 0x1b4   : > { %18621 = vst [vmem:[#allocation48_spill] sm:$0xff] %v16028_v39  ;;  %18622 = vst [vmem:[#allocation49_spill] sm:$0xff] %v16030_v40  ;;  %v965_v48 = vadd.f32 %v964_v38, %v16023_v30  ;;  %v960_v49 = vadd.f32 %v16030_v40, %v16028_v39  ;;  %v16037_v50 = vadd.f32 %v939_v45, %v927_v41  ;;  %v13486_v56 = vld [vmem:[%s15968_s29 + $0x1fc] ss:$36 sps:$4 sm:$0xff]   ;;  %v13489_v58 = vld [vmem:[%s15968_s29 + $0x1b4] ss:$36 sps:$4 sm:$0xff]   ;;  %p15311_p7 = pnand %p15310_p6, %p13434_p3 }
 0x1b5   : > { %18625 = vst [vmem:[#allocation52_spill] sm:$0xff] %v16039_v51  ;;  %v16041_v52 = vadd.f32 %v941_v47, %v929_v43  ;;  %v13488_v57 = vld [vmem:[%s15968_s29 + $0x1f8] ss:$36 sps:$4 sm:$0xff]   ;;  %2447 = vmatprep.subr.bf16.mxu0 %v13486_v56  ;;  %v13491_v59 = vld [vmem:[%s15968_s29 + $0x1b0] ss:$36 sps:$4 sm:$0xff]  }
 0x1b6   : > { %18624 = vst [vmem:[#allocation51_spill] sm:$0xff] %v16037_v50  ;;  %966 = vadd.xlane.f32.xlu1 %v965_v48  ;;  %v961_v53 = vadd.f32 %v960_v49, %v16032_v44  ;;  %v968_v54 = vadd.f32 %v16039_v51, %v16037_v50  ;;  %2448 = vmatpush1.bf16.msra.mxu0 %v13488_v57  ;;  %v13492_v60 = vld [vmem:[%s15968_s29 + $0x16c] ss:$36 sps:$4 sm:$0xff]   ;;  %v13510_v62 = vld [vmem:[%s15968_s29 + $0x67c] ss:$36 sps:$4 sm:$0xff]   ;;  %p15312_p4 = pneg %p15311_p7 }
 0x1b7   : > { %18626 = vst [vmem:[#allocation53_spill] sm:$0xff] %v16041_v52  ;;  %2449 = vmatprep.subr.bf16.mxu0 %v13489_v58  ;;  %v13494_v61 = vld [vmem:[%s15968_s29 + $0x168] ss:$36 sps:$4 sm:$0xff]   ;;  %v13514_v0 = vld [vmem:[%s15968_s29 + $0x678] ss:$36 sps:$4 sm:$0xff]   ;;  %2500 = vmatprep.subr.bf16.mxu1 %v13510_v62 }
 0x1b8   : > { %962 = vadd.xlane.f32.xlu0 %v961_v53  ;;  %v969_v55 = vadd.f32 %v968_v54, %v16041_v52  ;;  %v13495_v63 = vld [vmem:[%s15968_s29 + $0x124] ss:$36 sps:$4 sm:$0xff]   ;;  %2501 = vmatpush1.bf16.msra.mxu1 %v13514_v0  ;;  %v13498_v2 = vld [vmem:[%s15968_s29 + $0xdc] ss:$36 sps:$4 sm:$0xff]   ;;  %v13501_v4 = vld [vmem:[%s15968_s29 + $0x94] ss:$36 sps:$4 sm:$0xff]   ;;  %p15319_p12 = pnand %p15318_p10, %p15312_p4 }
 0x1b9   : > { %v13497_v1 = vld [vmem:[%s15968_s29 + $0x120] ss:$36 sps:$4 sm:$0xff]   ;;  %v13500_v3 = vld [vmem:[%s15968_s29 + $0xd8] ss:$36 sps:$4 sm:$0xff]   ;;  %v13503_v5 = vld [vmem:[%s15968_s29 + $0x90] ss:$36 sps:$4 sm:$0xff]  }
 0x1ba   : > { %970 = vadd.xlane.f32.xlu1 %v969_v55  ;;  %2450 = vmatpush1.bf16.msra.mxu0 %v13491_v59  ;;  %v13504_v6 = vld [vmem:[%s15968_s29 + $0x4c] ss:$36 sps:$4 sm:$0xff]   ;;  %v13507_v8 = vld [vmem:[%s15968_s29 + $0x4] ss:$36 sps:$4 sm:$0xff]   ;;  %v13512_v10 = vld [vmem:[%s15968_s29 + $0x43c] ss:$36 sps:$4 sm:$0xff]  }
 0x1bb   : > { %2451 = vmatprep.subr.bf16.mxu0 %v13492_v60  ;;  %v13506_v7 = vld [vmem:[%s15968_s29 + $0x48] ss:$36 sps:$4 sm:$0xff]   ;;  %v13509_v9 = vld [vmem:[%s15968_s29] ss:$36 sps:$4 sm:$0xff]   ;;  %v13515_v11 = vld [vmem:[%s15968_s29 + $0x438] ss:$36 sps:$4 sm:$0xff]  }
 0x1bc   : > { %v13516_v0 = vld [vmem:[%s15968_s29 + $0x634] ss:$36 sps:$4 sm:$0xff]  }
 0x1bd   : > { %2502 = vmatprep.subr.bf16.mxu1 %v13516_v0 }
 0x1be   : > { %2452 = vmatpush1.bf16.msra.mxu0 %v13494_v61 }
 0x1bf   : > { %2453 = vmatprep.subr.bf16.mxu0 %v13495_v63 }
 0x1c2   : > { %2454 = vmatpush1.bf16.msra.mxu0 %v13497_v1  ;;  %v13518_v1 = vld [vmem:[%s15968_s29 + $0x3f4] ss:$36 sps:$4 sm:$0xff]  }
 0x1c3   : > { %2455 = vmatprep.subr.bf16.mxu0 %v13498_v2  ;;  %v13520_v2 = vld [vmem:[%s15968_s29 + $0x630] ss:$36 sps:$4 sm:$0xff]  }
 0x1c4   : > { %2503 = vmatpush1.bf16.msra.mxu1 %v13520_v2 }
 0x1c6   : > { %2456 = vmatpush1.bf16.msra.mxu0 %v13500_v3  ;;  %v13521_v3 = vld [vmem:[%s15968_s29 + $0x3f0] ss:$36 sps:$4 sm:$0xff]  }
 0x1c7   : > { %2457 = vmatprep.subr.bf16.mxu0 %v13501_v4  ;;  %v13522_v4 = vld [vmem:[%s15968_s29 + $0x5ec] ss:$36 sps:$4 sm:$0xff]  }
 0x1c8   : > { %2504 = vmatprep.subr.bf16.mxu1 %v13522_v4 }
 0x1ca   : > { %2458 = vmatpush1.bf16.msra.mxu0 %v13503_v5  ;;  %v13524_v5 = vld [vmem:[%s15968_s29 + $0x3ac] ss:$36 sps:$4 sm:$0xff]  }
 0x1cb   : > { %2459 = vmatprep.subr.bf16.mxu0 %v13504_v6  ;;  %v13526_v6 = vld [vmem:[%s15968_s29 + $0x5e8] ss:$36 sps:$4 sm:$0xff]  }
 0x1cc   : > { %2505 = vmatpush1.bf16.msra.mxu1 %v13526_v6 }
 0x1ce   : > { %2460 = vmatpush1.bf16.msra.mxu0 %v13506_v7  ;;  %v13527_v7 = vld [vmem:[%s15968_s29 + $0x3a8] ss:$36 sps:$4 sm:$0xff]  }
 0x1cf   : > { %2461 = vmatprep.subr.bf16.mxu0 %v13507_v8  ;;  %v13528_v8 = vld [vmem:[%s15968_s29 + $0x5a4] ss:$36 sps:$4 sm:$0xff]  }
 0x1d0   : > { %2506 = vmatprep.subr.bf16.mxu1 %v13528_v8 }
 0x1d2   : > { %2462 = vmatpush1.bf16.msra.mxu0 %v13509_v9  ;;  %v13530_v9 = vld [vmem:[%s15968_s29 + $0x364] ss:$36 sps:$4 sm:$0xff]  }
 0x1d3   : > { %2463 = vmatprep.subr.bf16.mxu0 %v13512_v10  ;;  %v13532_v10 = vld [vmem:[%s15968_s29 + $0x5a0] ss:$36 sps:$4 sm:$0xff]  }
 0x1d4   : > { %2507 = vmatpush1.bf16.msra.mxu1 %v13532_v10 }
 0x1d6   : > { %2464 = vmatpush2.bf16.msra.mxu0 %v13515_v11  ;;  %v13533_v11 = vld [vmem:[%s15968_s29 + $0x360] ss:$36 sps:$4 sm:$0xff]  }
 0x1d7   : > { %2465 = vmatprep.subr.bf16.mxu0 %v13518_v1 }
 0x1da   : > { %2466 = vmatpush2.bf16.msra.mxu0 %v13521_v3 }
 0x1db   : > { %2467 = vmatprep.subr.bf16.mxu0 %v13524_v5  ;;  %v954_v5 = vld [vmem:[%s709_s16] sm:$0x7] }
 0x1de   : > { %2468 = vmatpush2.bf16.msra.mxu0 %v13527_v7 }
 0x1df   : > { %2469 = vmatprep.subr.bf16.mxu0 %v13530_v9  ;;  %v955_v9 = vld [vmem:[%s718_s1] sm:$0x7] }
 0x1e2   : > { %2470 = vmatpush2.bf16.msra.mxu0 %v13533_v11 }
 0x23c   : > { %v959_v12 = vpop.xlane.xlu0 %958 }
 0x23d   : > { %v973_v13 = vmul.f32 0.0026041667, %v959_v12  ;;  %v13534_v12 = vld [vmem:[%s15968_s29 + $0x55c] ss:$36 sps:$4 sm:$0xff]  }
 0x23e   : > { %2508 = vmatprep.subr.bf16.mxu1 %v13534_v12 }
 0x23f   : > { %v967_v14 = vpop.xlane.xlu1 %966  ;;  %v16068_v15 = vsub.f32 %v16011_v18, %v973_v13  ;;  %v16071_v16 = vsub.f32 %v16013_v19, %v973_v13  ;;  %v16074_v21 = vsub.f32 %v16015_v20, %v973_v13  ;;  %v13536_v13 = vld [vmem:[%s15968_s29 + $0x31c] ss:$36 sps:$4 sm:$0xff]  }
 0x240   : > { %v975_v17 = vmul.f32 0.0026041667, %v967_v14  ;;  %v13538_v14 = vld [vmem:[%s15968_s29 + $0x558] ss:$36 sps:$4 sm:$0xff]   ;;  %2471 = vmatprep.subr.bf16.mxu0 %v13536_v13 }
 0x241   : > { %v963_v22 = vpop.xlane.xlu0 %962  ;;  %v989_v26 = vmul.f32 %v16068_v15, %v16068_v15  ;;  %v990_v31 = vmul.f32 %v16071_v16, %v16071_v16  ;;  %v991_v32 = vmul.f32 %v16074_v21, %v16074_v21  ;;  %2509 = vmatpush1.bf16.msra.mxu1 %v13538_v14 }
 0x242   : > { %v16077_v23 = vsub.f32 %v16019_v28, %v975_v17  ;;  %v16080_v24 = vsub.f32 %v16021_v29, %v975_v17  ;;  %v974_v25 = vmul.f32 0.0026041667, %v963_v22  ;;  %v16089_v33 = vsub.f32 %v16023_v30, %v975_v17  ;;  %v13539_v17 = vld [vmem:[%s15968_s29 + $0x318] ss:$36 sps:$4 sm:$0xff]  }
 0x243   : > { %v971_v27 = vpop.xlane.xlu1 %970  ;;  %v1001_v38 = vadd.f32 %v990_v31, %v989_v26  ;;  %v13540_v22 = vld [vmem:[%s15968_s29 + $0x514] ss:$36 sps:$4 sm:$0xff]   ;;  %2472 = vmatpush2.bf16.msra.mxu0 %v13539_v17  ;;  %v13546_v31 = vld [vmem:[%s15968_s29 + $0x4cc] ss:$36 sps:$4 sm:$0xff]  }
 0x244   : > { %v16092_v34 = vsub.f32 %v16028_v39, %v974_v25  ;;  %v16095_v35 = vsub.f32 %v16030_v40, %v974_v25  ;;  %v16098_v36 = vsub.f32 %v16032_v44, %v974_v25  ;;  %v976_v37 = vmul.f32 0.0026041667, %v971_v27  ;;  %v13542_v25 = vld [vmem:[%s15968_s29 + $0x2d4] ss:$36 sps:$4 sm:$0xff]   ;;  %2510 = vmatprep.subr.bf16.mxu1 %v13540_v22 }
 0x245   : > { %v995_v41 = vmul.f32 %v16077_v23, %v16077_v23  ;;  %v996_v42 = vmul.f32 %v16080_v24, %v16080_v24  ;;  %v997_v43 = vmul.f32 %v16089_v33, %v16089_v33  ;;  %v1002_v49 = vadd.f32 %v1001_v38, %v991_v32  ;;  %v13544_v26 = vld [vmem:[%s15968_s29 + $0x510] ss:$36 sps:$4 sm:$0xff]   ;;  %2473 = vmatprep.subr.bf16.mxu0 %v13542_v25  ;;  %v13551_v38 = vld [vmem:[%s15968_s29 + $0x288] ss:$36 sps:$4 sm:$0xff]  }
 0x246   : > { %v16107_v45 = vsub.f32 %v16037_v50, %v976_v37  ;;  %v16110_v46 = vsub.f32 %v16039_v51, %v976_v37  ;;  %v16113_v47 = vsub.f32 %v16041_v52, %v976_v37  ;;  %v992_v48 = vmul.f32 %v16092_v34, %v16092_v34  ;;  %v13545_v27 = vld [vmem:[%s15968_s29 + $0x2d0] ss:$36 sps:$4 sm:$0xff]   ;;  %v13550_v37 = vld [vmem:[%s15968_s29 + $0x4c8] ss:$36 sps:$4 sm:$0xff]   ;;  %2511 = vmatpush1.bf16.msra.mxu1 %v13544_v26 }
 0x247   : > { %v1009_v53 = vadd.f32 %v996_v42, %v995_v41  ;;  %v993_v54 = vmul.f32 %v16095_v35, %v16095_v35  ;;  %1003 = vadd.xlane.f32.xlu0 %v1002_v49  ;;  %v994_v58 = vmul.f32 %v16098_v36, %v16098_v36  ;;  %v13548_v32 = vld [vmem:[%s15968_s29 + $0x28c] ss:$36 sps:$4 sm:$0xff]   ;;  %v13552_v41 = vld [vmem:[%s15968_s29 + $0x484] ss:$36 sps:$4 sm:$0xff]   ;;  %v18532_v42 = vmov 0   ;;  %2474 = vmatpush2.bf16.msra.mxu0 %v13545_v27  ;;  %v16526_v28 = vld [vmem:[#allocation7] sm:$0xff] }
 0x248   : > { %v998_v55 = vmul.f32 %v16107_v45, %v16107_v45  ;;  %v999_v56 = vmul.f32 %v16110_v46, %v16110_v46  ;;  %v1000_v60 = vmul.f32 %v16113_v47, %v16113_v47  ;;  %2532 = vmatprep.mubr.bf16.mxu1 %v18532_v42  ;;  %2512 = vmatprep.subr.bf16.mxu1 %v13546_v31  ;;  %v13557_v49 = vld [vmem:[%s15968_s29 + $0x240] ss:$36 sps:$4 sm:$0xff]  }
 0x249   : > { %v1010_v57 = vadd.f32 %v1009_v53, %v997_v43  ;;  %v1005_v59 = vadd.f32 %v993_v54, %v992_v48  ;;  %v13554_v43 = vld [vmem:[%s15968_s29 + $0x244] ss:$36 sps:$4 sm:$0xff]   ;;  %2475 = vmatprep.subr.bf16.mxu0 %v13548_v32 }
 0x24a   : > { %v1013_v61 = vadd.f32 %v999_v56, %v998_v55  ;;  %v13556_v48 = vld [vmem:[%s15968_s29 + $0x480] ss:$36 sps:$4 sm:$0xff]   ;;  %2513 = vmatpush1.bf16.msra.mxu1 %v13550_v37 }
 0x24b   : > { %v1006_v62 = vadd.f32 %v1005_v59, %v994_v58  ;;  %1011 = vadd.xlane.f32.xlu0 %v1010_v57  ;;  %v13560_v53 = vld [vmem:[%s15968_s29 + $0x204] ss:$36 sps:$4 sm:$0xff]   ;;  %2476 = vmatpush2.bf16.msra.mxu0 %v13551_v38 }
 0x24c   : > { %v1014_v63 = vadd.f32 %v1013_v61, %v1000_v60  ;;  %2514 = vmatprep.subr.bf16.mxu1 %v13552_v41  ;;  %2477 = vmatprep.subr.bf16.mxu0 %v13554_v43  ;;  %v13563_v54 = vld [vmem:[%s15968_s29 + $0x684] ss:$36 sps:$4 sm:$0xff]  }
 0x24d   : > { %1007 = vadd.xlane.f32.xlu1 %v1006_v62  ;;  %v1042_v62 = vlaneseq }
 0x24e   : > { %2515 = vmatpush1.bf16.msra.mxu1 %v13556_v48 }
 0x24f   : > { %2478 = vmatpush2.bf16.msra.mxu0 %v13557_v49  ;;  %2553 = vmatprep.subr.bf16.mxu1 %v13560_v53  ;;  %v16158_v3 = vshrl.u32 %v1042_v62, 7 }
 0x250   : > { %2606 = vmatprep.subr.bf16.mxu0 %v13563_v54 }
 0x251   : > { %1015 = vadd.xlane.f32.xlu1 %v1014_v63  ;;  %18627 = vst [vmem:[#allocation54_spill] sm:$0xff] %v16158_v3  ;;  %v16163_v6 = vsub.s32 1, %v16158_v3  ;;  %v16166_v7 = vsub.s32 2, %v16158_v3  ;;  %v16169_v8 = vsub.s32 0, %v16158_v3 }
 0x253   : > { %18628 = vst [vmem:[#allocation55_spill] sm:$0xff] %v16163_v6  ;;  %18629 = vst [vmem:[#allocation56_spill] sm:$0xff] %v16166_v7  ;;  %v1049_v10 = vrot.slane %v954_v5, %v16163_v6  ;;  %v1053_v12 = vrot.slane %v954_v5, %v16166_v7  ;;  %v1045_v22 = vrot.slane %v954_v5, %v16169_v8  ;;  %v13569_v5 = vld [vmem:[%s15968_s29 + $0x63c] ss:$36 sps:$4 sm:$0xff]  }
 0x254   : > { %18630 = vst [vmem:[#allocation57_spill] sm:$0xff] %v16169_v8  ;;  %v1077_v26 = vrot.slane %v955_v9, %v16163_v6  ;;  %v1081_v32 = vrot.slane %v955_v9, %v16166_v7 }
 0x2d0   : > { %v1004_v55 = vpop.xlane.xlu0 %1003 }
 0x2d1   : > { %v1017_v56 = vmul.f32 0.0026041667, %v1004_v55 }
 0x2d3   : > { %v1021_v57 = vadd.f32 1e-05, %v1017_v56 }
 0x2d4   : > { %v1012_v59 = vpop.xlane.xlu0 %1011 }
 0x2d5   : > { %14710 = vrsqrt.f32 %v1021_v57  ;;  %v1019_v61 = vmul.f32 0.0026041667, %v1012_v59 }
 0x2d6   : > { %v1008_v58 = vpop.xlane.xlu1 %1007 }
 0x2d7   : > { %v1018_v60 = vmul.f32 0.0026041667, %v1008_v58  ;;  %v1023_v0 = vadd.f32 1e-05, %v1019_v61  ;;  %v13561_v61 = vld [vmem:[%s15968_s29 + $0x680] ss:$36 sps:$4 sm:$0xff]  }
 0x2d9   : > { %v1022_v63 = vadd.f32 1e-05, %v1018_v60  ;;  %v13558_v60 = vld [vmem:[%s15968_s29 + $0x200] ss:$36 sps:$4 sm:$0xff]  }
 0x2da   : > { %v1016_v1 = vpop.xlane.xlu1 %1015 }
 0x2db   : > { %14712 = vrsqrt.f32 %v1022_v63  ;;  %v1020_v2 = vmul.f32 0.0026041667, %v1016_v1 }
 0x2dc   : > { %14714 = vrsqrt.f32 %v1023_v0 }
 0x2dd   : > { %v1024_v4 = vadd.f32 1e-05, %v1020_v2 }
 0x2df   : > { %14716 = vrsqrt.f32 %v1024_v4 }
 0x2e2   : > { %v14711_v11 = vpop.eup %14710 }
 0x2e3   : > { %v1030_v13 = vmul.f32 %v14711_v11, %v16071_v16  ;;  %v1031_v14 = vmul.f32 %v14711_v11, %v16074_v21  ;;  %v1029_v17 = vmul.f32 %v14711_v11, %v16068_v15  ;;  %v1073_v15 = vrot.slane %v955_v9, %v16169_v8 }
 0x2e5   : > { %v1058_v25 = vmul.f32 %v1049_v10, %v1030_v13  ;;  %v1059_v31 = vmul.f32 %v1053_v12, %v1031_v14  ;;  %v1057_v21 = vmul.f32 %v1045_v22, %v1029_v17  ;;  %v13564_v13 = vld [vmem:[%s15968_s29 + $0x1b8] ss:$36 sps:$4 sm:$0xff]  }
 0x2e7   : > { %v1086_v49 = vadd.f32 %v1077_v26, %v1058_v25  ;;  %v1087_v55 = vadd.f32 %v1081_v32, %v1059_v31  ;;  %v13572_v25 = vld [vmem:[%s15968_s29 + $0x174] ss:$36 sps:$4 sm:$0xff]  }
 0x2e8   : > { %v14713_v27 = vpop.eup %14712  ;;  %v13575_v31 = vld [vmem:[%s15968_s29 + $0x5f4] ss:$36 sps:$4 sm:$0xff]  }
 0x2e9   : > { %v14715_v37 = vpop.eup %14714  ;;  %v1033_v38 = vmul.f32 %v14713_v27, %v16095_v35  ;;  %v1034_v41 = vmul.f32 %v14713_v27, %v16098_v36  ;;  %v1032_v16 = vmul.f32 %v14713_v27, %v16092_v34 }
 0x2ea   : > { %v1036_v43 = vmul.f32 %v14715_v37, %v16080_v24  ;;  %v1037_v35 = vmul.f32 %v14715_v37, %v16089_v33  ;;  %v1085_v24 = vadd.f32 %v1073_v15, %v1057_v21  ;;  %v1035_v63 = vmul.f32 %v14715_v37, %v16077_v23  ;;  %v13566_v33 = vld [vmem:[%s15968_s29 + $0x1bc] ss:$36 sps:$4 sm:$0xff]   ;;  %v13573_v37 = vld [vmem:[%s15968_s29 + $0x5f0] ss:$36 sps:$4 sm:$0xff]  }
 0x2eb   : > { %v1061_v48 = vmul.f32 %v1049_v10, %v1033_v38  ;;  %v1062_v53 = vmul.f32 %v1053_v12, %v1034_v41  ;;  %v1060_v56 = vmul.f32 %v1045_v22, %v1032_v16  ;;  %v13578_v16 = vld [vmem:[%s15968_s29 + $0x12c] ss:$36 sps:$4 sm:$0xff]  }
 0x2ec   : > { %v14717_v54 = vpop.eup %14716  ;;  %v1064_v57 = vmul.f32 %v1049_v10, %v1036_v43  ;;  %v1065_v11 = vmul.f32 %v1053_v12, %v1037_v35  ;;  %v1063_v14 = vmul.f32 %v1045_v22, %v1035_v63  ;;  %v13581_v21 = vld [vmem:[%s15968_s29 + $0x5ac] ss:$36 sps:$4 sm:$0xff]   ;;  %v13591_v35 = vld [vmem:[%s15968_s29 + $0x518] ss:$36 sps:$4 sm:$0xff]   ;;  %v13608_v63 = vld [vmem:[%s15968_s29 + $0x444] ss:$36 sps:$4 sm:$0xff]  }
 0x2ed   : > { %v1089_v36 = vadd.f32 %v1077_v26, %v1061_v48  ;;  %v1090_v34 = vadd.f32 %v1081_v32, %v1062_v53  ;;  %v1039_v58 = vmul.f32 %v14717_v54, %v16110_v46  ;;  %v1040_v59 = vmul.f32 %v14717_v54, %v16113_v47  ;;  %v13584_v48 = vld [vmem:[%s15968_s29 + $0xe4] ss:$36 sps:$4 sm:$0xff]  }
 0x2ee   : > { %v1088_v62 = vadd.f32 %v1073_v15, %v1060_v56  ;;  %v1038_v0 = vmul.f32 %v14717_v54, %v16107_v45  ;;  %v1092_v23 = vadd.f32 %v1077_v26, %v1064_v57  ;;  %v1091_v38 = vadd.f32 %v1073_v15, %v1063_v14  ;;  %v13582_v53 = vld [vmem:[%s15968_s29 + $0xe0] ss:$36 sps:$4 sm:$0xff]   ;;  %v13588_v57 = vld [vmem:[%s15968_s29 + $0x98] ss:$36 sps:$4 sm:$0xff]   ;;  %v13626_v14 = vld [vmem:[%s15968_s29 + $0x36c] ss:$36 sps:$4 sm:$0xff]  }
 0x2ef   : > { %v16193_v1 = vpack.c.bf16 %v1089_v36, %v1086_v49  ;;  %v16195_v2 = vpack.c.bf16 %v1090_v34, %v1087_v55  ;;  %v1067_v4 = vmul.f32 %v1049_v10, %v1039_v58  ;;  %v1068_v46 = vmul.f32 %v1053_v12, %v1040_v59  ;;  %v13567_v10 = vld [vmem:[%s15968_s29 + $0x638] ss:$36 sps:$4 sm:$0xff]   ;;  %v13587_v49 = vld [vmem:[%s15968_s29 + $0x564] ss:$36 sps:$4 sm:$0xff]   ;;  %v13594_v58 = vld [vmem:[%s15968_s29 + $0x50] ss:$36 sps:$4 sm:$0xff]  }
 0x2f0   : > { %v16199_v47 = vpack.c.bf16 %v1088_v62, %v1085_v24  ;;  %v1066_v9 = vmul.f32 %v1045_v22, %v1038_v0  ;;  %v13570_v22 = vld [vmem:[%s15968_s29 + $0x170] ss:$36 sps:$4 sm:$0xff]   ;;  %v13585_v54 = vld [vmem:[%s15968_s29 + $0x560] ss:$36 sps:$4 sm:$0xff]   ;;  %v13600_v24 = vld [vmem:[%s15968_s29 + $0x8] ss:$36 sps:$4 sm:$0xff]  }
 0x2f1   : > { %2479 = vmatprep.mubr.bf16.mxu0 %v16193_v1  ;;  %2533 = vmatmul.mubr.bf16.vlgmr.msra.gmra.mxu1 %v16195_v2  ;;  %v1095_v45 = vadd.f32 %v1077_v26, %v1067_v4  ;;  %v1096_v27 = vadd.f32 %v1081_v32, %v1068_v46  ;;  %v1093_v26 = vadd.f32 %v1081_v32, %v1065_v11  ;;  %v13576_v32 = vld [vmem:[%s15968_s29 + $0x128] ss:$36 sps:$4 sm:$0xff]   ;;  %v13590_v55 = vld [vmem:[%s15968_s29 + $0x9c] ss:$36 sps:$4 sm:$0xff]   ;;  %v13596_v36 = vld [vmem:[%s15968_s29 + $0x54] ss:$36 sps:$4 sm:$0xff]  }
 0x2f2   : > { %2554 = vmatpush1.bf16.msra.mxu1 %v13558_v60  ;;  %2480 = vmatmul.mubr.bf16.vlgmr.msra.gmra.mxu0 %v16199_v47  ;;  %v1094_v12 = vadd.f32 %v1073_v15, %v1066_v9  ;;  %v13579_v15 = vld [vmem:[%s15968_s29 + $0x5a8] ss:$36 sps:$4 sm:$0xff]   ;;  %v13593_v56 = vld [vmem:[%s15968_s29 + $0x51c] ss:$36 sps:$4 sm:$0xff]   ;;  %v13599_v34 = vld [vmem:[%s15968_s29 + $0x4d4] ss:$36 sps:$4 sm:$0xff]  }
 0x2f3   : > { %2607 = vmatpush1.bf16.msra.mxu0 %v13561_v61  ;;  %2555 = vmatprep.subr.bf16.mxu1 %v13566_v33  ;;  %v16206_v17 = vpack.c.bf16 %v1095_v45, %v1092_v23  ;;  %v16214_v41 = vpack.c.bf16 %v1096_v27, %v1093_v26  ;;  %v13597_v59 = vld [vmem:[%s15968_s29 + $0x4d0] ss:$36 sps:$4 sm:$0xff]   ;;  %v13603_v62 = vld [vmem:[%s15968_s29 + $0x488] ss:$36 sps:$4 sm:$0xff]   ;;  %v13606_v33 = vld [vmem:[%s15968_s29 + $0x440] ss:$36 sps:$4 sm:$0xff]  }
 0x2f4   : > { %2608 = vmatprep.subr.bf16.mxu0 %v13569_v5  ;;  %2542 = vmatprep.mubr.bf16.mxu1 %v18532_v42  ;;  %v16218_v43 = vpack.c.bf16 %v1094_v12, %v1091_v38  ;;  %v13602_v60 = vld [vmem:[%s15968_s29 + $0xc] ss:$36 sps:$4 sm:$0xff]   ;;  %v13614_v5 = vld [vmem:[%s15968_s29 + $0x3fc] ss:$36 sps:$4 sm:$0xff]   ;;  %v13617_v46 = vld [vmem:[%s15968_s29 + $0x1c4] ss:$36 sps:$4 sm:$0xff]  }
 0x2f5   : > { %2489 = vmatprep.mubr.bf16.mxu0 %v16206_v17  ;;  %v13605_v61 = vld [vmem:[%s15968_s29 + $0x48c] ss:$36 sps:$4 sm:$0xff]   ;;  %v13612_v9 = vld [vmem:[%s15968_s29 + $0x3f8] ss:$36 sps:$4 sm:$0xff]   ;;  %v13615_v23 = vld [vmem:[%s15968_s29 + $0x1c0] ss:$36 sps:$4 sm:$0xff]  }
 0x2f6   : > { %2556 = vmatpush1.bf16.msra.mxu1 %v13564_v13  ;;  %v13611_v0 = vld [vmem:[%s15968_s29 + $0x20c] ss:$36 sps:$4 sm:$0xff]   ;;  %v13620_v45 = vld [vmem:[%s15968_s29 + $0x3b4] ss:$36 sps:$4 sm:$0xff]   ;;  %v13623_v11 = vld [vmem:[%s15968_s29 + $0x17c] ss:$36 sps:$4 sm:$0xff]  }
 0x2f7   : > { %2609 = vmatpush1.bf16.msra.mxu0 %v13567_v10  ;;  %2557 = vmatprep.subr.bf16.mxu1 %v13572_v25  ;;  %v13609_v4 = vld [vmem:[%s15968_s29 + $0x208] ss:$36 sps:$4 sm:$0xff]   ;;  %v13618_v13 = vld [vmem:[%s15968_s29 + $0x3b0] ss:$36 sps:$4 sm:$0xff]   ;;  %v13621_v10 = vld [vmem:[%s15968_s29 + $0x178] ss:$36 sps:$4 sm:$0xff]  }
 0x2f8   : > { %2610 = vmatprep.subr.bf16.mxu0 %v13575_v31  ;;  %v13629_v25 = vld [vmem:[%s15968_s29 + $0x134] ss:$36 sps:$4 sm:$0xff]   ;;  %v13624_v27 = vld [vmem:[%s15968_s29 + $0x368] ss:$36 sps:$4 sm:$0xff]   ;;  %v13638_v38 = vld [vmem:[%s15968_s29 + $0x2dc] ss:$36 sps:$4 sm:$0xff]  }
 0x2f9   : > { %2543 = vmatmul.mubr.bf16.gmra.mxu1 %v16214_v41  ;;  %v13627_v31 = vld [vmem:[%s15968_s29 + $0x130] ss:$36 sps:$4 sm:$0xff]   ;;  %v13632_v12 = vld [vmem:[%s15968_s29 + $0x324] ss:$36 sps:$4 sm:$0xff]  }
 0x2fa   : > { %2558 = vmatpush1.bf16.msra.mxu1 %v13570_v22  ;;  %2490 = vmatmul.mubr.bf16.gmra.mxu0 %v16218_v43  ;;  %v13635_v26 = vld [vmem:[%s15968_s29 + $0xec] ss:$36 sps:$4 sm:$0xff]   ;;  %v13630_v22 = vld [vmem:[%s15968_s29 + $0x320] ss:$36 sps:$4 sm:$0xff]  }
 0x2fb   : > { %2585 = vmatprep.mubr.bf16.mxu1 %v16193_v1  ;;  %2611 = vmatpush1.bf16.msra.mxu0 %v13573_v37  ;;  %v13633_v37 = vld [vmem:[%s15968_s29 + $0xe8] ss:$36 sps:$4 sm:$0xff]  }
 0x2fc   : > { %2559 = vmatprep.subr.bf16.mxu1 %v13578_v16  ;;  %2612 = vmatprep.subr.bf16.mxu0 %v13581_v21  ;;  %v13641_v16 = vld [vmem:[%s15968_s29 + $0xa4] ss:$36 sps:$4 sm:$0xff]   ;;  %v13636_v21 = vld [vmem:[%s15968_s29 + $0x2d8] ss:$36 sps:$4 sm:$0xff]  }
 0x2fd   : > { %2638 = vmatprep.mubr.bf16.mxu0 %v18532_v42 }
 0x2fe   : > { %2560 = vmatpush1.bf16.msra.mxu1 %v13576_v32  ;;  %v13639_v32 = vld [vmem:[%s15968_s29 + $0xa0] ss:$36 sps:$4 sm:$0xff]  }
 0x2ff   : > { %2613 = vmatpush1.bf16.msra.mxu0 %v13579_v15  ;;  %2561 = vmatprep.subr.bf16.mxu1 %v13584_v48  ;;  %v13644_v15 = vld [vmem:[%s15968_s29 + $0x294] ss:$36 sps:$4 sm:$0xff]   ;;  %v13647_v48 = vld [vmem:[%s15968_s29 + $0x5c] ss:$36 sps:$4 sm:$0xff]  }
 0x300   : > { %2614 = vmatprep.subr.bf16.mxu0 %v13587_v49  ;;  %v13642_v49 = vld [vmem:[%s15968_s29 + $0x290] ss:$36 sps:$4 sm:$0xff]  }
 0x302   : > { %2562 = vmatpush1.bf16.msra.mxu1 %v13582_v53  ;;  %v13645_v53 = vld [vmem:[%s15968_s29 + $0x58] ss:$36 sps:$4 sm:$0xff]  }
 0x303   : > { %2615 = vmatpush1.bf16.msra.mxu0 %v13585_v54  ;;  %2563 = vmatprep.subr.bf16.mxu1 %v13590_v55  ;;  %v13650_v54 = vld [vmem:[%s15968_s29 + $0x24c] ss:$36 sps:$4 sm:$0xff]   ;;  %v13653_v55 = vld [vmem:[%s15968_s29 + $0x14] ss:$36 sps:$4 sm:$0xff]  }
 0x304   : > { %2616 = vmatprep.subr.bf16.mxu0 %v13593_v56  ;;  %v13648_v56 = vld [vmem:[%s15968_s29 + $0x248] ss:$36 sps:$4 sm:$0xff]  }
 0x306   : > { %2564 = vmatpush1.bf16.msra.mxu1 %v13588_v57  ;;  %v13651_v57 = vld [vmem:[%s15968_s29 + $0x10] ss:$36 sps:$4 sm:$0xff]  }
 0x307   : > { %2617 = vmatpush1.bf16.msra.mxu0 %v13591_v35  ;;  %2565 = vmatprep.subr.bf16.mxu1 %v13596_v36  ;;  %v13656_v35 = vld [vmem:[%s15968_s29 + $0x68c] ss:$36 sps:$4 sm:$0xff]  }
 0x308   : > { %2618 = vmatprep.subr.bf16.mxu0 %v13599_v34  ;;  %v13659_v36 = vld [vmem:[%s15968_s29 + $0x44c] ss:$36 sps:$4 sm:$0xff]  }
 0x309   : > { %v13654_v34 = vld [vmem:[%s15968_s29 + $0x688] ss:$36 sps:$4 sm:$0xff]  }
 0x30a   : > { %2566 = vmatpush1.bf16.msra.mxu1 %v13594_v58  ;;  %v13657_v58 = vld [vmem:[%s15968_s29 + $0x448] ss:$36 sps:$4 sm:$0xff]  }
 0x30b   : > { %2619 = vmatpush1.bf16.msra.mxu0 %v13597_v59  ;;  %2567 = vmatprep.subr.bf16.mxu1 %v13602_v60  ;;  %v13662_v59 = vld [vmem:[%s15968_s29 + $0x644] ss:$36 sps:$4 sm:$0xff]  }
 0x30c   : > { %2620 = vmatprep.subr.bf16.mxu0 %v13605_v61  ;;  %v13665_v60 = vld [vmem:[%s15968_s29 + $0x404] ss:$36 sps:$4 sm:$0xff]  }
 0x30d   : > { %v13660_v61 = vld [vmem:[%s15968_s29 + $0x640] ss:$36 sps:$4 sm:$0xff]  }
 0x30e   : > { %2568 = vmatpush1.bf16.msra.mxu1 %v13600_v24  ;;  %v13663_v24 = vld [vmem:[%s15968_s29 + $0x400] ss:$36 sps:$4 sm:$0xff]  }
 0x30f   : > { %2621 = vmatpush1.bf16.msra.mxu0 %v13603_v62  ;;  %2569 = vmatprep.subr.bf16.mxu1 %v13608_v63  ;;  %v13668_v62 = vld [vmem:[%s15968_s29 + $0x5fc] ss:$36 sps:$4 sm:$0xff]  }
 0x310   : > { %2659 = vmatprep.subr.bf16.mxu0 %v13611_v0  ;;  %v13671_v63 = vld [vmem:[%s15968_s29 + $0x3bc] ss:$36 sps:$4 sm:$0xff]  }
 0x311   : > { %v13666_v0 = vld [vmem:[%s15968_s29 + $0x5f8] ss:$36 sps:$4 sm:$0xff]  }
 0x312   : > { %2570 = vmatpush2.bf16.msra.mxu1 %v13606_v33  ;;  %2639 = vmatmul.mubr.bf16.vlgmr.msra.gmra.mxu0 %v16195_v2  ;;  %v13669_v33 = vld [vmem:[%s15968_s29 + $0x3b8] ss:$36 sps:$4 sm:$0xff]  }
 0x313   : > { %2660 = vmatpush1.bf16.msra.mxu0 %v13609_v4  ;;  %2571 = vmatprep.subr.bf16.mxu1 %v13614_v5  ;;  %v13674_v4 = vld [vmem:[%s15968_s29 + $0x5b4] ss:$36 sps:$4 sm:$0xff]  }
 0x314   : > { %2661 = vmatprep.subr.bf16.mxu0 %v13617_v46  ;;  %2648 = vmatprep.mubr.bf16.mxu0 %v18532_v42  ;;  %v13677_v5 = vld [vmem:[%s15968_s29 + $0x374] ss:$36 sps:$4 sm:$0xff]  }
 0x315   : > { %v13672_v46 = vld [vmem:[%s15968_s29 + $0x5b0] ss:$36 sps:$4 sm:$0xff]  }
 0x316   : > { %2572 = vmatpush2.bf16.msra.mxu1 %v13612_v9  ;;  %v13675_v9 = vld [vmem:[%s15968_s29 + $0x370] ss:$36 sps:$4 sm:$0xff]  }
 0x317   : > { %2662 = vmatpush1.bf16.msra.mxu0 %v13615_v23  ;;  %2573 = vmatprep.subr.bf16.mxu1 %v13620_v45  ;;  %v13680_v23 = vld [vmem:[%s15968_s29 + $0x56c] ss:$36 sps:$4 sm:$0xff]  }
 0x318   : > { %2663 = vmatprep.subr.bf16.mxu0 %v13623_v11  ;;  %v13683_v45 = vld [vmem:[%s15968_s29 + $0x32c] ss:$36 sps:$4 sm:$0xff]  }
 0x319   : > { %v13678_v11 = vld [vmem:[%s15968_s29 + $0x568] ss:$36 sps:$4 sm:$0xff]  }
 0x31a   : > { %2574 = vmatpush2.bf16.msra.mxu1 %v13618_v13  ;;  %2649 = vmatmul.mubr.bf16.gmra.mxu0 %v16214_v41  ;;  %v13681_v13 = vld [vmem:[%s15968_s29 + $0x328] ss:$36 sps:$4 sm:$0xff]  }
 0x31b   : > { %2664 = vmatpush1.bf16.msra.mxu0 %v13621_v10  ;;  %2691 = vmatprep.mubr.bf16.mxu0 %v16193_v1  ;;  %v13686_v10 = vld [vmem:[%s15968_s29 + $0x524] ss:$36 sps:$4 sm:$0xff]  }
 0x31c   : > { %2575 = vmatprep.subr.bf16.mxu1 %v13626_v14  ;;  %2665 = vmatprep.subr.bf16.mxu0 %v13629_v25  ;;  %v13689_v14 = vld [vmem:[%s15968_s29 + $0x2e4] ss:$36 sps:$4 sm:$0xff]  }
 0x31d   : > { %v13684_v25 = vld [vmem:[%s15968_s29 + $0x520] ss:$36 sps:$4 sm:$0xff]  }
 0x31e   : > { %2576 = vmatpush2.bf16.msra.mxu1 %v13624_v27  ;;  %v13687_v27 = vld [vmem:[%s15968_s29 + $0x2e0] ss:$36 sps:$4 sm:$0xff]  }
 0x31f   : > { %2666 = vmatpush1.bf16.msra.mxu0 %v13627_v31  ;;  %2577 = vmatprep.subr.bf16.mxu1 %v13632_v12  ;;  %v13692_v31 = vld [vmem:[%s15968_s29 + $0x4dc] ss:$36 sps:$4 sm:$0xff]  }
 0x320   : > { %2667 = vmatprep.subr.bf16.mxu0 %v13635_v26  ;;  %v13695_v12 = vld [vmem:[%s15968_s29 + $0x29c] ss:$36 sps:$4 sm:$0xff]  }
 0x321   : > { %v13690_v26 = vld [vmem:[%s15968_s29 + $0x4d8] ss:$36 sps:$4 sm:$0xff]  }
 0x322   : > { %2578 = vmatpush2.bf16.msra.mxu1 %v13630_v22  ;;  %v13693_v22 = vld [vmem:[%s15968_s29 + $0x298] ss:$36 sps:$4 sm:$0xff]  }
 0x323   : > { %2668 = vmatpush1.bf16.msra.mxu0 %v13633_v37  ;;  %2579 = vmatprep.subr.bf16.mxu1 %v13638_v38  ;;  %v13698_v37 = vld [vmem:[%s15968_s29 + $0x494] ss:$36 sps:$4 sm:$0xff]  }
 0x324   : > { %2669 = vmatprep.subr.bf16.mxu0 %v13641_v16  ;;  %v13701_v38 = vld [vmem:[%s15968_s29 + $0x254] ss:$36 sps:$4 sm:$0xff]  }
 0x325   : > { %v13696_v16 = vld [vmem:[%s15968_s29 + $0x490] ss:$36 sps:$4 sm:$0xff]  }
 0x326   : > { %2580 = vmatpush2.bf16.msra.mxu1 %v13636_v21  ;;  %v13699_v21 = vld [vmem:[%s15968_s29 + $0x250] ss:$36 sps:$4 sm:$0xff]  }
 0x327   : > { %2670 = vmatpush1.bf16.msra.mxu0 %v13639_v32  ;;  %2581 = vmatprep.subr.bf16.mxu1 %v13644_v15  ;;  %v13704_v32 = vld [vmem:[%s15968_s29 + $0x214] ss:$36 sps:$4 sm:$0xff]  }
 0x328   : > { %2671 = vmatprep.subr.bf16.mxu0 %v13647_v48  ;;  %v13707_v15 = vld [vmem:[%s15968_s29 + $0x694] ss:$36 sps:$4 sm:$0xff]  }
 0x329   : > { %v13702_v48 = vld [vmem:[%s15968_s29 + $0x210] ss:$36 sps:$4 sm:$0xff]  }
 0x32a   : > { %2582 = vmatpush2.bf16.msra.mxu1 %v13642_v49  ;;  %v13705_v49 = vld [vmem:[%s15968_s29 + $0x690] ss:$36 sps:$4 sm:$0xff]  }
 0x32b   : > { %2672 = vmatpush1.bf16.msra.mxu0 %v13645_v53  ;;  %2583 = vmatprep.subr.bf16.mxu1 %v13650_v54  ;;  %v13710_v53 = vld [vmem:[%s15968_s29 + $0x1cc] ss:$36 sps:$4 sm:$0xff]  }
 0x32c   : > { %2673 = vmatprep.subr.bf16.mxu0 %v13653_v55  ;;  %v13713_v54 = vld [vmem:[%s15968_s29 + $0x64c] ss:$36 sps:$4 sm:$0xff]  }
 0x32d   : > { %v13708_v55 = vld [vmem:[%s15968_s29 + $0x1c8] ss:$36 sps:$4 sm:$0xff]  }
 0x32e   : > { %2584 = vmatpush2.bf16.msra.mxu1 %v13648_v56  ;;  %v13711_v56 = vld [vmem:[%s15968_s29 + $0x648] ss:$36 sps:$4 sm:$0xff]  }
 0x32f   : > { %2674 = vmatpush1.bf16.msra.mxu0 %v13651_v57  ;;  %2712 = vmatprep.subr.bf16.mxu1 %v13656_v35  ;;  %v13716_v57 = vld [vmem:[%s15968_s29 + $0x184] ss:$36 sps:$4 sm:$0xff]  }
 0x330   : > { %2675 = vmatprep.subr.bf16.mxu0 %v13659_v36  ;;  %v13719_v35 = vld [vmem:[%s15968_s29 + $0x604] ss:$36 sps:$4 sm:$0xff]  }
 0x331   : > { %2586 = vmatmul.mubr.bf16.vlgmr.msra.gmra.mxu1 %v16199_v47  ;;  %v13714_v36 = vld [vmem:[%s15968_s29 + $0x180] ss:$36 sps:$4 sm:$0xff]  }
 0x332   : > { %2595 = vmatprep.mubr.bf16.mxu1 %v16206_v17  ;;  %2713 = vmatpush1.bf16.msra.mxu1 %v13654_v34  ;;  %v13717_v34 = vld [vmem:[%s15968_s29 + $0x600] ss:$36 sps:$4 sm:$0xff]  }
 0x333   : > { %2676 = vmatpush2.bf16.msra.mxu0 %v13657_v58  ;;  %2714 = vmatprep.subr.bf16.mxu1 %v13662_v59  ;;  %v13722_v58 = vld [vmem:[%s15968_s29 + $0x13c] ss:$36 sps:$4 sm:$0xff]  }
 0x334   : > { %2677 = vmatprep.subr.bf16.mxu0 %v13665_v60  ;;  %v13725_v59 = vld [vmem:[%s15968_s29 + $0x5bc] ss:$36 sps:$4 sm:$0xff]  }
 0x335   : > { %v13720_v60 = vld [vmem:[%s15968_s29 + $0x138] ss:$36 sps:$4 sm:$0xff]  }
 0x336   : > { %2715 = vmatpush1.bf16.msra.mxu1 %v13660_v61  ;;  %v13723_v61 = vld [vmem:[%s15968_s29 + $0x5b8] ss:$36 sps:$4 sm:$0xff]  }
 0x337   : > { %2678 = vmatpush2.bf16.msra.mxu0 %v13663_v24  ;;  %2716 = vmatprep.subr.bf16.mxu1 %v13668_v62  ;;  %v13728_v24 = vld [vmem:[%s15968_s29 + $0xf4] ss:$36 sps:$4 sm:$0xff]  }
 0x338   : > { %2679 = vmatprep.subr.bf16.mxu0 %v13671_v63  ;;  %v13731_v62 = vld [vmem:[%s15968_s29 + $0x574] ss:$36 sps:$4 sm:$0xff]  }
 0x339   : > { %2596 = vmatmul.mubr.bf16.gmra.mxu1 %v16218_v43  ;;  %v13726_v63 = vld [vmem:[%s15968_s29 + $0xf0] ss:$36 sps:$4 sm:$0xff]  }
 0x33a   : > { %2717 = vmatpush1.bf16.msra.mxu1 %v13666_v0  ;;  %2744 = vmatprep.mubr.bf16.mxu1 %v18532_v42  ;;  %v13729_v0 = vld [vmem:[%s15968_s29 + $0x570] ss:$36 sps:$4 sm:$0xff]  }
 0x33b   : > { %2680 = vmatpush2.bf16.msra.mxu0 %v13669_v33  ;;  %2718 = vmatprep.subr.bf16.mxu1 %v13674_v4  ;;  %v13734_v33 = vld [vmem:[%s15968_s29 + $0xac] ss:$36 sps:$4 sm:$0xff]  }
 0x33c   : > { %2681 = vmatprep.subr.bf16.mxu0 %v13677_v5  ;;  %v13737_v4 = vld [vmem:[%s15968_s29 + $0x52c] ss:$36 sps:$4 sm:$0xff]  }
 0x33d   : > { %v13732_v5 = vld [vmem:[%s15968_s29 + $0xa8] ss:$36 sps:$4 sm:$0xff]  }
 0x33e   : > { %2719 = vmatpush1.bf16.msra.mxu1 %v13672_v46  ;;  %v13735_v46 = vld [vmem:[%s15968_s29 + $0x528] ss:$36 sps:$4 sm:$0xff]  }
 0x33f   : > { %2682 = vmatpush2.bf16.msra.mxu0 %v13675_v9  ;;  %2720 = vmatprep.subr.bf16.mxu1 %v13680_v23  ;;  %v13740_v9 = vld [vmem:[%s15968_s29 + $0x64] ss:$36 sps:$4 sm:$0xff]  }
 0x340   : > { %2683 = vmatprep.subr.bf16.mxu0 %v13683_v45  ;;  %v13743_v23 = vld [vmem:[%s15968_s29 + $0x4e4] ss:$36 sps:$4 sm:$0xff]  }
 0x341   : > { %v13738_v45 = vld [vmem:[%s15968_s29 + $0x60] ss:$36 sps:$4 sm:$0xff]  }
 0x342   : > { %2721 = vmatpush1.bf16.msra.mxu1 %v13678_v11  ;;  %v13741_v11 = vld [vmem:[%s15968_s29 + $0x4e0] ss:$36 sps:$4 sm:$0xff]  }
 0x343   : > { %2684 = vmatpush2.bf16.msra.mxu0 %v13681_v13  ;;  %2722 = vmatprep.subr.bf16.mxu1 %v13686_v10  ;;  %v13746_v13 = vld [vmem:[%s15968_s29 + $0x1c] ss:$36 sps:$4 sm:$0xff]  }
 0x344   : > { %2685 = vmatprep.subr.bf16.mxu0 %v13689_v14  ;;  %v13749_v10 = vld [vmem:[%s15968_s29 + $0x49c] ss:$36 sps:$4 sm:$0xff]  }
 0x345   : > { %v13744_v14 = vld [vmem:[%s15968_s29 + $0x18] ss:$36 sps:$4 sm:$0xff]  }
 0x346   : > { %2723 = vmatpush1.bf16.msra.mxu1 %v13684_v25  ;;  %v13747_v25 = vld [vmem:[%s15968_s29 + $0x498] ss:$36 sps:$4 sm:$0xff]  }
 0x347   : > { %2686 = vmatpush2.bf16.msra.mxu0 %v13687_v27  ;;  %2724 = vmatprep.subr.bf16.mxu1 %v13692_v31  ;;  %v13752_v27 = vld [vmem:[%s15968_s29 + $0x454] ss:$36 sps:$4 sm:$0xff]  }
 0x348   : > { %2687 = vmatprep.subr.bf16.mxu0 %v13695_v12  ;;  %v13753_v31 = vld [vmem:[%s15968_s29 + $0x458] ss:$36 sps:$4 sm:$0xff]   ;;  %v13750_v12 = vld [vmem:[%s15968_s29 + $0x450] ss:$36 sps:$4 sm:$0xff]  }
 0x34a   : > { %2725 = vmatpush1.bf16.msra.mxu1 %v13690_v26  ;;  %v13754_v26 = vld [vmem:[%s15968_s29 + $0x218] ss:$36 sps:$4 sm:$0xff]  }
 0x34b   : > { %2688 = vmatpush2.bf16.msra.mxu0 %v13693_v22  ;;  %2726 = vmatprep.subr.bf16.mxu1 %v13698_v37  ;;  %v13757_v22 = vld [vmem:[%s15968_s29 + $0x40c] ss:$36 sps:$4 sm:$0xff]  }
 0x34c   : > { %2689 = vmatprep.subr.bf16.mxu0 %v13701_v38  ;;  %v13758_v37 = vld [vmem:[%s15968_s29 + $0x410] ss:$36 sps:$4 sm:$0xff]   ;;  %v13755_v38 = vld [vmem:[%s15968_s29 + $0x408] ss:$36 sps:$4 sm:$0xff]  }
 0x34e   : > { %2727 = vmatpush1.bf16.msra.mxu1 %v13696_v16  ;;  %v13759_v16 = vld [vmem:[%s15968_s29 + $0x1d0] ss:$36 sps:$4 sm:$0xff]  }
 0x34f   : > { %2690 = vmatpush2.bf16.msra.mxu0 %v13699_v21  ;;  %2765 = vmatprep.subr.bf16.mxu1 %v13704_v32  ;;  %v13762_v21 = vld [vmem:[%s15968_s29 + $0x3c4] ss:$36 sps:$4 sm:$0xff]  }
 0x350   : > { %2818 = vmatprep.subr.bf16.mxu0 %v13707_v15  ;;  %v13763_v32 = vld [vmem:[%s15968_s29 + $0x3c8] ss:$36 sps:$4 sm:$0xff]   ;;  %v13760_v15 = vld [vmem:[%s15968_s29 + $0x3c0] ss:$36 sps:$4 sm:$0xff]  }
 0x351   : > { %2745 = vmatmul.mubr.bf16.vlgmr.msra.gmra.mxu1 %v16195_v2 }
 0x352   : > { %2692 = vmatmul.mubr.bf16.vlgmr.msra.gmra.mxu0 %v16199_v47  ;;  %2766 = vmatpush1.bf16.msra.mxu1 %v13702_v48  ;;  %v13764_v48 = vld [vmem:[%s15968_s29 + $0x188] ss:$36 sps:$4 sm:$0xff]  }
 0x353   : > { %2701 = vmatprep.mubr.bf16.mxu0 %v16206_v17  ;;  %2819 = vmatpush1.bf16.msra.mxu0 %v13705_v49  ;;  %v13767_v49 = vld [vmem:[%s15968_s29 + $0x37c] ss:$36 sps:$4 sm:$0xff]  }
 0x354   : > { %2767 = vmatprep.subr.bf16.mxu1 %v13710_v53  ;;  %2820 = vmatprep.subr.bf16.mxu0 %v13713_v54  ;;  %v13768_v53 = vld [vmem:[%s15968_s29 + $0x380] ss:$36 sps:$4 sm:$0xff]   ;;  %v13765_v54 = vld [vmem:[%s15968_s29 + $0x378] ss:$36 sps:$4 sm:$0xff]  }
 0x355   : > { %2754 = vmatprep.mubr.bf16.mxu1 %v18532_v42 }
 0x356   : > { %2768 = vmatpush1.bf16.msra.mxu1 %v13708_v55  ;;  %v13769_v55 = vld [vmem:[%s15968_s29 + $0x140] ss:$36 sps:$4 sm:$0xff]  }
 0x357   : > { %2821 = vmatpush1.bf16.msra.mxu0 %v13711_v56  ;;  %2769 = vmatprep.subr.bf16.mxu1 %v13716_v57  ;;  %v13772_v56 = vld [vmem:[%s15968_s29 + $0x334] ss:$36 sps:$4 sm:$0xff]  }
 0x358   : > { %2822 = vmatprep.subr.bf16.mxu0 %v13719_v35  ;;  %v13773_v57 = vld [vmem:[%s15968_s29 + $0x338] ss:$36 sps:$4 sm:$0xff]   ;;  %v13770_v35 = vld [vmem:[%s15968_s29 + $0x330] ss:$36 sps:$4 sm:$0xff]  }
 0x359   : > { %2755 = vmatmul.mubr.bf16.gmra.mxu1 %v16214_v41 }
 0x35a   : > { %2702 = vmatmul.mubr.bf16.gmra.mxu0 %v16218_v43  ;;  %2770 = vmatpush1.bf16.msra.mxu1 %v13714_v36  ;;  %v13774_v36 = vld [vmem:[%s15968_s29 + $0xf8] ss:$36 sps:$4 sm:$0xff]  }
 0x35b   : > { %2797 = vmatprep.mubr.bf16.mxu1 %v16193_v1  ;;  %2823 = vmatpush1.bf16.msra.mxu0 %v13717_v34  ;;  %v13777_v34 = vld [vmem:[%s15968_s29 + $0x2ec] ss:$36 sps:$4 sm:$0xff]  }
 0x35c   : > { %2771 = vmatprep.subr.bf16.mxu1 %v13722_v58  ;;  %2824 = vmatprep.subr.bf16.mxu0 %v13725_v59  ;;  %v13778_v58 = vld [vmem:[%s15968_s29 + $0x2f0] ss:$36 sps:$4 sm:$0xff]  }
 0x35d   : > { %2850 = vmatprep.mubr.bf16.mxu0 %v18532_v42  ;;  %v13779_v59 = vld [vmem:[%s15968_s29 + $0xb0] ss:$36 sps:$4 sm:$0xff]  }
 0x35e   : > { %2772 = vmatpush1.bf16.msra.mxu1 %v13720_v60  ;;  %v13782_v60 = vld [vmem:[%s15968_s29 + $0x2a4] ss:$36 sps:$4 sm:$0xff]  }
 0x35f   : > { %2825 = vmatpush1.bf16.msra.mxu0 %v13723_v61  ;;  %2773 = vmatprep.subr.bf16.mxu1 %v13728_v24  ;;  %v13783_v61 = vld [vmem:[%s15968_s29 + $0x2a8] ss:$36 sps:$4 sm:$0xff]   ;;  %v13780_v24 = vld [vmem:[%s15968_s29 + $0x2a0] ss:$36 sps:$4 sm:$0xff]  }
 0x360   : > { %2826 = vmatprep.subr.bf16.mxu0 %v13731_v62  ;;  %v13784_v62 = vld [vmem:[%s15968_s29 + $0x68] ss:$36 sps:$4 sm:$0xff]  }
 0x362   : > { %2774 = vmatpush1.bf16.msra.mxu1 %v13726_v63  ;;  %v13787_v63 = vld [vmem:[%s15968_s29 + $0x25c] ss:$36 sps:$4 sm:$0xff]  }
 0x363   : > { %2827 = vmatpush1.bf16.msra.mxu0 %v13729_v0  ;;  %2775 = vmatprep.subr.bf16.mxu1 %v13734_v33  ;;  %v13788_v0 = vld [vmem:[%s15968_s29 + $0x260] ss:$36 sps:$4 sm:$0xff]   ;;  %v13785_v33 = vld [vmem:[%s15968_s29 + $0x258] ss:$36 sps:$4 sm:$0xff]  }
 0x364   : > { %2828 = vmatprep.subr.bf16.mxu0 %v13737_v4  ;;  %v13789_v4 = vld [vmem:[%s15968_s29 + $0x20] ss:$36 sps:$4 sm:$0xff]  }
 0x366   : > { %2776 = vmatpush1.bf16.msra.mxu1 %v13732_v5  ;;  %v13790_v5 = vld [vmem:[%s15968_s29 + $0x698] ss:$36 sps:$4 sm:$0xff]  }
 0x367   : > { %2829 = vmatpush1.bf16.msra.mxu0 %v13735_v46  ;;  %2777 = vmatprep.subr.bf16.mxu1 %v13740_v9  ;;  %v13791_v46 = vld [vmem:[%s15968_s29 + $0x650] ss:$36 sps:$4 sm:$0xff]   ;;  %v13792_v9 = vld [vmem:[%s15968_s29 + $0x608] ss:$36 sps:$4 sm:$0xff]  }
 0x368   : > { %2830 = vmatprep.subr.bf16.mxu0 %v13743_v23  ;;  %v13793_v23 = vld [vmem:[%s15968_s29 + $0x5c0] ss:$36 sps:$4 sm:$0xff]  }
 0x36a   : > { %2778 = vmatpush1.bf16.msra.mxu1 %v13738_v45  ;;  %v13795_v45 = vld [vmem:[%s15968_s29 + $0x530] ss:$36 sps:$4 sm:$0xff]  }
 0x36b   : > { %2831 = vmatpush1.bf16.msra.mxu0 %v13741_v11  ;;  %2779 = vmatprep.subr.bf16.mxu1 %v13746_v13  ;;  %v13797_v11 = vld [vmem:[%s15968_s29 + $0x4a0] ss:$36 sps:$4 sm:$0xff]  }
 0x36c   : > { %2832 = vmatprep.subr.bf16.mxu0 %v13749_v10 }
 0x36e   : > { %2780 = vmatpush1.bf16.msra.mxu1 %v13744_v14 }
 0x36f   : > { %2833 = vmatpush1.bf16.msra.mxu0 %v13747_v25  ;;  %2781 = vmatprep.subr.bf16.mxu1 %v13752_v27 }
 0x370   : > { %12720 = vmatprep.subr.bf16.mxu0 %v13753_v31 }
 0x372   : > { %2782 = vmatpush2.bf16.msra.mxu1 %v13750_v12  ;;  %2851 = vmatmul.mubr.bf16.vlgmr.msra.gmra.mxu0 %v16195_v2 }
 0x373   : > { %12721 = vmatpush3.bf16.msra.mxu0 %v13754_v26  ;;  %2783 = vmatprep.subr.bf16.mxu1 %v13757_v22 }
 0x374   : > { %12722 = vmatprep.subr.bf16.mxu0 %v13758_v37  ;;  %2860 = vmatprep.mubr.bf16.mxu0 %v18532_v42 }
 0x376   : > { %2784 = vmatpush2.bf16.msra.mxu1 %v13755_v38 }
 0x377   : > { %12723 = vmatpush3.bf16.msra.mxu0 %v13759_v16  ;;  %2785 = vmatprep.subr.bf16.mxu1 %v13762_v21 }
 0x378   : > { %12724 = vmatprep.subr.bf16.mxu0 %v13763_v32 }
 0x37a   : > { %2786 = vmatpush2.bf16.msra.mxu1 %v13760_v15  ;;  %2861 = vmatmul.mubr.bf16.gmra.mxu0 %v16214_v41 }
 0x37b   : > { %12725 = vmatpush3.bf16.msra.mxu0 %v13764_v48  ;;  %2903 = vmatprep.mubr.bf16.mxu0 %v16193_v1  ;;  %v13775_v1 = vld [vmem:[%s15968_s29 + $0x2e8] ss:$36 sps:$4 sm:$0xff]  }
 0x37c   : > { %2787 = vmatprep.subr.bf16.mxu1 %v13767_v49  ;;  %12726 = vmatprep.subr.bf16.mxu0 %v13768_v53 }
 0x37e   : > { %2788 = vmatpush2.bf16.msra.mxu1 %v13765_v54 }
 0x37f   : > { %12727 = vmatpush3.bf16.msra.mxu0 %v13769_v55  ;;  %2789 = vmatprep.subr.bf16.mxu1 %v13772_v56 }
 0x380   : > { %12728 = vmatprep.subr.bf16.mxu0 %v13773_v57 }
 0x382   : > { %2790 = vmatpush2.bf16.msra.mxu1 %v13770_v35 }
 0x383   : > { %12729 = vmatpush3.bf16.msra.mxu0 %v13774_v36  ;;  %2791 = vmatprep.subr.bf16.mxu1 %v13777_v34 }
 0x384   : > { %12730 = vmatprep.subr.bf16.mxu0 %v13778_v58 }
 0x386   : > { %2792 = vmatpush2.bf16.msra.mxu1 %v13775_v1 }
 0x387   : > { %12731 = vmatpush3.bf16.msra.mxu0 %v13779_v59  ;;  %2793 = vmatprep.subr.bf16.mxu1 %v13782_v60 }
 0x388   : > { %12732 = vmatprep.subr.bf16.mxu0 %v13783_v61 }
 0x38a   : > { %2794 = vmatpush2.bf16.msra.mxu1 %v13780_v24 }
 0x38b   : > { %12733 = vmatpush3.bf16.msra.mxu0 %v13784_v62  ;;  %2795 = vmatprep.subr.bf16.mxu1 %v13787_v63 }
 0x38c   : > { %12734 = vmatprep.subr.bf16.mxu0 %v13788_v0 }
 0x38e   : > { %2796 = vmatpush2.bf16.msra.mxu1 %v13785_v33 }
 0x38f   : > { %12735 = vmatpush3.bf16.msra.mxu0 %v13789_v4  ;;  %13058 = vmatprep.subr.bf16.mxu1 %v13790_v5 }
 0x391   : > { %2798 = vmatmul.mubr.bf16.vlgmr.msra.gmra.mxu1 %v16199_v47 }
 0x392   : > { %2807 = vmatprep.mubr.bf16.mxu1 %v16206_v17  ;;  %2904 = vmatmul.mubr.bf16.vlgmr.msra.gmra.mxu0 %v16199_v47  ;;  %v13794_v47 = vld [vmem:[%s15968_s29 + $0x578] ss:$36 sps:$4 sm:$0xff]  }
 0x393   : > { %13059 = vmatpush3.bf16.msra.mxu1 %v13790_v5  ;;  %2911 = vmatprep.mubr.bf16.mxu0 %v16206_v17  ;;  %v13796_v17 = vld [vmem:[%s15968_s29 + $0x4e8] ss:$36 sps:$4 sm:$0xff]  }
 0x394   : > { %13060 = vmatprep.subr.bf16.mxu1 %v13791_v46 }
 0x397   : > { %13061 = vmatpush3.bf16.msra.mxu1 %v13791_v46 }
 0x398   : > { %13062 = vmatprep.subr.bf16.mxu1 %v13792_v9 }
 0x399   : > { %2808 = vmatmul.mubr.bf16.gmra.mxu1 %v16218_v43 }
 0x39a   : > { %2912 = vmatmul.mubr.bf16.gmra.mxu0 %v16218_v43  ;;  %13074 = vmatprep.mubr.bf16.mxu1 %v16195_v2 }
 0x39b   : > { %13063 = vmatpush3.bf16.msra.mxu1 %v13792_v9 }
 0x39c   : > { %13064 = vmatprep.subr.bf16.mxu1 %v13793_v23 }
 0x39f   : > { %13065 = vmatpush3.bf16.msra.mxu1 %v13793_v23 }
 0x3a0   : > { %13066 = vmatprep.subr.bf16.mxu1 %v13794_v47 }
 0x3a3   : > { %13067 = vmatpush3.bf16.msra.mxu1 %v13794_v47 }
 0x3a4   : > { %13068 = vmatprep.subr.bf16.mxu1 %v13795_v45 }
 0x3a7   : > { %13069 = vmatpush3.bf16.msra.mxu1 %v13795_v45 }
 0x3a8   : > { %13070 = vmatprep.subr.bf16.mxu1 %v13796_v17 }
 0x3ab   : > { %13071 = vmatpush3.bf16.msra.mxu1 %v13796_v17 }
 0x3ac   : > { %13072 = vmatprep.subr.bf16.mxu1 %v13797_v11 }
 0x3af   : > { %13073 = vmatpush3.bf16.msra.mxu1 %v13797_v11 }
 0x3b1   : > { %v2534_v13 = vpop.f32.mrf.mxu1 }
 0x3b2   : > { %13075 = vmatmul.mubr.bf16.vlgmr.msra.gmra.mxu1 %v16214_v41  ;;  %v2481_v43 = vpop.f32.mrf.mxu0 }
 0x3b3   : > { %v16406_v2 = vadd.f32 %v2534_v13, %v2481_v43  ;;  %v2536_v10 = vpop.f32.mrf.mxu1 }
 0x3b4   : > { %v2483_v14 = vpop.f32.mrf.mxu0 }
 0x3b5   : > { %v16408_v25 = vadd.f32 %v2536_v10, %v2483_v14  ;;  %v2538_v27 = vpop.f32.mrf.mxu1  ;;  %13086 = vmatprep.mubr.msk.f32.mxu0 %vm3069_vm0, %v16406_v2 }
 0x3b6   : > { %v2485_v31 = vpop.f32.mrf.mxu0 }
 0x3b7   : > { %v16412_v12 = vpop.f32.mrf.mxu1  ;;  %v16454_v47 = vadd.f32 %v2538_v27, %v2485_v31 }
 0x3b8   : > { %v16414_v26 = vpop.f32.mrf.mxu0 }
 0x3b9   : > { %v2544_v22 = vpop.f32.mrf.mxu1 }
 0x3ba   : > { %v2491_v37 = vpop.f32.mrf.mxu0 }
 0x3bb   : > { %v2546_v41 = vpop.f32.mrf.mxu1  ;;  %v16456_v45 = vadd.f32 %v2544_v22, %v2491_v37 }
 0x3bc   : > { %v2493_v38 = vpop.f32.mrf.mxu0 }
 0x3bd   : > { %v16416_v16 = vadd.f32 %v2546_v41, %v2493_v38  ;;  %v2548_v49 = vpop.f32.mrf.mxu1 }
 0x3be   : > { %v2495_v21 = vpop.f32.mrf.mxu0 }
 0x3bf   : > { %v16420_v54 = vpop.f32.mrf.mxu1  ;;  %v16464_v10 = vadd.f32 %v2548_v49, %v2495_v21 }
 0x3c0   : > { %v16418_v32 = vpop.f32.mrf.mxu0 }
 0x3d2   : > { %v2640_v15 = vpop.f32.mrf.mxu0 }
 0x3d4   : > { %v2642_v48 = vpop.f32.mrf.mxu0 }
 0x3d6   : > { %v2644_v53 = vpop.f32.mrf.mxu0 }
 0x3d8   : > { %v2646_v55 = vpop.f32.mrf.mxu0 }
 0x3da   : > { %v2650_v35 = vpop.f32.mrf.mxu0 }
 0x3dc   : > { %v2652_v1 = vpop.f32.mrf.mxu0 }
 0x3de   : > { %v2654_v24 = vpop.f32.mrf.mxu0 }
 0x3e0   : > { %v2656_v33 = vpop.f32.mrf.mxu0 }
 0x3f1   : > { %v2587_v56 = vpop.f32.mrf.mxu1 }
 0x3f2   : > { %v16422_v57 = vadd.f32 %v2640_v15, %v2587_v56 }
 0x3f3   : > { %v2589_v36 = vpop.f32.mrf.mxu1 }
 0x3f4   : > { %v16446_v23 = vadd.f32 %v2642_v48, %v2589_v36 }
 0x3f5   : > { %v2591_v34 = vpop.f32.mrf.mxu1 }
 0x3f6   : > { %v16424_v58 = vadd.f32 %v2644_v53, %v2591_v34 }
 0x3f7   : > { %v2593_v59 = vpop.f32.mrf.mxu1 }
 0x3f8   : > { %v16440_v9 = vadd.f32 %v2646_v55, %v2593_v59 }
 0x3f9   : > { %v2597_v60 = vpop.f32.mrf.mxu1 }
 0x3fa   : > { %v16426_v61 = vadd.f32 %v2650_v35, %v2597_v60 }
 0x3fb   : > { %v2599_v62 = vpop.f32.mrf.mxu1 }
 0x3fc   : > { %18631 = vst [vmem:[#allocation58_spill] sm:$0xff] %v16426_v61  ;;  %v16432_v46 = vadd.f32 %v2652_v1, %v2599_v62 }
 0x3fd   : > { %v2601_v63 = vpop.f32.mrf.mxu1 }
 0x3fe   : > { %v16428_v0 = vadd.f32 %v2654_v24, %v2601_v63 }
 0x3ff   : > { %v2603_v4 = vpop.f32.mrf.mxu1 }
 0x400   : > { %18632 = vst [vmem:[#allocation59_spill] sm:$0xff] %v16428_v0  ;;  %v16430_v5 = vadd.f32 %v2656_v33, %v2603_v4 }
 0x402   : > { %13078 = vmatprep.subr.msk.mxu0 %vm3069_vm0, %v16430_v5 }
 0x403   : > { %13079 = vmatpush3.xpose.msk.msra.mxu0 %vm3069_vm0, %v16430_v5 }
 0x404   : > { %13080 = vmatprep.subr.msk.mxu0 %vm3069_vm0, %v16432_v46 }
 0x407   : > { %13081 = vmatpush3.xpose.msk.msra.mxu0 %vm3069_vm0, %v16432_v46 }
 0x408   : > { %13082 = vmatprep.subr.msk.mxu0 %vm3069_vm0, %v16440_v9 }
 0x40b   : > { %13083 = vmatpush3.xpose.msk.msra.mxu0 %vm3069_vm0, %v16440_v9 }
 0x40c   : > { %13084 = vmatprep.subr.msk.mxu0 %vm3069_vm0, %v16446_v23 }
 0x40f   : > { %13085 = vmatpush3.xpose.msk.msra.mxu0 %vm3069_vm0, %v16446_v23 }
 0x411   : > { %v2746_v17 = vpop.f32.mrf.mxu1 }
 0x412   : > { %v2693_v11 = vpop.f32.mrf.mxu0  ;;  %13087 = vmatmul.mubr.msk.f32.vlgmr.msra.gmra.mxu0 %vm3069_vm0, %v16454_v47 }
 0x413   : > { %v16460_v13 = vadd.f32 %v2746_v17, %v2693_v11  ;;  %v2748_v43 = vpop.f32.mrf.mxu1  ;;  %13089 = vmatprep.mubr.msk.f32.mxu0 %vm3069_vm0, %v16456_v45 }
 0x414   : > { %v2695_v14 = vpop.f32.mrf.mxu0 }
 0x415   : > { %v16466_v41 = vadd.f32 %v2748_v43, %v2695_v14  ;;  %v2750_v27 = vpop.f32.mrf.mxu1 }
 0x416   : > { %v2697_v31 = vpop.f32.mrf.mxu0  ;;  %13090 = vmatmul.mubr.msk.f32.gmra.mxu0 %vm3069_vm0, %v16464_v10 }
 0x417   : > { %v16470_v22 = vadd.f32 %v2750_v27, %v2697_v31  ;;  %v16472_v37 = vpop.f32.mrf.mxu1 }
 0x418   : > { %v16474_v38 = vpop.f32.mrf.mxu0 }
 0x419   : > { %v2756_v15 = vpop.f32.mrf.mxu1 }
 0x41a   : > { %v2703_v48 = vpop.f32.mrf.mxu0 }
 0x41b   : > { %v16476_v53 = vadd.f32 %v2756_v15, %v2703_v48  ;;  %v2758_v21 = vpop.f32.mrf.mxu1 }
 0x41c   : > { %v2705_v49 = vpop.f32.mrf.mxu0 }
 0x41d   : > { %v16478_v55 = vadd.f32 %v2758_v21, %v2705_v49  ;;  %v2760_v56 = vpop.f32.mrf.mxu1 }
 0x41e   : > { %v2707_v35 = vpop.f32.mrf.mxu0 }
 0x41f   : > { %v16480_v36 = vadd.f32 %v2760_v56, %v2707_v35  ;;  %v16486_v4 = vpop.f32.mrf.mxu1 }
 0x420   : > { %v16482_v34 = vpop.f32.mrf.mxu0 }
 0x432   : > { %v2852_v1 = vpop.f32.mrf.mxu0 }
 0x434   : > { %v2854_v59 = vpop.f32.mrf.mxu0 }
 0x436   : > { %v2856_v60 = vpop.f32.mrf.mxu0 }
 0x438   : > { %v16484_v24 = vpop.f32.mrf.mxu0 }
 0x43a   : > { %v2862_v62 = vpop.f32.mrf.mxu0 }
 0x43c   : > { %v2864_v63 = vpop.f32.mrf.mxu0 }
 0x43e   : > { %v2866_v33 = vpop.f32.mrf.mxu0 }
 0x440   : > { %v16488_v17 = vpop.f32.mrf.mxu0 }
 0x451   : > { %v2799_v11 = vpop.f32.mrf.mxu1 }
 0x452   : > { %v12736_v43 = vpop.f32.mrf.mxu0 }
 0x453   : > { %v2801_v14 = vpop.f32.mrf.mxu1 }
 0x454   : > { %v16490_v27 = vadd.f32 %v2854_v59, %v2801_v14  ;;  %v12737_v31 = vpop.f32.mrf.mxu0  ;;  %v16510_v14 = vadd.f32 %v2852_v1, %v2799_v11 }
 0x455   : > { %v12738_v15 = vadd.f32 %v12737_v31, %v12736_v43  ;;  %v2803_v48 = vpop.f32.mrf.mxu1 }
 0x456   : > { %v16492_v21 = vpop.f32.mrf.mxu0  ;;  %v16506_v43 = vadd.f32 %v2856_v60, %v2803_v48  ;;  %v16524_v48 = vld [vmem:[#allocation7 + $0x8] sm:$0xff] }
 0x457   : > { %v16494_v49 = vpop.f32.mrf.mxu1 }
 0x458   : > { %v16496_v56 = vpop.f32.mrf.mxu0 }
 0x459   : > { %v2809_v35 = vpop.f32.mrf.mxu1 }
 0x45a   : > { %v12742_v42 = vpop.f32.mrf.mxu0  ;;  %v16502_v59 = vadd.f32 %v2862_v62, %v2809_v35 }
 0x45b   : > { %v2811_v3 = vpop.f32.mrf.mxu1 }
 0x45c   : > { %v16498_v51 = vadd.f32 %v2864_v63, %v2811_v3  ;;  %v12743_v52 = vpop.f32.mrf.mxu0 }
 0x45d   : > { %v12744_v50 = vadd.f32 %v12743_v52, %v12742_v42  ;;  %v2813_v44 = vpop.f32.mrf.mxu1 }
 0x45e   : > { %v16500_v29 = vadd.f32 %v2866_v33, %v2813_v44  ;;  %v12745_v44 = vpop.f32.mrf.mxu0 }
 0x45f   : > { %v16516_v52 = vpop.f32.mrf.mxu1 }
 0x460   : > { %13092 = vmatprep.subr.mxu1 %v16500_v29  ;;  %v12746_v42 = vpop.f32.mrf.mxu0 }
 0x461   : > { %13093 = vmatpush3.msra.mxu1 %v16500_v29  ;;  %v12747_v63 = vadd.f32 %v12746_v42, %v12745_v44 }
 0x462   : > { %13094 = vmatprep.subr.mxu1 %v16502_v59 }
 0x463   : > { %13095 = vmatpush3.msra.mxu1 %v16502_v59 }
 0x464   : > { %13096 = vmatprep.subr.mxu1 %v16506_v43 }
 0x465   : > { %13097 = vmatpush3.msra.mxu1 %v16506_v43 }
 0x466   : > { %13098 = vmatprep.subr.mxu1 %v16510_v14 }
 0x467   : > { %13099 = vmatpush3.msra.mxu1 %v16510_v14 }
 0x472   : > { %v13076_v3 = vpop.f32.mrf.mxu1 }
 0x473   : > { %v16518_v60 = vadd.f32 %v13076_v3, %v12744_v50  ;;  %v16529_v3 = vld [vmem:[#allocation7 + $0x18] sm:$0xff] }
 0x474   : > { %v2954_v62 = vpop.f32.mrf.mxu1 }
 0x475   : > { %v16520_v33 = vadd.f32 %v12738_v15, %v2954_v62 }
 0x476   : > { %v13077_v1 = vpop.f32.mrf.mxu1 }
 0x477   : > { %v16522_v11 = vadd.f32 %v13077_v1, %v12747_v63  ;;  %v16533_v63 = vld [vmem:[#allocation7 + $0x10] sm:$0xff] }
 0x4d2   : > { %v13088_v31 = vpop.f32.mrf.mxu0 }
 0x4d3   : > { %v3180_v35 = vmul.f32 0.125, %v13088_v31 }
 0x4d4   : > { %v3160_v30 = vpop.f32.mrf.mxu0 }
 0x4d5   : > { %v3179_v20 = vmul.f32 0.125, %v3160_v30  ;;  %v3184_v7 = vadd.f32 %v3180_v35, %v16524_v48 }
 0x4d6   : > { %v13091_v50 = vpop.f32.mrf.mxu0 }
 0x4d7   : > { %v3182_v44 = vmul.f32 0.125, %v13091_v50  ;;  %v3191_v15 = vsel %vm3187_vm1, %v3184_v7, -inf  ;;  %v3183_v42 = vadd.f32 %v3179_v20, %v16526_v28 }
 0x4d8   : > { %3192 = vmax.xlane.f32.xlu1 %v3191_v15  ;;  %v3170_v62 = vpop.f32.mrf.mxu0 }
 0x4d9   : > { %v3181_v1 = vmul.f32 0.125, %v3170_v62  ;;  %v3188_v31 = vsel %vm3187_vm1, %v3183_v42, -inf  ;;  %v3186_v40 = vadd.f32 %v3182_v44, %v16529_v3 }
 0x4da   : > { %3189 = vmax.xlane.f32.xlu0 %v3188_v31 }
 0x4db   : > { %v3197_v30 = vsel %vm3187_vm1, %v3186_v40, -inf  ;;  %v3185_v35 = vadd.f32 %v3181_v1, %v16533_v63 }
 0x4dc   : > { %3198 = vmax.xlane.f32.xlu1 %v3197_v30 }
 0x4dd   : > { %v3194_v50 = vsel %vm3187_vm1, %v3185_v35, -inf }
 0x4de   : > { %3195 = vmax.xlane.f32.xlu0 %v3194_v50 }
 0x561   : > { %v3193_v39 = vpop.xlane.xlu1 %3192 }
 0x562   : > { %v3201_v20 = vsub.f32 %v3184_v7, %v3193_v39 }
 0x563   : > { %v3190_v15 = vpop.xlane.xlu0 %3189 }
 0x564   : > { %v3206_v8 = vmul.f32 1.442695, %v3201_v20  ;;  %v3200_v18 = vsub.f32 %v3183_v42, %v3190_v15 }
 0x565   : > { %v3199_v19 = vpop.xlane.xlu1 %3198 }
 0x566   : > { %14718 = vpow2.f32 %v3206_v8  ;;  %v3204_v62 = vmul.f32 1.442695, %v3200_v18  ;;  %v3203_v6 = vsub.f32 %v3186_v40, %v3199_v19 }
 0x567   : > { %v3196_v0 = vpop.xlane.xlu0 %3195 }
 0x568   : > { %14720 = vpow2.f32 %v3204_v62  ;;  %v3210_v44 = vmul.f32 1.442695, %v3203_v6  ;;  %v3202_v31 = vsub.f32 %v3185_v35, %v3196_v0 }
 0x56a   : > { %14722 = vpow2.f32 %v3210_v44  ;;  %v3208_v61 = vmul.f32 1.442695, %v3202_v31 }
 0x56c   : > { %14724 = vpow2.f32 %v3208_v61 }
 0x573   : > { %v14719_v1 = vpop.eup %14718 }
 0x574   : > { %v3215_v30 = vsel %vm3187_vm1, %v14719_v1, 0.0 }
 0x575   : > { %v14721_v50 = vpop.eup %14720  ;;  %3216 = vadd.xlane.f32.xlu1 %v3215_v30  ;;  %v16576_v30 = vpop.f32.mrf.mxu1 }
 0x576   : > { %v3212_v39 = vsel %vm3187_vm1, %v14721_v50, 0.0 }
 0x577   : > { %v14723_v7 = vpop.eup %14722  ;;  %3213 = vadd.xlane.f32.xlu0 %v3212_v39 }
 0x578   : > { %v3221_v8 = vsel %vm3187_vm1, %v14723_v7, 0.0 }
 0x579   : > { %v14725_v18 = vpop.eup %14724  ;;  %3222 = vadd.xlane.f32.xlu1 %v3221_v8 }
 0x57a   : > { %v3218_v19 = vsel %vm3187_vm1, %v14725_v18, 0.0 }
 0x57b   : > { %3219 = vadd.xlane.f32.xlu0 %v3218_v19 }
 0x58a   : > { %3343 = vrot.lane.b32.xlu1 %v16432_v46, %s15426_s15 }
 0x58e   : > { %3341 = vrot.lane.b32.xlu1 %v16440_v9, %s15426_s15 }
 0x591   : > { %3345 = vrot.lane.b32.xlu0 %v16430_v5, %s15426_s15 }
 0x592   : > { %3339 = vrot.lane.b32.xlu1 %v16446_v23, %s15426_s15 }
 0x595   : > { %3331 = vrot.lane.b32.xlu0 %v16406_v2, %s15426_s15 }
 0x596   : > { %3333 = vrot.lane.b32.xlu1 %v16454_v47, %s15426_s15 }
 0x599   : > { %3335 = vrot.lane.b32.xlu0 %v16456_v45, %s15426_s15 }
 0x59a   : > { %3337 = vrot.lane.b32.xlu1 %v16464_v10, %s15426_s15 }
 0x5fe   : > { %v3217_v40 = vpop.xlane.xlu1 %3216 }
 0x5ff   : > { %14726 = vrcp.f32 %v3217_v40 }
 0x600   : > { %v3214_v6 = vpop.xlane.xlu0 %3213 }
 0x601   : > { %14728 = vrcp.f32 %v3214_v6 }
 0x602   : > { %v3223_v61 = vpop.xlane.xlu1 %3222 }
 0x603   : > { %14730 = vrcp.f32 %v3223_v61 }
 0x604   : > { %v3220_v0 = vpop.xlane.xlu0 %3219 }
 0x605   : > { %14732 = vrcp.f32 %v3220_v0 }
 0x606   : > { %v3344_v46 = vpop.permute.xlu1 %3343 }
 0x608   : > { %v3346_v5 = vpop.permute.xlu0 %3345 }
 0x609   : > { %13106 = vmatprep.subr.msk.mxu1 %vm3069_vm0, %v3346_v5 }
 0x60a   : > { %v3342_v42 = vpop.permute.xlu1 %3341 }
 0x60c   : > { %v14727_v2 = vpop.eup %14726  ;;  %v3332_v15 = vpop.permute.xlu0 %3331 }
 0x60d   : > { %v3229_v47 = vmul.f32 %v14727_v2, %v14719_v1 }
 0x60e   : > { %v14729_v9 = vpop.eup %14728  ;;  %v3340_v62 = vpop.permute.xlu1 %3339 }
 0x60f   : > { %v3228_v23 = vmul.f32 %v14729_v9, %v14721_v50 }
 0x610   : > { %v14731_v45 = vpop.eup %14730  ;;  %v3336_v31 = vpop.permute.xlu0 %3335 }
 0x611   : > { %13100 = vmatprep.mubr.msk.f32.mxu1 %vm3187_vm1, %v3228_v23  ;;  %v3231_v20 = vmul.f32 %v14731_v45, %v14723_v7 }
 0x612   : > { %v14733_v10 = vpop.eup %14732  ;;  %13101 = vmatmul.mubr.msk.f32.vlgmr.msra.gmra.mxu1 %vm3187_vm1, %v3229_v47  ;;  %v3334_v44 = vpop.permute.xlu1 %3333 }
 0x613   : > { %13107 = vmatpush3.xpose.msk.msra.mxu1 %vm3069_vm0, %v3346_v5  ;;  %v3230_v35 = vmul.f32 %v14733_v10, %v14725_v18 }
 0x614   : > { %13108 = vmatprep.subr.msk.mxu1 %vm3069_vm0, %v3344_v46 }
 0x615   : > { %13103 = vmatprep.mubr.msk.f32.mxu1 %vm3187_vm1, %v3230_v35 }
 0x616   : > { %13104 = vmatmul.mubr.msk.f32.gmra.mxu1 %vm3187_vm1, %v3231_v20  ;;  %v3338_v1 = vpop.permute.xlu1 %3337 }
 0x617   : > { %13109 = vmatpush3.xpose.msk.msra.mxu1 %vm3069_vm0, %v3344_v46  ;;  %13114 = vmatprep.mubr.msk.f32.mxu1 %vm3069_vm0, %v3332_v15 }
 0x618   : > { %13110 = vmatprep.subr.msk.mxu1 %vm3069_vm0, %v3342_v42 }
 0x61b   : > { %13111 = vmatpush3.xpose.msk.msra.mxu1 %vm3069_vm0, %v3342_v42 }
 0x61c   : > { %13112 = vmatprep.subr.msk.mxu1 %vm3069_vm0, %v3340_v62 }
 0x61f   : > { %13113 = vmatpush3.xpose.msk.msra.mxu1 %vm3069_vm0, %v3340_v62 }
 0x622   : > { %13115 = vmatmul.mubr.msk.f32.vlgmr.msra.gmra.mxu1 %vm3069_vm0, %v3334_v44 }
 0x623   : > { %13117 = vmatprep.mubr.msk.f32.mxu1 %vm3069_vm0, %v3336_v31 }
 0x626   : > { %13118 = vmatmul.mubr.msk.f32.gmra.mxu1 %vm3069_vm0, %v3338_v1 }
 0x6d2   : > { %v13102_v50 = vpop.f32.mrf.mxu1 }
 0x6d4   : > { %v3310_v39 = vpop.f32.mrf.mxu1 }
 0x6d5   : > { %v16578_v7 = vpack.c.bf16 %v13102_v50, %v3310_v39 }
 0x6d6   : > { %v16580_v8 = vpop.f32.mrf.mxu1 }
 0x6d8   : > { %v16582_v18 = vpop.f32.mrf.mxu1 }
 0x6e2   : > { %v13116_v19 = vpop.f32.mrf.mxu1 }
 0x6e3   : > { %v3449_v40 = vmul.f32 0.125, %v13116_v19 }
 0x6e4   : > { %v3429_v6 = vpop.f32.mrf.mxu1 }
 0x6e5   : > { %v3448_v61 = vmul.f32 0.125, %v3429_v6  ;;  %v3453_v0 = vadd.f32 %v3449_v40, %v16524_v48 }
 0x6e6   : > { %v13119_v5 = vpop.f32.mrf.mxu1 }
 0x6e7   : > { %v3459_v2 = vsel %vm3187_vm1, %v3453_v0, -inf  ;;  %v3452_v46 = vadd.f32 %v3448_v61, %v16526_v28  ;;  %v3451_v23 = vmul.f32 0.125, %v13119_v5 }
 0x6e8   : > { %3460 = vmax.xlane.f32.xlu1 %v3459_v2  ;;  %v3439_v9 = vpop.f32.mrf.mxu1 }
 0x6e9   : > { %v3450_v47 = vmul.f32 0.125, %v3439_v9  ;;  %v3456_v45 = vsel %vm3187_vm1, %v3452_v46, -inf  ;;  %v3455_v35 = vadd.f32 %v3451_v23, %v16529_v3 }
 0x6ea   : > { %3457 = vmax.xlane.f32.xlu0 %v3456_v45 }
 0x6eb   : > { %v3454_v10 = vadd.f32 %v3450_v47, %v16533_v63  ;;  %v3465_v20 = vsel %vm3187_vm1, %v3455_v35, -inf }
 0x6ed   : > { %v3462_v42 = vsel %vm3187_vm1, %v3454_v10, -inf }
 0x6ee   : > { %3463 = vmax.xlane.f32.xlu0 %v3462_v42  ;;  %v13804_v42 = vld [vmem:[%s15975_s12 + $0xb0] ss:$12 sps:$4 sm:$0xff]  }
 0x6ef   : > { %13134 = vmatprep.subr.bf16.mxu1 %v13804_v42 }
 0x6f0   : > { %13135 = vmatpush3.bf16.msra.mxu1 %v13804_v42  ;;  %v13811_v42 = vld [vmem:[%s15975_s12 + $0x64] ss:$12 sps:$4 sm:$0xff]  }
 0x6f2   : > { %3466 = vmax.xlane.f32.xlu0 %v3465_v20 }
 0x771   : > { %v3461_v15 = vpop.xlane.xlu1 %3460 }
 0x772   : > { %v3469_v62 = vsub.f32 %v3453_v0, %v3461_v15 }
 0x773   : > { %v3458_v44 = vpop.xlane.xlu0 %3457 }
 0x774   : > { %v3474_v31 = vmul.f32 1.442695, %v3469_v62  ;;  %v3468_v1 = vsub.f32 %v3452_v46, %v3458_v44 }
 0x776   : > { %14734 = vpow2.f32 %v3474_v31  ;;  %v3472_v50 = vmul.f32 1.442695, %v3468_v1 }
 0x777   : > { %v3464_v39 = vpop.xlane.xlu0 %3463 }
 0x778   : > { %14736 = vpow2.f32 %v3472_v50  ;;  %v3470_v19 = vsub.f32 %v3454_v10, %v3464_v39  ;;  %v13800_v39 = vld [vmem:[%s15975_s12 + $0xac] ss:$12 sps:$4 sm:$0xff]  }
 0x77a   : > { %v3476_v40 = vmul.f32 1.442695, %v3470_v19 }
 0x77b   : > { %v3467_v6 = vpop.xlane.xlu0 %3466 }
 0x77c   : > { %14738 = vpow2.f32 %v3476_v40  ;;  %v3471_v61 = vsub.f32 %v3455_v35, %v3467_v6  ;;  %v13808_v35 = vld [vmem:[%s15975_s12 + $0x98] ss:$12 sps:$4 sm:$0xff]   ;;  %v13798_v40 = vld [vmem:[%s15975_s12 + $0xa8] ss:$12 sps:$4 sm:$0xff]  }
 0x77d   : > { %13136 = vmatprep.subr.bf16.mxu1 %v13808_v35 }
 0x77e   : > { %v3478_v5 = vmul.f32 1.442695, %v3471_v61  ;;  %13137 = vmatpush3.bf16.msra.mxu1 %v13808_v35  ;;  %v13803_v61 = vld [vmem:[%s15975_s12 + $0x94] ss:$12 sps:$4 sm:$0xff]  }
 0x77f   : > { %v13812_v35 = vld [vmem:[%s15975_s12 + $0x80] ss:$12 sps:$4 sm:$0xff]  }
 0x780   : > { %14740 = vpow2.f32 %v3478_v5  ;;  %13138 = vmatprep.subr.bf16.mxu1 %v13812_v35 }
 0x782   : > { %13139 = vmatpush3.bf16.msra.mxu1 %v13812_v35 }
 0x783   : > { %v14735_v2 = vpop.eup %14734 }
 0x784   : > { %v3483_v9 = vsel %vm3187_vm1, %v14735_v2, 0.0 }
 0x785   : > { %v14737_v0 = vpop.eup %14736  ;;  %3484 = vadd.xlane.f32.xlu1 %v3483_v9 }
 0x786   : > { %v3480_v46 = vsel %vm3187_vm1, %v14737_v0, 0.0 }
 0x787   : > { %3481 = vadd.xlane.f32.xlu0 %v3480_v46 }
 0x789   : > { %v14739_v23 = vpop.eup %14738 }
 0x78a   : > { %v3486_v47 = vsel %vm3187_vm1, %v14739_v23, 0.0 }
 0x78b   : > { %3487 = vadd.xlane.f32.xlu0 %v3486_v47  ;;  %v13805_v47 = vld [vmem:[%s15975_s12 + $0x78] ss:$12 sps:$4 sm:$0xff]  }
 0x78d   : > { %v14741_v45 = vpop.eup %14740 }
 0x78e   : > { %v3489_v10 = vsel %vm3187_vm1, %v14741_v45, 0.0 }
 0x78f   : > { %3490 = vadd.xlane.f32.xlu1 %v3489_v10  ;;  %v18633_v10 = vmov 0  }
 0x7a0   : > { %3508 = vrot.lane.b32.xlu1 %v16502_v59, %s15426_s15 }
 0x7a1   : > { %3510 = vrot.lane.b32.xlu0 %v16500_v29, %s15426_s15 }
 0x7a4   : > { %3506 = vrot.lane.b32.xlu1 %v16506_v43, %s15426_s15 }
 0x7a8   : > { %3504 = vrot.lane.b32.xlu1 %v16510_v14, %s15426_s15 }
 0x80e   : > { %v3485_v15 = vpop.xlane.xlu1 %3484 }
 0x810   : > { %v3482_v20 = vpop.xlane.xlu0 %3481 }
 0x811   : > { %14742 = vrcp.f32 %v3482_v20  ;;  %v13816_v20 = vld [vmem:[%s15975_s12 + $0x4c] ss:$12 sps:$4 sm:$0xff]  }
 0x812   : > { %14744 = vrcp.f32 %v3485_v15  ;;  %v13820_v15 = vld [vmem:[%s15975_s12 + $0x50] ss:$12 sps:$4 sm:$0xff]  }
 0x814   : > { %v3488_v62 = vpop.xlane.xlu0 %3487 }
 0x815   : > { %14746 = vrcp.f32 %v3488_v62 }
 0x818   : > { %v3491_v59 = vpop.xlane.xlu1 %3490  ;;  %v3511_v29 = vpop.permute.xlu0 %3510 }
 0x819   : > { %14748 = vrcp.f32 %v3491_v59  ;;  %13120 = vmatprep.subr.mxu0 %v3511_v29 }
 0x81a   : > { %13121 = vmatpush3.msra.mxu0 %v3511_v29  ;;  %v13814_v29 = vld [vmem:[%s15975_s12 + $0x48] ss:$12 sps:$4 sm:$0xff]  }
 0x81c   : > { %v3509_v43 = vpop.permute.xlu1 %3508 }
 0x81d   : > { %13122 = vmatprep.subr.mxu0 %v3509_v43 }
 0x81e   : > { %v14743_v14 = vpop.eup %14742  ;;  %13123 = vmatpush3.msra.mxu0 %v3509_v43 }
 0x81f   : > { %v3496_v44 = vmul.f32 %v14743_v14, %v14737_v0  ;;  %v14745_v1 = vpop.eup %14744  ;;  %v13801_v0 = vld [vmem:[%s15975_s12 + $0x90] ss:$12 sps:$4 sm:$0xff]   ;;  %v13819_v14 = vld [vmem:[%s15975_s12 + $0x34] ss:$12 sps:$4 sm:$0xff]  }
 0x820   : > { %v3507_v31 = vpop.permute.xlu1 %3506  ;;  %v3497_v6 = vmul.f32 %v14745_v1, %v14735_v2  ;;  %v13807_v2 = vld [vmem:[%s15975_s12 + $0x7c] ss:$12 sps:$4 sm:$0xff]  }
 0x821   : > { %13124 = vmatprep.subr.mxu0 %v3507_v31  ;;  %13128 = vmatprep.mubr.msk.f32.mxu0 %vm3187_vm1, %v3496_v44  ;;  %v13817_v1 = vld [vmem:[%s15975_s12 + $0x30] ss:$12 sps:$4 sm:$0xff]  }
 0x822   : > { %13125 = vmatpush3.msra.mxu0 %v3507_v31  ;;  %v14747_v50 = vpop.eup %14746 }
 0x823   : > { %v3498_v9 = vmul.f32 %v14747_v50, %v14739_v23  ;;  %v13809_v23 = vld [vmem:[%s15975_s12 + $0x60] ss:$12 sps:$4 sm:$0xff]  }
 0x824   : > { %v3505_v19 = vpop.permute.xlu1 %3504 }
 0x825   : > { %13126 = vmatprep.subr.mxu0 %v3505_v19 }
 0x826   : > { %v14749_v5 = vpop.eup %14748  ;;  %13127 = vmatpush3.msra.mxu0 %v3505_v19  ;;  %v13824_v19 = vld [vmem:[%s15975_s12 + $0x38] ss:$12 sps:$4 sm:$0xff]  }
 0x827   : > { %13129 = vmatmul.mubr.msk.f32.vlgmr.msra.gmra.mxu0 %vm3187_vm1, %v3497_v6  ;;  %3693 = vmatprep.subr.bf16.mxu0 %v13800_v39  ;;  %v3499_v46 = vmul.f32 %v14749_v5, %v14741_v45  ;;  %v13813_v45 = vld [vmem:[%s15975_s12 + $0x68] ss:$12 sps:$4 sm:$0xff]   ;;  %v13827_v6 = vld [vmem:[%s15975_s12 + $0x4] ss:$12 sps:$4 sm:$0xff]   ;;  %v13825_v5 = vld [vmem:[%s15975_s12] ss:$12 sps:$4 sm:$0xff]  }
 0x828   : > { %13131 = vmatprep.mubr.msk.f32.mxu0 %vm3187_vm1, %v3498_v9  ;;  %3694 = vmatpush1.bf16.msra.mxu0 %v13798_v40  ;;  %v13823_v39 = vld [vmem:[%s15975_s12 + $0x1c] ss:$12 sps:$4 sm:$0xff]   ;;  %v13821_v40 = vld [vmem:[%s15975_s12 + $0x18] ss:$12 sps:$4 sm:$0xff]  }
 0x829   : > { %3695 = vmatprep.subr.bf16.mxu0 %v13803_v61  ;;  %13140 = vmatprep.subr.bf16.mxu1 %v13813_v45  ;;  %v13828_v61 = vld [vmem:[%s15975_s12 + $0x20] ss:$12 sps:$4 sm:$0xff]   ;;  %v13829_v9 = vld [vmem:[%s15975_s12 + $0x8] ss:$12 sps:$4 sm:$0xff]  }
 0x82a   : > { %13141 = vmatpush3.bf16.msra.mxu1 %v13813_v45 }
 0x82b   : > { %13132 = vmatmul.mubr.msk.f32.gmra.mxu0 %vm3187_vm1, %v3499_v46  ;;  %13146 = vmatprep.subr.bf16.mxu1 %v13820_v15  ;;  %v3330_v46 = vpack.c.bf16 %v16580_v8, %v16582_v18 }
 0x82c   : > { %3696 = vmatpush1.bf16.msra.mxu0 %v13801_v0  ;;  %3717 = vmatprep.mubr.bf16.mxu0 %v18633_v10  ;;  %v16645_v0 = vadd.f32 %v16488_v17, %v16516_v52  ;;  %v16663_v17 = vadd.f32 %v16484_v24, %v16494_v49  ;;  %v16684_v24 = vadd.f32 %v16412_v12, %v16414_v26 }
 0x82d   : > { %3697 = vmatprep.subr.bf16.mxu0 %v13807_v2  ;;  %v16692_v49 = vadd.f32 %v16420_v54, %v16418_v32 }
 0x830   : > { %3698 = vmatpush1.bf16.msra.mxu0 %v13805_v47 }
 0x831   : > { %3699 = vmatprep.subr.bf16.mxu0 %v13811_v42 }
 0x834   : > { %3700 = vmatpush1.bf16.msra.mxu0 %v13809_v23 }
 0x835   : > { %3865 = vmatprep.subr.bf16.mxu0 %v13816_v20 }
 0x8e7   : > { %v13130_v62 = vpop.f32.mrf.mxu0 }
 0x8e9   : > { %v3594_v59 = vpop.f32.mrf.mxu0 }
 0x8ea   : > { %v3613_v43 = vpack.c.bf16 %v13130_v62, %v3594_v59 }
 0x8eb   : > { %v13133_v44 = vpop.f32.mrf.mxu0 }
 0x8ec   : > { %12008 = vmatmul.mubr.msk.bf16.vlgmr.msra.gmra.mxu0 %vm3069_vm0, %v3613_v43  ;;  %13142 = vmatprep.mubr.msk.bf16.mxu1 %vm3069_vm0, %v3613_v43 }
 0x8ed   : > { %3866 = vmatpush1.bf16.msra.mxu0 %v13814_v29  ;;  %v3604_v31 = vpop.f32.mrf.mxu0  ;;  %3727 = vmatprep.mubr.bf16.mxu0 %v18633_v10 }
 0x8ee   : > { %v3614_v50 = vpack.c.bf16 %v13133_v44, %v3604_v31  ;;  %3867 = vmatprep.subr.bf16.mxu0 %v13819_v14 }
 0x8f0   : > { %13143 = vmatmul.mubr.msk.bf16.vlgmr.msra.gmra.mxu1 %vm3069_vm0, %v3614_v50 }
 0x8f1   : > { %3868 = vmatpush1.bf16.msra.mxu0 %v13817_v1  ;;  %13147 = vmatpush3.bf16.msra.mxu1 %v13820_v15 }
 0x8f2   : > { %13154 = vmatprep.mubr.msk.bf16.mxu1 %vm3069_vm0, %v16578_v7  ;;  %3869 = vmatprep.subr.bf16.mxu0 %v13823_v39 }
 0x8f3   : > { %13148 = vmatprep.subr.bf16.mxu1 %v13824_v19 }
 0x8f4   : > { %12009 = vmatmul.mubr.msk.bf16.gmra.mxu0 %vm3069_vm0, %v3614_v50 }
 0x8f5   : > { %3870 = vmatpush1.bf16.msra.mxu0 %v13821_v40  ;;  %13149 = vmatpush3.bf16.msra.mxu1 %v13824_v19 }
 0x8f6   : > { %3871 = vmatprep.subr.bf16.mxu0 %v13827_v6  ;;  %13150 = vmatprep.subr.bf16.mxu1 %v13828_v61 }
 0x8f7   : > { %3889 = vmatprep.mubr.bf16.mxu0 %v18633_v10 }
 0x8f9   : > { %3872 = vmatpush1.bf16.msra.mxu0 %v13825_v5  ;;  %13151 = vmatpush3.bf16.msra.mxu1 %v13828_v61 }
 0x8fa   : > { %13158 = vmatprep.subr.msk.mxu0 %vm3069_vm0, %v16480_v36  ;;  %13152 = vmatprep.subr.bf16.mxu1 %v13829_v9 }
 0x8fc   : > { %12024 = vmatmul.mubr.msk.bf16.vlgmr.msra.gmra.mxu0 %vm3069_vm0, %v16578_v7 }
 0x8fd   : > { %13153 = vmatpush3.bf16.msra.mxu1 %v13829_v9  ;;  %13159 = vmatpush3.xpose.msk.msra.mxu0 %vm3069_vm0, %v16480_v36 }
 0x8fe   : > { %13160 = vmatprep.subr.msk.mxu0 %vm3069_vm0, %v16476_v53  ;;  %13172 = vmatprep.subr.mxu1 %v16645_v0 }
 0x8ff   : > { %3899 = vmatprep.mubr.bf16.mxu0 %v18633_v10 }
 0x900   : > { %13155 = vmatmul.mubr.msk.bf16.vlgmr.msra.gmra.mxu1 %vm3069_vm0, %v3330_v46 }
 0x901   : > { %13161 = vmatpush3.xpose.msk.msra.mxu0 %vm3069_vm0, %v16476_v53  ;;  %13173 = vmatpush3.msra.mxu1 %v16645_v0 }
 0x902   : > { %13162 = vmatprep.subr.msk.mxu0 %vm3069_vm0, %v16470_v22  ;;  %13174 = vmatprep.subr.mxu1 %v16498_v51 }
 0x903   : > { %13175 = vmatpush3.msra.mxu1 %v16498_v51 }
 0x904   : > { %13176 = vmatprep.subr.mxu1 %v16663_v17  ;;  %12025 = vmatmul.mubr.msk.bf16.gmra.mxu0 %vm3069_vm0, %v3330_v46 }
 0x905   : > { %13163 = vmatpush3.xpose.msk.msra.mxu0 %vm3069_vm0, %v16470_v22  ;;  %13177 = vmatpush3.msra.mxu1 %v16663_v17 }
 0x906   : > { %13164 = vmatprep.subr.msk.mxu0 %vm3069_vm0, %v16460_v13  ;;  %13166 = vmatprep.mubr.msk.f32.mxu0 %vm3069_vm0, %v16408_v25 }
 0x907   : > { %13178 = vmatprep.subr.mxu1 %v16490_v27 }
 0x908   : > { %13179 = vmatpush3.msra.mxu1 %v16490_v27 }
 0x909   : > { %13165 = vmatpush3.xpose.msk.msra.mxu0 %vm3069_vm0, %v16460_v13 }
 0x90c   : > { %13167 = vmatmul.mubr.msk.f32.vlgmr.msra.gmra.mxu0 %vm3069_vm0, %v16684_v24 }
 0x90d   : > { %13169 = vmatprep.mubr.msk.f32.mxu0 %vm3069_vm0, %v16416_v16 }
 0x910   : > { %13170 = vmatmul.mubr.msk.f32.gmra.mxu0 %vm3069_vm0, %v16692_v49 }
 0x9ac   : > { %v3719_v52 = vpop.f32.mrf.mxu0 }
 0x9ae   : > { %v3721_v7 = vpop.f32.mrf.mxu0 }
 0x9b0   : > { %v3723_v8 = vpop.f32.mrf.mxu0  ;;  %v13144_v18 = vpop.f32.mrf.mxu1 }
 0x9b2   : > { %v16696_v2 = vpop.f32.mrf.mxu0  ;;  %v3772_v26 = vpop.f32.mrf.mxu1 }
 0x9b4   : > { %v3729_v12 = vpop.f32.mrf.mxu0  ;;  %v13145_v42 = vpop.f32.mrf.mxu1 }
 0x9b6   : > { %v3731_v47 = vpop.f32.mrf.mxu0  ;;  %v16702_v32 = vpop.f32.mrf.mxu1 }
 0x9b8   : > { %v3733_v23 = vpop.f32.mrf.mxu0 }
 0x9ba   : > { %v16698_v35 = vpop.f32.mrf.mxu0 }
 0x9bc   : > { %v3891_v45 = vpop.f32.mrf.mxu0 }
 0x9bd   : > { %v16700_v20 = vadd.f32 %v3891_v45, %v3719_v52 }
 0x9be   : > { %v3893_v54 = vpop.f32.mrf.mxu0 }
 0x9bf   : > { %v16704_v15 = vadd.f32 %v3893_v54, %v3721_v7 }
 0x9c0   : > { %v13156_v62 = vpop.f32.mrf.mxu1  ;;  %v3895_v59 = vpop.f32.mrf.mxu0 }
 0x9c1   : > { %v16706_v29 = vadd.f32 %v13156_v62, %v13144_v18  ;;  %v16708_v43 = vadd.f32 %v3895_v59, %v3723_v8 }
 0x9c2   : > { %v3944_v14 = vpop.f32.mrf.mxu1  ;;  %v16710_v44 = vpop.f32.mrf.mxu0 }
 0x9c3   : > { %v16712_v31 = vadd.f32 %v3944_v14, %v3772_v26 }
 0x9c4   : > { %v13157_v1 = vpop.f32.mrf.mxu1  ;;  %v3901_v50 = vpop.f32.mrf.mxu0 }
 0x9c5   : > { %v16714_v39 = vadd.f32 %v13157_v1, %v13145_v42  ;;  %v16716_v19 = vadd.f32 %v3901_v50, %v3729_v12 }
 0x9c6   : > { %v3903_v40 = vpop.f32.mrf.mxu0 }
 0x9c7   : > { %v16718_v6 = vadd.f32 %v3903_v40, %v3731_v47 }
 0x9c8   : > { %v3905_v61 = vpop.f32.mrf.mxu0 }
 0x9c9   : > { %v16720_v5 = vadd.f32 %v3905_v61, %v3733_v23 }
 0x9ca   : > { %v16722_v9 = vpop.f32.mrf.mxu0 }
 0x9cc   : > { %v13168_v46 = vpop.f32.mrf.mxu0 }
 0x9cd   : > { %v4069_v52 = vmul.f32 0.125, %v13168_v46 }
 0x9ce   : > { %v4049_v7 = vpop.f32.mrf.mxu0 }
 0x9cf   : > { %v4068_v8 = vmul.f32 0.125, %v4049_v7  ;;  %v4073_v18 = vadd.f32 %v4069_v52, %v16524_v48 }
 0x9d0   : > { %v13171_v26 = vpop.f32.mrf.mxu0 }
 0x9d1   : > { %v4079_v42 = vsel %vm3187_vm1, %v4073_v18, -inf  ;;  %v4072_v12 = vadd.f32 %v4068_v8, %v16526_v28  ;;  %v4071_v47 = vmul.f32 0.125, %v13171_v26 }
 0x9d2   : > { %4080 = vmax.xlane.f32.xlu1 %v4079_v42  ;;  %v4059_v45 = vpop.f32.mrf.mxu0 }
 0x9d3   : > { %v4070_v54 = vmul.f32 0.125, %v4059_v45  ;;  %v4076_v23 = vsel %vm3187_vm1, %v4072_v12, -inf  ;;  %v4075_v14 = vadd.f32 %v4071_v47, %v16529_v3 }
 0x9d4   : > { %4077 = vmax.xlane.f32.xlu0 %v4076_v23 }
 0x9d5   : > { %v4074_v62 = vadd.f32 %v4070_v54, %v16533_v63  ;;  %v4085_v1 = vsel %vm3187_vm1, %v4075_v14, -inf }
 0x9d7   : > { %v4082_v59 = vsel %vm3187_vm1, %v4074_v62, -inf }
 0x9d8   : > { %4083 = vmax.xlane.f32.xlu0 %v4082_v59 }
 0x9dc   : > { %4086 = vmax.xlane.f32.xlu0 %v4085_v1 }
 0xa5b   : > { %v4081_v50 = vpop.xlane.xlu1 %4080 }
 0xa5c   : > { %v4089_v40 = vsub.f32 %v4073_v18, %v4081_v50 }
 0xa5d   : > { %v4078_v61 = vpop.xlane.xlu0 %4077 }
 0xa5e   : > { %v4094_v46 = vmul.f32 1.442695, %v4089_v40  ;;  %v4088_v52 = vsub.f32 %v4072_v12, %v4078_v61 }
 0xa60   : > { %14750 = vpow2.f32 %v4094_v46  ;;  %v4092_v7 = vmul.f32 1.442695, %v4088_v52  ;;  %v13830_v46 = vld [vmem:[%s15975_s12 + $0x108] ss:$12 sps:$4 sm:$0xff]  }
 0xa61   : > { %v4084_v8 = vpop.xlane.xlu0 %4083  ;;  %v13835_v52 = vld [vmem:[%s15975_s12 + $0xf4] ss:$12 sps:$4 sm:$0xff]  }
 0xa62   : > { %14752 = vpow2.f32 %v4092_v7  ;;  %v4090_v26 = vsub.f32 %v4074_v62, %v4084_v8 }
 0xa64   : > { %v4096_v42 = vmul.f32 1.442695, %v4090_v26  ;;  %v13833_v26 = vld [vmem:[%s15975_s12 + $0xf0] ss:$12 sps:$4 sm:$0xff]  }
 0xa65   : > { %v4087_v45 = vpop.xlane.xlu0 %4086 }
 0xa66   : > { %14754 = vpow2.f32 %v4096_v42  ;;  %v4091_v54 = vsub.f32 %v4075_v14, %v4087_v45  ;;  %v13832_v14 = vld [vmem:[%s15975_s12 + $0x10c] ss:$12 sps:$4 sm:$0xff]   ;;  %v13838_v42 = vld [vmem:[%s15975_s12 + $0xdc] ss:$12 sps:$4 sm:$0xff]  }
 0xa67   : > { %4297 = vmatprep.subr.bf16.mxu1 %v13832_v14 }
 0xa68   : > { %v4098_v23 = vmul.f32 1.442695, %v4091_v54 }
 0xa6a   : > { %14756 = vpow2.f32 %v4098_v23  ;;  %v13836_v23 = vld [vmem:[%s15975_s12 + $0xd8] ss:$12 sps:$4 sm:$0xff]  }
 0xa6d   : > { %v14751_v47 = vpop.eup %14750 }
 0xa6e   : > { %v4103_v59 = vsel %vm3187_vm1, %v14751_v47, 0.0 }
 0xa6f   : > { %v14753_v1 = vpop.eup %14752  ;;  %4104 = vadd.xlane.f32.xlu1 %v4103_v59  ;;  %v13839_v59 = vld [vmem:[%s15975_s12 + $0xc0] ss:$12 sps:$4 sm:$0xff]  }
 0xa70   : > { %v4100_v18 = vsel %vm3187_vm1, %v14753_v1, 0.0 }
 0xa71   : > { %4101 = vadd.xlane.f32.xlu0 %v4100_v18  ;;  %v13843_v18 = vld [vmem:[%s15975_s12 + $0xf8] ss:$12 sps:$4 sm:$0xff]  }
 0xa73   : > { %v14755_v12 = vpop.eup %14754 }
 0xa74   : > { %v4106_v50 = vsel %vm3187_vm1, %v14755_v12, 0.0 }
 0xa75   : > { %4107 = vadd.xlane.f32.xlu0 %v4106_v50  ;;  %v13845_v50 = vld [vmem:[%s15975_s12 + $0xc8] ss:$12 sps:$4 sm:$0xff]  }
 0xa77   : > { %v14757_v62 = vpop.eup %14756 }
 0xa78   : > { %v4109_v40 = vsel %vm3187_vm1, %v14757_v62, 0.0 }
 0xa79   : > { %4110 = vadd.xlane.f32.xlu1 %v4109_v40 }
 0xa8a   : > { %4415 = vrot.lane.b32.xlu1 %v16476_v53, %s15426_s15  ;;  %v13842_v53 = vld [vmem:[%s15975_s12 + $0x110] ss:$12 sps:$4 sm:$0xff]  }
 0xa8b   : > { %4417 = vrot.lane.b32.xlu0 %v16480_v36, %s15426_s15  ;;  %13186 = vmatprep.subr.bf16.mxu0 %v13842_v53 }
 0xa8c   : > { %13187 = vmatpush3.bf16.msra.mxu0 %v13842_v53 }
 0xa8d   : > { %13188 = vmatprep.subr.bf16.mxu0 %v13843_v18 }
 0xa8e   : > { %4413 = vrot.lane.b32.xlu1 %v16470_v22, %s15426_s15 }
 0xa8f   : > { %4403 = vrot.lane.b32.xlu0 %v16408_v25, %s15426_s15 }
 0xa90   : > { %13189 = vmatpush3.bf16.msra.mxu0 %v13843_v18 }
 0xa92   : > { %4411 = vrot.lane.b32.xlu1 %v16460_v13, %s15426_s15 }
 0xa93   : > { %4407 = vrot.lane.b32.xlu0 %v16416_v16, %s15426_s15 }
 0xa96   : > { %4405 = vrot.lane.b32.xlu1 %v16684_v24, %s15426_s15 }
 0xa9a   : > { %4409 = vrot.lane.b32.xlu1 %v16692_v49, %s15426_s15 }
 0xaf8   : > { %v4105_v22 = vpop.xlane.xlu1 %4104 }
 0xaf9   : > { %14758 = vrcp.f32 %v4105_v22 }
 0xafa   : > { %v4102_v25 = vpop.xlane.xlu0 %4101 }
 0xafb   : > { %14760 = vrcp.f32 %v4102_v25 }
 0xafe   : > { %v4108_v13 = vpop.xlane.xlu0 %4107 }
 0xaff   : > { %14762 = vrcp.f32 %v4108_v13 }
 0xb02   : > { %v4111_v16 = vpop.xlane.xlu1 %4110 }
 0xb03   : > { %14764 = vrcp.f32 %v4111_v16 }
 0xb06   : > { %v14759_v36 = vpop.eup %14758  ;;  %v4416_v40 = vpop.permute.xlu1 %4415 }
 0xb07   : > { %v4117_v49 = vmul.f32 %v14759_v36, %v14751_v47  ;;  %v13841_v47 = vld [vmem:[%s15975_s12 + $0xc4] ss:$12 sps:$4 sm:$0xff]  }
 0xb08   : > { %v14761_v24 = vpop.eup %14760 }
 0xb09   : > { %v4116_v61 = vmul.f32 %v14761_v24, %v14753_v1  ;;  %v4418_v1 = vpop.permute.xlu0 %4417 }
 0xb0a   : > { %v4414_v25 = vpop.permute.xlu1 %4413 }
 0xb0b   : > { %13180 = vmatprep.mubr.msk.f32.mxu1 %vm3187_vm1, %v4116_v61 }
 0xb0c   : > { %v14763_v7 = vpop.eup %14762  ;;  %13181 = vmatmul.mubr.msk.f32.vlgmr.msra.gmra.mxu1 %vm3187_vm1, %v4117_v49 }
 0xb0d   : > { %4298 = vmatpush1.bf16.msra.mxu1 %v13830_v46  ;;  %v4118_v8 = vmul.f32 %v14763_v7, %v14755_v12  ;;  %v13844_v12 = vld [vmem:[%s15975_s12 + $0xe0] ss:$12 sps:$4 sm:$0xff]   ;;  %v4404_v61 = vpop.permute.xlu0 %4403  ;;  %v13846_v46 = vld [vmem:[%s15975_s12 + $0x170] ss:$12 sps:$4 sm:$0xff]  }
 0xb0e   : > { %4299 = vmatprep.subr.bf16.mxu1 %v13835_v52  ;;  %13190 = vmatprep.subr.bf16.mxu0 %v13844_v12  ;;  %v4412_v24 = vpop.permute.xlu1 %4411  ;;  %v13847_v52 = vld [vmem:[%s15975_s12 + $0x158] ss:$12 sps:$4 sm:$0xff]  }
 0xb0f   : > { %13183 = vmatprep.mubr.msk.f32.mxu1 %vm3187_vm1, %v4118_v8  ;;  %13191 = vmatpush3.bf16.msra.mxu0 %v13844_v12  ;;  %v13848_v8 = vld [vmem:[%s15975_s12 + $0x140] ss:$12 sps:$4 sm:$0xff]  }
 0xb10   : > { %v14765_v45 = vpop.eup %14764  ;;  %13192 = vmatprep.subr.bf16.mxu0 %v13845_v50 }
 0xb11   : > { %4300 = vmatpush1.bf16.msra.mxu1 %v13833_v26  ;;  %v4119_v54 = vmul.f32 %v14765_v45, %v14757_v62  ;;  %v16770_v62 = vpop.f32.mrf.mxu1  ;;  %v4408_v7 = vpop.permute.xlu0 %4407 }
 0xb12   : > { %4301 = vmatprep.subr.bf16.mxu1 %v13838_v42  ;;  %v4406_v49 = vpop.permute.xlu1 %4405  ;;  %v13849_v42 = vld [vmem:[%s15975_s12 + $0x128] ss:$12 sps:$4 sm:$0xff]  }
 0xb13   : > { %13184 = vmatmul.mubr.msk.f32.gmra.mxu1 %vm3187_vm1, %v4119_v54  ;;  %13193 = vmatpush3.bf16.msra.mxu0 %v13845_v50 }
 0xb14   : > { %4321 = vmatprep.mubr.bf16.mxu1 %v18633_v10 }
 0xb15   : > { %4302 = vmatpush1.bf16.msra.mxu1 %v13836_v23 }
 0xb16   : > { %4303 = vmatprep.subr.bf16.mxu1 %v13841_v47  ;;  %v4410_v26 = vpop.permute.xlu1 %4409 }
 0xb19   : > { %4304 = vmatpush1.bf16.msra.mxu1 %v13839_v59 }
 0xb1a   : > { %13198 = vmatprep.subr.msk.mxu1 %vm3069_vm0, %v4418_v1 }
 0xbcc   : > { %v13182_v14 = vpop.f32.mrf.mxu1 }
 0xbce   : > { %v4198_v53 = vpop.f32.mrf.mxu1 }
 0xbcf   : > { %v4217_v22 = vpack.c.bf16 %v13182_v14, %v4198_v53 }
 0xbd1   : > { %12052 = vmatmul.mubr.msk.bf16.vlgmr.msra.gmra.mxu1 %vm3069_vm0, %v4217_v22  ;;  %13194 = vmatprep.mubr.msk.bf16.mxu0 %vm3069_vm0, %v4217_v22 }
 0xbd2   : > { %13199 = vmatpush3.xpose.msk.msra.mxu1 %vm3069_vm0, %v4418_v1  ;;  %4331 = vmatprep.mubr.bf16.mxu1 %v18633_v10 }
 0xbd3   : > { %13200 = vmatprep.subr.msk.mxu1 %vm3069_vm0, %v4416_v40  ;;  %v13185_v13 = vpop.f32.mrf.mxu1 }
 0xbd5   : > { %v4208_v16 = vpop.f32.mrf.mxu1 }
 0xbd6   : > { %v4218_v36 = vpack.c.bf16 %v13185_v13, %v4208_v16  ;;  %13201 = vmatpush3.xpose.msk.msra.mxu1 %vm3069_vm0, %v4416_v40 }
 0xbd7   : > { %13202 = vmatprep.subr.msk.mxu1 %vm3069_vm0, %v4414_v25 }
 0xbd8   : > { %13195 = vmatmul.mubr.msk.bf16.vlgmr.msra.gmra.mxu0 %vm3069_vm0, %v4218_v36 }
 0xbd9   : > { %12053 = vmatmul.mubr.msk.bf16.gmra.mxu1 %vm3069_vm0, %v4218_v36 }
 0xbda   : > { %13203 = vmatpush3.xpose.msk.msra.mxu1 %vm3069_vm0, %v4414_v25  ;;  %13206 = vmatprep.mubr.msk.f32.mxu1 %vm3069_vm0, %v4404_v61 }
 0xbdb   : > { %13204 = vmatprep.subr.msk.mxu1 %vm3069_vm0, %v4412_v24 }
 0xbde   : > { %13205 = vmatpush3.xpose.msk.msra.mxu1 %vm3069_vm0, %v4412_v24 }
 0xbdf   : > { %13226 = vmatprep.subr.bf16.mxu1 %v13846_v46 }
 0xbe1   : > { %13207 = vmatmul.mubr.msk.f32.vlgmr.msra.gmra.mxu1 %vm3069_vm0, %v4406_v49 }
 0xbe2   : > { %13227 = vmatpush3.bf16.msra.mxu1 %v13846_v46  ;;  %13209 = vmatprep.mubr.msk.f32.mxu1 %vm3069_vm0, %v4408_v7 }
 0xbe3   : > { %13228 = vmatprep.subr.bf16.mxu1 %v13847_v52 }
 0xbe5   : > { %13210 = vmatmul.mubr.msk.f32.gmra.mxu1 %vm3069_vm0, %v4410_v26 }
 0xbe6   : > { %13229 = vmatpush3.bf16.msra.mxu1 %v13847_v52 }
 0xbe7   : > { %13230 = vmatprep.subr.bf16.mxu1 %v13848_v8 }
 0xbea   : > { %13231 = vmatpush3.bf16.msra.mxu1 %v13848_v8 }
 0xbeb   : > { %13232 = vmatprep.subr.bf16.mxu1 %v13849_v42 }
 0xbee   : > { %13233 = vmatpush3.bf16.msra.mxu1 %v13849_v42 }
 0xbef   : > { %13252 = vmatprep.subr.mxu1 %v16522_v11 }
 0xc91   : > { %v4323_v45 = vpop.f32.mrf.mxu1 }
 0xc92   : > { %v16794_v54 = vadd.f32 %v4323_v45, %v16700_v20 }
 0xc93   : > { %v4325_v23 = vpop.f32.mrf.mxu1 }
 0xc94   : > { %v16797_v47 = vadd.f32 %v4325_v23, %v16704_v15 }
 0xc95   : > { %v4327_v59 = vpop.f32.mrf.mxu1 }
 0xc96   : > { %v16800_v1 = vadd.f32 %v4327_v59, %v16708_v43 }
 0xc97   : > { %v16802_v18 = vpop.f32.mrf.mxu1 }
 0xc98   : > { %v13196_v12 = vpop.f32.mrf.mxu0 }
 0xc99   : > { %v16805_v50 = vadd.f32 %v13196_v12, %v16706_v29  ;;  %v4333_v40 = vpop.f32.mrf.mxu1 }
 0xc9a   : > { %v16808_v14 = vadd.f32 %v4333_v40, %v16716_v19  ;;  %v4376_v20 = vpop.f32.mrf.mxu0 }
 0xc9b   : > { %v16811_v53 = vadd.f32 %v4376_v20, %v16712_v31  ;;  %v4335_v15 = vpop.f32.mrf.mxu1 }
 0xc9c   : > { %v16814_v22 = vadd.f32 %v4335_v15, %v16718_v6  ;;  %v13197_v43 = vpop.f32.mrf.mxu0 }
 0xc9d   : > { %v16817_v25 = vadd.f32 %v13197_v43, %v16714_v39  ;;  %v4337_v13 = vpop.f32.mrf.mxu1 }
 0xc9e   : > { %v16820_v29 = vadd.f32 %v4337_v13, %v16720_v5 }
 0xc9f   : > { %v16822_v16 = vpop.f32.mrf.mxu1 }
 0xca1   : > { %v13208_v19 = vpop.f32.mrf.mxu1 }
 0xca2   : > { %v4521_v36 = vmul.f32 0.125, %v13208_v19 }
 0xca3   : > { %v4501_v24 = vpop.f32.mrf.mxu1 }
 0xca4   : > { %v4520_v61 = vmul.f32 0.125, %v4501_v24  ;;  %v4525_v31 = vadd.f32 %v4521_v36, %v16524_v48 }
 0xca5   : > { %v13211_v46 = vpop.f32.mrf.mxu1 }
 0xca6   : > { %v4531_v6 = vsel %vm3187_vm1, %v4525_v31, -inf  ;;  %v4524_v49 = vadd.f32 %v4520_v61, %v16526_v28  ;;  %v4523_v52 = vmul.f32 0.125, %v13211_v46 }
 0xca7   : > { %4532 = vmax.xlane.f32.xlu1 %v4531_v6  ;;  %v4511_v39 = vpop.f32.mrf.mxu1 }
 0xca8   : > { %v4522_v7 = vmul.f32 0.125, %v4511_v39  ;;  %v4528_v5 = vsel %vm3187_vm1, %v4524_v49, -inf  ;;  %v4527_v42 = vadd.f32 %v4523_v52, %v16529_v3 }
 0xca9   : > { %4529 = vmax.xlane.f32.xlu0 %v4528_v5 }
 0xcaa   : > { %v4526_v8 = vadd.f32 %v4522_v7, %v16533_v63  ;;  %v4537_v48 = vsel %vm3187_vm1, %v4527_v42, -inf }
 0xcac   : > { %v4534_v26 = vsel %vm3187_vm1, %v4526_v8, -inf }
 0xcad   : > { %4535 = vmax.xlane.f32.xlu0 %v4534_v26 }
 0xcb1   : > { %4538 = vmax.xlane.f32.xlu0 %v4537_v48  ;;  %v13852_v48 = vld [vmem:[%s15975_s12 + $0x16c] ss:$12 sps:$4 sm:$0xff]  }
 0xd30   : > { %v4533_v45 = vpop.xlane.xlu1 %4532 }
 0xd31   : > { %v4541_v23 = vsub.f32 %v4525_v31, %v4533_v45 }
 0xd32   : > { %v4530_v28 = vpop.xlane.xlu0 %4529 }
 0xd33   : > { %v4546_v59 = vmul.f32 1.442695, %v4541_v23  ;;  %v4540_v12 = vsub.f32 %v4524_v49, %v4530_v28  ;;  %v13850_v23 = vld [vmem:[%s15975_s12 + $0x168] ss:$12 sps:$4 sm:$0xff]  }
 0xd35   : > { %14766 = vpow2.f32 %v4546_v59  ;;  %v4544_v40 = vmul.f32 1.442695, %v4540_v12  ;;  %v13855_v59 = vld [vmem:[%s15975_s12 + $0x154] ss:$12 sps:$4 sm:$0xff]  }
 0xd36   : > { %v4536_v20 = vpop.xlane.xlu0 %4535 }
 0xd37   : > { %14768 = vpow2.f32 %v4544_v40  ;;  %v4542_v15 = vsub.f32 %v4526_v8, %v4536_v20  ;;  %v13853_v20 = vld [vmem:[%s15975_s12 + $0x150] ss:$12 sps:$4 sm:$0xff]  }
 0xd39   : > { %v4548_v43 = vmul.f32 1.442695, %v4542_v15 }
 0xd3a   : > { %v4539_v63 = vpop.xlane.xlu0 %4538 }
 0xd3b   : > { %14770 = vpow2.f32 %v4548_v43  ;;  %v4543_v13 = vsub.f32 %v4527_v42, %v4539_v63  ;;  %v13858_v43 = vld [vmem:[%s15975_s12 + $0x13c] ss:$12 sps:$4 sm:$0xff]   ;;  %v13856_v63 = vld [vmem:[%s15975_s12 + $0x138] ss:$12 sps:$4 sm:$0xff]  }
 0xd3d   : > { %v4550_v19 = vmul.f32 1.442695, %v4543_v13  ;;  %v13861_v13 = vld [vmem:[%s15975_s12 + $0x124] ss:$12 sps:$4 sm:$0xff]  }
 0xd3f   : > { %14772 = vpow2.f32 %v4550_v19  ;;  %v13859_v19 = vld [vmem:[%s15975_s12 + $0x120] ss:$12 sps:$4 sm:$0xff]  }
 0xd42   : > { %v14767_v3 = vpop.eup %14766 }
 0xd43   : > { %v4555_v36 = vsel %vm3187_vm1, %v14767_v3, 0.0 }
 0xd44   : > { %v14769_v24 = vpop.eup %14768  ;;  %4556 = vadd.xlane.f32.xlu1 %v4555_v36  ;;  %v16863_v36 = vpop.f32.mrf.mxu0 }
 0xd45   : > { %v4552_v61 = vsel %vm3187_vm1, %v14769_v24, 0.0 }
 0xd46   : > { %4553 = vadd.xlane.f32.xlu0 %v4552_v61 }
 0xd48   : > { %v14771_v31 = vpop.eup %14770 }
 0xd49   : > { %v4558_v46 = vsel %vm3187_vm1, %v14771_v31, 0.0 }
 0xd4a   : > { %4559 = vadd.xlane.f32.xlu0 %v4558_v46 }
 0xd4c   : > { %v14773_v6 = vpop.eup %14772 }
 0xd4d   : > { %v4561_v49 = vsel %vm3187_vm1, %v14773_v6, 0.0 }
 0xd4e   : > { %4562 = vadd.xlane.f32.xlu1 %v4561_v49  ;;  %v12741_v49 = vadd.f32 %v16496_v56, %v16492_v21 }
 0xd5f   : > { %4580 = vrot.lane.b32.xlu1 %v16498_v51, %s15426_s15 }
 0xd60   : > { %4582 = vrot.lane.b32.xlu0 %v16645_v0, %s15426_s15 }
 0xd63   : > { %4578 = vrot.lane.b32.xlu1 %v16663_v17, %s15426_s15 }
 0xd67   : > { %4576 = vrot.lane.b32.xlu1 %v16490_v27, %s15426_s15 }
 0xdcd   : > { %v4557_v52 = vpop.xlane.xlu1 %4556 }
 0xdcf   : > { %v4554_v39 = vpop.xlane.xlu0 %4553 }
 0xdd0   : > { %14774 = vrcp.f32 %v4554_v39  ;;  %v16883_v39 = vadd.f32 %v12741_v49, %v16576_v30 }
 0xdd1   : > { %14776 = vrcp.f32 %v4557_v52 }
 0xdd3   : > { %v4560_v7 = vpop.xlane.xlu0 %4559 }
 0xdd4   : > { %14778 = vrcp.f32 %v4560_v7 }
 0xdd7   : > { %v4563_v5 = vpop.xlane.xlu1 %4562  ;;  %v4583_v8 = vpop.permute.xlu0 %4582 }
 0xdd8   : > { %14780 = vrcp.f32 %v4563_v5  ;;  %13212 = vmatprep.subr.mxu0 %v4583_v8 }
 0xdd9   : > { %13213 = vmatpush3.msra.mxu0 %v4583_v8 }
 0xddb   : > { %v4581_v51 = vpop.permute.xlu1 %4580 }
 0xddc   : > { %13214 = vmatprep.subr.mxu0 %v4581_v51 }
 0xddd   : > { %v14775_v0 = vpop.eup %14774  ;;  %13215 = vmatpush3.msra.mxu0 %v4581_v51 }
 0xdde   : > { %v4568_v17 = vmul.f32 %v14775_v0, %v14769_v24  ;;  %v14777_v26 = vpop.eup %14776 }
 0xddf   : > { %v4579_v27 = vpop.permute.xlu1 %4578  ;;  %v4569_v28 = vmul.f32 %v14777_v26, %v14767_v3  ;;  %v16859_v3 = vadd.f32 %v16486_v4, %v16482_v34  ;;  %v16874_v4 = vadd.f32 %v16472_v37, %v16474_v38  ;;  %v18634_v37 = vld [vmem:[#allocation58_spill] sm:$0xff]  ;;  %v18635_v38 = vld [vmem:[#allocation59_spill] sm:$0xff] }
 0xde0   : > { %13216 = vmatprep.subr.mxu0 %v4579_v27  ;;  %13220 = vmatprep.mubr.msk.f32.mxu0 %vm3187_vm1, %v4568_v17 }
 0xde1   : > { %13217 = vmatpush3.msra.mxu0 %v4579_v27  ;;  %v14779_v42 = vpop.eup %14778 }
 0xde2   : > { %v4570_v40 = vmul.f32 %v14779_v42, %v14771_v31 }
 0xde3   : > { %v4577_v45 = vpop.permute.xlu1 %4576 }
 0xde4   : > { %13218 = vmatprep.subr.mxu0 %v4577_v45 }
 0xde5   : > { %v14781_v12 = vpop.eup %14780  ;;  %13219 = vmatpush3.msra.mxu0 %v4577_v45 }
 0xde6   : > { %13221 = vmatmul.mubr.msk.f32.vlgmr.msra.gmra.mxu0 %vm3187_vm1, %v4569_v28  ;;  %4765 = vmatprep.subr.bf16.mxu0 %v13852_v48  ;;  %v4571_v15 = vmul.f32 %v14781_v12, %v14773_v6 }
 0xde7   : > { %13223 = vmatprep.mubr.msk.f32.mxu0 %vm3187_vm1, %v4570_v40  ;;  %4766 = vmatpush1.bf16.msra.mxu0 %v13850_v23  ;;  %v16939_v40 = vld [vmem:[#allocation7 + $0x8] sm:$0xff] }
 0xde8   : > { %4767 = vmatprep.subr.bf16.mxu0 %v13855_v59 }
 0xdea   : > { %13224 = vmatmul.mubr.msk.f32.gmra.mxu0 %vm3187_vm1, %v4571_v15  ;;  %v16943_v15 = vld [vmem:[#allocation7] sm:$0xff] }
 0xdeb   : > { %4768 = vmatpush1.bf16.msra.mxu0 %v13853_v20  ;;  %4789 = vmatprep.mubr.bf16.mxu0 %v18633_v10 }
 0xdec   : > { %4769 = vmatprep.subr.bf16.mxu0 %v13858_v43 }
 0xdef   : > { %4770 = vmatpush1.bf16.msra.mxu0 %v13856_v63 }
 0xdf0   : > { %4771 = vmatprep.subr.bf16.mxu0 %v13861_v13 }
 0xdf3   : > { %4772 = vmatpush1.bf16.msra.mxu0 %v13859_v19  ;;  %v16947_v19 = vld [vmem:[#allocation7 + $0x10] sm:$0xff] }
 0xdf4   : > { %13238 = vmatprep.subr.msk.mxu0 %vm3069_vm0, %v16859_v3 }
 0xea6   : > { %v13222_v24 = vpop.f32.mrf.mxu0 }
 0xea8   : > { %v4666_v61 = vpop.f32.mrf.mxu0 }
 0xea9   : > { %v4685_v31 = vpack.c.bf16 %v13222_v24, %v4666_v61 }
 0xeaa   : > { %v13225_v46 = vpop.f32.mrf.mxu0 }
 0xeab   : > { %12080 = vmatmul.mubr.msk.bf16.vlgmr.msra.gmra.mxu0 %vm3069_vm0, %v4685_v31  ;;  %13234 = vmatprep.mubr.msk.bf16.mxu1 %vm3069_vm0, %v4685_v31  ;;  %v16951_v31 = vld [vmem:[#allocation7 + $0x18] sm:$0xff] }
 0xeac   : > { %13239 = vmatpush3.xpose.msk.msra.mxu0 %vm3069_vm0, %v16859_v3  ;;  %v4676_v6 = vpop.f32.mrf.mxu0  ;;  %4799 = vmatprep.mubr.bf16.mxu0 %v18633_v10 }
 0xead   : > { %v4686_v34 = vpack.c.bf16 %v13225_v46, %v4676_v6  ;;  %13240 = vmatprep.subr.msk.mxu0 %vm3069_vm0, %v16478_v55 }
 0xeaf   : > { %13235 = vmatmul.mubr.msk.bf16.vlgmr.msra.gmra.mxu1 %vm3069_vm0, %v4686_v34 }
 0xeb0   : > { %13241 = vmatpush3.xpose.msk.msra.mxu0 %vm3069_vm0, %v16478_v55  ;;  %13253 = vmatpush3.msra.mxu1 %v16522_v11 }
 0xeb1   : > { %13242 = vmatprep.subr.msk.mxu0 %vm3069_vm0, %v16874_v4  ;;  %13254 = vmatprep.subr.mxu1 %v16518_v60 }
 0xeb2   : > { %13255 = vmatpush3.msra.mxu1 %v16518_v60 }
 0xeb3   : > { %13256 = vmatprep.subr.mxu1 %v16883_v39  ;;  %12081 = vmatmul.mubr.msk.bf16.gmra.mxu0 %vm3069_vm0, %v4686_v34 }
 0xeb4   : > { %13243 = vmatpush3.xpose.msk.msra.mxu0 %vm3069_vm0, %v16874_v4  ;;  %13257 = vmatpush3.msra.mxu1 %v16883_v39 }
 0xeb5   : > { %13244 = vmatprep.subr.msk.mxu0 %vm3069_vm0, %v16466_v41  ;;  %13246 = vmatprep.mubr.msk.f32.mxu0 %vm3069_vm0, %v16422_v57 }
 0xeb6   : > { %13258 = vmatprep.subr.mxu1 %v16520_v33 }
 0xeb7   : > { %13259 = vmatpush3.msra.mxu1 %v16520_v33 }
 0xeb8   : > { %13245 = vmatpush3.xpose.msk.msra.mxu0 %vm3069_vm0, %v16466_v41 }
 0xebb   : > { %13247 = vmatmul.mubr.msk.f32.vlgmr.msra.gmra.mxu0 %vm3069_vm0, %v16424_v58 }
 0xebc   : > { %13249 = vmatprep.mubr.msk.f32.mxu0 %vm3069_vm0, %v18634_v37 }
 0xebf   : > { %13250 = vmatmul.mubr.msk.f32.gmra.mxu0 %vm3069_vm0, %v18635_v38 }
 0xf6b   : > { %v4791_v21 = vpop.f32.mrf.mxu0 }
 0xf6c   : > { %v16909_v56 = vadd.f32 %v4791_v21, %v16794_v54 }
 0xf6d   : > { %v4793_v30 = vpop.f32.mrf.mxu0 }
 0xf6e   : > { %v16912_v52 = vadd.f32 %v4793_v30, %v16797_v47 }
 0xf6f   : > { %v4795_v7 = vpop.f32.mrf.mxu0  ;;  %v13236_v5 = vpop.f32.mrf.mxu1 }
 0xf70   : > { %v16915_v8 = vadd.f32 %v4795_v7, %v16800_v1  ;;  %v16918_v51 = vadd.f32 %v13236_v5, %v16805_v50 }
 0xf71   : > { %v16920_v0 = vpop.f32.mrf.mxu0  ;;  %v4844_v17 = vpop.f32.mrf.mxu1 }
 0xf72   : > { %v16923_v27 = vadd.f32 %v4844_v17, %v16811_v53 }
 0xf73   : > { %v4801_v54 = vpop.f32.mrf.mxu0  ;;  %v13237_v26 = vpop.f32.mrf.mxu1 }
 0xf74   : > { %v16926_v42 = vadd.f32 %v4801_v54, %v16808_v14  ;;  %v16929_v47 = vadd.f32 %v13237_v26, %v16817_v25 }
 0xf75   : > { %v4803_v48 = vpop.f32.mrf.mxu0 }
 0xf76   : > { %v16932_v1 = vadd.f32 %v4803_v48, %v16814_v22 }
 0xf77   : > { %v4805_v50 = vpop.f32.mrf.mxu0 }
 0xf78   : > { %v16935_v45 = vadd.f32 %v4805_v50, %v16820_v29 }
 0xf79   : > { %v16937_v23 = vpop.f32.mrf.mxu0 }
 0xf7b   : > { %v13248_v53 = vpop.f32.mrf.mxu0 }
 0xf7c   : > { %v4981_v28 = vmul.f32 0.125, %v13248_v53 }
 0xf7d   : > { %v4961_v59 = vpop.f32.mrf.mxu0 }
 0xf7e   : > { %v4980_v12 = vmul.f32 0.125, %v4961_v59  ;;  %v4985_v14 = vadd.f32 %v16939_v40, %v4981_v28 }
 0xf7f   : > { %v13251_v25 = vpop.f32.mrf.mxu0 }
 0xf80   : > { %v4991_v20 = vsel %vm3187_vm1, %v4985_v14, -inf  ;;  %v4984_v22 = vadd.f32 %v16943_v15, %v4980_v12  ;;  %v4983_v43 = vmul.f32 0.125, %v13251_v25 }
 0xf81   : > { %4992 = vmax.xlane.f32.xlu1 %v4991_v20  ;;  %v4971_v29 = vpop.f32.mrf.mxu0 }
 0xf82   : > { %v4982_v63 = vmul.f32 0.125, %v4971_v29  ;;  %v4988_v13 = vsel %vm3187_vm1, %v4984_v22, -inf  ;;  %v4987_v46 = vadd.f32 %v16951_v31, %v4983_v43  ;;  %v13864_v43 = vld [vmem:[%s15975_s12 + $0x1cc] ss:$12 sps:$4 sm:$0xff]  }
 0xf83   : > { %4989 = vmax.xlane.f32.xlu0 %v4988_v13  ;;  %5209 = vmatprep.subr.bf16.mxu1 %v13864_v43  ;;  %v13862_v13 = vld [vmem:[%s15975_s12 + $0x1c8] ss:$12 sps:$4 sm:$0xff]  }
 0xf84   : > { %v4986_v24 = vadd.f32 %v16947_v19, %v4982_v63  ;;  %v4997_v6 = vsel %vm3187_vm1, %v4987_v46, -inf }
 0xf86   : > { %v4994_v61 = vsel %vm3187_vm1, %v4986_v24, -inf }
 0xf87   : > { %4995 = vmax.xlane.f32.xlu0 %v4994_v61 }
 0xf8b   : > { %4998 = vmax.xlane.f32.xlu0 %v4997_v6  ;;  %v13865_v6 = vld [vmem:[%s15975_s12 + $0x1b0] ss:$12 sps:$4 sm:$0xff]  }
0x100a   : > { %v4993_v34 = vpop.xlane.xlu1 %4992 }
0x100b   : > { %v5001_v49 = vsub.f32 %v4985_v14, %v4993_v34  ;;  %v13870_v34 = vld [vmem:[%s15975_s12 + $0x19c] ss:$12 sps:$4 sm:$0xff]  }
0x100c   : > { %v4990_v21 = vpop.xlane.xlu0 %4989 }
0x100d   : > { %v5006_v30 = vmul.f32 1.442695, %v5001_v49  ;;  %v5000_v7 = vsub.f32 %v4984_v22, %v4990_v21 }
0x100f   : > { %14782 = vpow2.f32 %v5006_v30  ;;  %v5004_v5 = vmul.f32 1.442695, %v5000_v7  ;;  %v13868_v30 = vld [vmem:[%s15975_s12 + $0x198] ss:$12 sps:$4 sm:$0xff]  }
0x1010   : > { %v4996_v17 = vpop.xlane.xlu0 %4995  ;;  %v13873_v7 = vld [vmem:[%s15975_s12 + $0x184] ss:$12 sps:$4 sm:$0xff]  }
0x1011   : > { %14784 = vpow2.f32 %v5004_v5  ;;  %v5002_v54 = vsub.f32 %v4986_v24, %v4996_v17  ;;  %v13867_v24 = vld [vmem:[%s15975_s12 + $0x1b4] ss:$12 sps:$4 sm:$0xff]  }
0x1012   : > { %v13871_v5 = vld [vmem:[%s15975_s12 + $0x180] ss:$12 sps:$4 sm:$0xff]  }
0x1013   : > { %v5008_v26 = vmul.f32 1.442695, %v5002_v54  ;;  %v13875_v54 = vld [vmem:[%s15975_s12 + $0x1b8] ss:$12 sps:$4 sm:$0xff]  }
0x1014   : > { %v4999_v48 = vpop.xlane.xlu0 %4998 }
0x1015   : > { %14786 = vpow2.f32 %v5008_v26  ;;  %v5003_v50 = vsub.f32 %v4987_v46, %v4999_v48  ;;  %v13876_v26 = vld [vmem:[%s15975_s12 + $0x1a0] ss:$12 sps:$4 sm:$0xff]   ;;  %v13877_v48 = vld [vmem:[%s15975_s12 + $0x188] ss:$12 sps:$4 sm:$0xff]  }
0x1017   : > { %v5010_v53 = vmul.f32 1.442695, %v5003_v50  ;;  %v16993_v50 = vpop.f32.mrf.mxu1 }
0x1019   : > { %14788 = vpow2.f32 %v5010_v53 }
0x101c   : > { %v14783_v28 = vpop.eup %14782 }
0x101d   : > { %v5015_v59 = vsel %vm3187_vm1, %v14783_v28, 0.0 }
0x101e   : > { %v14785_v12 = vpop.eup %14784  ;;  %5016 = vadd.xlane.f32.xlu1 %v5015_v59 }
0x101f   : > { %v5012_v14 = vsel %vm3187_vm1, %v14785_v12, 0.0 }
0x1020   : > { %5013 = vadd.xlane.f32.xlu0 %v5012_v14 }
0x1022   : > { %v14787_v25 = vpop.eup %14786 }
0x1023   : > { %v5018_v20 = vsel %vm3187_vm1, %v14787_v25, 0.0 }
0x1024   : > { %5019 = vadd.xlane.f32.xlu0 %v5018_v20 }
0x1026   : > { %v14789_v22 = vpop.eup %14788 }
0x1027   : > { %v5021_v29 = vsel %vm3187_vm1, %v14789_v22, 0.0 }
0x1028   : > { %5022 = vadd.xlane.f32.xlu1 %v5021_v29 }
0x1039   : > { %5327 = vrot.lane.b32.xlu1 %v16478_v55, %s15426_s15  ;;  %v13874_v55 = vld [vmem:[%s15975_s12 + $0x1d0] ss:$12 sps:$4 sm:$0xff]  }
0x103a   : > { %5329 = vrot.lane.b32.xlu0 %v16859_v3, %s15426_s15  ;;  %13266 = vmatprep.subr.bf16.mxu0 %v13874_v55 }
0x103b   : > { %13267 = vmatpush3.bf16.msra.mxu0 %v13874_v55 }
0x103c   : > { %13268 = vmatprep.subr.bf16.mxu0 %v13875_v54 }
0x103d   : > { %5325 = vrot.lane.b32.xlu1 %v16874_v4, %s15426_s15 }
0x103e   : > { %5315 = vrot.lane.b32.xlu0 %v16422_v57, %s15426_s15 }
0x103f   : > { %13269 = vmatpush3.bf16.msra.mxu0 %v13875_v54 }
0x1040   : > { %13270 = vmatprep.subr.bf16.mxu0 %v13876_v26 }
0x1041   : > { %5323 = vrot.lane.b32.xlu1 %v16466_v41, %s15426_s15 }
0x1042   : > { %5319 = vrot.lane.b32.xlu0 %v18634_v37, %s15426_s15 }
0x1043   : > { %13271 = vmatpush3.bf16.msra.mxu0 %v13876_v26 }
0x1044   : > { %13272 = vmatprep.subr.bf16.mxu0 %v13877_v48 }
0x1045   : > { %5317 = vrot.lane.b32.xlu1 %v16424_v58, %s15426_s15 }
0x1047   : > { %13273 = vmatpush3.bf16.msra.mxu0 %v13877_v48 }
0x1049   : > { %5321 = vrot.lane.b32.xlu1 %v18635_v38, %s15426_s15 }
0x10a7   : > { %v5017_v3 = vpop.xlane.xlu1 %5016 }
0x10a8   : > { %14790 = vrcp.f32 %v5017_v3 }
0x10a9   : > { %v5014_v57 = vpop.xlane.xlu0 %5013 }
0x10aa   : > { %14792 = vrcp.f32 %v5014_v57 }
0x10ad   : > { %v5020_v41 = vpop.xlane.xlu0 %5019 }
0x10ae   : > { %14794 = vrcp.f32 %v5020_v41 }
0x10b1   : > { %v5023_v4 = vpop.xlane.xlu1 %5022  ;;  %v5330_v17 = vpop.permute.xlu0 %5329 }
0x10b2   : > { %14796 = vrcp.f32 %v5023_v4 }
0x10b5   : > { %v14791_v37 = vpop.eup %14790  ;;  %v5328_v53 = vpop.permute.xlu1 %5327 }
0x10b6   : > { %v5029_v38 = vmul.f32 %v14791_v37, %v14783_v28  ;;  %v5316_v43 = vpop.permute.xlu0 %5315 }
0x10b7   : > { %v14793_v58 = vpop.eup %14792 }
0x10b8   : > { %v5028_v63 = vmul.f32 %v14793_v58, %v14785_v12 }
0x10b9   : > { %v5326_v14 = vpop.permute.xlu1 %5325 }
0x10ba   : > { %13260 = vmatprep.mubr.msk.f32.mxu1 %vm3187_vm1, %v5028_v63  ;;  %v5320_v3 = vpop.permute.xlu0 %5319 }
0x10bb   : > { %v14795_v61 = vpop.eup %14794  ;;  %13261 = vmatmul.mubr.msk.f32.vlgmr.msra.gmra.mxu1 %vm3187_vm1, %v5029_v38 }
0x10bc   : > { %5210 = vmatpush1.bf16.msra.mxu1 %v13862_v13  ;;  %v5030_v46 = vmul.f32 %v14795_v61, %v14787_v25 }
0x10bd   : > { %5211 = vmatprep.subr.bf16.mxu1 %v13867_v24  ;;  %v5324_v29 = vpop.permute.xlu1 %5323 }
0x10be   : > { %13263 = vmatprep.mubr.msk.f32.mxu1 %vm3187_vm1, %v5030_v46 }
0x10bf   : > { %v14797_v49 = vpop.eup %14796 }
0x10c0   : > { %5212 = vmatpush1.bf16.msra.mxu1 %v13865_v6  ;;  %v5031_v21 = vmul.f32 %v14797_v49, %v14789_v22 }
0x10c1   : > { %5213 = vmatprep.subr.bf16.mxu1 %v13870_v34  ;;  %v5318_v55 = vpop.permute.xlu1 %5317 }
0x10c2   : > { %13264 = vmatmul.mubr.msk.f32.gmra.mxu1 %vm3187_vm1, %v5031_v21 }
0x10c3   : > { %5233 = vmatprep.mubr.bf16.mxu1 %v18633_v10 }
0x10c4   : > { %5214 = vmatpush1.bf16.msra.mxu1 %v13868_v30 }
0x10c5   : > { %5215 = vmatprep.subr.bf16.mxu1 %v13873_v7  ;;  %v5322_v57 = vpop.permute.xlu1 %5321 }
0x10c8   : > { %5216 = vmatpush1.bf16.msra.mxu1 %v13871_v5 }
0x10c9   : > { %13278 = vmatprep.subr.msk.mxu1 %vm3069_vm0, %v5330_v17 }
0x117b   : > { %v13262_v28 = vpop.f32.mrf.mxu1 }
0x117d   : > { %v5110_v59 = vpop.f32.mrf.mxu1 }
0x117e   : > { %v5129_v12 = vpack.c.bf16 %v13262_v28, %v5110_v59 }
0x1180   : > { %12108 = vmatmul.mubr.msk.bf16.vlgmr.msra.gmra.mxu1 %vm3069_vm0, %v5129_v12  ;;  %13274 = vmatprep.mubr.msk.bf16.mxu0 %vm3069_vm0, %v5129_v12 }
0x1181   : > { %13279 = vmatpush3.xpose.msk.msra.mxu1 %vm3069_vm0, %v5330_v17  ;;  %5243 = vmatprep.mubr.bf16.mxu1 %v18633_v10 }
0x1182   : > { %13280 = vmatprep.subr.msk.mxu1 %vm3069_vm0, %v5328_v53  ;;  %v13265_v25 = vpop.f32.mrf.mxu1 }
0x1184   : > { %v5120_v20 = vpop.f32.mrf.mxu1 }
0x1185   : > { %v5130_v22 = vpack.c.bf16 %v13265_v25, %v5120_v20  ;;  %13281 = vmatpush3.xpose.msk.msra.mxu1 %vm3069_vm0, %v5328_v53 }
0x1186   : > { %13282 = vmatprep.subr.msk.mxu1 %vm3069_vm0, %v5326_v14 }
0x1187   : > { %13275 = vmatmul.mubr.msk.bf16.vlgmr.msra.gmra.mxu0 %vm3069_vm0, %v5130_v22 }
0x1188   : > { %12109 = vmatmul.mubr.msk.bf16.gmra.mxu1 %vm3069_vm0, %v5130_v22 }
0x1189   : > { %13283 = vmatpush3.xpose.msk.msra.mxu1 %vm3069_vm0, %v5326_v14  ;;  %13286 = vmatprep.mubr.msk.f32.mxu1 %vm3069_vm0, %v5316_v43 }
0x118a   : > { %13284 = vmatprep.subr.msk.mxu1 %vm3069_vm0, %v5324_v29 }
0x118d   : > { %13285 = vmatpush3.xpose.msk.msra.mxu1 %vm3069_vm0, %v5324_v29 }
0x1190   : > { %13287 = vmatmul.mubr.msk.f32.vlgmr.msra.gmra.mxu1 %vm3069_vm0, %v5318_v55 }
0x1191   : > { %13289 = vmatprep.mubr.msk.f32.mxu1 %vm3069_vm0, %v5320_v3 }
0x1194   : > { %13290 = vmatmul.mubr.msk.f32.gmra.mxu1 %vm3069_vm0, %v5322_v57 }
0x1240   : > { %v5235_v41 = vpop.f32.mrf.mxu1 }
0x1241   : > { %v17012_v4 = vadd.f32 %v5235_v41, %v16909_v56 }
0x1242   : > { %v5237_v37 = vpop.f32.mrf.mxu1 }
0x1243   : > { %v17015_v58 = vadd.f32 %v5237_v37, %v16912_v52 }
0x1244   : > { %v5239_v63 = vpop.f32.mrf.mxu1 }
0x1245   : > { %v17018_v13 = vadd.f32 %v5239_v63, %v16915_v8 }
0x1246   : > { %v17020_v38 = vpop.f32.mrf.mxu1 }
0x1247   : > { %v13276_v24 = vpop.f32.mrf.mxu0 }
0x1248   : > { %v17023_v61 = vadd.f32 %v13276_v24, %v16918_v51  ;;  %v5245_v46 = vpop.f32.mrf.mxu1 }
0x1249   : > { %v17026_v6 = vadd.f32 %v5245_v46, %v16926_v42  ;;  %v5288_v56 = vpop.f32.mrf.mxu0 }
0x124a   : > { %v17029_v34 = vadd.f32 %v5288_v56, %v16923_v27  ;;  %v5247_v52 = vpop.f32.mrf.mxu1 }
0x124b   : > { %v17032_v49 = vadd.f32 %v5247_v52, %v16932_v1  ;;  %v13277_v8 = vpop.f32.mrf.mxu0 }
0x124c   : > { %v17035_v21 = vadd.f32 %v13277_v8, %v16929_v47  ;;  %v5249_v30 = vpop.f32.mrf.mxu1 }
0x124d   : > { %v17038_v51 = vadd.f32 %v5249_v30, %v16935_v45 }
0x124e   : > { %v17040_v7 = vpop.f32.mrf.mxu1 }
0x1250   : > { %v13288_v42 = vpop.f32.mrf.mxu1 }
0x1251   : > { %v5433_v5 = vmul.f32 0.125, %v13288_v42  ;;  %v13884_v42 = vld [vmem:[%s15975_s12 + $0x230] ss:$12 sps:$4 sm:$0xff]  }
0x1252   : > { %v5413_v17 = vpop.f32.mrf.mxu1  ;;  %13306 = vmatprep.subr.bf16.mxu1 %v13884_v42 }
0x1253   : > { %v5432_v54 = vmul.f32 0.125, %v5413_v17  ;;  %v5437_v27 = vadd.f32 %v16939_v40, %v5433_v5  ;;  %v13888_v5 = vld [vmem:[%s15975_s12 + $0x218] ss:$12 sps:$4 sm:$0xff]   ;;  %13307 = vmatpush3.bf16.msra.mxu1 %v13884_v42 }
0x1254   : > { %v13291_v26 = vpop.f32.mrf.mxu1  ;;  %13308 = vmatprep.subr.bf16.mxu1 %v13888_v5 }
0x1255   : > { %v5443_v1 = vsel %vm3187_vm1, %v5437_v27, -inf  ;;  %v5436_v48 = vadd.f32 %v16943_v15, %v5432_v54  ;;  %v5435_v53 = vmul.f32 0.125, %v13291_v26 }
0x1256   : > { %5444 = vmax.xlane.f32.xlu1 %v5443_v1  ;;  %v5423_v47 = vpop.f32.mrf.mxu1 }
0x1257   : > { %v5434_v28 = vmul.f32 0.125, %v5423_v47  ;;  %v5440_v45 = vsel %vm3187_vm1, %v5436_v48, -inf  ;;  %v5439_v14 = vadd.f32 %v16951_v31, %v5435_v53  ;;  %13309 = vmatpush3.bf16.msra.mxu1 %v13888_v5  ;;  %v13880_v53 = vld [vmem:[%s15975_s12 + $0x22c] ss:$12 sps:$4 sm:$0xff]   ;;  %v3908_v5 = vadd.f32 %v16722_v9, %v16698_v35  ;;  %v18638_v9 = vld [vmem:[#allocation42_spill] sm:$0xff] }
0x1258   : > { %5441 = vmax.xlane.f32.xlu0 %v5440_v45  ;;  %v13878_v45 = vld [vmem:[%s15975_s12 + $0x228] ss:$12 sps:$4 sm:$0xff]  }
0x1259   : > { %v5438_v59 = vadd.f32 %v16947_v19, %v5434_v28  ;;  %v5449_v40 = vsel %vm3187_vm1, %v5439_v14, -inf }
0x125b   : > { %v5446_v12 = vsel %vm3187_vm1, %v5438_v59, -inf }
0x125c   : > { %5447 = vmax.xlane.f32.xlu0 %v5446_v12  ;;  %v13883_v12 = vld [vmem:[%s15975_s12 + $0x214] ss:$12 sps:$4 sm:$0xff]  }
0x1260   : > { %5450 = vmax.xlane.f32.xlu0 %v5449_v40 }
0x12df   : > { %v5445_v25 = vpop.xlane.xlu1 %5444 }
0x12e0   : > { %v5453_v20 = vsub.f32 %v5437_v27, %v5445_v25  ;;  %v13881_v25 = vld [vmem:[%s15975_s12 + $0x210] ss:$12 sps:$4 sm:$0xff]  }
0x12e1   : > { %v5442_v15 = vpop.xlane.xlu0 %5441 }
0x12e2   : > { %v5458_v22 = vmul.f32 1.442695, %v5453_v20  ;;  %v5452_v29 = vsub.f32 %v5436_v48, %v5442_v15  ;;  %v13887_v15 = vld [vmem:[%s15975_s12 + $0x1fc] ss:$12 sps:$4 sm:$0xff]  }
0x12e4   : > { %14798 = vpow2.f32 %v5458_v22  ;;  %v5456_v43 = vmul.f32 1.442695, %v5452_v29  ;;  %v13885_v22 = vld [vmem:[%s15975_s12 + $0x1f8] ss:$12 sps:$4 sm:$0xff]   ;;  %v13889_v29 = vld [vmem:[%s15975_s12 + $0x1e0] ss:$12 sps:$4 sm:$0xff]  }
0x12e5   : > { %v5448_v55 = vpop.xlane.xlu0 %5447 }
0x12e6   : > { %14800 = vpow2.f32 %v5456_v43  ;;  %v5454_v3 = vsub.f32 %v5438_v59, %v5448_v55  ;;  %v13891_v43 = vld [vmem:[%s15975_s12 + $0x1e4] ss:$12 sps:$4 sm:$0xff]   ;;  %v13892_v55 = vld [vmem:[%s15975_s12 + $0x200] ss:$12 sps:$4 sm:$0xff]  }
0x12e7   : > { %13310 = vmatprep.subr.bf16.mxu1 %v13892_v55 }
0x12e8   : > { %v5460_v57 = vmul.f32 1.442695, %v5454_v3  ;;  %13311 = vmatpush3.bf16.msra.mxu1 %v13892_v55  ;;  %v13893_v3 = vld [vmem:[%s15975_s12 + $0x1e8] ss:$12 sps:$4 sm:$0xff]  }
0x12e9   : > { %v5451_v19 = vpop.xlane.xlu0 %5450  ;;  %13312 = vmatprep.subr.bf16.mxu1 %v13893_v3 }
0x12ea   : > { %14802 = vpow2.f32 %v5460_v57  ;;  %v5455_v41 = vsub.f32 %v5439_v14, %v5451_v19  ;;  %v5291_v57 = vpop.f32.mrf.mxu0 }
0x12ec   : > { %v5462_v37 = vmul.f32 1.442695, %v5455_v41  ;;  %13313 = vmatpush3.bf16.msra.mxu1 %v13893_v3 }
0x12ee   : > { %14804 = vpow2.f32 %v5462_v37 }
0x12f1   : > { %v14799_v31 = vpop.eup %14798 }
0x12f2   : > { %v5467_v63 = vsel %vm3187_vm1, %v14799_v31, 0.0 }
0x12f3   : > { %v14801_v24 = vpop.eup %14800  ;;  %5468 = vadd.xlane.f32.xlu1 %v5467_v63 }
0x12f4   : > { %v5464_v46 = vsel %vm3187_vm1, %v14801_v24, 0.0 }
0x12f5   : > { %5465 = vadd.xlane.f32.xlu0 %v5464_v46  ;;  %v3898_v46 = vadd.f32 %v16710_v44, %v16696_v2  ;;  %v18636_v44 = vld [vmem:[#allocation55_spill] sm:$0xff] }
0x12f7   : > { %v14803_v56 = vpop.eup %14802 }
0x12f8   : > { %v5470_v52 = vsel %vm3187_vm1, %v14803_v56, 0.0 }
0x12f9   : > { %5471 = vadd.xlane.f32.xlu0 %v5470_v52  ;;  %v4395_v52 = vadd.f32 %v16802_v18, %v3898_v46  ;;  %v18647_v46 = vld [vmem:[#allocation46_spill] sm:$0xff] }
0x12fb   : > { %v14805_v8 = vpop.eup %14804 }
0x12fc   : > { %v5473_v30 = vsel %vm3187_vm1, %v14805_v8, 0.0 }
0x12fd   : > { %5474 = vadd.xlane.f32.xlu1 %v5473_v30 }
0x130e   : > { %5492 = vrot.lane.b32.xlu1 %v16518_v60, %s15426_s15 }
0x130f   : > { %5494 = vrot.lane.b32.xlu0 %v16522_v11, %s15426_s15 }
0x1312   : > { %5490 = vrot.lane.b32.xlu1 %v16883_v39, %s15426_s15 }
0x1316   : > { %5488 = vrot.lane.b32.xlu1 %v16520_v33, %s15426_s15 }
0x137c   : > { %v5469_v54 = vpop.xlane.xlu1 %5468 }
0x137e   : > { %v5466_v17 = vpop.xlane.xlu0 %5465 }
0x137f   : > { %14806 = vrcp.f32 %v5466_v17  ;;  %v4863_v17 = vadd.f32 %v16920_v0, %v4395_v52  ;;  %v18648_v52 = vld [vmem:[#allocation50_spill] sm:$0xff] }
0x1380   : > { %14808 = vrcp.f32 %v5469_v54  ;;  %v5795_v54 = vld [vmem:[%s745_s24] sm:$0x7] }
0x1382   : > { %v5472_v27 = vpop.xlane.xlu0 %5471 }
0x1383   : > { %14810 = vrcp.f32 %v5472_v27 }
0x1386   : > { %v5475_v60 = vpop.xlane.xlu1 %5474  ;;  %v5495_v11 = vpop.permute.xlu0 %5494 }
0x1387   : > { %14812 = vrcp.f32 %v5475_v60  ;;  %13292 = vmatprep.subr.mxu0 %v5495_v11  ;;  %v5804_v60 = vrot.slane %v5795_v54, %v18636_v44 }
0x1388   : > { %13293 = vmatpush3.msra.mxu0 %v5495_v11 }
0x138a   : > { %v5493_v33 = vpop.permute.xlu1 %5492 }
0x138b   : > { %13294 = vmatprep.subr.mxu0 %v5493_v33 }
0x138c   : > { %v14807_v39 = vpop.eup %14806  ;;  %13295 = vmatpush3.msra.mxu0 %v5493_v33 }
0x138d   : > { %v5480_v26 = vmul.f32 %v14807_v39, %v14801_v24  ;;  %v14809_v48 = vpop.eup %14808  ;;  %v18639_v39 = vld [vmem:[#allocation57_spill] sm:$0xff] }
0x138e   : > { %v5491_v1 = vpop.permute.xlu1 %5490  ;;  %v5481_v59 = vmul.f32 %v14809_v48, %v14799_v31 }
0x138f   : > { %13296 = vmatprep.subr.mxu0 %v5491_v1  ;;  %13300 = vmatprep.mubr.msk.f32.mxu0 %vm3187_vm1, %v5480_v26  ;;  %v5800_v26 = vrot.slane %v5795_v54, %v18639_v39 }
0x1390   : > { %13297 = vmatpush3.msra.mxu0 %v5491_v1  ;;  %v14811_v47 = vpop.eup %14810 }
0x1391   : > { %v5482_v40 = vmul.f32 %v14811_v47, %v14803_v56 }
0x1392   : > { %v5489_v28 = vpop.permute.xlu1 %5488 }
0x1393   : > { %13298 = vmatprep.subr.mxu0 %v5489_v28 }
0x1394   : > { %v14813_v14 = vpop.eup %14812  ;;  %13299 = vmatpush3.msra.mxu0 %v5489_v28 }
0x1395   : > { %13301 = vmatmul.mubr.msk.f32.vlgmr.msra.gmra.mxu0 %vm3187_vm1, %v5481_v59  ;;  %5677 = vmatprep.subr.bf16.mxu0 %v13880_v53  ;;  %v5483_v20 = vmul.f32 %v14813_v14, %v14805_v8  ;;  %v3948_v8 = vadd.f32 %v16770_v62, %v16702_v32  ;;  %v4401_v32 = vadd.f32 %v16822_v16, %v3908_v5  ;;  %v18640_v16 = vld [vmem:[#allocation48_spill] sm:$0xff]  ;;  %v18641_v14 = vld [vmem:[#allocation49_spill] sm:$0xff] }
0x1396   : > { %13303 = vmatprep.mubr.msk.f32.mxu0 %vm3187_vm1, %v5482_v40  ;;  %5678 = vmatpush1.bf16.msra.mxu0 %v13878_v45  ;;  %v5307_v62 = vadd.f32 %v17020_v38, %v4863_v17 }
0x1397   : > { %5679 = vmatprep.subr.bf16.mxu0 %v13883_v12  ;;  %v4396_v2 = vadd.f32 %v16863_v36, %v3948_v8  ;;  %v4869_v48 = vadd.f32 %v16937_v23, %v4401_v32  ;;  %v18642_v23 = vld [vmem:[#allocation56_spill] sm:$0xff] }
0x1399   : > { %13304 = vmatmul.mubr.msk.f32.gmra.mxu0 %vm3187_vm1, %v5483_v20  ;;  %v4864_v36 = vadd.f32 %v16993_v50, %v4396_v2  ;;  %v5313_v50 = vadd.f32 %v17040_v7, %v4869_v48  ;;  %v18650_v2 = vld [vmem:[#allocation51_spill] sm:$0xff] }
0x139a   : > { %5680 = vmatpush1.bf16.msra.mxu0 %v13881_v25  ;;  %5701 = vmatprep.mubr.bf16.mxu0 %v18633_v10 }
0x139b   : > { %5681 = vmatprep.subr.bf16.mxu0 %v13887_v15  ;;  %v5308_v12 = vadd.f32 %v5291_v57, %v4864_v36  ;;  %v5808_v15 = vrot.slane %v5795_v54, %v18642_v23 }
0x139e   : > { %5682 = vmatpush1.bf16.msra.mxu0 %v13885_v22  ;;  %v18643_v22 = vld [vmem:[#allocation44_spill] sm:$0xff] }
0x139f   : > { %5683 = vmatprep.subr.bf16.mxu0 %v13891_v43 }
0x13a2   : > { %5684 = vmatpush1.bf16.msra.mxu0 %v13889_v29 }
0x1455   : > { %v13302_v19 = vpop.f32.mrf.mxu0 }
0x1457   : > { %v5578_v41 = vpop.f32.mrf.mxu0 }
0x1458   : > { %v5597_v37 = vpack.c.bf16 %v13302_v19, %v5578_v41 }
0x1459   : > { %v13305_v31 = vpop.f32.mrf.mxu0 }
0x145a   : > { %12136 = vmatmul.mubr.msk.bf16.vlgmr.msra.gmra.mxu0 %vm3069_vm0, %v5597_v37  ;;  %13314 = vmatprep.mubr.msk.bf16.mxu1 %vm3069_vm0, %v5597_v37 }
0x145b   : > { %v5588_v63 = vpop.f32.mrf.mxu0  ;;  %5711 = vmatprep.mubr.bf16.mxu0 %v18633_v10 }
0x145c   : > { %v5598_v24 = vpack.c.bf16 %v13305_v31, %v5588_v63 }
0x145e   : > { %13315 = vmatmul.mubr.msk.bf16.vlgmr.msra.gmra.mxu1 %vm3069_vm0, %v5598_v24 }
0x145f   : > { %7849 = vmatprep.mubr.bf16.mxu1 %v18633_v10 }
0x1462   : > { %12137 = vmatmul.mubr.msk.bf16.gmra.mxu0 %vm3069_vm0, %v5598_v24 }
0x151a   : > { %v5703_v56 = vpop.f32.mrf.mxu0 }
0x151b   : > { %v5771_v30 = vadd.f32 %v5703_v56, %v17012_v4  ;;  %v18637_v4 = vld [vmem:[#allocation43_spill] sm:$0xff] }
0x151c   : > { %v5705_v42 = vpop.f32.mrf.mxu0 }
0x151d   : > { %v5772_v27 = vadd.f32 %v5705_v42, %v17015_v58  ;;  %v5783_v0 = vadd.f32 %v5771_v30, %v18638_v9 }
0x151e   : > { %v5707_v18 = vpop.f32.mrf.mxu0  ;;  %v13316_v11 = vpop.f32.mrf.mxu1 }
0x151f   : > { %v5784_v33 = vadd.f32 %v5772_v27, %v18637_v4  ;;  %v5774_v35 = vadd.f32 %v5707_v18, %v17018_v13  ;;  %v5779_v38 = vadd.f32 %v13316_v11, %v17023_v61  ;;  %v17115_v20 = vadd.f32 %v5800_v26, %v5783_v0 }
0x1520   : > { %v5709_v1 = vpop.f32.mrf.mxu0  ;;  %v5756_v58 = vpop.f32.mrf.mxu1 }
0x1521   : > { %v5775_v47 = vadd.f32 %v5709_v1, %v5307_v62  ;;  %v17107_v53 = vadd.f32 %v5804_v60, %v5784_v33  ;;  %v5786_v28 = vadd.f32 %v5774_v35, %v18640_v16  ;;  %v5773_v45 = vadd.f32 %v5756_v58, %v17029_v34  ;;  %v18644_v34 = vld [vmem:[#allocation45_spill] sm:$0xff]  ;;  %v18653_v62 = vld [vmem:[#allocation52_spill] sm:$0xff] }
0x1522   : > { %v5713_v13 = vpop.f32.mrf.mxu0  ;;  %v13317_v59 = vpop.f32.mrf.mxu1  ;;  %v13897_v16 = vld [vmem:[%s15992_s26 + $0x240] ss:$48 sps:$4 sm:$0xff]  }
0x1523   : > { %v5787_v40 = vadd.f32 %v5775_v47, %v18641_v14  ;;  %v5777_v25 = vadd.f32 %v5713_v13, %v17026_v6  ;;  %v5785_v29 = vadd.f32 %v5773_v45, %v18643_v22  ;;  %v17123_v41 = vadd.f32 %v5800_v26, %v5786_v28  ;;  %v18645_v6 = vld [vmem:[#allocation47_spill] sm:$0xff]  ;;  %v13900_v13 = vld [vmem:[%s15992_s26 + $0x1e0] ss:$48 sps:$4 sm:$0xff]  }
0x1524   : > { %v5715_v43 = vpop.f32.mrf.mxu0  ;;  %v5759_v55 = vpop.f32.mrf.mxu1  ;;  %v5791_v37 = vadd.f32 %v5779_v38, %v18645_v6  ;;  %v5826_v63 = vadd.f32 %v17107_v53, %v17115_v20  ;;  %v5782_v24 = vadd.f32 %v13317_v59, %v17035_v21  ;;  %v13896_v47 = vld [vmem:[%s15992_s26 + $0x2a4] ss:$48 sps:$4 sm:$0xff]   ;;  %v13918_v38 = vld [vmem:[%s15992_s26 + $0x8a0] ss:$48 sps:$4 sm:$0xff]  }
0x1525   : > { %v17119_v61 = vadd.f32 %v5804_v60, %v5787_v40  ;;  %v5789_v3 = vadd.f32 %v5777_v25, %v18644_v34  ;;  %v5778_v57 = vadd.f32 %v5715_v43, %v17032_v49  ;;  %v5776_v19 = vadd.f32 %v5759_v55, %v5308_v12  ;;  %7764 = vmatprep.subr.bf16.mxu0 %v13896_v47  ;;  %v13902_v28 = vld [vmem:[%s15992_s26 + $0x1e4] ss:$48 sps:$4 sm:$0xff]   ;;  %v13903_v12 = vld [vmem:[%s15992_s26 + $0x180] ss:$48 sps:$4 sm:$0xff]  }
0x1526   : > { %v17126_v7 = vadd.f32 %v5808_v15, %v5785_v29  ;;  %v5717_v31 = vpop.f32.mrf.mxu0  ;;  %v17144_v11 = vadd.f32 %v5808_v15, %v5791_v37  ;;  %v13920_v45 = vld [vmem:[%s15992_s26 + $0x8a4] ss:$48 sps:$4 sm:$0xff]   ;;  %v13906_v40 = vld [vmem:[%s15992_s26 + $0x120] ss:$48 sps:$4 sm:$0xff]  }
0x1527   : > { %v5790_v56 = vadd.f32 %v5778_v57, %v18647_v46  ;;  %v5788_v8 = vadd.f32 %v5776_v19, %v18648_v52  ;;  %v5780_v30 = vadd.f32 %v5717_v31, %v17038_v51  ;;  %v17134_v49 = vadd.f32 %v5800_v26, %v5789_v3  ;;  %v18652_v51 = vld [vmem:[#allocation53_spill] sm:$0xff]  ;;  %7817 = vmatprep.subr.bf16.mxu1 %v13920_v45  ;;  %v13912_v22 = vld [vmem:[%s15992_s26 + $0x60] ss:$48 sps:$4 sm:$0xff]  }
0x1528   : > { %18646 = vst [vmem:[#allocation58_spill] sm:$0xff] %v17126_v7  ;;  %v5719_v42 = vpop.f32.mrf.mxu0  ;;  %v5827_v5 = vadd.f32 %v5826_v63, %v17126_v7  ;;  %v5830_v17 = vadd.f32 %v17119_v61, %v17123_v41  ;;  %18651 = vst [vmem:[#allocation55_spill] sm:$0xff] %v17144_v11  ;;  %v5794_v32 = vadd.f32 %v5782_v24, %v18652_v51  ;;  %v13905_v59 = vld [vmem:[%s15992_s26 + $0x184] ss:$48 sps:$4 sm:$0xff]   ;;  %7818 = vmatpush1.bf16.msra.mxu1 %v13918_v38  ;;  %v13915_v43 = vld [vmem:[%s15992_s26] ss:$48 sps:$4 sm:$0xff]  }
0x1529   : > { %v17139_v54 = vadd.f32 %v5804_v60, %v5790_v56  ;;  %v17141_v27 = vadd.f32 %v5808_v15, %v5788_v8  ;;  %v5792_v21 = vadd.f32 %v5780_v30, %v18650_v2  ;;  %v5781_v18 = vadd.f32 %v5719_v42, %v5313_v50  ;;  %v13908_v14 = vld [vmem:[%s15992_s26 + $0x124] ss:$48 sps:$4 sm:$0xff]   ;;  %v13909_v50 = vld [vmem:[%s15992_s26 + $0xc0] ss:$48 sps:$4 sm:$0xff]  }
0x152a   : > { %5828 = vadd.xlane.f32.xlu0 %v5827_v5  ;;  %v17156_v58 = vadd.f32 %v5808_v15, %v5794_v32  ;;  %v13911_v25 = vld [vmem:[%s15992_s26 + $0xc4] ss:$48 sps:$4 sm:$0xff]   ;;  %v13921_v34 = vld [vmem:[%s15992_s26 + $0x5a0] ss:$48 sps:$4 sm:$0xff]  }
0x152b   : > { %18649 = vst [vmem:[#allocation59_spill] sm:$0xff] %v17141_v27  ;;  %v5793_v4 = vadd.f32 %v5781_v18, %v18653_v62  ;;  %v5831_v33 = vadd.f32 %v5830_v17, %v17141_v27  ;;  %v5834_v35 = vadd.f32 %v17139_v54, %v17134_v49  ;;  %v17151_v9 = vadd.f32 %v5800_v26, %v5792_v21  ;;  %v13894_v26 = vld [vmem:[%s15992_s26 + $0x2a0] ss:$48 sps:$4 sm:$0xff]   ;;  %v13914_v15 = vld [vmem:[%s15992_s26 + $0x64] ss:$48 sps:$4 sm:$0xff]  }
0x152c   : > { %18654 = vst [vmem:[#allocation43_spill] sm:$0xff] %v17156_v58  ;;  %7765 = vmatpush1.bf16.msra.mxu0 %v13894_v26  ;;  %v13917_v29 = vld [vmem:[%s15992_s26 + $0x4] ss:$48 sps:$4 sm:$0xff]  }
0x152d   : > { %v17153_v0 = vadd.f32 %v5804_v60, %v5793_v4  ;;  %5832 = vadd.xlane.f32.xlu1 %v5831_v33  ;;  %v5835_v1 = vadd.f32 %v5834_v35, %v17144_v11  ;;  %v13899_v60 = vld [vmem:[%s15992_s26 + $0x244] ss:$48 sps:$4 sm:$0xff]  }
0x152e   : > { %7766 = vmatprep.subr.bf16.mxu0 %v13899_v60  ;;  %v13923_v55 = vld [vmem:[%s15992_s26 + $0x5a4] ss:$48 sps:$4 sm:$0xff]  }
0x152f   : > { %5836 = vadd.xlane.f32.xlu0 %v5835_v1  ;;  %v5838_v36 = vadd.f32 %v17153_v0, %v17151_v9 }
0x1530   : > { %7767 = vmatpush1.bf16.msra.mxu0 %v13897_v16 }
0x1531   : > { %v5839_v48 = vadd.f32 %v5838_v36, %v17156_v58  ;;  %7768 = vmatprep.subr.bf16.mxu0 %v13902_v28 }
0x1533   : > { %5840 = vadd.xlane.f32.xlu0 %v5839_v48 }
0x1534   : > { %7769 = vmatpush1.bf16.msra.mxu0 %v13900_v13 }
0x1535   : > { %7770 = vmatprep.subr.bf16.mxu0 %v13905_v59 }
0x1538   : > { %7771 = vmatpush1.bf16.msra.mxu0 %v13903_v12 }
0x1539   : > { %7772 = vmatprep.subr.bf16.mxu0 %v13908_v14 }
0x153c   : > { %7773 = vmatpush1.bf16.msra.mxu0 %v13906_v40 }
0x153d   : > { %7774 = vmatprep.subr.bf16.mxu0 %v13911_v25  ;;  %v13926_v25 = vld [vmem:[%s15992_s26 + $0x844] ss:$48 sps:$4 sm:$0xff]  }
0x153e   : > { %7819 = vmatprep.subr.bf16.mxu1 %v13926_v25 }
0x1540   : > { %7775 = vmatpush1.bf16.msra.mxu0 %v13909_v50  ;;  %v13924_v50 = vld [vmem:[%s15992_s26 + $0x840] ss:$48 sps:$4 sm:$0xff]  }
0x1541   : > { %7776 = vmatprep.subr.bf16.mxu0 %v13914_v15  ;;  %v13929_v15 = vld [vmem:[%s15992_s26 + $0x544] ss:$48 sps:$4 sm:$0xff]   ;;  %7820 = vmatpush1.bf16.msra.mxu1 %v13924_v50 }
0x1544   : > { %7777 = vmatpush1.bf16.msra.mxu0 %v13912_v22  ;;  %v13927_v22 = vld [vmem:[%s15992_s26 + $0x540] ss:$48 sps:$4 sm:$0xff]  }
0x1545   : > { %7778 = vmatprep.subr.bf16.mxu0 %v13917_v29  ;;  %v13932_v29 = vld [vmem:[%s15992_s26 + $0x7e4] ss:$48 sps:$4 sm:$0xff]  }
0x1546   : > { %7821 = vmatprep.subr.bf16.mxu1 %v13932_v29 }
0x1548   : > { %7779 = vmatpush1.bf16.msra.mxu0 %v13915_v43  ;;  %v13930_v43 = vld [vmem:[%s15992_s26 + $0x7e0] ss:$48 sps:$4 sm:$0xff]  }
0x1549   : > { %7780 = vmatprep.subr.bf16.mxu0 %v13923_v55  ;;  %v13935_v55 = vld [vmem:[%s15992_s26 + $0x4e4] ss:$48 sps:$4 sm:$0xff]   ;;  %7822 = vmatpush1.bf16.msra.mxu1 %v13930_v43 }
0x154c   : > { %7781 = vmatpush2.bf16.msra.mxu0 %v13921_v34  ;;  %v13933_v34 = vld [vmem:[%s15992_s26 + $0x4e0] ss:$48 sps:$4 sm:$0xff]  }
0x154d   : > { %7782 = vmatprep.subr.bf16.mxu0 %v13929_v15 }
0x1550   : > { %7783 = vmatpush2.bf16.msra.mxu0 %v13927_v22 }
0x1551   : > { %7784 = vmatprep.subr.bf16.mxu0 %v13935_v55  ;;  %v5824_v55 = vld [vmem:[%s754_s18] sm:$0x7] }
0x1554   : > { %7785 = vmatpush2.bf16.msra.mxu0 %v13933_v34 }
0x15b3   : > { %v5829_v3 = vpop.xlane.xlu0 %5828 }
0x15b4   : > { %v5842_v57 = vmul.f32 0.0026041667, %v5829_v3  ;;  %v13936_v3 = vld [vmem:[%s15992_s26 + $0x780] ss:$48 sps:$4 sm:$0xff]  }
0x15b6   : > { %v17182_v19 = vsub.f32 %v17115_v20, %v5842_v57  ;;  %v17185_v6 = vsub.f32 %v17107_v53, %v5842_v57  ;;  %v17188_v37 = vsub.f32 %v17126_v7, %v5842_v57  ;;  %v5833_v31 = vpop.xlane.xlu1 %5832  ;;  %v13938_v57 = vld [vmem:[%s15992_s26 + $0x784] ss:$48 sps:$4 sm:$0xff]  }
0x15b7   : > { %v5843_v63 = vmul.f32 0.0026041667, %v5833_v31  ;;  %v13941_v31 = vld [vmem:[%s15992_s26 + $0x484] ss:$48 sps:$4 sm:$0xff]   ;;  %7823 = vmatprep.subr.bf16.mxu1 %v13938_v57  ;;  %v5918_v57 = vrot.slane %v5824_v55, %v18636_v44 }
0x15b8   : > { %v5837_v24 = vpop.xlane.xlu0 %5836  ;;  %v5858_v46 = vmul.f32 %v17182_v19, %v17182_v19  ;;  %v5859_v56 = vmul.f32 %v17185_v6, %v17185_v6  ;;  %v5860_v5 = vmul.f32 %v17188_v37, %v17188_v37  ;;  %7786 = vmatprep.subr.bf16.mxu0 %v13941_v31  ;;  %7824 = vmatpush1.bf16.msra.mxu1 %v13936_v3  ;;  %v5825_v3 = vld [vmem:[%s763_s20] sm:$0x7] }
0x15b9   : > { %v17195_v52 = vsub.f32 %v17123_v41, %v5843_v63  ;;  %v17198_v8 = vsub.f32 %v17119_v61, %v5843_v63  ;;  %v5844_v30 = vmul.f32 0.0026041667, %v5837_v24  ;;  %v17201_v42 = vsub.f32 %v17141_v27, %v5843_v63  ;;  %v13939_v63 = vld [vmem:[%s15992_s26 + $0x480] ss:$48 sps:$4 sm:$0xff]  }
0x15ba   : > { %v5870_v17 = vadd.f32 %v5859_v56, %v5858_v46  ;;  %7787 = vmatpush2.bf16.msra.mxu0 %v13939_v63  ;;  %v13942_v24 = vld [vmem:[%s15992_s26 + $0x720] ss:$48 sps:$4 sm:$0xff]   ;;  %v13944_v46 = vld [vmem:[%s15992_s26 + $0x724] ss:$48 sps:$4 sm:$0xff]   ;;  %v5922_v31 = vrot.slane %v5824_v55, %v18642_v23  ;;  %v5914_v63 = vrot.slane %v5824_v55, %v18639_v39 }
0x15bb   : > { %v17206_v2 = vsub.f32 %v17134_v49, %v5844_v30  ;;  %v17209_v21 = vsub.f32 %v17139_v54, %v5844_v30  ;;  %v17212_v18 = vsub.f32 %v17144_v11, %v5844_v30  ;;  %v5861_v51 = vmul.f32 %v17195_v52, %v17195_v52  ;;  %v13945_v56 = vld [vmem:[%s15992_s26 + $0x420] ss:$48 sps:$4 sm:$0xff]   ;;  %v13947_v30 = vld [vmem:[%s15992_s26 + $0x424] ss:$48 sps:$4 sm:$0xff]   ;;  %7825 = vmatprep.subr.bf16.mxu1 %v13944_v46 }
0x15bc   : > { %v5841_v32 = vpop.xlane.xlu0 %5840  ;;  %v5871_v62 = vadd.f32 %v5870_v17, %v5860_v5  ;;  %v5862_v4 = vmul.f32 %v17198_v8, %v17198_v8  ;;  %v5863_v36 = vmul.f32 %v17201_v42, %v17201_v42  ;;  %v13950_v5 = vld [vmem:[%s15992_s26 + $0x6c4] ss:$48 sps:$4 sm:$0xff]   ;;  %7788 = vmatprep.subr.bf16.mxu0 %v13947_v30  ;;  %7826 = vmatpush1.bf16.msra.mxu1 %v13942_v24 }
0x15bd   : > { %v5864_v33 = vmul.f32 %v17206_v2, %v17206_v2  ;;  %v5865_v35 = vmul.f32 %v17209_v21, %v17209_v21  ;;  %v5845_v1 = vmul.f32 0.0026041667, %v5841_v32  ;;  %v5866_v26 = vmul.f32 %v17212_v18, %v17212_v18  ;;  %v13953_v17 = vld [vmem:[%s15992_s26 + $0x3c4] ss:$48 sps:$4 sm:$0xff]   ;;  %7827 = vmatprep.subr.bf16.mxu1 %v13950_v5  ;;  %v13951_v32 = vld [vmem:[%s15992_s26 + $0x3c0] ss:$48 sps:$4 sm:$0xff]  }
0x15be   : > { %5872 = vadd.xlane.f32.xlu0 %v5871_v62  ;;  %v5874_v48 = vadd.f32 %v5862_v4, %v5861_v51  ;;  %v13948_v51 = vld [vmem:[%s15992_s26 + $0x6c0] ss:$48 sps:$4 sm:$0xff]   ;;  %7789 = vmatpush2.bf16.msra.mxu0 %v13945_v56  ;;  %v13956_v62 = vld [vmem:[%s15992_s26 + $0x664] ss:$48 sps:$4 sm:$0xff]   ;;  %v5946_v30 = vrot.slane %v5825_v3, %v18636_v44  ;;  %v5950_v5 = vrot.slane %v5825_v3, %v18642_v23 }
0x15bf   : > { %v17227_v47 = vsub.f32 %v17151_v9, %v5845_v1  ;;  %v17230_v60 = vsub.f32 %v17153_v0, %v5845_v1  ;;  %v17233_v16 = vsub.f32 %v17156_v58, %v5845_v1  ;;  %v5878_v28 = vadd.f32 %v5865_v35, %v5864_v33  ;;  %7790 = vmatprep.subr.bf16.mxu0 %v13953_v17  ;;  %v13959_v4 = vld [vmem:[%s15992_s26 + $0x364] ss:$48 sps:$4 sm:$0xff]   ;;  %v13954_v33 = vld [vmem:[%s15992_s26 + $0x660] ss:$48 sps:$4 sm:$0xff]  }
0x15c0   : > { %v5875_v38 = vadd.f32 %v5874_v48, %v5863_v36  ;;  %7828 = vmatpush1.bf16.msra.mxu1 %v13948_v51  ;;  %v13957_v35 = vld [vmem:[%s15992_s26 + $0x360] ss:$48 sps:$4 sm:$0xff]   ;;  %v13962_v1 = vld [vmem:[%s15992_s26 + $0x604] ss:$48 sps:$4 sm:$0xff]  }
0x15c1   : > { %v5867_v45 = vmul.f32 %v17227_v47, %v17227_v47  ;;  %v5868_v13 = vmul.f32 %v17230_v60, %v17230_v60  ;;  %v5879_v59 = vadd.f32 %v5878_v28, %v5866_v26  ;;  %v5869_v12 = vmul.f32 %v17233_v16, %v17233_v16  ;;  %7829 = vmatprep.subr.bf16.mxu1 %v13956_v62  ;;  %v13965_v36 = vld [vmem:[%s15992_s26 + $0x304] ss:$48 sps:$4 sm:$0xff]   ;;  %v13960_v48 = vld [vmem:[%s15992_s26 + $0x600] ss:$48 sps:$4 sm:$0xff]   ;;  %v13968_v28 = vld [vmem:[%s15992_s26 + $0x2ac] ss:$48 sps:$4 sm:$0xff]  }
0x15c2   : > { %5876 = vadd.xlane.f32.xlu1 %v5875_v38  ;;  %7791 = vmatpush2.bf16.msra.mxu0 %v13951_v32  ;;  %v13963_v26 = vld [vmem:[%s15992_s26 + $0x300] ss:$48 sps:$4 sm:$0xff]   ;;  %v13971_v38 = vld [vmem:[%s15992_s26 + $0x8ac] ss:$48 sps:$4 sm:$0xff]  }
0x15c3   : > { %5880 = vadd.xlane.f32.xlu0 %v5879_v59  ;;  %v5882_v14 = vadd.f32 %v5868_v13, %v5867_v45  ;;  %7792 = vmatprep.subr.bf16.mxu0 %v13959_v4  ;;  %v5942_v4 = vrot.slane %v5825_v3, %v18639_v39 }
0x15c4   : > { %7830 = vmatpush1.bf16.msra.mxu1 %v13954_v33 }
0x15c5   : > { %v5883_v40 = vadd.f32 %v5882_v14, %v5869_v12  ;;  %7831 = vmatprep.subr.bf16.mxu1 %v13962_v1 }
0x15c6   : > { %7793 = vmatpush2.bf16.msra.mxu0 %v13957_v35 }
0x15c7   : > { %5884 = vadd.xlane.f32.xlu1 %v5883_v40  ;;  %7794 = vmatprep.subr.bf16.mxu0 %v13965_v36 }
0x15c8   : > { %7832 = vmatpush1.bf16.msra.mxu1 %v13960_v48 }
0x15c9   : > { %7870 = vmatprep.subr.bf16.mxu1 %v13968_v28 }
0x15ca   : > { %7795 = vmatpush2.bf16.msra.mxu0 %v13963_v26 }
0x15cb   : > { %7923 = vmatprep.subr.bf16.mxu0 %v13971_v38 }
0x1647   : > { %v5873_v45 = vpop.xlane.xlu0 %5872 }
0x1648   : > { %v5886_v13 = vmul.f32 0.0026041667, %v5873_v45 }
0x164a   : > { %v5890_v59 = vadd.f32 1e-05, %v5886_v13 }
0x164b   : > { %v5877_v12 = vpop.xlane.xlu1 %5876 }
0x164c   : > { %14814 = vrsqrt.f32 %v5890_v59  ;;  %v5887_v14 = vmul.f32 0.0026041667, %v5877_v12  ;;  %v5881_v40 = vpop.xlane.xlu0 %5880  ;;  %v13966_v12 = vld [vmem:[%s15992_s26 + $0x2a8] ss:$48 sps:$4 sm:$0xff]  }
0x164d   : > { %v5888_v25 = vmul.f32 0.0026041667, %v5881_v40 }
0x164e   : > { %v5891_v50 = vadd.f32 1e-05, %v5887_v14 }
0x164f   : > { %v5892_v15 = vadd.f32 1e-05, %v5888_v25 }
0x1650   : > { %14816 = vrsqrt.f32 %v5891_v50  ;;  %v5885_v22 = vpop.xlane.xlu1 %5884 }
0x1651   : > { %14818 = vrsqrt.f32 %v5892_v15  ;;  %v5889_v29 = vmul.f32 0.0026041667, %v5885_v22  ;;  %v13969_v15 = vld [vmem:[%s15992_s26 + $0x8a8] ss:$48 sps:$4 sm:$0xff]   ;;  %v13974_v22 = vld [vmem:[%s15992_s26 + $0x24c] ss:$48 sps:$4 sm:$0xff]  }
0x1653   : > { %v5893_v43 = vadd.f32 1e-05, %v5889_v29 }
0x1655   : > { %14820 = vrsqrt.f32 %v5893_v43 }
0x1659   : > { %v14815_v34 = vpop.eup %14814 }
0x165a   : > { %v5899_v24 = vmul.f32 %v14815_v34, %v17185_v6  ;;  %v5900_v46 = vmul.f32 %v14815_v34, %v17188_v37  ;;  %v5898_v56 = vmul.f32 %v14815_v34, %v17182_v19  ;;  %v13972_v34 = vld [vmem:[%s15992_s26 + $0x248] ss:$48 sps:$4 sm:$0xff]  }
0x165c   : > { %v5927_v51 = vmul.f32 %v5918_v57, %v5899_v24  ;;  %v5928_v32 = vmul.f32 %v5922_v31, %v5900_v46  ;;  %v5926_v62 = vmul.f32 %v5914_v63, %v5898_v56  ;;  %v13975_v46 = vld [vmem:[%s15992_s26 + $0x848] ss:$48 sps:$4 sm:$0xff]  }
0x165d   : > { %v14817_v17 = vpop.eup %14816 }
0x165e   : > { %v14819_v33 = vpop.eup %14818  ;;  %v5902_v35 = vmul.f32 %v14817_v17, %v17198_v8  ;;  %v5903_v6 = vmul.f32 %v14817_v17, %v17201_v42  ;;  %v5901_v37 = vmul.f32 %v14817_v17, %v17195_v52  ;;  %v5955_v48 = vadd.f32 %v5946_v30, %v5927_v51 }
0x165f   : > { %v5905_v19 = vmul.f32 %v14819_v33, %v17209_v21  ;;  %v5956_v26 = vadd.f32 %v5950_v5, %v5928_v32  ;;  %v5954_v38 = vadd.f32 %v5942_v4, %v5926_v62  ;;  %v5906_v8 = vmul.f32 %v14819_v33, %v17212_v18 }
0x1660   : > { %v5930_v1 = vmul.f32 %v5918_v57, %v5902_v35  ;;  %v5931_v36 = vmul.f32 %v5922_v31, %v5903_v6  ;;  %v5929_v28 = vmul.f32 %v5914_v63, %v5901_v37  ;;  %v5904_v42 = vmul.f32 %v14819_v33, %v17206_v2  ;;  %v13977_v2 = vld [vmem:[%s15992_s26 + $0x84c] ss:$48 sps:$4 sm:$0xff]   ;;  %v13981_v33 = vld [vmem:[%s15992_s26 + $0x7e8] ss:$48 sps:$4 sm:$0xff]  }
0x1661   : > { %v5933_v14 = vmul.f32 %v5918_v57, %v5905_v19  ;;  %v13986_v6 = vld [vmem:[%s15992_s26 + $0x18c] ss:$48 sps:$4 sm:$0xff]   ;;  %v13987_v37 = vld [vmem:[%s15992_s26 + $0x788] ss:$48 sps:$4 sm:$0xff]  }
0x1662   : > { %v14821_v45 = vpop.eup %14820  ;;  %v5958_v13 = vadd.f32 %v5946_v30, %v5930_v1  ;;  %v5959_v59 = vadd.f32 %v5950_v5, %v5931_v36  ;;  %v5957_v52 = vadd.f32 %v5942_v4, %v5929_v28  ;;  %v5932_v24 = vmul.f32 %v5914_v63, %v5904_v42  ;;  %v13992_v19 = vld [vmem:[%s15992_s26 + $0x12c] ss:$48 sps:$4 sm:$0xff]   ;;  %v13990_v36 = vld [vmem:[%s15992_s26 + $0x128] ss:$48 sps:$4 sm:$0xff]  }
0x1663   : > { %v5908_v21 = vmul.f32 %v14821_v45, %v17230_v60  ;;  %v5909_v40 = vmul.f32 %v14821_v45, %v17233_v16  ;;  %v5907_v29 = vmul.f32 %v14821_v45, %v17227_v47  ;;  %v5934_v60 = vmul.f32 %v5922_v31, %v5906_v8  ;;  %v13995_v1 = vld [vmem:[%s15992_s26 + $0x72c] ss:$48 sps:$4 sm:$0xff]   ;;  %v13999_v45 = vld [vmem:[%s15992_s26 + $0x6c8] ss:$48 sps:$4 sm:$0xff]  }
0x1664   : > { %v17293_v25 = vpack.c.bf16 %v5958_v13, %v5955_v48  ;;  %v17295_v50 = vpack.c.bf16 %v5959_v59, %v5956_v26  ;;  %v17300_v43 = vpack.c.bf16 %v5957_v52, %v5954_v38  ;;  %v5961_v3 = vadd.f32 %v5946_v30, %v5933_v14  ;;  %v13993_v48 = vld [vmem:[%s15992_s26 + $0x728] ss:$48 sps:$4 sm:$0xff]   ;;  %v13998_v26 = vld [vmem:[%s15992_s26 + $0xcc] ss:$48 sps:$4 sm:$0xff]  }
0x1665   : > { %v5936_v18 = vmul.f32 %v5918_v57, %v5908_v21  ;;  %v5937_v55 = vmul.f32 %v5922_v31, %v5909_v40  ;;  %v5935_v16 = vmul.f32 %v5914_v63, %v5907_v29  ;;  %v13980_v57 = vld [vmem:[%s15992_s26 + $0x1ec] ss:$48 sps:$4 sm:$0xff]   ;;  %v5962_v32 = vadd.f32 %v5950_v5, %v5934_v60  ;;  %v13978_v63 = vld [vmem:[%s15992_s26 + $0x1e8] ss:$48 sps:$4 sm:$0xff]   ;;  %v14017_v29 = vld [vmem:[%s15992_s26 + $0x2b0] ss:$48 sps:$4 sm:$0xff]  }
0x1666   : > { %7796 = vmatprep.mubr.bf16.mxu0 %v17293_v25  ;;  %7850 = vmatmul.mubr.bf16.vlgmr.msra.gmra.mxu1 %v17295_v50  ;;  %v13983_v31 = vld [vmem:[%s15992_s26 + $0x7ec] ss:$48 sps:$4 sm:$0xff]   ;;  %v13996_v38 = vld [vmem:[%s15992_s26 + $0xc8] ss:$48 sps:$4 sm:$0xff]   ;;  %v14023_v60 = vld [vmem:[%s15992_s26 + $0x250] ss:$48 sps:$4 sm:$0xff]  }
0x1667   : > { %7871 = vmatpush1.bf16.msra.mxu1 %v13966_v12  ;;  %7797 = vmatmul.mubr.bf16.vlgmr.msra.gmra.mxu0 %v17300_v43  ;;  %v5964_v47 = vadd.f32 %v5946_v30, %v5936_v18  ;;  %v5965_v56 = vadd.f32 %v5950_v5, %v5937_v55  ;;  %v5963_v51 = vadd.f32 %v5942_v4, %v5935_v16  ;;  %v13989_v5 = vld [vmem:[%s15992_s26 + $0x78c] ss:$48 sps:$4 sm:$0xff]   ;;  %v14002_v8 = vld [vmem:[%s15992_s26 + $0x68] ss:$48 sps:$4 sm:$0xff]   ;;  %v14025_v18 = vld [vmem:[%s15992_s26 + $0x254] ss:$48 sps:$4 sm:$0xff]  }
0x1668   : > { %7924 = vmatpush1.bf16.msra.mxu0 %v13969_v15  ;;  %7872 = vmatprep.subr.bf16.mxu1 %v13974_v22  ;;  %v5960_v30 = vadd.f32 %v5942_v4, %v5932_v24  ;;  %v13984_v4 = vld [vmem:[%s15992_s26 + $0x188] ss:$48 sps:$4 sm:$0xff]   ;;  %v14001_v28 = vld [vmem:[%s15992_s26 + $0x6cc] ss:$48 sps:$4 sm:$0xff]   ;;  %v14019_v15 = vld [vmem:[%s15992_s26 + $0x2b4] ss:$48 sps:$4 sm:$0xff]  }
0x1669   : > { %7925 = vmatprep.subr.bf16.mxu0 %v13977_v2  ;;  %v17309_v17 = vpack.c.bf16 %v5964_v47, %v5961_v3  ;;  %7859 = vmatprep.mubr.bf16.mxu1 %v18633_v10  ;;  %v17315_v62 = vpack.c.bf16 %v5965_v56, %v5962_v32  ;;  %v14004_v13 = vld [vmem:[%s15992_s26 + $0x6c] ss:$48 sps:$4 sm:$0xff]   ;;  %v14005_v42 = vld [vmem:[%s15992_s26 + $0x668] ss:$48 sps:$4 sm:$0xff]   ;;  %v14029_v47 = vld [vmem:[%s15992_s26 + $0x1f0] ss:$48 sps:$4 sm:$0xff]  }
0x166a   : > { %v17318_v35 = vpack.c.bf16 %v5963_v51, %v5960_v30  ;;  %v14007_v59 = vld [vmem:[%s15992_s26 + $0x66c] ss:$48 sps:$4 sm:$0xff]   ;;  %v14008_v21 = vld [vmem:[%s15992_s26 + $0x8] ss:$48 sps:$4 sm:$0xff]   ;;  %v14035_v56 = vld [vmem:[%s15992_s26 + $0x190] ss:$48 sps:$4 sm:$0xff]  }
0x166b   : > { %7873 = vmatpush1.bf16.msra.mxu1 %v13972_v34  ;;  %7806 = vmatprep.mubr.bf16.mxu0 %v17309_v17  ;;  %v14010_v12 = vld [vmem:[%s15992_s26 + $0xc] ss:$48 sps:$4 sm:$0xff]   ;;  %v14011_v14 = vld [vmem:[%s15992_s26 + $0x608] ss:$48 sps:$4 sm:$0xff]   ;;  %v14031_v34 = vld [vmem:[%s15992_s26 + $0x1f4] ss:$48 sps:$4 sm:$0xff]  }
0x166c   : > { %7926 = vmatpush1.bf16.msra.mxu0 %v13975_v46  ;;  %7874 = vmatprep.subr.bf16.mxu1 %v13980_v57  ;;  %v14013_v52 = vld [vmem:[%s15992_s26 + $0x60c] ss:$48 sps:$4 sm:$0xff]   ;;  %v14014_v22 = vld [vmem:[%s15992_s26 + $0x5a8] ss:$48 sps:$4 sm:$0xff]   ;;  %v14037_v46 = vld [vmem:[%s15992_s26 + $0x194] ss:$48 sps:$4 sm:$0xff]  }
0x166d   : > { %7927 = vmatprep.subr.bf16.mxu0 %v13983_v31  ;;  %v14016_v40 = vld [vmem:[%s15992_s26 + $0x5ac] ss:$48 sps:$4 sm:$0xff]   ;;  %v14020_v55 = vld [vmem:[%s15992_s26 + $0x548] ss:$48 sps:$4 sm:$0xff]   ;;  %v14043_v51 = vld [vmem:[%s15992_s26 + $0x134] ss:$48 sps:$4 sm:$0xff]  }
0x166e   : > { %7860 = vmatmul.mubr.bf16.gmra.mxu1 %v17315_v62  ;;  %v14022_v2 = vld [vmem:[%s15992_s26 + $0x54c] ss:$48 sps:$4 sm:$0xff]   ;;  %v14026_v3 = vld [vmem:[%s15992_s26 + $0x4e8] ss:$48 sps:$4 sm:$0xff]  }
0x166f   : > { %7875 = vmatpush1.bf16.msra.mxu1 %v13978_v63  ;;  %7807 = vmatmul.mubr.bf16.gmra.mxu0 %v17318_v35  ;;  %v14028_v16 = vld [vmem:[%s15992_s26 + $0x4ec] ss:$48 sps:$4 sm:$0xff]   ;;  %v14032_v57 = vld [vmem:[%s15992_s26 + $0x488] ss:$48 sps:$4 sm:$0xff]   ;;  %v14041_v63 = vld [vmem:[%s15992_s26 + $0x130] ss:$48 sps:$4 sm:$0xff]  }
0x1670   : > { %7902 = vmatprep.mubr.bf16.mxu1 %v17293_v25  ;;  %7928 = vmatpush1.bf16.msra.mxu0 %v13981_v33  ;;  %v14034_v24 = vld [vmem:[%s15992_s26 + $0x48c] ss:$48 sps:$4 sm:$0xff]   ;;  %v14038_v32 = vld [vmem:[%s15992_s26 + $0x428] ss:$48 sps:$4 sm:$0xff]   ;;  %v14049_v33 = vld [vmem:[%s15992_s26 + $0xd4] ss:$48 sps:$4 sm:$0xff]  }
0x1671   : > { %7876 = vmatprep.subr.bf16.mxu1 %v13986_v6  ;;  %7929 = vmatprep.subr.bf16.mxu0 %v13989_v5  ;;  %v14040_v31 = vld [vmem:[%s15992_s26 + $0x42c] ss:$48 sps:$4 sm:$0xff]   ;;  %v14044_v6 = vld [vmem:[%s15992_s26 + $0x3c8] ss:$48 sps:$4 sm:$0xff]   ;;  %v14047_v5 = vld [vmem:[%s15992_s26 + $0xd0] ss:$48 sps:$4 sm:$0xff]  }
0x1672   : > { %7955 = vmatprep.mubr.bf16.mxu0 %v18633_v10  ;;  %v14046_v30 = vld [vmem:[%s15992_s26 + $0x3cc] ss:$48 sps:$4 sm:$0xff]  }
0x1673   : > { %7877 = vmatpush1.bf16.msra.mxu1 %v13984_v4  ;;  %v14052_v4 = vld [vmem:[%s15992_s26 + $0x36c] ss:$48 sps:$4 sm:$0xff]  }
0x1674   : > { %7930 = vmatpush1.bf16.msra.mxu0 %v13987_v37  ;;  %7878 = vmatprep.subr.bf16.mxu1 %v13992_v19  ;;  %v14055_v37 = vld [vmem:[%s15992_s26 + $0x74] ss:$48 sps:$4 sm:$0xff]   ;;  %v14050_v19 = vld [vmem:[%s15992_s26 + $0x368] ss:$48 sps:$4 sm:$0xff]  }
0x1675   : > { %7931 = vmatprep.subr.bf16.mxu0 %v13995_v1  ;;  %v14053_v1 = vld [vmem:[%s15992_s26 + $0x70] ss:$48 sps:$4 sm:$0xff]  }
0x1677   : > { %7879 = vmatpush1.bf16.msra.mxu1 %v13990_v36  ;;  %v14058_v36 = vld [vmem:[%s15992_s26 + $0x30c] ss:$48 sps:$4 sm:$0xff]  }
0x1678   : > { %7932 = vmatpush1.bf16.msra.mxu0 %v13993_v48  ;;  %7880 = vmatprep.subr.bf16.mxu1 %v13998_v26  ;;  %v14061_v48 = vld [vmem:[%s15992_s26 + $0x14] ss:$48 sps:$4 sm:$0xff]   ;;  %v14056_v26 = vld [vmem:[%s15992_s26 + $0x308] ss:$48 sps:$4 sm:$0xff]  }
0x1679   : > { %7933 = vmatprep.subr.bf16.mxu0 %v14001_v28  ;;  %v14059_v28 = vld [vmem:[%s15992_s26 + $0x10] ss:$48 sps:$4 sm:$0xff]  }
0x167b   : > { %7881 = vmatpush1.bf16.msra.mxu1 %v13996_v38  ;;  %v14064_v38 = vld [vmem:[%s15992_s26 + $0x8b4] ss:$48 sps:$4 sm:$0xff]  }
0x167c   : > { %7934 = vmatpush1.bf16.msra.mxu0 %v13999_v45  ;;  %7882 = vmatprep.subr.bf16.mxu1 %v14004_v13  ;;  %v14067_v45 = vld [vmem:[%s15992_s26 + $0x5b4] ss:$48 sps:$4 sm:$0xff]   ;;  %v14062_v13 = vld [vmem:[%s15992_s26 + $0x8b0] ss:$48 sps:$4 sm:$0xff]  }
0x167d   : > { %7935 = vmatprep.subr.bf16.mxu0 %v14007_v59  ;;  %v14065_v59 = vld [vmem:[%s15992_s26 + $0x5b0] ss:$48 sps:$4 sm:$0xff]  }
0x167f   : > { %7883 = vmatpush1.bf16.msra.mxu1 %v14002_v8  ;;  %v14070_v8 = vld [vmem:[%s15992_s26 + $0x854] ss:$48 sps:$4 sm:$0xff]  }
0x1680   : > { %7936 = vmatpush1.bf16.msra.mxu0 %v14005_v42  ;;  %7884 = vmatprep.subr.bf16.mxu1 %v14010_v12  ;;  %v14073_v42 = vld [vmem:[%s15992_s26 + $0x554] ss:$48 sps:$4 sm:$0xff]   ;;  %v14068_v12 = vld [vmem:[%s15992_s26 + $0x850] ss:$48 sps:$4 sm:$0xff]  }
0x1681   : > { %7937 = vmatprep.subr.bf16.mxu0 %v14013_v52  ;;  %v14071_v52 = vld [vmem:[%s15992_s26 + $0x550] ss:$48 sps:$4 sm:$0xff]  }
0x1683   : > { %7885 = vmatpush1.bf16.msra.mxu1 %v14008_v21  ;;  %v14076_v21 = vld [vmem:[%s15992_s26 + $0x7f4] ss:$48 sps:$4 sm:$0xff]  }
0x1684   : > { %7938 = vmatpush1.bf16.msra.mxu0 %v14011_v14  ;;  %7886 = vmatprep.subr.bf16.mxu1 %v14016_v40  ;;  %v14079_v14 = vld [vmem:[%s15992_s26 + $0x4f4] ss:$48 sps:$4 sm:$0xff]   ;;  %v14074_v40 = vld [vmem:[%s15992_s26 + $0x7f0] ss:$48 sps:$4 sm:$0xff]  }
0x1685   : > { %7976 = vmatprep.subr.bf16.mxu0 %v14019_v15  ;;  %v14077_v15 = vld [vmem:[%s15992_s26 + $0x4f0] ss:$48 sps:$4 sm:$0xff]  }
0x1687   : > { %7887 = vmatpush2.bf16.msra.mxu1 %v14014_v22  ;;  %7956 = vmatmul.mubr.bf16.vlgmr.msra.gmra.mxu0 %v17295_v50  ;;  %v14082_v22 = vld [vmem:[%s15992_s26 + $0x794] ss:$48 sps:$4 sm:$0xff]  }
0x1688   : > { %7977 = vmatpush1.bf16.msra.mxu0 %v14017_v29  ;;  %7888 = vmatprep.subr.bf16.mxu1 %v14022_v2  ;;  %v14085_v29 = vld [vmem:[%s15992_s26 + $0x494] ss:$48 sps:$4 sm:$0xff]   ;;  %v14080_v2 = vld [vmem:[%s15992_s26 + $0x790] ss:$48 sps:$4 sm:$0xff]  }
0x1689   : > { %7978 = vmatprep.subr.bf16.mxu0 %v14025_v18  ;;  %7965 = vmatprep.mubr.bf16.mxu0 %v18633_v10  ;;  %v14083_v18 = vld [vmem:[%s15992_s26 + $0x490] ss:$48 sps:$4 sm:$0xff]  }
0x168b   : > { %7889 = vmatpush2.bf16.msra.mxu1 %v14020_v55  ;;  %v14088_v55 = vld [vmem:[%s15992_s26 + $0x734] ss:$48 sps:$4 sm:$0xff]  }
0x168c   : > { %7979 = vmatpush1.bf16.msra.mxu0 %v14023_v60  ;;  %7890 = vmatprep.subr.bf16.mxu1 %v14028_v16  ;;  %v14091_v60 = vld [vmem:[%s15992_s26 + $0x434] ss:$48 sps:$4 sm:$0xff]   ;;  %v14086_v16 = vld [vmem:[%s15992_s26 + $0x730] ss:$48 sps:$4 sm:$0xff]  }
0x168d   : > { %7980 = vmatprep.subr.bf16.mxu0 %v14031_v34  ;;  %v14089_v34 = vld [vmem:[%s15992_s26 + $0x430] ss:$48 sps:$4 sm:$0xff]  }
0x168f   : > { %7891 = vmatpush2.bf16.msra.mxu1 %v14026_v3  ;;  %7966 = vmatmul.mubr.bf16.gmra.mxu0 %v17315_v62  ;;  %v14094_v3 = vld [vmem:[%s15992_s26 + $0x6d4] ss:$48 sps:$4 sm:$0xff]  }
0x1690   : > { %7981 = vmatpush1.bf16.msra.mxu0 %v14029_v47  ;;  %8008 = vmatprep.mubr.bf16.mxu0 %v17293_v25  ;;  %v14097_v47 = vld [vmem:[%s15992_s26 + $0x3d4] ss:$48 sps:$4 sm:$0xff]  }
0x1691   : > { %7892 = vmatprep.subr.bf16.mxu1 %v14034_v24  ;;  %7982 = vmatprep.subr.bf16.mxu0 %v14037_v46  ;;  %v14092_v24 = vld [vmem:[%s15992_s26 + $0x6d0] ss:$48 sps:$4 sm:$0xff]  }
0x1692   : > { %v14095_v46 = vld [vmem:[%s15992_s26 + $0x3d0] ss:$48 sps:$4 sm:$0xff]  }
0x1693   : > { %7893 = vmatpush2.bf16.msra.mxu1 %v14032_v57  ;;  %v14100_v57 = vld [vmem:[%s15992_s26 + $0x674] ss:$48 sps:$4 sm:$0xff]  }
0x1694   : > { %7983 = vmatpush1.bf16.msra.mxu0 %v14035_v56  ;;  %7894 = vmatprep.subr.bf16.mxu1 %v14040_v31  ;;  %v14103_v56 = vld [vmem:[%s15992_s26 + $0x374] ss:$48 sps:$4 sm:$0xff]   ;;  %v14098_v31 = vld [vmem:[%s15992_s26 + $0x670] ss:$48 sps:$4 sm:$0xff]  }
0x1695   : > { %7984 = vmatprep.subr.bf16.mxu0 %v14043_v51  ;;  %v14101_v51 = vld [vmem:[%s15992_s26 + $0x370] ss:$48 sps:$4 sm:$0xff]  }
0x1697   : > { %7895 = vmatpush2.bf16.msra.mxu1 %v14038_v32  ;;  %v14106_v32 = vld [vmem:[%s15992_s26 + $0x614] ss:$48 sps:$4 sm:$0xff]  }
0x1698   : > { %7985 = vmatpush1.bf16.msra.mxu0 %v14041_v63  ;;  %7896 = vmatprep.subr.bf16.mxu1 %v14046_v30  ;;  %v14109_v63 = vld [vmem:[%s15992_s26 + $0x314] ss:$48 sps:$4 sm:$0xff]   ;;  %v14104_v30 = vld [vmem:[%s15992_s26 + $0x610] ss:$48 sps:$4 sm:$0xff]  }
0x1699   : > { %7986 = vmatprep.subr.bf16.mxu0 %v14049_v33  ;;  %v14107_v33 = vld [vmem:[%s15992_s26 + $0x310] ss:$48 sps:$4 sm:$0xff]  }
0x169b   : > { %7897 = vmatpush2.bf16.msra.mxu1 %v14044_v6  ;;  %v14112_v6 = vld [vmem:[%s15992_s26 + $0x2bc] ss:$48 sps:$4 sm:$0xff]  }
0x169c   : > { %7987 = vmatpush1.bf16.msra.mxu0 %v14047_v5  ;;  %7898 = vmatprep.subr.bf16.mxu1 %v14052_v4  ;;  %v14115_v5 = vld [vmem:[%s15992_s26 + $0x8bc] ss:$48 sps:$4 sm:$0xff]   ;;  %v14110_v4 = vld [vmem:[%s15992_s26 + $0x2b8] ss:$48 sps:$4 sm:$0xff]  }
0x169d   : > { %7988 = vmatprep.subr.bf16.mxu0 %v14055_v37  ;;  %v14113_v37 = vld [vmem:[%s15992_s26 + $0x8b8] ss:$48 sps:$4 sm:$0xff]  }
0x169f   : > { %7899 = vmatpush2.bf16.msra.mxu1 %v14050_v19  ;;  %v14118_v19 = vld [vmem:[%s15992_s26 + $0x25c] ss:$48 sps:$4 sm:$0xff]  }
0x16a0   : > { %7989 = vmatpush1.bf16.msra.mxu0 %v14053_v1  ;;  %7900 = vmatprep.subr.bf16.mxu1 %v14058_v36  ;;  %v14121_v1 = vld [vmem:[%s15992_s26 + $0x85c] ss:$48 sps:$4 sm:$0xff]   ;;  %v14116_v36 = vld [vmem:[%s15992_s26 + $0x258] ss:$48 sps:$4 sm:$0xff]  }
0x16a1   : > { %7990 = vmatprep.subr.bf16.mxu0 %v14061_v48  ;;  %v14119_v48 = vld [vmem:[%s15992_s26 + $0x858] ss:$48 sps:$4 sm:$0xff]  }
0x16a3   : > { %7901 = vmatpush2.bf16.msra.mxu1 %v14056_v26  ;;  %v14124_v26 = vld [vmem:[%s15992_s26 + $0x1fc] ss:$48 sps:$4 sm:$0xff]  }
0x16a4   : > { %7991 = vmatpush1.bf16.msra.mxu0 %v14059_v28  ;;  %8029 = vmatprep.subr.bf16.mxu1 %v14064_v38  ;;  %v14127_v28 = vld [vmem:[%s15992_s26 + $0x7fc] ss:$48 sps:$4 sm:$0xff]   ;;  %v14122_v38 = vld [vmem:[%s15992_s26 + $0x1f8] ss:$48 sps:$4 sm:$0xff]  }
0x16a5   : > { %7992 = vmatprep.subr.bf16.mxu0 %v14067_v45  ;;  %v14125_v45 = vld [vmem:[%s15992_s26 + $0x7f8] ss:$48 sps:$4 sm:$0xff]  }
0x16a6   : > { %7903 = vmatmul.mubr.bf16.vlgmr.msra.gmra.mxu1 %v17300_v43 }
0x16a7   : > { %7912 = vmatprep.mubr.bf16.mxu1 %v17309_v17  ;;  %8030 = vmatpush1.bf16.msra.mxu1 %v14062_v13  ;;  %v14130_v13 = vld [vmem:[%s15992_s26 + $0x19c] ss:$48 sps:$4 sm:$0xff]  }
0x16a8   : > { %7993 = vmatpush2.bf16.msra.mxu0 %v14065_v59  ;;  %8031 = vmatprep.subr.bf16.mxu1 %v14070_v8  ;;  %v14133_v59 = vld [vmem:[%s15992_s26 + $0x79c] ss:$48 sps:$4 sm:$0xff]   ;;  %v14128_v8 = vld [vmem:[%s15992_s26 + $0x198] ss:$48 sps:$4 sm:$0xff]  }
0x16a9   : > { %7994 = vmatprep.subr.bf16.mxu0 %v14073_v42  ;;  %v14131_v42 = vld [vmem:[%s15992_s26 + $0x798] ss:$48 sps:$4 sm:$0xff]  }
0x16ab   : > { %8032 = vmatpush1.bf16.msra.mxu1 %v14068_v12  ;;  %v14136_v12 = vld [vmem:[%s15992_s26 + $0x13c] ss:$48 sps:$4 sm:$0xff]  }
0x16ac   : > { %7995 = vmatpush2.bf16.msra.mxu0 %v14071_v52  ;;  %8033 = vmatprep.subr.bf16.mxu1 %v14076_v21  ;;  %v14139_v52 = vld [vmem:[%s15992_s26 + $0x73c] ss:$48 sps:$4 sm:$0xff]   ;;  %v14134_v21 = vld [vmem:[%s15992_s26 + $0x138] ss:$48 sps:$4 sm:$0xff]  }
0x16ad   : > { %7996 = vmatprep.subr.bf16.mxu0 %v14079_v14  ;;  %v14137_v14 = vld [vmem:[%s15992_s26 + $0x738] ss:$48 sps:$4 sm:$0xff]  }
0x16ae   : > { %7913 = vmatmul.mubr.bf16.gmra.mxu1 %v17318_v35 }
0x16af   : > { %8034 = vmatpush1.bf16.msra.mxu1 %v14074_v40  ;;  %8061 = vmatprep.mubr.bf16.mxu1 %v18633_v10  ;;  %v14142_v40 = vld [vmem:[%s15992_s26 + $0xdc] ss:$48 sps:$4 sm:$0xff]  }
0x16b0   : > { %7997 = vmatpush2.bf16.msra.mxu0 %v14077_v15  ;;  %8035 = vmatprep.subr.bf16.mxu1 %v14082_v22  ;;  %v14145_v15 = vld [vmem:[%s15992_s26 + $0x6dc] ss:$48 sps:$4 sm:$0xff]   ;;  %v14140_v22 = vld [vmem:[%s15992_s26 + $0xd8] ss:$48 sps:$4 sm:$0xff]  }
0x16b1   : > { %7998 = vmatprep.subr.bf16.mxu0 %v14085_v29  ;;  %v14143_v29 = vld [vmem:[%s15992_s26 + $0x6d8] ss:$48 sps:$4 sm:$0xff]  }
0x16b3   : > { %8036 = vmatpush1.bf16.msra.mxu1 %v14080_v2  ;;  %v14148_v2 = vld [vmem:[%s15992_s26 + $0x7c] ss:$48 sps:$4 sm:$0xff]  }
0x16b4   : > { %7999 = vmatpush2.bf16.msra.mxu0 %v14083_v18  ;;  %8037 = vmatprep.subr.bf16.mxu1 %v14088_v55  ;;  %v14151_v18 = vld [vmem:[%s15992_s26 + $0x67c] ss:$48 sps:$4 sm:$0xff]   ;;  %v14146_v55 = vld [vmem:[%s15992_s26 + $0x78] ss:$48 sps:$4 sm:$0xff]  }
0x16b5   : > { %8000 = vmatprep.subr.bf16.mxu0 %v14091_v60  ;;  %v14149_v60 = vld [vmem:[%s15992_s26 + $0x678] ss:$48 sps:$4 sm:$0xff]  }
0x16b7   : > { %8038 = vmatpush1.bf16.msra.mxu1 %v14086_v16  ;;  %v14154_v16 = vld [vmem:[%s15992_s26 + $0x1c] ss:$48 sps:$4 sm:$0xff]  }
0x16b8   : > { %8001 = vmatpush2.bf16.msra.mxu0 %v14089_v34  ;;  %8039 = vmatprep.subr.bf16.mxu1 %v14094_v3  ;;  %v14157_v34 = vld [vmem:[%s15992_s26 + $0x61c] ss:$48 sps:$4 sm:$0xff]   ;;  %v14152_v3 = vld [vmem:[%s15992_s26 + $0x18] ss:$48 sps:$4 sm:$0xff]  }
0x16b9   : > { %8002 = vmatprep.subr.bf16.mxu0 %v14097_v47  ;;  %v14155_v47 = vld [vmem:[%s15992_s26 + $0x618] ss:$48 sps:$4 sm:$0xff]  }
0x16bb   : > { %8040 = vmatpush1.bf16.msra.mxu1 %v14092_v24  ;;  %v14160_v24 = vld [vmem:[%s15992_s26 + $0x5bc] ss:$48 sps:$4 sm:$0xff]  }
0x16bc   : > { %8003 = vmatpush2.bf16.msra.mxu0 %v14095_v46  ;;  %8041 = vmatprep.subr.bf16.mxu1 %v14100_v57  ;;  %v14163_v46 = vld [vmem:[%s15992_s26 + $0x2c4] ss:$48 sps:$4 sm:$0xff]   ;;  %v14158_v57 = vld [vmem:[%s15992_s26 + $0x5b8] ss:$48 sps:$4 sm:$0xff]  }
0x16bd   : > { %8004 = vmatprep.subr.bf16.mxu0 %v14103_v56  ;;  %v14161_v56 = vld [vmem:[%s15992_s26 + $0x2c0] ss:$48 sps:$4 sm:$0xff]  }
0x16bf   : > { %8042 = vmatpush1.bf16.msra.mxu1 %v14098_v31  ;;  %v14166_v31 = vld [vmem:[%s15992_s26 + $0x55c] ss:$48 sps:$4 sm:$0xff]  }
0x16c0   : > { %8005 = vmatpush2.bf16.msra.mxu0 %v14101_v51  ;;  %8043 = vmatprep.subr.bf16.mxu1 %v14106_v32  ;;  %v14169_v51 = vld [vmem:[%s15992_s26 + $0x264] ss:$48 sps:$4 sm:$0xff]   ;;  %v14164_v32 = vld [vmem:[%s15992_s26 + $0x558] ss:$48 sps:$4 sm:$0xff]  }
0x16c1   : > { %8006 = vmatprep.subr.bf16.mxu0 %v14109_v63  ;;  %v14167_v63 = vld [vmem:[%s15992_s26 + $0x260] ss:$48 sps:$4 sm:$0xff]  }
0x16c3   : > { %8044 = vmatpush1.bf16.msra.mxu1 %v14104_v30  ;;  %v14172_v30 = vld [vmem:[%s15992_s26 + $0x4fc] ss:$48 sps:$4 sm:$0xff]  }
0x16c4   : > { %8007 = vmatpush2.bf16.msra.mxu0 %v14107_v33  ;;  %8082 = vmatprep.subr.bf16.mxu1 %v14112_v6  ;;  %v14175_v33 = vld [vmem:[%s15992_s26 + $0x204] ss:$48 sps:$4 sm:$0xff]   ;;  %v14170_v6 = vld [vmem:[%s15992_s26 + $0x4f8] ss:$48 sps:$4 sm:$0xff]  }
0x16c5   : > { %8135 = vmatprep.subr.bf16.mxu0 %v14115_v5  ;;  %v14173_v5 = vld [vmem:[%s15992_s26 + $0x200] ss:$48 sps:$4 sm:$0xff]  }
0x16c6   : > { %8062 = vmatmul.mubr.bf16.vlgmr.msra.gmra.mxu1 %v17295_v50 }
0x16c7   : > { %8009 = vmatmul.mubr.bf16.vlgmr.msra.gmra.mxu0 %v17300_v43  ;;  %8083 = vmatpush1.bf16.msra.mxu1 %v14110_v4  ;;  %v14178_v4 = vld [vmem:[%s15992_s26 + $0x49c] ss:$48 sps:$4 sm:$0xff]  }
0x16c8   : > { %8018 = vmatprep.mubr.bf16.mxu0 %v17309_v17  ;;  %8136 = vmatpush1.bf16.msra.mxu0 %v14113_v37  ;;  %v14181_v37 = vld [vmem:[%s15992_s26 + $0x1a4] ss:$48 sps:$4 sm:$0xff]  }
0x16c9   : > { %8084 = vmatprep.subr.bf16.mxu1 %v14118_v19  ;;  %8137 = vmatprep.subr.bf16.mxu0 %v14121_v1  ;;  %v14176_v19 = vld [vmem:[%s15992_s26 + $0x498] ss:$48 sps:$4 sm:$0xff]   ;;  %v14179_v1 = vld [vmem:[%s15992_s26 + $0x1a0] ss:$48 sps:$4 sm:$0xff]  }
0x16ca   : > { %8071 = vmatprep.mubr.bf16.mxu1 %v18633_v10 }
0x16cb   : > { %8085 = vmatpush1.bf16.msra.mxu1 %v14116_v36  ;;  %v14184_v36 = vld [vmem:[%s15992_s26 + $0x43c] ss:$48 sps:$4 sm:$0xff]  }
0x16cc   : > { %8138 = vmatpush1.bf16.msra.mxu0 %v14119_v48  ;;  %8086 = vmatprep.subr.bf16.mxu1 %v14124_v26  ;;  %v14187_v48 = vld [vmem:[%s15992_s26 + $0x144] ss:$48 sps:$4 sm:$0xff]   ;;  %v14182_v26 = vld [vmem:[%s15992_s26 + $0x438] ss:$48 sps:$4 sm:$0xff]  }
0x16cd   : > { %8139 = vmatprep.subr.bf16.mxu0 %v14127_v28  ;;  %v14185_v28 = vld [vmem:[%s15992_s26 + $0x140] ss:$48 sps:$4 sm:$0xff]  }
0x16ce   : > { %8072 = vmatmul.mubr.bf16.gmra.mxu1 %v17315_v62 }
0x16cf   : > { %8019 = vmatmul.mubr.bf16.gmra.mxu0 %v17318_v35  ;;  %8087 = vmatpush1.bf16.msra.mxu1 %v14122_v38  ;;  %v14190_v38 = vld [vmem:[%s15992_s26 + $0x3dc] ss:$48 sps:$4 sm:$0xff]  }
0x16d0   : > { %8114 = vmatprep.mubr.bf16.mxu1 %v17293_v25  ;;  %8140 = vmatpush1.bf16.msra.mxu0 %v14125_v45  ;;  %v14193_v45 = vld [vmem:[%s15992_s26 + $0xe4] ss:$48 sps:$4 sm:$0xff]  }
0x16d1   : > { %8088 = vmatprep.subr.bf16.mxu1 %v14130_v13  ;;  %8141 = vmatprep.subr.bf16.mxu0 %v14133_v59  ;;  %v14188_v13 = vld [vmem:[%s15992_s26 + $0x3d8] ss:$48 sps:$4 sm:$0xff]   ;;  %v14191_v59 = vld [vmem:[%s15992_s26 + $0xe0] ss:$48 sps:$4 sm:$0xff]  }
0x16d2   : > { %8167 = vmatprep.mubr.bf16.mxu0 %v18633_v10 }
0x16d3   : > { %8089 = vmatpush1.bf16.msra.mxu1 %v14128_v8  ;;  %v14196_v8 = vld [vmem:[%s15992_s26 + $0x37c] ss:$48 sps:$4 sm:$0xff]  }
0x16d4   : > { %8142 = vmatpush1.bf16.msra.mxu0 %v14131_v42  ;;  %8090 = vmatprep.subr.bf16.mxu1 %v14136_v12  ;;  %v14199_v42 = vld [vmem:[%s15992_s26 + $0x84] ss:$48 sps:$4 sm:$0xff]   ;;  %v14194_v12 = vld [vmem:[%s15992_s26 + $0x378] ss:$48 sps:$4 sm:$0xff]  }
0x16d5   : > { %8143 = vmatprep.subr.bf16.mxu0 %v14139_v52  ;;  %v14197_v52 = vld [vmem:[%s15992_s26 + $0x80] ss:$48 sps:$4 sm:$0xff]  }
0x16d7   : > { %8091 = vmatpush1.bf16.msra.mxu1 %v14134_v21  ;;  %v14202_v21 = vld [vmem:[%s15992_s26 + $0x31c] ss:$48 sps:$4 sm:$0xff]  }
0x16d8   : > { %8144 = vmatpush1.bf16.msra.mxu0 %v14137_v14  ;;  %8092 = vmatprep.subr.bf16.mxu1 %v14142_v40  ;;  %v14205_v14 = vld [vmem:[%s15992_s26 + $0x24] ss:$48 sps:$4 sm:$0xff]   ;;  %v14200_v40 = vld [vmem:[%s15992_s26 + $0x318] ss:$48 sps:$4 sm:$0xff]  }
0x16d9   : > { %8145 = vmatprep.subr.bf16.mxu0 %v14145_v15  ;;  %v14203_v15 = vld [vmem:[%s15992_s26 + $0x20] ss:$48 sps:$4 sm:$0xff]  }
0x16db   : > { %8093 = vmatpush1.bf16.msra.mxu1 %v14140_v22  ;;  %v14208_v22 = vld [vmem:[%s15992_s26 + $0x8c4] ss:$48 sps:$4 sm:$0xff]  }
0x16dc   : > { %8146 = vmatpush1.bf16.msra.mxu0 %v14143_v29  ;;  %8094 = vmatprep.subr.bf16.mxu1 %v14148_v2  ;;  %v14211_v29 = vld [vmem:[%s15992_s26 + $0x5c4] ss:$48 sps:$4 sm:$0xff]   ;;  %v14206_v2 = vld [vmem:[%s15992_s26 + $0x8c0] ss:$48 sps:$4 sm:$0xff]  }
0x16dd   : > { %8147 = vmatprep.subr.bf16.mxu0 %v14151_v18  ;;  %v14209_v18 = vld [vmem:[%s15992_s26 + $0x5c0] ss:$48 sps:$4 sm:$0xff]  }
0x16df   : > { %8095 = vmatpush1.bf16.msra.mxu1 %v14146_v55  ;;  %v14214_v55 = vld [vmem:[%s15992_s26 + $0x864] ss:$48 sps:$4 sm:$0xff]  }
0x16e0   : > { %8148 = vmatpush1.bf16.msra.mxu0 %v14149_v60  ;;  %8096 = vmatprep.subr.bf16.mxu1 %v14154_v16  ;;  %v14217_v60 = vld [vmem:[%s15992_s26 + $0x564] ss:$48 sps:$4 sm:$0xff]   ;;  %v14212_v16 = vld [vmem:[%s15992_s26 + $0x860] ss:$48 sps:$4 sm:$0xff]  }
0x16e1   : > { %8149 = vmatprep.subr.bf16.mxu0 %v14157_v34  ;;  %v14215_v34 = vld [vmem:[%s15992_s26 + $0x560] ss:$48 sps:$4 sm:$0xff]  }
0x16e3   : > { %8097 = vmatpush1.bf16.msra.mxu1 %v14152_v3  ;;  %v14220_v3 = vld [vmem:[%s15992_s26 + $0x804] ss:$48 sps:$4 sm:$0xff]  }
0x16e4   : > { %8150 = vmatpush1.bf16.msra.mxu0 %v14155_v47  ;;  %8098 = vmatprep.subr.bf16.mxu1 %v14160_v24  ;;  %v14223_v47 = vld [vmem:[%s15992_s26 + $0x504] ss:$48 sps:$4 sm:$0xff]   ;;  %v14218_v24 = vld [vmem:[%s15992_s26 + $0x800] ss:$48 sps:$4 sm:$0xff]  }
0x16e5   : > { %8188 = vmatprep.subr.bf16.mxu0 %v14163_v46  ;;  %v14221_v46 = vld [vmem:[%s15992_s26 + $0x500] ss:$48 sps:$4 sm:$0xff]  }
0x16e7   : > { %8099 = vmatpush2.bf16.msra.mxu1 %v14158_v57  ;;  %8168 = vmatmul.mubr.bf16.vlgmr.msra.gmra.mxu0 %v17295_v50  ;;  %v14226_v57 = vld [vmem:[%s15992_s26 + $0x7a4] ss:$48 sps:$4 sm:$0xff]  }
0x16e8   : > { %8189 = vmatpush1.bf16.msra.mxu0 %v14161_v56  ;;  %8100 = vmatprep.subr.bf16.mxu1 %v14166_v31  ;;  %v14229_v56 = vld [vmem:[%s15992_s26 + $0x4a4] ss:$48 sps:$4 sm:$0xff]   ;;  %v14224_v31 = vld [vmem:[%s15992_s26 + $0x7a0] ss:$48 sps:$4 sm:$0xff]  }
0x16e9   : > { %8190 = vmatprep.subr.bf16.mxu0 %v14169_v51  ;;  %8177 = vmatprep.mubr.bf16.mxu0 %v18633_v10  ;;  %v14227_v51 = vld [vmem:[%s15992_s26 + $0x4a0] ss:$48 sps:$4 sm:$0xff]  }
0x16eb   : > { %8101 = vmatpush2.bf16.msra.mxu1 %v14164_v32  ;;  %v14232_v32 = vld [vmem:[%s15992_s26 + $0x744] ss:$48 sps:$4 sm:$0xff]  }
0x16ec   : > { %8191 = vmatpush1.bf16.msra.mxu0 %v14167_v63  ;;  %8102 = vmatprep.subr.bf16.mxu1 %v14172_v30  ;;  %v14235_v63 = vld [vmem:[%s15992_s26 + $0x444] ss:$48 sps:$4 sm:$0xff]   ;;  %v14230_v30 = vld [vmem:[%s15992_s26 + $0x740] ss:$48 sps:$4 sm:$0xff]  }
0x16ed   : > { %8192 = vmatprep.subr.bf16.mxu0 %v14175_v33  ;;  %v14233_v33 = vld [vmem:[%s15992_s26 + $0x440] ss:$48 sps:$4 sm:$0xff]  }
0x16ef   : > { %8103 = vmatpush2.bf16.msra.mxu1 %v14170_v6  ;;  %8178 = vmatmul.mubr.bf16.gmra.mxu0 %v17315_v62  ;;  %v14238_v6 = vld [vmem:[%s15992_s26 + $0x6e4] ss:$48 sps:$4 sm:$0xff]  }
0x16f0   : > { %8193 = vmatpush1.bf16.msra.mxu0 %v14173_v5  ;;  %8220 = vmatprep.mubr.bf16.mxu0 %v17293_v25  ;;  %v14241_v5 = vld [vmem:[%s15992_s26 + $0x3e4] ss:$48 sps:$4 sm:$0xff]  }
0x16f1   : > { %8104 = vmatprep.subr.bf16.mxu1 %v14178_v4  ;;  %8194 = vmatprep.subr.bf16.mxu0 %v14181_v37  ;;  %v14236_v4 = vld [vmem:[%s15992_s26 + $0x6e0] ss:$48 sps:$4 sm:$0xff]  }
0x16f2   : > { %v14239_v37 = vld [vmem:[%s15992_s26 + $0x3e0] ss:$48 sps:$4 sm:$0xff]  }
0x16f3   : > { %8105 = vmatpush2.bf16.msra.mxu1 %v14176_v19  ;;  %v14244_v19 = vld [vmem:[%s15992_s26 + $0x684] ss:$48 sps:$4 sm:$0xff]  }
0x16f4   : > { %8195 = vmatpush1.bf16.msra.mxu0 %v14179_v1  ;;  %8106 = vmatprep.subr.bf16.mxu1 %v14184_v36  ;;  %v14247_v1 = vld [vmem:[%s15992_s26 + $0x384] ss:$48 sps:$4 sm:$0xff]   ;;  %v14242_v36 = vld [vmem:[%s15992_s26 + $0x680] ss:$48 sps:$4 sm:$0xff]  }
0x16f5   : > { %8196 = vmatprep.subr.bf16.mxu0 %v14187_v48  ;;  %v14245_v48 = vld [vmem:[%s15992_s26 + $0x380] ss:$48 sps:$4 sm:$0xff]  }
0x16f7   : > { %8107 = vmatpush2.bf16.msra.mxu1 %v14182_v26  ;;  %v14250_v26 = vld [vmem:[%s15992_s26 + $0x624] ss:$48 sps:$4 sm:$0xff]  }
0x16f8   : > { %8197 = vmatpush1.bf16.msra.mxu0 %v14185_v28  ;;  %8108 = vmatprep.subr.bf16.mxu1 %v14190_v38  ;;  %v14253_v28 = vld [vmem:[%s15992_s26 + $0x324] ss:$48 sps:$4 sm:$0xff]   ;;  %v14248_v38 = vld [vmem:[%s15992_s26 + $0x620] ss:$48 sps:$4 sm:$0xff]  }
0x16f9   : > { %8198 = vmatprep.subr.bf16.mxu0 %v14193_v45  ;;  %v14251_v45 = vld [vmem:[%s15992_s26 + $0x320] ss:$48 sps:$4 sm:$0xff]  }
0x16fb   : > { %8109 = vmatpush2.bf16.msra.mxu1 %v14188_v13  ;;  %v14256_v13 = vld [vmem:[%s15992_s26 + $0x2cc] ss:$48 sps:$4 sm:$0xff]  }
0x16fc   : > { %8199 = vmatpush1.bf16.msra.mxu0 %v14191_v59  ;;  %8110 = vmatprep.subr.bf16.mxu1 %v14196_v8  ;;  %v14259_v59 = vld [vmem:[%s15992_s26 + $0x8cc] ss:$48 sps:$4 sm:$0xff]   ;;  %v14254_v8 = vld [vmem:[%s15992_s26 + $0x2c8] ss:$48 sps:$4 sm:$0xff]  }
0x16fd   : > { %8200 = vmatprep.subr.bf16.mxu0 %v14199_v42  ;;  %v14257_v42 = vld [vmem:[%s15992_s26 + $0x8c8] ss:$48 sps:$4 sm:$0xff]  }
0x16ff   : > { %8111 = vmatpush2.bf16.msra.mxu1 %v14194_v12  ;;  %v17533_v12 = vld [vmem:[%s15995_s22] sm:$0xff] }
0x1700   : > { %8201 = vmatpush1.bf16.msra.mxu0 %v14197_v52  ;;  %8112 = vmatprep.subr.bf16.mxu1 %v14202_v21  ;;  %v14262_v52 = vld [vmem:[%s15992_s26 + $0x26c] ss:$48 sps:$4 sm:$0xff]  }
0x1701   : > { %8202 = vmatprep.subr.bf16.mxu0 %v14205_v14  ;;  %v14265_v21 = vld [vmem:[%s15992_s26 + $0x86c] ss:$48 sps:$4 sm:$0xff]  }
0x1703   : > { %8113 = vmatpush2.bf16.msra.mxu1 %v14200_v40  ;;  %v17542_v40 = vrot.slane %v17533_v12, %v18636_v44 }
0x1704   : > { %8203 = vmatpush1.bf16.msra.mxu0 %v14203_v15  ;;  %8241 = vmatprep.subr.bf16.mxu1 %v14208_v22  ;;  %v14260_v22 = vld [vmem:[%s15992_s26 + $0x268] ss:$48 sps:$4 sm:$0xff]  }
0x1705   : > { %8204 = vmatprep.subr.bf16.mxu0 %v14211_v29 }
0x1706   : > { %8115 = vmatmul.mubr.bf16.vlgmr.msra.gmra.mxu1 %v17300_v43 }
0x1707   : > { %8124 = vmatprep.mubr.bf16.mxu1 %v17309_v17  ;;  %8242 = vmatpush1.bf16.msra.mxu1 %v14206_v2  ;;  %v14263_v2 = vld [vmem:[%s15992_s26 + $0x868] ss:$48 sps:$4 sm:$0xff]  }
0x1708   : > { %8205 = vmatpush2.bf16.msra.mxu0 %v14209_v18  ;;  %8243 = vmatprep.subr.bf16.mxu1 %v14214_v55  ;;  %v14268_v18 = vld [vmem:[%s15992_s26 + $0x20c] ss:$48 sps:$4 sm:$0xff]  }
0x1709   : > { %8206 = vmatprep.subr.bf16.mxu0 %v14217_v60  ;;  %v14271_v60 = vld [vmem:[%s15992_s26 + $0x80c] ss:$48 sps:$4 sm:$0xff]  }
0x170b   : > { %8244 = vmatpush1.bf16.msra.mxu1 %v14212_v16 }
0x170c   : > { %8207 = vmatpush2.bf16.msra.mxu0 %v14215_v34  ;;  %8245 = vmatprep.subr.bf16.mxu1 %v14220_v3  ;;  %v14266_v3 = vld [vmem:[%s15992_s26 + $0x208] ss:$48 sps:$4 sm:$0xff]  }
0x170d   : > { %8208 = vmatprep.subr.bf16.mxu0 %v14223_v47 }
0x170e   : > { %8125 = vmatmul.mubr.bf16.gmra.mxu1 %v17318_v35 }
0x170f   : > { %8246 = vmatpush1.bf16.msra.mxu1 %v14218_v24  ;;  %8273 = vmatprep.mubr.bf16.mxu1 %v18633_v10 }
0x1710   : > { %8209 = vmatpush2.bf16.msra.mxu0 %v14221_v46  ;;  %8247 = vmatprep.subr.bf16.mxu1 %v14226_v57  ;;  %v14269_v46 = vld [vmem:[%s15992_s26 + $0x808] ss:$48 sps:$4 sm:$0xff]  }
0x1711   : > { %8210 = vmatprep.subr.bf16.mxu0 %v14229_v56  ;;  %v14274_v56 = vld [vmem:[%s15992_s26 + $0x1ac] ss:$48 sps:$4 sm:$0xff]  }
0x1713   : > { %8248 = vmatpush1.bf16.msra.mxu1 %v14224_v31  ;;  %v14277_v31 = vld [vmem:[%s15992_s26 + $0x7ac] ss:$48 sps:$4 sm:$0xff]  }
0x1714   : > { %8211 = vmatpush2.bf16.msra.mxu0 %v14227_v51  ;;  %8249 = vmatprep.subr.bf16.mxu1 %v14232_v32 }
0x1715   : > { %8212 = vmatprep.subr.bf16.mxu0 %v14235_v63  ;;  %v14272_v63 = vld [vmem:[%s15992_s26 + $0x1a8] ss:$48 sps:$4 sm:$0xff]  }
0x1717   : > { %8250 = vmatpush1.bf16.msra.mxu1 %v14230_v30 }
0x1718   : > { %8213 = vmatpush2.bf16.msra.mxu0 %v14233_v33  ;;  %8251 = vmatprep.subr.bf16.mxu1 %v14238_v6  ;;  %v14275_v6 = vld [vmem:[%s15992_s26 + $0x7a8] ss:$48 sps:$4 sm:$0xff]  }
0x1719   : > { %8214 = vmatprep.subr.bf16.mxu0 %v14241_v5  ;;  %v14280_v5 = vld [vmem:[%s15992_s26 + $0x14c] ss:$48 sps:$4 sm:$0xff]  }
0x171b   : > { %8252 = vmatpush1.bf16.msra.mxu1 %v14236_v4 }
0x171c   : > { %8215 = vmatpush2.bf16.msra.mxu0 %v14239_v37  ;;  %8253 = vmatprep.subr.bf16.mxu1 %v14244_v19  ;;  %v14283_v37 = vld [vmem:[%s15992_s26 + $0x74c] ss:$48 sps:$4 sm:$0xff]  }
0x171d   : > { %8216 = vmatprep.subr.bf16.mxu0 %v14247_v1 }
0x171f   : > { %8254 = vmatpush1.bf16.msra.mxu1 %v14242_v36  ;;  %v14281_v36 = vld [vmem:[%s15992_s26 + $0x748] ss:$48 sps:$4 sm:$0xff]  }
0x1720   : > { %8217 = vmatpush2.bf16.msra.mxu0 %v14245_v48  ;;  %8255 = vmatprep.subr.bf16.mxu1 %v14250_v26  ;;  %v14286_v48 = vld [vmem:[%s15992_s26 + $0xec] ss:$48 sps:$4 sm:$0xff]  }
0x1721   : > { %8218 = vmatprep.subr.bf16.mxu0 %v14253_v28  ;;  %v14289_v28 = vld [vmem:[%s15992_s26 + $0x6ec] ss:$48 sps:$4 sm:$0xff]  }
0x1723   : > { %8256 = vmatpush1.bf16.msra.mxu1 %v14248_v38 }
0x1724   : > { %8219 = vmatpush2.bf16.msra.mxu0 %v14251_v45  ;;  %8294 = vmatprep.subr.bf16.mxu1 %v14256_v13  ;;  %v14284_v45 = vld [vmem:[%s15992_s26 + $0xe8] ss:$48 sps:$4 sm:$0xff]  }
0x1725   : > { %8347 = vmatprep.subr.bf16.mxu0 %v14259_v59 }
0x1726   : > { %8274 = vmatmul.mubr.bf16.vlgmr.msra.gmra.mxu1 %v17295_v50  ;;  %v17538_v14 = vpop.f32.mrf.mxu1 }
0x1727   : > { %8221 = vmatmul.mubr.bf16.vlgmr.msra.gmra.mxu0 %v17300_v43  ;;  %8295 = vmatpush1.bf16.msra.mxu1 %v14254_v8  ;;  %v17545_v15 = vpop.f32.mrf.mxu0  ;;  %v14287_v8 = vld [vmem:[%s15992_s26 + $0x6e8] ss:$48 sps:$4 sm:$0xff]  }
0x1728   : > { %8230 = vmatprep.mubr.bf16.mxu0 %v17309_v17  ;;  %8348 = vmatpush1.bf16.msra.mxu0 %v14257_v42  ;;  %v7853_v29 = vpop.f32.mrf.mxu1  ;;  %v14292_v42 = vld [vmem:[%s15992_s26 + $0x8c] ss:$48 sps:$4 sm:$0xff]  }
0x1729   : > { %v7800_v55 = vpop.f32.mrf.mxu0  ;;  %8296 = vmatprep.subr.bf16.mxu1 %v14262_v52  ;;  %8349 = vmatprep.subr.bf16.mxu0 %v14265_v21  ;;  %v14295_v52 = vld [vmem:[%s15992_s26 + $0x68c] ss:$48 sps:$4 sm:$0xff]  }
0x172a   : > { %v7801_v16 = vadd.f32 %v7800_v55, %v17542_v40  ;;  %8283 = vmatprep.mubr.bf16.mxu1 %v18633_v10  ;;  %v17559_v24 = vpop.f32.mrf.mxu1  ;;  %v14301_v55 = vld [vmem:[%s15992_s26 + $0x62c] ss:$48 sps:$4 sm:$0xff]  }
0x172b   : > { %8297 = vmatpush1.bf16.msra.mxu1 %v14260_v22  ;;  %v17554_v34 = vpop.f32.mrf.mxu0  ;;  %v14290_v22 = vld [vmem:[%s15992_s26 + $0x88] ss:$48 sps:$4 sm:$0xff]  }
0x172c   : > { %v17557_v47 = vadd.f32 %v7853_v29, %v7801_v16  ;;  %8350 = vmatpush1.bf16.msra.mxu0 %v14263_v2  ;;  %8298 = vmatprep.subr.bf16.mxu1 %v14268_v18  ;;  %v7857_v33 = vpop.f32.mrf.mxu1  ;;  %v14293_v2 = vld [vmem:[%s15992_s26 + $0x688] ss:$48 sps:$4 sm:$0xff]   ;;  %v14298_v18 = vld [vmem:[%s15992_s26 + $0x2c] ss:$48 sps:$4 sm:$0xff]  }
0x172d   : > { %v7804_v57 = vpop.f32.mrf.mxu0  ;;  %8351 = vmatprep.subr.bf16.mxu0 %v14271_v60  ;;  %v14296_v60 = vld [vmem:[%s15992_s26 + $0x28] ss:$48 sps:$4 sm:$0xff]  }
0x172e   : > { %v8449_v51 = vmul.f32 0.044715, %v17557_v47  ;;  %v7805_v32 = vadd.f32 %v7804_v57, %v17542_v40  ;;  %8284 = vmatmul.mubr.bf16.gmra.mxu1 %v17315_v62  ;;  %v14299_v16 = vld [vmem:[%s15992_s26 + $0x628] ss:$48 sps:$4 sm:$0xff]  }
0x172f   : > { %8231 = vmatmul.mubr.bf16.gmra.mxu0 %v17318_v35  ;;  %8299 = vmatpush1.bf16.msra.mxu1 %v14266_v3  ;;  %v14304_v3 = vld [vmem:[%s15992_s26 + $0x5cc] ss:$48 sps:$4 sm:$0xff]   ;;  %v17599_v57 = vpop.f32.mrf.mxu0 }
0x1730   : > { %v8497_v30 = vmul.f32 %v8449_v51, %v17557_v47  ;;  %8326 = vmatprep.mubr.bf16.mxu1 %v17293_v25  ;;  %8352 = vmatpush1.bf16.msra.mxu0 %v14269_v46  ;;  %v17573_v4 = vadd.f32 %v7857_v33, %v7805_v32  ;;  %v14278_v25 = vld [vmem:[%s15992_s26 + $0x148] ss:$48 sps:$4 sm:$0xff]   ;;  %v14307_v46 = vld [vmem:[%s16001_s25 + $0xac] ss:$12 sps:$4 sm:$0xff]   ;;  %v14310_v51 = vld [vmem:[%s15992_s26 + $0x56c] ss:$48 sps:$4 sm:$0xff]  }
0x1731   : > { %8300 = vmatprep.subr.bf16.mxu1 %v14274_v56  ;;  %8353 = vmatprep.subr.bf16.mxu0 %v14277_v31  ;;  %v14302_v56 = vld [vmem:[%s15992_s26 + $0x5c8] ss:$48 sps:$4 sm:$0xff]   ;;  %v14305_v31 = vld [vmem:[%s16001_s25 + $0xa8] ss:$12 sps:$4 sm:$0xff]  }
0x1732   : > { %8379 = vmatprep.mubr.bf16.mxu0 %v18633_v10  ;;  %v8545_v19 = vmul.f32 %v8497_v30, %v17557_v47  ;;  %v8461_v1 = vmul.f32 0.044715, %v17573_v4  ;;  %v14313_v32 = vld [vmem:[%s16001_s25 + $0x94] ss:$12 sps:$4 sm:$0xff]   ;;  %v7810_v30 = vpop.f32.mrf.mxu0 }
0x1733   : > { %8301 = vmatpush1.bf16.msra.mxu1 %v14272_v63  ;;  %v14308_v33 = vld [vmem:[%s15992_s26 + $0x568] ss:$48 sps:$4 sm:$0xff]  }
0x1734   : > { %8354 = vmatpush1.bf16.msra.mxu0 %v14275_v6  ;;  %8302 = vmatprep.subr.bf16.mxu1 %v14280_v5  ;;  %v8509_v26 = vmul.f32 %v8461_v1, %v17573_v4  ;;  %v8593_v38 = vadd.f32 %v8545_v19, %v17557_v47  ;;  %v14311_v6 = vld [vmem:[%s16001_s25 + $0x90] ss:$12 sps:$4 sm:$0xff]   ;;  %v14316_v5 = vld [vmem:[%s15992_s26 + $0x50c] ss:$48 sps:$4 sm:$0xff]  }
0x1735   : > { %8355 = vmatprep.subr.bf16.mxu0 %v14283_v37  ;;  %v17609_v37 = vpop.f32.mrf.mxu1  ;;  %v14319_v19 = vld [vmem:[%s16001_s25 + $0x7c] ss:$12 sps:$4 sm:$0xff]  }
0x1736   : > { %v8557_v13 = vmul.f32 %v8509_v26, %v17573_v4  ;;  %v8641_v59 = vmul.f32 0.7978846, %v8593_v38  ;;  %v8413_v26 = vmul.f32 0.5, %v17573_v4  ;;  %v14317_v38 = vld [vmem:[%s16001_s25 + $0x78] ss:$12 sps:$4 sm:$0xff]  }
0x1737   : > { %8303 = vmatpush1.bf16.msra.mxu1 %v14278_v25 }
0x1738   : > { %8356 = vmatpush1.bf16.msra.mxu0 %v14281_v36  ;;  %8304 = vmatprep.subr.bf16.mxu1 %v14286_v48  ;;  %v8605_v21 = vadd.f32 %v8557_v13, %v17573_v4  ;;  %14822 = vtanh.f32 %v8641_v59  ;;  %v7812_v36 = vpop.f32.mrf.mxu0  ;;  %v14314_v48 = vld [vmem:[%s15992_s26 + $0x508] ss:$48 sps:$4 sm:$0xff]  }
0x1739   : > { %8357 = vmatprep.subr.bf16.mxu0 %v14289_v28 }
0x173a   : > { %v8653_v29 = vmul.f32 0.7978846, %v8605_v21  ;;  %v14323_v21 = vld [vmem:[%s16001_s25 + $0x60] ss:$12 sps:$4 sm:$0xff]  }
0x173b   : > { %8305 = vmatpush1.bf16.msra.mxu1 %v14284_v45  ;;  %v14322_v45 = vld [vmem:[%s15992_s26 + $0x4ac] ss:$48 sps:$4 sm:$0xff]  }
0x173c   : > { %8358 = vmatpush1.bf16.msra.mxu0 %v14287_v8  ;;  %8306 = vmatprep.subr.bf16.mxu1 %v14292_v42  ;;  %14824 = vtanh.f32 %v8653_v29  ;;  %v14325_v8 = vld [vmem:[%s16001_s25 + $0x64] ss:$12 sps:$4 sm:$0xff]   ;;  %v6267_v42 = vrot.slane %v17533_v12, %v18639_v39 }
0x173d   : > { %8359 = vmatprep.subr.bf16.mxu0 %v14295_v52  ;;  %v14320_v52 = vld [vmem:[%s15992_s26 + $0x4a8] ss:$48 sps:$4 sm:$0xff]  }
0x173e   : > { %v7803_v29 = vadd.f32 %v17554_v34, %v6267_v42  ;;  %v14329_v34 = vld [vmem:[%s16001_s25 + $0x48] ss:$12 sps:$4 sm:$0xff]  }
0x173f   : > { %8307 = vmatpush1.bf16.msra.mxu1 %v14290_v22  ;;  %v14328_v22 = vld [vmem:[%s15992_s26 + $0x44c] ss:$48 sps:$4 sm:$0xff]  }
0x1740   : > { %8360 = vmatpush1.bf16.msra.mxu0 %v14293_v2  ;;  %8308 = vmatprep.subr.bf16.mxu1 %v14298_v18  ;;  %v14331_v18 = vld [vmem:[%s16001_s25 + $0x4c] ss:$12 sps:$4 sm:$0xff]  }
0x1741   : > { %8361 = vmatprep.subr.bf16.mxu0 %v14301_v55 }
0x1743   : > { %8309 = vmatpush1.bf16.msra.mxu1 %v14296_v60  ;;  %v14326_v60 = vld [vmem:[%s15992_s26 + $0x448] ss:$48 sps:$4 sm:$0xff]  }
0x1744   : > { %8362 = vmatpush1.bf16.msra.mxu0 %v14299_v16  ;;  %8310 = vmatprep.subr.bf16.mxu1 %v14304_v3  ;;  %v7811_v16 = vadd.f32 %v7810_v30, %v17542_v40  ;;  %v14334_v3 = vld [vmem:[%s15992_s26 + $0x3ec] ss:$48 sps:$4 sm:$0xff]  }
0x1745   : > { %10793 = vmatprep.subr.bf16.mxu0 %v14307_v46  ;;  %v14823_v63 = vpop.eup %14822  ;;  %v17637_v46 = vadd.f32 %v17559_v24, %v7803_v29  ;;  %v14340_v24 = vld [vmem:[%s15992_s26 + $0x38c] ss:$48 sps:$4 sm:$0xff]  }
0x1746   : > { %v8737_v1 = vadd.f32 1.0, %v14823_v63  ;;  %v14335_v63 = vld [vmem:[%s16001_s25 + $0x30] ss:$12 sps:$4 sm:$0xff]  }
0x1747   : > { %8311 = vmatpush2.bf16.msra.mxu1 %v14302_v56  ;;  %8380 = vmatmul.mubr.bf16.vlgmr.msra.gmra.mxu0 %v17295_v50  ;;  %v8401_v50 = vmul.f32 0.5, %v17557_v47  ;;  %v7814_v47 = vpop.f32.mrf.mxu0  ;;  %v8460_v30 = vmul.f32 0.044715, %v17637_v46 }
0x1748   : > { %10794 = vmatpush1.bf16.msra.mxu0 %v14305_v31  ;;  %8312 = vmatprep.subr.bf16.mxu1 %v14310_v51  ;;  %v7815_v55 = vadd.f32 %v7814_v47, %v17542_v40  ;;  %v14337_v31 = vld [vmem:[%s16001_s25 + $0x34] ss:$12 sps:$4 sm:$0xff]   ;;  %v14352_v47 = vld [vmem:[%s16001_s25 + $0x22c] ss:$12 sps:$4 sm:$0xff]  }
0x1749   : > { %10795 = vmatprep.subr.bf16.mxu0 %v14313_v32  ;;  %8389 = vmatprep.mubr.bf16.mxu0 %v18633_v10  ;;  %v14825_v25 = vpop.eup %14824  ;;  %v7863_v10 = vpop.f32.mrf.mxu1  ;;  %v8785_v13 = vmul.f32 %v8737_v1, %v8401_v50  ;;  %v14332_v40 = vld [vmem:[%s15992_s26 + $0x3e8] ss:$48 sps:$4 sm:$0xff]   ;;  %v14346_v50 = vld [vmem:[%s15992_s26 + $0x32c] ss:$48 sps:$4 sm:$0xff]  }
0x174a   : > { %v8749_v28 = vadd.f32 1.0, %v14825_v25  ;;  %v17646_v32 = vadd.f32 %v7863_v10, %v7811_v16  ;;  %v17655_v1 = vpop.f32.mrf.mxu0  ;;  %v14338_v25 = vld [vmem:[%s15992_s26 + $0x388] ss:$48 sps:$4 sm:$0xff]   ;;  %v14353_v16 = vld [vmem:[%s16001_s25 + $0x168] ss:$12 sps:$4 sm:$0xff]  }
0x174b   : > { %8313 = vmatpush2.bf16.msra.mxu1 %v14308_v33  ;;  %v7865_v2 = vpop.f32.mrf.mxu1  ;;  %v7813_v33 = vadd.f32 %v7812_v36, %v6267_v42  ;;  %v14341_v36 = vld [vmem:[%s16001_s25 + $0x18] ss:$12 sps:$4 sm:$0xff]  }
0x174c   : > { %10796 = vmatpush1.bf16.msra.mxu0 %v14311_v6  ;;  %8314 = vmatprep.subr.bf16.mxu1 %v14316_v5  ;;  %v8797_v59 = vmul.f32 %v8749_v28, %v8413_v26  ;;  %v14343_v6 = vld [vmem:[%s16001_s25 + $0x1c] ss:$12 sps:$4 sm:$0xff]   ;;  %v8508_v26 = vmul.f32 %v8460_v30, %v17637_v46 }
0x174d   : > { %10797 = vmatprep.subr.bf16.mxu0 %v14319_v19  ;;  %v7867_v56 = vpop.f32.mrf.mxu1  ;;  %v7809_v19 = vadd.f32 %v17599_v57, %v6267_v42  ;;  %v17662_v28 = vadd.f32 %v7865_v2, %v7813_v33  ;;  %v14349_v57 = vld [vmem:[%s16001_s25 + $0x4] ss:$12 sps:$4 sm:$0xff]  }
0x174e   : > { %v17622_v4 = vpack.c.bf16 %v8797_v59, %v8785_v13  ;;  %v17640_v51 = vadd.f32 %v7867_v56, %v7815_v55  ;;  %v7959_v13 = vpop.f32.mrf.mxu0  ;;  %v14344_v59 = vld [vmem:[%s15992_s26 + $0x328] ss:$48 sps:$4 sm:$0xff]  }
0x174f   : > { %8315 = vmatpush2.bf16.msra.mxu1 %v14314_v48  ;;  %8390 = vmatmul.mubr.bf16.gmra.mxu0 %v17315_v62  ;;  %v7799_v62 = vadd.f32 %v17545_v15, %v6267_v42  ;;  %v8473_v48 = vmul.f32 0.044715, %v17646_v32  ;;  %v17668_v10 = vadd.f32 %v17609_v37, %v7809_v19  ;;  %v14347_v42 = vld [vmem:[%s16001_s25] ss:$12 sps:$4 sm:$0xff]  }
0x1750   : > { %10798 = vmatpush1.bf16.msra.mxu0 %v14317_v38  ;;  %8316 = vmatprep.subr.bf16.mxu1 %v14322_v45  ;;  %v18655_v37 = vld [vmem:[#allocation54_spill] sm:$0xff] }
0x1751   : > { %10825 = vmatprep.mubr.bf16.mxu0 %v17622_v4  ;;  %10799 = vmatprep.subr.bf16.mxu0 %v14325_v8  ;;  %v17643_v15 = vadd.f32 %v17538_v14, %v7799_v62  ;;  %v8485_v14 = vmul.f32 0.044715, %v17640_v51  ;;  %v8521_v8 = vmul.f32 %v8473_v48, %v17646_v32  ;;  %v18556_v29 = vsub.s32 3, %v18655_v37  ;;  %v17681_v62 = vpop.f32.mrf.mxu0  ;;  %v14364_v48 = vld [vmem:[%s16001_s25 + $0x1fc] ss:$12 sps:$4 sm:$0xff]  }
0x1752   : > { %v8472_v55 = vmul.f32 0.044715, %v17668_v10 }
0x1753   : > { %8317 = vmatpush2.bf16.msra.mxu1 %v14320_v52  ;;  %v8448_v5 = vmul.f32 0.044715, %v17643_v15  ;;  %v8533_v38 = vmul.f32 %v8485_v14, %v17640_v51  ;;  %v8556_v52 = vmul.f32 %v8508_v26, %v17637_v46  ;;  %v7963_v14 = vpop.f32.mrf.mxu0 }
0x1754   : > { %10800 = vmatpush1.bf16.msra.mxu0 %v14323_v21  ;;  %8318 = vmatprep.subr.bf16.mxu1 %v14328_v22  ;;  %v8484_v21 = vmul.f32 0.044715, %v17662_v28  ;;  %v14355_v22 = vld [vmem:[%s16001_s25 + $0x16c] ss:$12 sps:$4 sm:$0xff]  }
0x1755   : > { %10801 = vmatprep.subr.bf16.mxu0 %v14331_v18  ;;  %v8496_v45 = vmul.f32 %v8448_v5, %v17643_v15  ;;  %v8581_v2 = vmul.f32 %v8533_v38, %v17640_v51  ;;  %v8604_v56 = vadd.f32 %v8556_v52, %v17637_v46  ;;  %v14356_v5 = vld [vmem:[%s16001_s25 + $0x210] ss:$12 sps:$4 sm:$0xff]  }
0x1757   : > { %8319 = vmatpush2.bf16.msra.mxu1 %v14326_v60  ;;  %v8544_v18 = vmul.f32 %v8496_v45, %v17643_v15  ;;  %v14350_v60 = vld [vmem:[%s16001_s25 + $0x228] ss:$12 sps:$4 sm:$0xff]   ;;  %v8629_v30 = vadd.f32 %v8581_v2, %v17640_v51 }
0x1758   : > { %10802 = vmatpush1.bf16.msra.mxu0 %v14329_v34  ;;  %8320 = vmatprep.subr.bf16.mxu1 %v14334_v3  ;;  %v14358_v34 = vld [vmem:[%s16001_s25 + $0x214] ss:$12 sps:$4 sm:$0xff]   ;;  %v8569_v3 = vmul.f32 %v8521_v8, %v17646_v32  ;;  %v17708_v8 = vpop.f32.mrf.mxu0 }
0x1759   : > { %10803 = vmatprep.subr.bf16.mxu0 %v14337_v31  ;;  %v8532_v31 = vmul.f32 %v8484_v21, %v17662_v28  ;;  %v8592_v33 = vadd.f32 %v8544_v18, %v17643_v15  ;;  %v8677_v38 = vmul.f32 0.7978846, %v8629_v30  ;;  %v14365_v21 = vld [vmem:[%s16001_s25 + $0x138] ss:$12 sps:$4 sm:$0xff]  }
0x175b   : > { %8321 = vmatpush2.bf16.msra.mxu1 %v14332_v40  ;;  %v17692_v40 = vrot.slane %v17533_v12, %v18556_v29  ;;  %v8640_v45 = vmul.f32 0.7978846, %v8592_v33 }
0x175c   : > { %10804 = vmatpush1.bf16.msra.mxu0 %v14335_v63  ;;  %8322 = vmatprep.subr.bf16.mxu1 %v14340_v24  ;;  %v14361_v63 = vld [vmem:[%s16001_s25 + $0x154] ss:$12 sps:$4 sm:$0xff]  }
0x175d   : > { %10805 = vmatprep.subr.bf16.mxu0 %v14343_v6  ;;  %v8520_v6 = vmul.f32 %v8472_v55, %v17668_v10 }
0x175f   : > { %8323 = vmatpush2.bf16.msra.mxu1 %v14338_v25  ;;  %v14359_v25 = vld [vmem:[%s16001_s25 + $0x150] ss:$12 sps:$4 sm:$0xff]  }
0x1760   : > { %10806 = vmatpush1.bf16.msra.mxu0 %v14341_v36  ;;  %8324 = vmatprep.subr.bf16.mxu1 %v14346_v50  ;;  %v8652_v36 = vmul.f32 0.7978846, %v8604_v56  ;;  %v8580_v50 = vmul.f32 %v8532_v31, %v17662_v28  ;;  %v7969_v56 = vpop.f32.mrf.mxu0 }
0x1761   : > { %10807 = vmatprep.subr.bf16.mxu0 %v14349_v57  ;;  %v14367_v57 = vld [vmem:[%s16001_s25 + $0x13c] ss:$12 sps:$4 sm:$0xff]  }
0x1762   : > { %14826 = vtanh.f32 %v8652_v36  ;;  %v8628_v18 = vadd.f32 %v8580_v50, %v17662_v28  ;;  %v7971_v50 = vpop.f32.mrf.mxu0 }
0x1763   : > { %8325 = vmatpush2.bf16.msra.mxu1 %v14344_v59  ;;  %v8568_v59 = vmul.f32 %v8520_v6, %v17668_v10  ;;  %14828 = vtanh.f32 %v8677_v38 }
0x1764   : > { %10808 = vmatpush1.bf16.msra.mxu0 %v14347_v42  ;;  %10846 = vmatprep.subr.bf16.mxu1 %v14352_v47  ;;  %v14362_v47 = vld [vmem:[%s16001_s25 + $0x1f8] ss:$12 sps:$4 sm:$0xff]   ;;  %14830 = vtanh.f32 %v8640_v45 }
0x1765   : > { %10809 = vmatprep.subr.bf16.mxu0 %v14355_v22  ;;  %v14370_v22 = vld [vmem:[%s16001_s25 + $0x1e4] ss:$12 sps:$4 sm:$0xff]  }
0x1766   : > { %v7904_v24 = vpop.f32.mrf.mxu1  ;;  %8327 = vmatmul.mubr.bf16.vlgmr.msra.gmra.mxu1 %v17300_v43  ;;  %v8617_v43 = vadd.f32 %v8569_v3, %v17646_v32  ;;  %v8616_v3 = vadd.f32 %v8568_v59, %v17668_v10 }
0x1767   : > { %8336 = vmatprep.mubr.bf16.mxu1 %v17309_v17  ;;  %10847 = vmatpush1.bf16.msra.mxu1 %v14350_v60 }
0x1768   : > { %v7906_v19 = vpop.f32.mrf.mxu1  ;;  %10810 = vmatpush2.bf16.msra.mxu0 %v14353_v16  ;;  %10848 = vmatprep.subr.bf16.mxu1 %v14358_v34  ;;  %v8665_v2 = vmul.f32 0.7978846, %v8617_v43  ;;  %v14373_v16 = vld [vmem:[%s16001_s25 + $0x124] ss:$12 sps:$4 sm:$0xff]  }
0x1769   : > { %v7907_v26 = vadd.f32 %v7906_v19, %v17692_v40  ;;  %10811 = vmatprep.subr.bf16.mxu0 %v14361_v63  ;;  %v14368_v63 = vld [vmem:[%s16001_s25 + $0x1e0] ss:$12 sps:$4 sm:$0xff]  }
0x176a   : > { %v7908_v17 = vpop.f32.mrf.mxu1  ;;  %14832 = vtanh.f32 %v8665_v2  ;;  %v14379_v19 = vld [vmem:[%s16001_s25 + $0x10c] ss:$12 sps:$4 sm:$0xff]  }
0x176b   : > { %v17710_v42 = vadd.f32 %v7959_v13, %v7907_v26  ;;  %10849 = vmatpush1.bf16.msra.mxu1 %v14356_v5  ;;  %v17721_v13 = vrot.slane %v17533_v12, %v18642_v23  ;;  %v14371_v5 = vld [vmem:[%s16001_s25 + $0x120] ss:$12 sps:$4 sm:$0xff]  }
0x176c   : > { %v7910_v52 = vpop.f32.mrf.mxu1  ;;  %10812 = vmatpush2.bf16.msra.mxu0 %v14359_v25  ;;  %10850 = vmatprep.subr.bf16.mxu1 %v14364_v48  ;;  %v8676_v25 = vmul.f32 0.7978846, %v8628_v18 }
0x176d   : > { %v8451_v55 = vmul.f32 0.044715, %v17710_v42  ;;  %v7911_v60 = vadd.f32 %v7910_v52, %v17692_v40  ;;  %10813 = vmatprep.subr.bf16.mxu0 %v14367_v57  ;;  %v7909_v30 = vadd.f32 %v7908_v17, %v17721_v13  ;;  %v7905_v43 = vadd.f32 %v7904_v24, %v17721_v13  ;;  %v14374_v57 = vld [vmem:[%s16001_s25 + $0x1c8] ss:$12 sps:$4 sm:$0xff]  }
0x176e   : > { %v7914_v34 = vpop.f32.mrf.mxu1  ;;  %8337 = vmatmul.mubr.bf16.gmra.mxu1 %v17318_v35  ;;  %v14376_v35 = vld [vmem:[%s16001_s25 + $0x1cc] ss:$12 sps:$4 sm:$0xff]   ;;  %v8664_v17 = vmul.f32 0.7978846, %v8616_v3  ;;  %v14377_v24 = vld [vmem:[%s16001_s25 + $0x108] ss:$12 sps:$4 sm:$0xff]   ;;  %14834 = vtanh.f32 %v8676_v25 }
0x176f   : > { %v8499_v31 = vmul.f32 %v8451_v55, %v17710_v42  ;;  %10851 = vmatpush1.bf16.msra.mxu1 %v14362_v47  ;;  %v17728_v33 = vadd.f32 %v7963_v14, %v7911_v60  ;;  %v17739_v38 = vadd.f32 %v17681_v62, %v7909_v30  ;;  %v14382_v47 = vld [vmem:[%s16001_s25 + $0x1b4] ss:$12 sps:$4 sm:$0xff]   ;;  %v7973_v55 = vpop.f32.mrf.mxu0 }
0x1770   : > { %v7916_v6 = vpop.f32.mrf.mxu1  ;;  %10814 = vmatpush2.bf16.msra.mxu0 %v14365_v21  ;;  %10852 = vmatprep.subr.bf16.mxu1 %v14370_v22  ;;  %v14385_v21 = vld [vmem:[%s16001_s25 + $0xf4] ss:$12 sps:$4 sm:$0xff]   ;;  %v17747_v22 = vadd.f32 %v17655_v1, %v7905_v43  ;;  %14836 = vtanh.f32 %v8664_v17  ;;  %v14383_v1 = vld [vmem:[%s16001_s25 + $0xf0] ss:$12 sps:$4 sm:$0xff]   ;;  %v14389_v17 = vld [vmem:[%s16001_s25 + $0xd8] ss:$12 sps:$4 sm:$0xff]  }
0x1771   : > { %10815 = vmatprep.subr.bf16.mxu0 %v14373_v16  ;;  %v8547_v48 = vmul.f32 %v8499_v31, %v17710_v42  ;;  %v8463_v36 = vmul.f32 0.044715, %v17728_v33  ;;  %v7917_v26 = vadd.f32 %v7916_v6, %v17692_v40  ;;  %v14380_v16 = vld [vmem:[%s16001_s25 + $0x1b0] ss:$12 sps:$4 sm:$0xff]   ;;  %v8462_v3 = vmul.f32 0.044715, %v17739_v38 }
0x1772   : > { %v7918_v14 = vpop.f32.mrf.mxu1  ;;  %v14391_v6 = vld [vmem:[%s16001_s25 + $0xdc] ss:$12 sps:$4 sm:$0xff]  }
0x1773   : > { %10853 = vmatpush1.bf16.msra.mxu1 %v14368_v63  ;;  %v8511_v45 = vmul.f32 %v8463_v36, %v17728_v33  ;;  %v8595_v52 = vadd.f32 %v8547_v48, %v17710_v42  ;;  %v17751_v60 = vadd.f32 %v7969_v56, %v7917_v26  ;;  %v7919_v31 = vadd.f32 %v7918_v14, %v17721_v13  ;;  %v14827_v56 = vpop.eup %14826  ;;  %v14386_v36 = vld [vmem:[%s16001_s25 + $0x198] ss:$12 sps:$4 sm:$0xff]  }
0x1774   : > { %v7920_v59 = vpop.f32.mrf.mxu1  ;;  %10816 = vmatpush2.bf16.msra.mxu0 %v14371_v5  ;;  %10854 = vmatprep.subr.bf16.mxu1 %v14376_v35  ;;  %v8450_v5 = vmul.f32 0.044715, %v17747_v22  ;;  %v7915_v35 = vadd.f32 %v7914_v34, %v17721_v13  ;;  %v14829_v48 = vpop.eup %14828  ;;  %v8510_v26 = vmul.f32 %v8462_v3, %v17739_v38  ;;  %v14394_v13 = vld [vmem:[%s16001_s25 + $0x184] ss:$12 sps:$4 sm:$0xff]  }
0x1775   : > { %10817 = vmatprep.subr.bf16.mxu0 %v14379_v19  ;;  %v7921_v62 = vadd.f32 %v7920_v59, %v17692_v40  ;;  %v8559_v2 = vmul.f32 %v8511_v45, %v17728_v33  ;;  %v8643_v18 = vmul.f32 0.7978846, %v8595_v52  ;;  %v14388_v40 = vld [vmem:[%s16001_s25 + $0x19c] ss:$12 sps:$4 sm:$0xff]   ;;  %v8475_v43 = vmul.f32 0.044715, %v17751_v60  ;;  %v14831_v14 = vpop.eup %14830 }
0x1776   : > { %v8748_v45 = vadd.f32 1.0, %v14827_v56  ;;  %v17776_v52 = vadd.f32 %v17708_v8, %v7915_v35  ;;  %v8437_v8 = vmul.f32 0.5, %v17640_v51 }
0x1777   : > { %10855 = vmatpush1.bf16.msra.mxu1 %v14374_v57  ;;  %v17756_v63 = vadd.f32 %v7973_v55, %v7921_v62  ;;  %v8607_v30 = vadd.f32 %v8559_v2, %v17728_v33  ;;  %14838 = vtanh.f32 %v8643_v18  ;;  %v17768_v57 = vadd.f32 %v7971_v50, %v7919_v31  ;;  %v14833_v34 = vpop.eup %14832  ;;  %v14392_v18 = vld [vmem:[%s16001_s25 + $0x180] ss:$12 sps:$4 sm:$0xff]  }
0x1778   : > { %10818 = vmatpush2.bf16.msra.mxu0 %v14377_v24  ;;  %10856 = vmatprep.subr.bf16.mxu1 %v14382_v47  ;;  %v14397_v24 = vld [vmem:[%s16001_s25 + $0xc4] ss:$12 sps:$4 sm:$0xff]   ;;  %v8498_v47 = vmul.f32 %v8450_v5, %v17747_v22  ;;  %v8773_v50 = vadd.f32 1.0, %v14829_v48  ;;  %v8412_v62 = vmul.f32 0.5, %v17637_v46  ;;  %v8523_v2 = vmul.f32 %v8475_v43, %v17751_v60  ;;  %v14395_v55 = vld [vmem:[%s16001_s25 + $0xc0] ss:$12 sps:$4 sm:$0xff]  }
0x1779   : > { %10819 = vmatprep.subr.bf16.mxu0 %v14385_v21  ;;  %v8487_v19 = vmul.f32 0.044715, %v17756_v63  ;;  %v8655_v25 = vmul.f32 0.7978846, %v8607_v30  ;;  %v8736_v21 = vadd.f32 1.0, %v14831_v14 }
0x177a   : > { %v8486_v3 = vmul.f32 0.044715, %v17768_v57  ;;  %v14400_v31 = vld [vmem:[%s16001_s25 + $0x2ec] ss:$12 sps:$4 sm:$0xff]   ;;  %v8796_v30 = vmul.f32 %v8748_v45, %v8412_v62  ;;  %v8546_v35 = vmul.f32 %v8498_v47, %v17747_v22  ;;  %v8821_v51 = vmul.f32 %v8773_v50, %v8437_v8  ;;  %v14409_v45 = vld [vmem:[%s16001_s25 + $0x394] ss:$12 sps:$4 sm:$0xff]  }
0x177b   : > { %10857 = vmatpush1.bf16.msra.mxu1 %v14380_v16  ;;  %14840 = vtanh.f32 %v8655_v25  ;;  %v8535_v59 = vmul.f32 %v8487_v19, %v17756_v63  ;;  %v8558_v16 = vmul.f32 %v8510_v26, %v17739_v38  ;;  %v14403_v46 = vld [vmem:[%s16001_s25 + $0x3ac] ss:$12 sps:$4 sm:$0xff]   ;;  %v14835_v5 = vpop.eup %14834  ;;  %v8474_v19 = vmul.f32 0.044715, %v17776_v52 }
0x177c   : > { %10820 = vmatpush2.bf16.msra.mxu0 %v14383_v1  ;;  %10858 = vmatprep.subr.bf16.mxu1 %v14388_v40  ;;  %v8761_v1 = vadd.f32 1.0, %v14833_v34  ;;  %v8400_v40 = vmul.f32 0.5, %v17643_v15  ;;  %v8425_v25 = vmul.f32 0.5, %v17646_v32  ;;  %v14398_v15 = vld [vmem:[%s16001_s25 + $0x2e8] ss:$12 sps:$4 sm:$0xff]   ;;  %v8571_v43 = vmul.f32 %v8523_v2, %v17751_v60 }
0x177d   : > { %10821 = vmatprep.subr.bf16.mxu0 %v14391_v6  ;;  %v6286_v6 = vsub.s32 5, %v18655_v37  ;;  %v8583_v56 = vmul.f32 %v8535_v59, %v17756_v63  ;;  %v8606_v14 = vadd.f32 %v8558_v16, %v17739_v38  ;;  %v8534_v26 = vmul.f32 %v8486_v3, %v17768_v57  ;;  %v14406_v32 = vld [vmem:[%s16001_s25 + $0x2d4] ss:$12 sps:$4 sm:$0xff]   ;;  %v14404_v3 = vld [vmem:[%s16001_s25 + $0x2d0] ss:$12 sps:$4 sm:$0xff]  }
0x177e   : > { %v8784_v48 = vmul.f32 %v8736_v21, %v8400_v40  ;;  %v8772_v59 = vadd.f32 1.0, %v14835_v5  ;;  %v8594_v50 = vadd.f32 %v8546_v35, %v17747_v22  ;;  %v8522_v21 = vmul.f32 %v8474_v19, %v17776_v52 }
0x177f   : > { %10859 = vmatpush1.bf16.msra.mxu1 %v14386_v36  ;;  %v14837_v36 = vpop.eup %14836  ;;  %v8654_v40 = vmul.f32 0.7978846, %v8606_v14 }
0x1780   : > { %10822 = vmatpush2.bf16.msra.mxu0 %v14389_v17  ;;  %10860 = vmatprep.subr.bf16.mxu1 %v14394_v13  ;;  %v14401_v17 = vld [vmem:[%s16001_s25 + $0x3a8] ss:$12 sps:$4 sm:$0xff]   ;;  %v8809_v13 = vmul.f32 %v8761_v1, %v8425_v25  ;;  %v17798_v34 = vpack.c.bf16 %v8796_v30, %v8784_v48  ;;  %v8760_v8 = vadd.f32 1.0, %v14837_v36  ;;  %v8619_v1 = vadd.f32 %v8571_v43, %v17751_v60 }
0x1781   : > { %10823 = vmatprep.subr.bf16.mxu0 %v14397_v24  ;;  %v8631_v24 = vadd.f32 %v8583_v56, %v17756_v63  ;;  %v8582_v30 = vmul.f32 %v8534_v26, %v17768_v57  ;;  %v14412_v56 = vld [vmem:[%s16001_s25 + $0x2bc] ss:$12 sps:$4 sm:$0xff]   ;;  %v8570_v43 = vmul.f32 %v8522_v21, %v17776_v52  ;;  %14842 = vtanh.f32 %v8654_v40  ;;  %v14413_v21 = vld [vmem:[%s16001_s25 + $0x378] ss:$12 sps:$4 sm:$0xff]  }
0x1782   : > { %v17807_v2 = vpack.c.bf16 %v8821_v51, %v8809_v13  ;;  %v14415_v51 = vld [vmem:[%s16001_s25 + $0x37c] ss:$12 sps:$4 sm:$0xff]   ;;  %v14410_v13 = vld [vmem:[%s16001_s25 + $0x2b8] ss:$12 sps:$4 sm:$0xff]  }
0x1783   : > { %10861 = vmatpush1.bf16.msra.mxu1 %v14392_v18  ;;  %v17810_v18 = vrot.slane %v17533_v12, %v6286_v6  ;;  %v14407_v6 = vld [vmem:[%s16001_s25 + $0x390] ss:$12 sps:$4 sm:$0xff]   ;;  %v8679_v48 = vmul.f32 0.7978846, %v8631_v24  ;;  %v8630_v24 = vadd.f32 %v8582_v30, %v17768_v57 }
0x1784   : > { %10824 = vmatpush2.bf16.msra.mxu0 %v14395_v55  ;;  %10862 = vmatprep.subr.bf16.mxu1 %v14400_v31  ;;  %v14839_v47 = vpop.eup %14838  ;;  %v6282_v55 = vsub.s32 4, %v18655_v37  ;;  %v8436_v31 = vmul.f32 0.5, %v17662_v28  ;;  %v8424_v28 = vmul.f32 0.5, %v17668_v10  ;;  %v8415_v10 = vmul.f32 0.5, %v17728_v33 }
0x1785   : > { %10899 = vmatprep.subr.bf16.mxu0 %v14403_v46  ;;  %v8739_v25 = vadd.f32 1.0, %v14839_v47  ;;  %14844 = vtanh.f32 %v8679_v48  ;;  %v8618_v33 = vadd.f32 %v8570_v43, %v17776_v52  ;;  %v8678_v48 = vmul.f32 0.7978846, %v8630_v24  ;;  %v14425_v24 = vld [vmem:[%s16001_s25 + $0x348] ss:$12 sps:$4 sm:$0xff]  }
0x1786   : > { %v17805_v62 = vpop.f32.mrf.mxu1  ;;  %v8820_v19 = vmul.f32 %v8772_v59, %v8436_v31  ;;  %v8667_v59 = vmul.f32 0.7978846, %v8619_v1  ;;  %v14418_v31 = vld [vmem:[%s16001_s25 + $0x2a4] ss:$12 sps:$4 sm:$0xff]  }
0x1787   : > { %v17813_v16 = vpop.f32.mrf.mxu0  ;;  %10826 = vmatmul.mubr.bf16.vlgmr.msra.gmra.mxu0 %v17798_v34  ;;  %10863 = vmatpush2.bf16.msra.mxu1 %v14398_v15  ;;  %v8642_v15 = vmul.f32 0.7978846, %v8594_v50 }
0x1788   : > { %v8065_v46 = vpop.f32.mrf.mxu1  ;;  %10835 = vmatprep.mubr.bf16.mxu0 %v17807_v2  ;;  %10900 = vmatpush1.bf16.msra.mxu0 %v14401_v17  ;;  %v14841_v5 = vpop.eup %14840 }
0x1789   : > { %v8012_v35 = vpop.f32.mrf.mxu0  ;;  %10864 = vmatprep.subr.bf16.mxu1 %v14406_v32  ;;  %10901 = vmatprep.subr.bf16.mxu0 %v14409_v45  ;;  %v8751_v26 = vadd.f32 1.0, %v14841_v5  ;;  %v8808_v32 = vmul.f32 %v8760_v8, %v8424_v28  ;;  %v8403_v45 = vmul.f32 0.5, %v17710_v42  ;;  %14846 = vtanh.f32 %v8642_v15  ;;  %v14416_v28 = vld [vmem:[%s16001_s25 + $0x2a0] ss:$12 sps:$4 sm:$0xff]  }
0x178a   : > { %v8013_v36 = vadd.f32 %v8012_v35, %v17810_v18  ;;  %v8067_v14 = vpop.f32.mrf.mxu1  ;;  %v14421_v35 = vld [vmem:[%s16001_s25 + $0x364] ss:$12 sps:$4 sm:$0xff]   ;;  %14848 = vtanh.f32 %v8667_v59 }
0x178b   : > { %v8014_v17 = vpop.f32.mrf.mxu0  ;;  %10865 = vmatpush2.bf16.msra.mxu1 %v14404_v3  ;;  %v17835_v3 = vpack.c.bf16 %v8820_v19, %v8808_v32  ;;  %v8787_v8 = vmul.f32 %v8739_v25, %v8403_v45  ;;  %v8799_v42 = vmul.f32 %v8751_v26, %v8415_v10  ;;  %v14419_v25 = vld [vmem:[%s16001_s25 + $0x360] ss:$12 sps:$4 sm:$0xff]   ;;  %v8666_v26 = vmul.f32 0.7978846, %v8618_v33  ;;  %v14422_v10 = vld [vmem:[%s16001_s25 + $0x288] ss:$12 sps:$4 sm:$0xff]  }
0x178c   : > { %v17831_v47 = vadd.f32 %v8065_v46, %v8013_v36  ;;  %v8069_v50 = vpop.f32.mrf.mxu1  ;;  %10902 = vmatpush1.bf16.msra.mxu0 %v14407_v6  ;;  %10866 = vmatprep.subr.bf16.mxu1 %v14412_v56  ;;  %v6283_v46 = vrot.slane %v17533_v12, %v6282_v55  ;;  %v14427_v36 = vld [vmem:[%s16001_s25 + $0x34c] ss:$12 sps:$4 sm:$0xff]   ;;  %14850 = vtanh.f32 %v8678_v48  ;;  %v14428_v33 = vld [vmem:[%s16001_s25 + $0x270] ss:$12 sps:$4 sm:$0xff]  }
0x178d   : > { %v8016_v5 = vpop.f32.mrf.mxu0  ;;  %10903 = vmatprep.subr.bf16.mxu0 %v14415_v51  ;;  %v17845_v56 = vpack.c.bf16 %v8799_v42, %v8787_v8  ;;  %v14424_v51 = vld [vmem:[%s16001_s25 + $0x28c] ss:$12 sps:$4 sm:$0xff]   ;;  %14852 = vtanh.f32 %v8666_v26 }
0x178e   : > { %v8453_v1 = vmul.f32 0.044715, %v17831_v47  ;;  %v8017_v40 = vadd.f32 %v8016_v5, %v17810_v18  ;;  %v17841_v30 = vpop.f32.mrf.mxu1  ;;  %v8015_v43 = vadd.f32 %v8014_v17, %v6283_v46  ;;  %v14433_v5 = vld [vmem:[%s16001_s25 + $0x334] ss:$12 sps:$4 sm:$0xff]   ;;  %v14843_v48 = vpop.eup %14842  ;;  %v14434_v26 = vld [vmem:[%s16001_s25 + $0x258] ss:$12 sps:$4 sm:$0xff]  }
0x178f   : > { %v8020_v6 = vpop.f32.mrf.mxu0  ;;  %10836 = vmatmul.mubr.bf16.gmra.mxu0 %v17835_v3  ;;  %10867 = vmatpush2.bf16.msra.mxu1 %v14410_v13  ;;  %v8011_v13 = vadd.f32 %v17813_v16, %v6283_v46 }
0x1790   : > { %v8075_v19 = vpop.f32.mrf.mxu1  ;;  %10904 = vmatpush1.bf16.msra.mxu0 %v14413_v21  ;;  %10868 = vmatprep.subr.bf16.mxu1 %v14418_v31  ;;  %v8501_v15 = vmul.f32 %v8453_v1, %v17831_v47  ;;  %v17851_v12 = vadd.f32 %v8069_v50, %v8017_v40  ;;  %v14430_v50 = vld [vmem:[%s16001_s25 + $0x274] ss:$12 sps:$4 sm:$0xff]   ;;  %v17861_v21 = vadd.f32 %v8067_v14, %v8015_v43  ;;  %v14439_v43 = vld [vmem:[%s16001_s25 + $0x31c] ss:$12 sps:$4 sm:$0xff]  }
0x1791   : > { %10878 = vmatprep.mubr.bf16.mxu1 %v17845_v56  ;;  %v8022_v55 = vpop.f32.mrf.mxu0  ;;  %10905 = vmatprep.subr.bf16.mxu0 %v14421_v35  ;;  %v17867_v42 = vadd.f32 %v17805_v62, %v8011_v13  ;;  %v14437_v13 = vld [vmem:[%s16001_s25 + $0x318] ss:$12 sps:$4 sm:$0xff]  }
0x1792   : > { %v8465_v32 = vmul.f32 0.044715, %v17851_v12  ;;  %v8023_v17 = vadd.f32 %v8022_v55, %v17810_v18  ;;  %v8077_v59 = vpop.f32.mrf.mxu1  ;;  %v8549_v8 = vmul.f32 %v8501_v15, %v17831_v47  ;;  %v14845_v55 = vpop.eup %14844 }
0x1793   : > { %v8024_v45 = vpop.f32.mrf.mxu0  ;;  %10869 = vmatpush2.bf16.msra.mxu1 %v14416_v28 }
0x1794   : > { %10906 = vmatpush1.bf16.msra.mxu0 %v14419_v25  ;;  %10870 = vmatprep.subr.bf16.mxu1 %v14424_v51  ;;  %v8513_v31 = vmul.f32 %v8465_v32, %v17851_v12  ;;  %v17872_v1 = vadd.f32 %v8075_v19, %v8023_v17  ;;  %v8025_v40 = vadd.f32 %v8024_v45, %v6283_v46  ;;  %v8079_v28 = vpop.f32.mrf.mxu1  ;;  %v14431_v25 = vld [vmem:[%s16001_s25 + $0x330] ss:$12 sps:$4 sm:$0xff]  }
0x1795   : > { %v8026_v16 = vpop.f32.mrf.mxu0  ;;  %10907 = vmatprep.subr.bf16.mxu0 %v14427_v36  ;;  %v14436_v51 = vld [vmem:[%s16001_s25 + $0x25c] ss:$12 sps:$4 sm:$0xff]   ;;  %v8597_v62 = vadd.f32 %v8549_v8, %v17831_v47  ;;  %v8021_v36 = vadd.f32 %v8020_v6, %v6283_v46  ;;  %v14442_v46 = vld [vmem:[%s16001_s25 + $0x244] ss:$12 sps:$4 sm:$0xff]  }
0x1796   : > { %v8027_v35 = vadd.f32 %v8026_v16, %v17810_v18  ;;  %v8561_v14 = vmul.f32 %v8513_v31, %v17851_v12  ;;  %v8464_v18 = vmul.f32 0.044715, %v17861_v21  ;;  %v14847_v45 = vpop.eup %14846  ;;  %v8750_v31 = vadd.f32 1.0, %v14843_v48  ;;  %v14445_v8 = vld [vmem:[%s16001_s25 + $0x304] ss:$12 sps:$4 sm:$0xff]  }
0x1797   : > { %10871 = vmatpush2.bf16.msra.mxu1 %v14422_v10  ;;  %v8645_v32 = vmul.f32 0.7978846, %v8597_v62  ;;  %v8452_v10 = vmul.f32 0.044715, %v17867_v42  ;;  %v8477_v16 = vmul.f32 0.044715, %v17872_v1 }
0x1798   : > { %10908 = vmatpush1.bf16.msra.mxu0 %v14425_v24  ;;  %10872 = vmatprep.subr.bf16.mxu1 %v14430_v50  ;;  %v17878_v15 = vadd.f32 %v8079_v28, %v8027_v35  ;;  %v8609_v19 = vadd.f32 %v8561_v14, %v17851_v12  ;;  %v14849_v50 = vpop.eup %14848  ;;  %v8512_v6 = vmul.f32 %v8464_v18, %v17861_v21  ;;  %v8775_v35 = vadd.f32 1.0, %v14845_v55 }
0x1799   : > { %10909 = vmatprep.subr.bf16.mxu0 %v14433_v5  ;;  %v17887_v5 = vadd.f32 %v8077_v59, %v8025_v40  ;;  %14854 = vtanh.f32 %v8645_v32  ;;  %v8414_v14 = vmul.f32 0.5, %v17739_v38  ;;  %v17894_v28 = vadd.f32 %v17841_v30, %v8021_v36  ;;  %v14457_v30 = vld [vmem:[%s16001_s25 + $0x52c] ss:$12 sps:$4 sm:$0xff]   ;;  %v14851_v55 = vpop.eup %14850 }
0x179a   : > { %v8489_v17 = vmul.f32 0.044715, %v17878_v15  ;;  %v8657_v24 = vmul.f32 0.7978846, %v8609_v19  ;;  %v8500_v40 = vmul.f32 %v8452_v10, %v17867_v42  ;;  %v8439_v62 = vmul.f32 0.5, %v17756_v63 }
0x179b   : > { %10873 = vmatpush2.bf16.msra.mxu1 %v14428_v33  ;;  %v8738_v33 = vadd.f32 1.0, %v14847_v45  ;;  %v8763_v48 = vadd.f32 1.0, %v14849_v50  ;;  %v8402_v18 = vmul.f32 0.5, %v17747_v22  ;;  %v8525_v19 = vmul.f32 %v8477_v16, %v17872_v1  ;;  %v14448_v32 = vld [vmem:[%s16001_s25 + $0x46c] ss:$12 sps:$4 sm:$0xff]  }
0x179c   : > { %10910 = vmatpush1.bf16.msra.mxu0 %v14431_v25  ;;  %10874 = vmatprep.subr.bf16.mxu1 %v14436_v51  ;;  %14856 = vtanh.f32 %v8657_v24  ;;  %v8537_v59 = vmul.f32 %v8489_v17, %v17878_v15  ;;  %v14440_v25 = vld [vmem:[%s16001_s25 + $0x240] ss:$12 sps:$4 sm:$0xff]   ;;  %v8488_v38 = vmul.f32 0.044715, %v17887_v5  ;;  %v8560_v36 = vmul.f32 %v8512_v6, %v17861_v21  ;;  %v14853_v17 = vpop.eup %14852  ;;  %v14455_v50 = vld [vmem:[%s16001_s25 + $0x528] ss:$12 sps:$4 sm:$0xff]  }
0x179d   : > { %10911 = vmatprep.subr.bf16.mxu0 %v14439_v43  ;;  %v14443_v51 = vld [vmem:[%s16001_s25 + $0x300] ss:$12 sps:$4 sm:$0xff]   ;;  %v8798_v43 = vmul.f32 %v8750_v31, %v8414_v14  ;;  %v8823_v63 = vmul.f32 %v8775_v35, %v8439_v62  ;;  %v8786_v22 = vmul.f32 %v8738_v33, %v8402_v18  ;;  %v8476_v45 = vmul.f32 0.044715, %v17894_v28 }
0x179e   : > { %v8585_v10 = vmul.f32 %v8537_v59, %v17878_v15  ;;  %v8536_v31 = vmul.f32 %v8488_v38, %v17887_v5  ;;  %v14463_v6 = vld [vmem:[%s16001_s25 + $0x514] ss:$12 sps:$4 sm:$0xff]   ;;  %v8608_v35 = vadd.f32 %v8560_v36, %v17861_v21 }
0x179f   : > { %10875 = vmatpush2.bf16.msra.mxu1 %v14434_v26  ;;  %v8427_v26 = vmul.f32 0.5, %v17751_v60  ;;  %v17913_v16 = vpack.c.bf16 %v8798_v43, %v8786_v22  ;;  %v14446_v60 = vld [vmem:[%s16001_s25 + $0x468] ss:$12 sps:$4 sm:$0xff]   ;;  %v8524_v59 = vmul.f32 %v8476_v45, %v17894_v28  ;;  %v14449_v43 = vld [vmem:[%s16001_s25 + $0x450] ss:$12 sps:$4 sm:$0xff]  }
0x17a0   : > { %10912 = vmatpush1.bf16.msra.mxu0 %v14437_v13  ;;  %10876 = vmatprep.subr.bf16.mxu1 %v14442_v46  ;;  %v8548_v13 = vmul.f32 %v8500_v40, %v17867_v42  ;;  %v8774_v46 = vadd.f32 1.0, %v14851_v55  ;;  %v14451_v14 = vld [vmem:[%s16001_s25 + $0x454] ss:$12 sps:$4 sm:$0xff]   ;;  %v8438_v40 = vmul.f32 0.5, %v17768_v57  ;;  %v8584_v18 = vmul.f32 %v8536_v31, %v17887_v5  ;;  %v14469_v57 = vld [vmem:[%s16001_s25 + $0x4fc] ss:$12 sps:$4 sm:$0xff]  }
0x17a1   : > { %10913 = vmatprep.subr.bf16.mxu0 %v14445_v8  ;;  %v8811_v24 = vmul.f32 %v8763_v48, %v8427_v26  ;;  %v8573_v8 = vmul.f32 %v8525_v19, %v17872_v1  ;;  %v14461_v48 = vld [vmem:[%s16001_s25 + $0x510] ss:$12 sps:$4 sm:$0xff]   ;;  %v8426_v19 = vmul.f32 0.5, %v17776_v52  ;;  %v8656_v36 = vmul.f32 0.7978846, %v8608_v35 }
0x17a2   : > { %v8596_v62 = vadd.f32 %v8548_v13, %v17867_v42  ;;  %v8822_v38 = vmul.f32 %v8774_v46, %v8438_v40  ;;  %v14454_v26 = vld [vmem:[%s16001_s25 + $0x43c] ss:$12 sps:$4 sm:$0xff]   ;;  %v8405_v52 = vmul.f32 0.5, %v17831_v47  ;;  %v8632_v31 = vadd.f32 %v8584_v18, %v17887_v5  ;;  %v14452_v46 = vld [vmem:[%s16001_s25 + $0x438] ss:$12 sps:$4 sm:$0xff]  }
0x17a3   : > { %10877 = vmatpush2.bf16.msra.mxu1 %v14440_v25  ;;  %v17919_v33 = vpack.c.bf16 %v8823_v63, %v8811_v24  ;;  %v8762_v25 = vadd.f32 1.0, %v14853_v17  ;;  %v8417_v24 = vmul.f32 0.5, %v17851_v12  ;;  %14858 = vtanh.f32 %v8656_v36  ;;  %v14473_v40 = vld [vmem:[%s16001_s25 + $0x4e0] ss:$12 sps:$4 sm:$0xff]   ;;  %v14490_v36 = vld [vmem:[%s16001_s25 + $0x49c] ss:$12 sps:$4 sm:$0xff]  }
0x17a4   : > { %10914 = vmatpush1.bf16.msra.mxu0 %v14443_v51  ;;  %10952 = vmatprep.subr.bf16.mxu1 %v14457_v30  ;;  %v8633_v51 = vadd.f32 %v8585_v10, %v17878_v15  ;;  %v8621_v30 = vadd.f32 %v8573_v8, %v17872_v1  ;;  %v14467_v10 = vld [vmem:[%s16001_s25 + $0x4f8] ss:$12 sps:$4 sm:$0xff]   ;;  %v8644_v13 = vmul.f32 0.7978846, %v8596_v62  ;;  %v8680_v62 = vmul.f32 0.7978846, %v8632_v31 }
0x17a5   : > { %10915 = vmatprep.subr.bf16.mxu0 %v14448_v32  ;;  %v8572_v32 = vmul.f32 %v8524_v59, %v17894_v28  ;;  %v8810_v22 = vmul.f32 %v8762_v25, %v8426_v19  ;;  %v14458_v25 = vld [vmem:[%s16001_s25 + $0x420] ss:$12 sps:$4 sm:$0xff]   ;;  %v14464_v19 = vld [vmem:[%s16001_s25 + $0x408] ss:$12 sps:$4 sm:$0xff]  }
0x17a6   : > { %10879 = vmatmul.mubr.bf16.vlgmr.msra.gmra.mxu1 %v17913_v16  ;;  %v14855_v55 = vpop.eup %14854  ;;  %v8681_v17 = vmul.f32 0.7978846, %v8633_v51  ;;  %v8669_v8 = vmul.f32 0.7978846, %v8621_v30  ;;  %v14481_v51 = vld [vmem:[%s16001_s25 + $0x4cc] ss:$12 sps:$4 sm:$0xff]  }
0x17a7   : > { %10888 = vmatprep.mubr.bf16.mxu1 %v17919_v33  ;;  %10953 = vmatpush1.bf16.msra.mxu1 %v14455_v50  ;;  %v8741_v45 = vadd.f32 1.0, %v14855_v55  ;;  %v8620_v12 = vadd.f32 %v8572_v32, %v17894_v28  ;;  %v14485_v30 = vld [vmem:[%s16001_s25 + $0x4b0] ss:$12 sps:$4 sm:$0xff]  }
0x17a8   : > { %10916 = vmatpush2.bf16.msra.mxu0 %v14446_v60  ;;  %10954 = vmatprep.subr.bf16.mxu1 %v14463_v6  ;;  %v17940_v60 = vpack.c.bf16 %v8822_v38, %v8810_v22  ;;  %v14475_v6 = vld [vmem:[%s16001_s25 + $0x4e4] ss:$12 sps:$4 sm:$0xff]   ;;  %14860 = vtanh.f32 %v8681_v17  ;;  %v14487_v38 = vld [vmem:[%s16001_s25 + $0x4b4] ss:$12 sps:$4 sm:$0xff]   ;;  %v17962_v22 = vpop.f32.mrf.mxu0 }
0x17a9   : > { %10917 = vmatprep.subr.bf16.mxu0 %v14451_v14  ;;  %v14857_v63 = vpop.eup %14856  ;;  %v8789_v35 = vmul.f32 %v8741_v45, %v8405_v52  ;;  %v14460_v14 = vld [vmem:[%s16001_s25 + $0x424] ss:$12 sps:$4 sm:$0xff]   ;;  %14862 = vtanh.f32 %v8644_v13  ;;  %v8668_v18 = vmul.f32 0.7978846, %v8620_v12  ;;  %v8441_v12 = vmul.f32 0.5, %v17878_v15 }
0x17aa   : > { %v8753_v50 = vadd.f32 1.0, %v14857_v63  ;;  %14864 = vtanh.f32 %v8669_v8  ;;  %v14470_v55 = vld [vmem:[%s16001_s25 + $0x3f0] ss:$12 sps:$4 sm:$0xff]   ;;  %v14488_v45 = vld [vmem:[%s16001_s25 + $0x498] ss:$12 sps:$4 sm:$0xff]   ;;  %v8171_v8 = vpop.f32.mrf.mxu0 }
0x17ab   : > { %10955 = vmatpush1.bf16.msra.mxu1 %v14461_v48  ;;  %v14466_v48 = vld [vmem:[%s16001_s25 + $0x40c] ss:$12 sps:$4 sm:$0xff]   ;;  %14866 = vtanh.f32 %v8680_v62  ;;  %v14493_v13 = vld [vmem:[%s16001_s25 + $0x484] ss:$12 sps:$4 sm:$0xff]   ;;  %v8404_v62 = vmul.f32 0.5, %v17867_v42 }
0x17ac   : > { %10918 = vmatpush2.bf16.msra.mxu0 %v14449_v43  ;;  %10956 = vmatprep.subr.bf16.mxu1 %v14469_v57  ;;  %v8801_v47 = vmul.f32 %v8753_v50, %v8417_v24  ;;  %v14479_v43 = vld [vmem:[%s16001_s25 + $0x4c8] ss:$12 sps:$4 sm:$0xff]   ;;  %14868 = vtanh.f32 %v8668_v18  ;;  %v14476_v17 = vld [vmem:[%s16001_s25 + $0x3d8] ss:$12 sps:$4 sm:$0xff]  }
0x17ad   : > { %10919 = vmatprep.subr.bf16.mxu0 %v14454_v26  ;;  %v14472_v57 = vld [vmem:[%s16001_s25 + $0x3f4] ss:$12 sps:$4 sm:$0xff]   ;;  %v14478_v26 = vld [vmem:[%s16001_s25 + $0x3dc] ss:$12 sps:$4 sm:$0xff]   ;;  %v14484_v50 = vld [vmem:[%s16001_s25 + $0x3c4] ss:$12 sps:$4 sm:$0xff]  }
0x17ae   : > { %10889 = vmatmul.mubr.bf16.gmra.mxu1 %v17940_v60  ;;  %v17947_v59 = vpack.c.bf16 %v8801_v47, %v8789_v35  ;;  %v6290_v35 = vsub.s32 6, %v18655_v37  ;;  %v14491_v47 = vld [vmem:[%s16001_s25 + $0x480] ss:$12 sps:$4 sm:$0xff]  }
0x17af   : > { %10957 = vmatpush1.bf16.msra.mxu1 %v14467_v10  ;;  %v14499_v18 = vld [vmem:[%s16001_s25 + $0x6ac] ss:$12 sps:$4 sm:$0xff]  }
0x17b0   : > { %10920 = vmatpush2.bf16.msra.mxu0 %v14452_v46  ;;  %10958 = vmatprep.subr.bf16.mxu1 %v14475_v6  ;;  %v14859_v63 = vpop.eup %14858  ;;  %v8416_v6 = vmul.f32 0.5, %v17861_v21  ;;  %v6294_v21 = vsub.s32 7, %v18655_v37 }
0x17b1   : > { %10931 = vmatprep.mubr.bf16.mxu0 %v17947_v59  ;;  %10921 = vmatprep.subr.bf16.mxu0 %v14460_v14  ;;  %v8752_v24 = vadd.f32 1.0, %v14859_v63  ;;  %v14482_v14 = vld [vmem:[%s16001_s25 + $0x3c0] ss:$12 sps:$4 sm:$0xff]   ;;  %v14497_v63 = vld [vmem:[%s16001_s25 + $0x6a8] ss:$12 sps:$4 sm:$0xff]  }
0x17b3   : > { %10959 = vmatpush1.bf16.msra.mxu1 %v14473_v40 }
0x17b4   : > { %10922 = vmatpush2.bf16.msra.mxu0 %v14458_v25  ;;  %10960 = vmatprep.subr.bf16.mxu1 %v14481_v51  ;;  %v14496_v25 = vld [vmem:[%s16001_s25 + $0x5ec] ss:$12 sps:$4 sm:$0xff]  }
0x17b5   : > { %10923 = vmatprep.subr.bf16.mxu0 %v14466_v48  ;;  %v14861_v32 = vpop.eup %14860  ;;  %v8800_v48 = vmul.f32 %v8752_v24, %v8416_v6 }
0x17b6   : > { %v14863_v10 = vpop.eup %14862  ;;  %v8777_v31 = vadd.f32 1.0, %v14861_v32 }
0x17b7   : > { %10961 = vmatpush1.bf16.msra.mxu1 %v14479_v43  ;;  %v14865_v52 = vpop.eup %14864  ;;  %v8740_v46 = vadd.f32 1.0, %v14863_v10  ;;  %v8429_v43 = vmul.f32 0.5, %v17872_v1  ;;  %v14505_v10 = vld [vmem:[%s16001_s25 + $0x694] ss:$12 sps:$4 sm:$0xff]  }
0x17b8   : > { %10924 = vmatpush2.bf16.msra.mxu0 %v14464_v19  ;;  %10962 = vmatprep.subr.bf16.mxu1 %v14487_v38  ;;  %v8765_v40 = vadd.f32 1.0, %v14865_v52  ;;  %v14867_v51 = vpop.eup %14866  ;;  %v8825_v19 = vmul.f32 %v8777_v31, %v8441_v12  ;;  %v8440_v52 = vmul.f32 0.5, %v17887_v5  ;;  %v14508_v12 = vld [vmem:[%s16001_s25 + $0x5bc] ss:$12 sps:$4 sm:$0xff]  }
0x17b9   : > { %10925 = vmatprep.subr.bf16.mxu0 %v14472_v57  ;;  %v14869_v38 = vpop.eup %14868  ;;  %v8788_v15 = vmul.f32 %v8740_v46, %v8404_v62  ;;  %v8173_v57 = vpop.f32.mrf.mxu0  ;;  %v14500_v46 = vld [vmem:[%s16001_s25 + $0x5d0] ss:$12 sps:$4 sm:$0xff]  }
0x17ba   : > { %v8813_v42 = vmul.f32 %v8765_v40, %v8429_v43  ;;  %v8764_v24 = vadd.f32 1.0, %v14869_v38  ;;  %v14509_v38 = vld [vmem:[%s16001_s25 + $0x678] ss:$12 sps:$4 sm:$0xff]  }
0x17bb   : > { %10963 = vmatpush1.bf16.msra.mxu1 %v14485_v30  ;;  %v14922_v30 = vld [vmem:[%s15995_s22] sm:$0xff]  ;;  %v17983_v32 = vpack.c.bf16 %v8800_v48, %v8788_v15  ;;  %v14514_v15 = vld [vmem:[%s16001_s25 + $0x5a4] ss:$12 sps:$4 sm:$0xff]  }
0x17bc   : > { %10926 = vmatpush2.bf16.msra.mxu0 %v14470_v55  ;;  %10964 = vmatprep.subr.bf16.mxu1 %v14490_v36  ;;  %v17979_v55 = vrot.slane %v14922_v30, %v6290_v35  ;;  %v14494_v36 = vld [vmem:[%s16001_s25 + $0x5e8] ss:$12 sps:$4 sm:$0xff]   ;;  %v17985_v1 = vrot.slane %v14922_v30, %v6294_v21  ;;  %v8428_v35 = vmul.f32 0.5, %v17894_v28 }
0x17bd   : > { %10927 = vmatprep.subr.bf16.mxu0 %v14478_v26  ;;  %v8776_v26 = vadd.f32 1.0, %v14867_v51 }
0x17be   : > { %v8812_v62 = vmul.f32 %v8764_v24, %v8428_v35  ;;  %v14520_v35 = vld [vmem:[%s16001_s25 + $0x58c] ss:$12 sps:$4 sm:$0xff]  }
0x17bf   : > { %10965 = vmatpush1.bf16.msra.mxu1 %v14488_v45  ;;  %v14502_v45 = vld [vmem:[%s16001_s25 + $0x5d4] ss:$12 sps:$4 sm:$0xff]  }
0x17c0   : > { %10928 = vmatpush2.bf16.msra.mxu0 %v14476_v17  ;;  %10966 = vmatprep.subr.bf16.mxu1 %v14493_v13  ;;  %v17989_v13 = vpack.c.bf16 %v8825_v19, %v8813_v42 }
0x17c1   : > { %10929 = vmatprep.subr.bf16.mxu0 %v14484_v50  ;;  %v8175_v50 = vpop.f32.mrf.mxu0 }
0x17c3   : > { %10967 = vmatpush1.bf16.msra.mxu1 %v14491_v47  ;;  %v8824_v47 = vmul.f32 %v8776_v26, %v8440_v52  ;;  %v8179_v48 = vpop.f32.mrf.mxu0  ;;  %v14517_v26 = vld [vmem:[%s16001_s25 + $0x664] ss:$12 sps:$4 sm:$0xff]  }
0x17c4   : > { %10930 = vmatpush2.bf16.msra.mxu0 %v14482_v14  ;;  %10968 = vmatprep.subr.bf16.mxu1 %v14496_v25  ;;  %v14503_v14 = vld [vmem:[%s16001_s25 + $0x690] ss:$12 sps:$4 sm:$0xff]  }
0x17c5   : > { %11005 = vmatprep.subr.bf16.mxu0 %v14499_v18  ;;  %v14511_v25 = vld [vmem:[%s16001_s25 + $0x67c] ss:$12 sps:$4 sm:$0xff]   ;;  %v18009_v19 = vpack.c.bf16 %v8824_v47, %v8812_v62 }
0x17c6   : > { %v8116_v17 = vpop.f32.mrf.mxu1 }
0x17c7   : > { %v8117_v31 = vadd.f32 %v8116_v17, %v17979_v55  ;;  %10932 = vmatmul.mubr.bf16.vlgmr.msra.gmra.mxu0 %v17983_v32  ;;  %10969 = vmatpush2.bf16.msra.mxu1 %v14494_v36 }
0x17c8   : > { %v8118_v6 = vpop.f32.mrf.mxu1  ;;  %10941 = vmatprep.mubr.bf16.mxu0 %v17989_v13  ;;  %11006 = vmatpush1.bf16.msra.mxu0 %v14497_v63 }
0x17c9   : > { %v18000_v5 = vadd.f32 %v17962_v22, %v8117_v31  ;;  %v8119_v40 = vadd.f32 %v8118_v6, %v17985_v1  ;;  %10970 = vmatprep.subr.bf16.mxu1 %v14502_v45  ;;  %11007 = vmatprep.subr.bf16.mxu0 %v14505_v10  ;;  %v14506_v22 = vld [vmem:[%s16001_s25 + $0x5b8] ss:$12 sps:$4 sm:$0xff]   ;;  %v8181_v45 = vpop.f32.mrf.mxu0  ;;  %v14515_v6 = vld [vmem:[%s16001_s25 + $0x660] ss:$12 sps:$4 sm:$0xff]  }
0x17ca   : > { %v8120_v51 = vpop.f32.mrf.mxu1 }
0x17cb   : > { %v8454_v28 = vmul.f32 0.044715, %v18000_v5  ;;  %v18005_v21 = vadd.f32 %v8171_v8, %v8119_v40  ;;  %v8121_v18 = vadd.f32 %v8120_v51, %v17979_v55  ;;  %10971 = vmatpush2.bf16.msra.mxu1 %v14500_v46  ;;  %v14523_v40 = vld [vmem:[%s16001_s25 + $0x64c] ss:$12 sps:$4 sm:$0xff]  }
0x17cc   : > { %v8122_v43 = vpop.f32.mrf.mxu1  ;;  %11008 = vmatpush1.bf16.msra.mxu0 %v14503_v14  ;;  %10972 = vmatprep.subr.bf16.mxu1 %v14508_v12 }
0x17cd   : > { %v8502_v30 = vmul.f32 %v8454_v28, %v18000_v5  ;;  %v8455_v36 = vmul.f32 0.044715, %v18005_v21  ;;  %v18015_v42 = vadd.f32 %v8173_v57, %v8121_v18  ;;  %v8123_v8 = vadd.f32 %v8122_v43, %v17985_v1  ;;  %11009 = vmatprep.subr.bf16.mxu0 %v14511_v25  ;;  %v14512_v57 = vld [vmem:[%s16001_s25 + $0x5a0] ss:$12 sps:$4 sm:$0xff]   ;;  %v8183_v28 = vpop.f32.mrf.mxu0 }
0x17ce   : > { %v8126_v63 = vpop.f32.mrf.mxu1 }
0x17cf   : > { %v8550_v10 = vmul.f32 %v8502_v30, %v18000_v5  ;;  %v8503_v17 = vmul.f32 %v8455_v36, %v18005_v21  ;;  %v8466_v52 = vmul.f32 0.044715, %v18015_v42  ;;  %10942 = vmatmul.mubr.bf16.gmra.mxu0 %v18009_v19  ;;  %10973 = vmatpush2.bf16.msra.mxu1 %v14506_v22  ;;  %v18024_v24 = vadd.f32 %v8175_v50, %v8123_v8 }
0x17d0   : > { %v8127_v31 = vadd.f32 %v8126_v63, %v17979_v55  ;;  %v8128_v46 = vpop.f32.mrf.mxu1  ;;  %11010 = vmatpush1.bf16.msra.mxu0 %v14509_v38  ;;  %10974 = vmatprep.subr.bf16.mxu1 %v14514_v15  ;;  %v14518_v15 = vld [vmem:[%s16001_s25 + $0x588] ss:$12 sps:$4 sm:$0xff]  }
0x17d1   : > { %v8598_v47 = vadd.f32 %v8550_v10, %v18000_v5  ;;  %v8514_v14 = vmul.f32 %v8466_v52, %v18015_v42  ;;  %v8129_v12 = vadd.f32 %v8128_v46, %v17985_v1  ;;  %11011 = vmatprep.subr.bf16.mxu0 %v14517_v26  ;;  %v8551_v25 = vmul.f32 %v8503_v17, %v18005_v21  ;;  %v14526_v26 = vld [vmem:[%s16001_s25 + $0x574] ss:$12 sps:$4 sm:$0xff]  }
0x17d2   : > { %v8467_v50 = vmul.f32 0.044715, %v18024_v24  ;;  %v18035_v51 = vadd.f32 %v8179_v48, %v8127_v31  ;;  %v8130_v62 = vpop.f32.mrf.mxu1  ;;  %v14521_v48 = vld [vmem:[%s16001_s25 + $0x648] ss:$12 sps:$4 sm:$0xff]  }
0x17d3   : > { %v8646_v18 = vmul.f32 0.7978846, %v8598_v47  ;;  %v8562_v22 = vmul.f32 %v8514_v14, %v18015_v42  ;;  %v18038_v43 = vadd.f32 %v8181_v45, %v8129_v12  ;;  %v8131_v38 = vadd.f32 %v8130_v62, %v17979_v55  ;;  %10975 = vmatpush2.bf16.msra.mxu1 %v14512_v57  ;;  %v14529_v55 = vld [vmem:[%s16001_s25 + $0x634] ss:$12 sps:$4 sm:$0xff]   ;;  %v14524_v12 = vld [vmem:[%s16001_s25 + $0x570] ss:$12 sps:$4 sm:$0xff]  }
0x17d4   : > { %v8515_v30 = vmul.f32 %v8467_v50, %v18024_v24  ;;  %v8478_v36 = vmul.f32 0.044715, %v18035_v51  ;;  %v8132_v8 = vpop.f32.mrf.mxu1  ;;  %11012 = vmatpush1.bf16.msra.mxu0 %v14515_v6  ;;  %10976 = vmatprep.subr.bf16.mxu1 %v14520_v35  ;;  %v8599_v63 = vadd.f32 %v8551_v25, %v18005_v21  ;;  %v8185_v6 = vpop.f32.mrf.mxu0  ;;  %v14532_v50 = vld [vmem:[%s16001_s25 + $0x55c] ss:$12 sps:$4 sm:$0xff]  }
0x17d5   : > { %v8610_v45 = vadd.f32 %v8562_v22, %v18015_v42  ;;  %v8479_v10 = vmul.f32 0.044715, %v18038_v43  ;;  %v18049_v17 = vadd.f32 %v8183_v28, %v8131_v38  ;;  %11013 = vmatprep.subr.bf16.mxu0 %v14523_v40  ;;  %v8133_v57 = vadd.f32 %v8132_v8, %v17985_v1  ;;  %v14527_v1 = vld [vmem:[%s16001_s25 + $0x630] ss:$12 sps:$4 sm:$0xff]   ;;  %v14530_v8 = vld [vmem:[%s16001_s25 + $0x558] ss:$12 sps:$4 sm:$0xff]  }
0x17d6   : > { %v8526_v52 = vmul.f32 %v8478_v36, %v18035_v51  ;;  %v8563_v31 = vmul.f32 %v8515_v30, %v18024_v24  ;;  %v8647_v46 = vmul.f32 0.7978846, %v8599_v63  ;;  %14870 = vtanh.f32 %v8646_v18  ;;  %v14535_v18 = vld [vmem:[%s16001_s25 + $0x61c] ss:$12 sps:$4 sm:$0xff]   ;;  %v14533_v63 = vld [vmem:[%s16001_s25 + $0x618] ss:$12 sps:$4 sm:$0xff]  }
0x17d7   : > { %v8658_v35 = vmul.f32 0.7978846, %v8610_v45  ;;  %v8527_v47 = vmul.f32 %v8479_v10, %v18038_v43  ;;  %v8490_v14 = vmul.f32 0.044715, %v18049_v17  ;;  %10977 = vmatpush2.bf16.msra.mxu1 %v14518_v15  ;;  %v18059_v25 = vadd.f32 %v8185_v6, %v8133_v57  ;;  %v14538_v45 = vld [vmem:[%s16001_s25 + $0x544] ss:$12 sps:$4 sm:$0xff]  }
0x17d8   : > { %v8574_v40 = vmul.f32 %v8526_v52, %v18035_v51  ;;  %11014 = vmatpush1.bf16.msra.mxu0 %v14521_v48  ;;  %10978 = vmatprep.subr.bf16.mxu1 %v14526_v26  ;;  %v8611_v62 = vadd.f32 %v8563_v31, %v18024_v24  ;;  %14872 = vtanh.f32 %v8647_v46  ;;  %v14541_v52 = vld [vmem:[%s16001_s25 + $0x604] ss:$12 sps:$4 sm:$0xff]   ;;  %v14536_v46 = vld [vmem:[%s16001_s25 + $0x540] ss:$12 sps:$4 sm:$0xff]  }
0x17d9   : > { %14874 = vtanh.f32 %v8658_v35  ;;  %v8538_v28 = vmul.f32 %v8490_v14, %v18049_v17  ;;  %11015 = vmatprep.subr.bf16.mxu0 %v14529_v55  ;;  %v8575_v22 = vmul.f32 %v8527_v47, %v18038_v43  ;;  %v8491_v15 = vmul.f32 0.044715, %v18059_v25  ;;  %v14539_v35 = vld [vmem:[%s16001_s25 + $0x600] ss:$12 sps:$4 sm:$0xff]  }
0x17da   : > { %v8622_v38 = vadd.f32 %v8574_v40, %v18035_v51  ;;  %v8659_v30 = vmul.f32 0.7978846, %v8611_v62  ;;  %v14568_v14 = vld [vmem:[%s16001_s25 + $0x82c] ss:$12 sps:$4 sm:$0xff]  }
0x17db   : > { %v8586_v36 = vmul.f32 %v8538_v28, %v18049_v17  ;;  %10979 = vmatpush2.bf16.msra.mxu1 %v14524_v12  ;;  %v8623_v48 = vadd.f32 %v8575_v22, %v18038_v43  ;;  %v8539_v26 = vmul.f32 %v8491_v15, %v18059_v25  ;;  %v18083_v12 = vld [vmem:[%s15995_s22 + $0x8] sm:$0xf]  ;;  %v14544_v40 = vld [vmem:[%s16001_s25 + $0x76c] ss:$12 sps:$4 sm:$0xff]   ;;  %v14542_v28 = vld [vmem:[%s16001_s25 + $0x768] ss:$12 sps:$4 sm:$0xff]  }
0x17dc   : > { %11016 = vmatpush1.bf16.msra.mxu0 %v14527_v1  ;;  %10980 = vmatprep.subr.bf16.mxu1 %v14532_v50  ;;  %14876 = vtanh.f32 %v8659_v30  ;;  %v8670_v10 = vmul.f32 0.7978846, %v8622_v38  ;;  %v18088_v62 = vrot.slane %v18083_v12, %v18639_v39  ;;  %v14547_v22 = vld [vmem:[%s16001_s25 + $0x754] ss:$12 sps:$4 sm:$0xff]   ;;  %v18094_v30 = vrot.slane %v18083_v12, %v18636_v44 }
0x17dd   : > { %v8634_v55 = vadd.f32 %v8586_v36, %v18049_v17  ;;  %11017 = vmatprep.subr.bf16.mxu0 %v14535_v18  ;;  %v8671_v57 = vmul.f32 0.7978846, %v8623_v48  ;;  %v8587_v31 = vmul.f32 %v8539_v26, %v18059_v25 }
0x17de   : > { %14878 = vtanh.f32 %v8670_v10  ;;  %v8406_v10 = vmul.f32 0.5, %v18000_v5  ;;  %v8419_v5 = vmul.f32 0.5, %v18024_v24 }
0x17df   : > { %10981 = vmatpush2.bf16.msra.mxu1 %v14530_v8  ;;  %14880 = vtanh.f32 %v8671_v57  ;;  %v8682_v6 = vmul.f32 0.7978846, %v8634_v55  ;;  %v8635_v47 = vadd.f32 %v8587_v31, %v18059_v25  ;;  %v14550_v31 = vld [vmem:[%s16001_s25 + $0x73c] ss:$12 sps:$4 sm:$0xff]  }
0x17e0   : > { %11018 = vmatpush1.bf16.msra.mxu0 %v14533_v63  ;;  %10982 = vmatprep.subr.bf16.mxu1 %v14538_v45  ;;  %v14545_v63 = vld [vmem:[%s16001_s25 + $0x750] ss:$12 sps:$4 sm:$0xff]  }
0x17e1   : > { %11019 = vmatprep.subr.bf16.mxu0 %v14541_v52  ;;  %14882 = vtanh.f32 %v8682_v6  ;;  %v8683_v1 = vmul.f32 0.7978846, %v8635_v47 }
0x17e3   : > { %10983 = vmatpush2.bf16.msra.mxu1 %v14536_v46  ;;  %v14871_v50 = vpop.eup %14870  ;;  %14884 = vtanh.f32 %v8683_v1  ;;  %v8418_v46 = vmul.f32 0.5, %v18015_v42 }
0x17e4   : > { %11020 = vmatpush1.bf16.msra.mxu0 %v14539_v35  ;;  %11058 = vmatprep.subr.bf16.mxu1 %v14568_v14  ;;  %v8742_v55 = vadd.f32 1.0, %v14871_v50  ;;  %v8431_v50 = vmul.f32 0.5, %v18038_v43  ;;  %v8442_v43 = vmul.f32 0.5, %v18049_v17 }
0x17e5   : > { %v14873_v18 = vpop.eup %14872  ;;  %11021 = vmatprep.subr.bf16.mxu0 %v14544_v40 }
0x17e6   : > { %v14875_v38 = vpop.eup %14874  ;;  %v8275_v15 = vpop.f32.mrf.mxu1  ;;  %v8743_v57 = vadd.f32 1.0, %v14873_v18  ;;  %v8430_v18 = vmul.f32 0.5, %v18035_v51  ;;  %v14553_v51 = vld [vmem:[%s16001_s25 + $0x724] ss:$12 sps:$4 sm:$0xff]  }
0x17e7   : > { %v8222_v36 = vpop.f32.mrf.mxu0  ;;  %v8754_v8 = vadd.f32 1.0, %v14875_v38 }
0x17e8   : > { %v8223_v48 = vadd.f32 %v8222_v36, %v18088_v62  ;;  %v8277_v26 = vpop.f32.mrf.mxu1  ;;  %11022 = vmatpush2.bf16.msra.mxu0 %v14542_v28  ;;  %v8407_v28 = vmul.f32 0.5, %v18005_v21 }
0x17e9   : > { %v14877_v45 = vpop.eup %14876  ;;  %v8224_v52 = vpop.f32.mrf.mxu0  ;;  %11023 = vmatprep.subr.bf16.mxu0 %v14547_v22  ;;  %v8802_v42 = vmul.f32 %v8754_v8, %v8418_v46 }
0x17ea   : > { %v18101_v6 = vadd.f32 %v8275_v15, %v8223_v48  ;;  %v8225_v35 = vadd.f32 %v8224_v52, %v18094_v30  ;;  %v8279_v47 = vpop.f32.mrf.mxu1  ;;  %v8755_v14 = vadd.f32 1.0, %v14877_v45  ;;  %v14548_v45 = vld [vmem:[%s16001_s25 + $0x738] ss:$12 sps:$4 sm:$0xff]   ;;  %v8790_v52 = vmul.f32 %v8742_v55, %v8406_v10 }
0x17eb   : > { %v14879_v40 = vpop.eup %14878  ;;  %v8226_v1 = vpop.f32.mrf.mxu0  ;;  %v8791_v29 = vmul.f32 %v8743_v57, %v8407_v28 }
0x17ec   : > { %v14881_v22 = vpop.eup %14880  ;;  %v8456_v38 = vmul.f32 0.044715, %v18101_v6  ;;  %v18109_v15 = vadd.f32 %v8277_v26, %v8225_v35  ;;  %v8227_v36 = vadd.f32 %v8226_v1, %v18088_v62  ;;  %v8281_v48 = vpop.f32.mrf.mxu1  ;;  %11024 = vmatpush2.bf16.msra.mxu0 %v14545_v63  ;;  %v8803_v24 = vmul.f32 %v8755_v14, %v8419_v5 }
0x17ed   : > { %v8228_v21 = vpop.f32.mrf.mxu0  ;;  %11025 = vmatprep.subr.bf16.mxu0 %v14550_v31  ;;  %v8767_v35 = vadd.f32 1.0, %v14881_v22  ;;  %v8766_v14 = vadd.f32 1.0, %v14879_v40  ;;  %v14566_v31 = vld [vmem:[%s16001_s25 + $0x828] ss:$12 sps:$4 sm:$0xff]   ;;  %v8443_v22 = vmul.f32 0.5, %v18059_v25 }
0x17ee   : > { %v14883_v58 = vpop.eup %14882  ;;  %v8504_v8 = vmul.f32 %v8456_v38, %v18101_v6  ;;  %v8457_v26 = vmul.f32 0.044715, %v18109_v15  ;;  %v18117_v46 = vadd.f32 %v8279_v47, %v8227_v36  ;;  %v8229_v63 = vadd.f32 %v8228_v21, %v18094_v30  ;;  %v8285_v10 = vpop.f32.mrf.mxu1  ;;  %v14551_v36 = vld [vmem:[%s16001_s25 + $0x720] ss:$12 sps:$4 sm:$0xff]  }
0x17ef   : > { %v8232_v55 = vpop.f32.mrf.mxu0  ;;  %v18120_v57 = vpack.c.bf16 %v8803_v24, %v8791_v29  ;;  %v8778_v17 = vadd.f32 1.0, %v14883_v58  ;;  %v18126_v38 = vpack.c.bf16 %v8802_v42, %v8790_v52  ;;  %v14573_v21 = vld [vmem:[%s16001_s25 + $0x814] ss:$12 sps:$4 sm:$0xff]   ;;  %v8815_v25 = vmul.f32 %v8767_v35, %v8431_v50 }
0x17f0   : > { %v8552_v1 = vmul.f32 %v8504_v8, %v18101_v6  ;;  %v8505_v28 = vmul.f32 %v8457_v26, %v18109_v15  ;;  %v8468_v5 = vmul.f32 0.044715, %v18117_v46  ;;  %v8287_v47 = vpop.f32.mrf.mxu1  ;;  %11026 = vmatpush2.bf16.msra.mxu0 %v14548_v45  ;;  %v14885_v11 = vpop.eup %14884  ;;  %v18130_v29 = vadd.f32 %v8281_v48, %v8229_v63  ;;  %v14556_v8 = vld [vmem:[%s16001_s25 + $0x70c] ss:$12 sps:$4 sm:$0xff]  }
0x17f1   : > { %v8233_v40 = vadd.f32 %v8232_v55, %v18088_v62  ;;  %10984 = vmatprep.mubr.bf16.mxu1 %v18120_v57  ;;  %v8234_v58 = vpop.f32.mrf.mxu0  ;;  %v8826_v24 = vmul.f32 %v8778_v17, %v8442_v43  ;;  %11027 = vmatprep.subr.bf16.mxu0 %v14553_v51  ;;  %v8779_v52 = vadd.f32 1.0, %v14885_v11  ;;  %v8814_v43 = vmul.f32 %v8766_v14, %v8430_v18  ;;  %v14571_v51 = vld [vmem:[%s16001_s25 + $0x810] ss:$12 sps:$4 sm:$0xff]   ;;  %v14554_v11 = vld [vmem:[%s16001_s25 + $0x708] ss:$12 sps:$4 sm:$0xff]  }
0x17f2   : > { %v8600_v42 = vadd.f32 %v8552_v1, %v18101_v6  ;;  %v8516_v45 = vmul.f32 %v8468_v5, %v18117_v46  ;;  %10985 = vmatmul.mubr.bf16.vlgmr.msra.gmra.mxu1 %v18126_v38  ;;  %v8235_v48 = vadd.f32 %v8234_v58, %v18094_v30  ;;  %v8469_v26 = vmul.f32 0.044715, %v18130_v29  ;;  %v8289_v27 = vpop.f32.mrf.mxu1  ;;  %v14559_v14 = vld [vmem:[%s16001_s25 + $0x6f4] ss:$12 sps:$4 sm:$0xff]  }
0x17f3   : > { %v18141_v63 = vadd.f32 %v8285_v10, %v8233_v40  ;;  %v8236_v55 = vpop.f32.mrf.mxu0  ;;  %11059 = vmatpush1.bf16.msra.mxu1 %v14566_v31  ;;  %v14578_v10 = vld [vmem:[%s16001_s25 + $0x7fc] ss:$12 sps:$4 sm:$0xff]   ;;  %v8827_v35 = vmul.f32 %v8779_v52, %v8443_v22  ;;  %v8553_v31 = vmul.f32 %v8505_v28, %v18109_v15  ;;  %v14576_v28 = vld [vmem:[%s16001_s25 + $0x7f8] ss:$12 sps:$4 sm:$0xff]  }
0x17f4   : > { %v8648_v17 = vmul.f32 0.7978846, %v8600_v42  ;;  %v8564_v1 = vmul.f32 %v8516_v45, %v18117_v46  ;;  %v18145_v5 = vadd.f32 %v8287_v47, %v8235_v48  ;;  %v8237_v58 = vadd.f32 %v8236_v55, %v18088_v62  ;;  %11028 = vmatpush2.bf16.msra.mxu0 %v14551_v36  ;;  %11060 = vmatprep.subr.bf16.mxu1 %v14573_v21  ;;  %v14557_v22 = vld [vmem:[%s16001_s25 + $0x6f0] ss:$12 sps:$4 sm:$0xff]   ;;  %v8291_v55 = vpop.f32.mrf.mxu1 }
0x17f5   : > { %v8517_v40 = vmul.f32 %v8469_v26, %v18130_v29  ;;  %v8480_v50 = vmul.f32 0.044715, %v18141_v63  ;;  %v8238_v18 = vpop.f32.mrf.mxu0  ;;  %11029 = vmatprep.subr.bf16.mxu0 %v14556_v8  ;;  %v18158_v21 = vpack.c.bf16 %v8826_v24, %v8814_v43  ;;  %v18162_v48 = vpack.c.bf16 %v8827_v35, %v8815_v25  ;;  %v14583_v43 = vld [vmem:[%s16001_s25 + $0x7e4] ss:$12 sps:$4 sm:$0xff]  }
0x17f6   : > { %v8612_v47 = vadd.f32 %v8564_v1, %v18117_v46  ;;  %v8481_v62 = vmul.f32 0.044715, %v18145_v5  ;;  %v18156_v36 = vadd.f32 %v8289_v27, %v8237_v58  ;;  %v8239_v45 = vadd.f32 %v8238_v18, %v18094_v30  ;;  %v14581_v18 = vld [vmem:[%s16001_s25 + $0x7e0] ss:$12 sps:$4 sm:$0xff]  }
0x17f7   : > { %v8528_v42 = vmul.f32 %v8480_v50, %v18141_v63  ;;  %v8565_v8 = vmul.f32 %v8517_v40, %v18130_v29  ;;  %11061 = vmatpush1.bf16.msra.mxu1 %v14571_v51  ;;  %v8601_v24 = vadd.f32 %v8553_v31, %v18109_v15  ;;  %14886 = vtanh.f32 %v8648_v17  ;;  %10994 = vmatprep.mubr.bf16.mxu1 %v18162_v48  ;;  %v14562_v51 = vld [vmem:[%s16001_s25 + $0x6dc] ss:$12 sps:$4 sm:$0xff]  }
0x17f8   : > { %v8660_v52 = vmul.f32 0.7978846, %v8612_v47  ;;  %v8529_v26 = vmul.f32 %v8481_v62, %v18145_v5  ;;  %v8492_v27 = vmul.f32 0.044715, %v18156_v36  ;;  %11030 = vmatpush2.bf16.msra.mxu0 %v14554_v11  ;;  %11062 = vmatprep.subr.bf16.mxu1 %v14578_v10  ;;  %v18172_v25 = vadd.f32 %v8291_v55, %v8239_v45  ;;  %v14588_v47 = vld [vmem:[%s16001_s25 + $0x7cc] ss:$12 sps:$4 sm:$0xff]  }
0x17f9   : > { %v8576_v30 = vmul.f32 %v8528_v42, %v18141_v63  ;;  %11031 = vmatprep.subr.bf16.mxu0 %v14559_v14  ;;  %v8613_v1 = vadd.f32 %v8565_v8, %v18130_v29  ;;  %v8649_v11 = vmul.f32 0.7978846, %v8601_v24  ;;  %v14560_v14 = vld [vmem:[%s16001_s25 + $0x6d8] ss:$12 sps:$4 sm:$0xff]   ;;  %v14593_v55 = vld [vmem:[%s16001_s25 + $0x7b4] ss:$12 sps:$4 sm:$0xff]  }
0x17fa   : > { %14888 = vtanh.f32 %v8660_v52  ;;  %v8540_v58 = vmul.f32 %v8492_v27, %v18156_v36  ;;  %10995 = vmatmul.mubr.bf16.gmra.mxu1 %v18158_v21  ;;  %v8577_v17 = vmul.f32 %v8529_v26, %v18145_v5  ;;  %v8493_v40 = vmul.f32 0.044715, %v18172_v25  ;;  %v14565_v42 = vld [vmem:[%s16001_s25 + $0x6c4] ss:$12 sps:$4 sm:$0xff]   ;;  %v14586_v52 = vld [vmem:[%s16001_s25 + $0x7c8] ss:$12 sps:$4 sm:$0xff]  }
0x17fb   : > { %v8624_v10 = vadd.f32 %v8576_v30, %v18141_v63  ;;  %v8661_v50 = vmul.f32 0.7978846, %v8613_v1  ;;  %11063 = vmatpush1.bf16.msra.mxu1 %v14576_v28  ;;  %14890 = vtanh.f32 %v8649_v11  ;;  %v14563_v26 = vld [vmem:[%s16001_s25 + $0x6c0] ss:$12 sps:$4 sm:$0xff]   ;;  %v14569_v24 = vld [vmem:[%s16001_s25 + $0x170] ss:$12 sps:$4 sm:$0xff]  }
0x17fc   : > { %v8588_v35 = vmul.f32 %v8540_v58, %v18156_v36  ;;  %11032 = vmatpush2.bf16.msra.mxu0 %v14557_v22  ;;  %v8625_v31 = vadd.f32 %v8577_v17, %v18145_v5  ;;  %11064 = vmatprep.subr.bf16.mxu1 %v14583_v43  ;;  %v8541_v62 = vmul.f32 %v8493_v40, %v18172_v25  ;;  %v14598_v1 = vld [vmem:[%s16001_s25 + $0x79c] ss:$12 sps:$4 sm:$0xff]   ;;  %v14596_v17 = vld [vmem:[%s16001_s25 + $0x798] ss:$12 sps:$4 sm:$0xff]  }
0x17fd   : > { %11033 = vmatprep.subr.bf16.mxu0 %v14562_v51  ;;  %14892 = vtanh.f32 %v8661_v50  ;;  %v8672_v45 = vmul.f32 0.7978846, %v8624_v10  ;;  %v14591_v51 = vld [vmem:[%s16001_s25 + $0x7b0] ss:$12 sps:$4 sm:$0xff]  }
0x17fe   : > { %v8636_v8 = vadd.f32 %v8588_v35, %v18156_v36  ;;  %v8673_v28 = vmul.f32 0.7978846, %v8625_v31  ;;  %v8589_v22 = vmul.f32 %v8541_v62, %v18172_v25  ;;  %v14603_v40 = vld [vmem:[%s16001_s25 + $0x784] ss:$12 sps:$4 sm:$0xff]   ;;  %v8421_v62 = vmul.f32 0.5, %v18130_v29 }
0x17ff   : > { %11065 = vmatpush1.bf16.msra.mxu1 %v14581_v18  ;;  %14894 = vtanh.f32 %v8672_v45  ;;  %v14601_v45 = vld [vmem:[%s16001_s25 + $0x780] ss:$12 sps:$4 sm:$0xff]   ;;  %v14570_v29 = vld [vmem:[%s16001_s25 + $0xb0] ss:$12 sps:$4 sm:$0xff]  }
0x1800   : > { %11034 = vmatpush2.bf16.msra.mxu0 %v14560_v14  ;;  %v8684_v27 = vmul.f32 0.7978846, %v8636_v8  ;;  %11066 = vmatprep.subr.bf16.mxu1 %v14588_v47  ;;  %v8637_v43 = vadd.f32 %v8589_v22, %v18172_v25  ;;  %14896 = vtanh.f32 %v8673_v28  ;;  %v8420_v14 = vmul.f32 0.5, %v18117_v46  ;;  %v14608_v22 = vld [vmem:[%s16001_s25 + $0x8ec] ss:$12 sps:$4 sm:$0xff]  }
0x1801   : > { %11035 = vmatprep.subr.bf16.mxu0 %v14565_v42  ;;  %v8409_v47 = vmul.f32 0.5, %v18109_v15  ;;  %v8408_v8 = vmul.f32 0.5, %v18101_v6 }
0x1802   : > { %14898 = vtanh.f32 %v8684_v27  ;;  %v8685_v30 = vmul.f32 0.7978846, %v8637_v43  ;;  %v14606_v43 = vld [vmem:[%s16001_s25 + $0x8e8] ss:$12 sps:$4 sm:$0xff]  }
0x1803   : > { %11067 = vmatpush1.bf16.msra.mxu1 %v14586_v52 }
0x1804   : > { %11036 = vmatpush2.bf16.msra.mxu0 %v14563_v26  ;;  %11068 = vmatprep.subr.bf16.mxu1 %v14593_v55  ;;  %14900 = vtanh.f32 %v8685_v30  ;;  %v14887_v58 = vpop.eup %14886 }
0x1805   : > { %12890 = vmatprep.subr.bf16.mxu0 %v14569_v24  ;;  %v8744_v35 = vadd.f32 1.0, %v14887_v58 }
0x1807   : > { %v14889_v11 = vpop.eup %14888  ;;  %11069 = vmatpush1.bf16.msra.mxu1 %v14591_v51  ;;  %v8792_v15 = vmul.f32 %v8744_v35, %v8408_v8  ;;  %v14574_v51 = vld [vmem:[%s16001_s25 + $0x158] ss:$12 sps:$4 sm:$0xff]  }
0x1808   : > { %v8756_v10 = vadd.f32 1.0, %v14889_v11  ;;  %11070 = vmatprep.subr.bf16.mxu1 %v14598_v1  ;;  %v14891_v50 = vpop.eup %14890  ;;  %v14613_v1 = vld [vmem:[%s16001_s25 + $0x8d4] ss:$12 sps:$4 sm:$0xff]  }
0x1809   : > { %v8745_v31 = vadd.f32 1.0, %v14891_v50  ;;  %v8433_v50 = vmul.f32 0.5, %v18145_v5 }
0x180a   : > { %v14893_v18 = vpop.eup %14892  ;;  %v8804_v28 = vmul.f32 %v8756_v10, %v8420_v14  ;;  %v8444_v10 = vmul.f32 0.5, %v18156_v36  ;;  %v14611_v14 = vld [vmem:[%s16001_s25 + $0x8d0] ss:$12 sps:$4 sm:$0xff]  }
0x180b   : > { %v8757_v42 = vadd.f32 1.0, %v14893_v18  ;;  %11071 = vmatpush1.bf16.msra.mxu1 %v14596_v17  ;;  %v8793_v26 = vmul.f32 %v8745_v31, %v8409_v47  ;;  %v14575_v17 = vld [vmem:[%s16001_s25 + $0x98] ss:$12 sps:$4 sm:$0xff]   ;;  %v8445_v18 = vmul.f32 0.5, %v18172_v25  ;;  %v14579_v31 = vld [vmem:[%s16001_s25 + $0x140] ss:$12 sps:$4 sm:$0xff]  }
0x180c   : > { %11072 = vmatprep.subr.bf16.mxu1 %v14603_v40  ;;  %v14895_v52 = vpop.eup %14894  ;;  %v18210_v30 = vpack.c.bf16 %v8804_v28, %v8792_v15  ;;  %v8432_v47 = vmul.f32 0.5, %v18141_v63  ;;  %v14618_v36 = vld [vmem:[%s16001_s25 + $0x8bc] ss:$12 sps:$4 sm:$0xff]   ;;  %v14580_v25 = vld [vmem:[%s16001_s25 + $0x80] ss:$12 sps:$4 sm:$0xff]  }
0x180d   : > { %v8805_v46 = vmul.f32 %v8757_v42, %v8421_v62  ;;  %v14897_v27 = vpop.eup %14896  ;;  %v8768_v40 = vadd.f32 1.0, %v14895_v52  ;;  %v14584_v63 = vld [vmem:[%s16001_s25 + $0x128] ss:$12 sps:$4 sm:$0xff]   ;;  %v14623_v52 = vld [vmem:[%s16001_s25 + $0x8a4] ss:$12 sps:$4 sm:$0xff]  }
0x180e   : > { %v8769_v58 = vadd.f32 1.0, %v14897_v27  ;;  %v14589_v27 = vld [vmem:[%s16001_s25 + $0x110] ss:$12 sps:$4 sm:$0xff]   ;;  %v14621_v15 = vld [vmem:[%s16001_s25 + $0x8a0] ss:$12 sps:$4 sm:$0xff]  }
0x180f   : > { %v14899_v55 = vpop.eup %14898  ;;  %v18206_v24 = vpack.c.bf16 %v8805_v46, %v8793_v26  ;;  %11073 = vmatpush1.bf16.msra.mxu1 %v14601_v45  ;;  %v8816_v8 = vmul.f32 %v8768_v40, %v8432_v47  ;;  %v8381_v26 = vpop.f32.mrf.mxu0  ;;  %v14585_v46 = vld [vmem:[%s16001_s25 + $0x68] ss:$12 sps:$4 sm:$0xff]   ;;  %v18656_v40 = vsub.s32 3, %v18655_v37  ;;  %v14600_v47 = vld [vmem:[%s16001_s25 + $0x20] ss:$12 sps:$4 sm:$0xff]  }
0x1810   : > { %v8780_v6 = vadd.f32 1.0, %v14899_v55  ;;  %11074 = vmatprep.subr.bf16.mxu1 %v14608_v22  ;;  %v8817_v42 = vmul.f32 %v8769_v58, %v8433_v50  ;;  %v14616_v22 = vld [vmem:[%s16001_s25 + $0x8b8] ss:$12 sps:$4 sm:$0xff]  }
0x1811   : > { %11037 = vmatprep.mubr.bf16.mxu0 %v18206_v24  ;;  %v14901_v11 = vpop.eup %14900  ;;  %v14628_v55 = vld [vmem:[%s16001_s25 + $0x88c] ss:$12 sps:$4 sm:$0xff]   ;;  %v18253_v50 = vrot.slane %v18083_v12, %v18656_v40 }
0x1812   : > { %11038 = vmatmul.mubr.bf16.vlgmr.msra.gmra.mxu0 %v18210_v30  ;;  %v8781_v35 = vadd.f32 1.0, %v14901_v11  ;;  %v8828_v62 = vmul.f32 %v8780_v6, %v8444_v10  ;;  %v14626_v6 = vld [vmem:[%s16001_s25 + $0x888] ss:$12 sps:$4 sm:$0xff]   ;;  %v14595_v58 = vld [vmem:[%s16001_s25 + $0x38] ss:$12 sps:$4 sm:$0xff]   ;;  %v18246_v11 = vrot.slane %v18083_v12, %v18642_v23 }
0x1813   : > { %12891 = vmatpush3.bf16.msra.mxu0 %v14570_v29  ;;  %11075 = vmatpush2.bf16.msra.mxu1 %v14606_v43  ;;  %v8383_v29 = vpop.f32.mrf.mxu0  ;;  %v14590_v43 = vld [vmem:[%s16001_s25 + $0x50] ss:$12 sps:$4 sm:$0xff]  }
0x1814   : > { %12892 = vmatprep.subr.bf16.mxu0 %v14574_v51  ;;  %11076 = vmatprep.subr.bf16.mxu1 %v14613_v1  ;;  %v8829_v45 = vmul.f32 %v8781_v35, %v8445_v18  ;;  %v18227_v28 = vpack.c.bf16 %v8828_v62, %v8816_v8  ;;  %v14594_v51 = vld [vmem:[%s16001_s25 + $0xf8] ss:$12 sps:$4 sm:$0xff]   ;;  %v14631_v10 = vld [vmem:[%s16001_s25 + $0x870] ss:$12 sps:$4 sm:$0xff]  }
0x1815   : > { %v8385_v1 = vpop.f32.mrf.mxu0  ;;  %v14638_v18 = vld [vmem:[%s16001_s25 + $0x85c] ss:$12 sps:$4 sm:$0xff]  }
0x1816   : > { %v18224_v5 = vpack.c.bf16 %v8829_v45, %v8817_v42  ;;  %v14636_v42 = vld [vmem:[%s16001_s25 + $0x858] ss:$12 sps:$4 sm:$0xff]  }
0x1817   : > { %12893 = vmatpush3.bf16.msra.mxu0 %v14575_v17  ;;  %11077 = vmatpush2.bf16.msra.mxu1 %v14611_v14  ;;  %v14599_v17 = vld [vmem:[%s16001_s25 + $0xe0] ss:$12 sps:$4 sm:$0xff]   ;;  %v8387_v14 = vpop.f32.mrf.mxu0  ;;  %v14643_v45 = vld [vmem:[%s16001_s25 + $0x844] ss:$12 sps:$4 sm:$0xff]  }
0x1818   : > { %12894 = vmatprep.subr.bf16.mxu0 %v14579_v31  ;;  %11078 = vmatprep.subr.bf16.mxu1 %v14618_v36  ;;  %v14604_v36 = vld [vmem:[%s16001_s25 + $0xc8] ss:$12 sps:$4 sm:$0xff]  }
0x1819   : > { %11047 = vmatprep.mubr.bf16.mxu0 %v18224_v5 }
0x181a   : > { %11048 = vmatmul.mubr.bf16.gmra.mxu0 %v18227_v28 }
0x181b   : > { %12895 = vmatpush3.bf16.msra.mxu0 %v14580_v25  ;;  %11143 = vmatprep.mubr.bf16.mxu0 %v17622_v4  ;;  %v14633_v4 = vld [vmem:[%s16001_s25 + $0x874] ss:$12 sps:$4 sm:$0xff]   ;;  %v8391_v25 = vpop.f32.mrf.mxu0 }
0x181c   : > { %12896 = vmatprep.subr.bf16.mxu0 %v14584_v63  ;;  %11079 = vmatpush2.bf16.msra.mxu1 %v14616_v22 }
0x181d   : > { %11080 = vmatprep.subr.bf16.mxu1 %v14623_v52 }
0x181f   : > { %12897 = vmatpush3.bf16.msra.mxu0 %v14585_v46  ;;  %v14605_v46 = vld [vmem:[%s16001_s25 + $0x8] ss:$12 sps:$4 sm:$0xff]  }
0x1820   : > { %12898 = vmatprep.subr.bf16.mxu0 %v14589_v27  ;;  %11081 = vmatpush2.bf16.msra.mxu1 %v14621_v15  ;;  %v14641_v15 = vld [vmem:[%s16001_s25 + $0x840] ss:$12 sps:$4 sm:$0xff]  }
0x1821   : > { %11082 = vmatprep.subr.bf16.mxu1 %v14628_v55 }
0x1823   : > { %12899 = vmatpush3.bf16.msra.mxu0 %v14590_v43 }
0x1824   : > { %12900 = vmatprep.subr.bf16.mxu0 %v14594_v51  ;;  %11083 = vmatpush2.bf16.msra.mxu1 %v14626_v6  ;;  %v14646_v6 = vld [vmem:[%s16001_s25 + $0x2f0] ss:$12 sps:$4 sm:$0xff]  }
0x1825   : > { %11084 = vmatprep.subr.bf16.mxu1 %v14633_v4 }
0x1826   : > { %v8328_v35 = vpop.f32.mrf.mxu1 }
0x1827   : > { %12901 = vmatpush3.bf16.msra.mxu0 %v14595_v58  ;;  %v8329_v31 = vadd.f32 %v8328_v35, %v18246_v11  ;;  %v8393_v58 = vpop.f32.mrf.mxu0 }
0x1828   : > { %v8330_v62 = vpop.f32.mrf.mxu1  ;;  %12902 = vmatprep.subr.bf16.mxu0 %v14599_v17  ;;  %11085 = vmatpush2.bf16.msra.mxu1 %v14631_v10 }
0x1829   : > { %v18260_v37 = vadd.f32 %v8381_v26, %v8329_v31  ;;  %v8331_v12 = vadd.f32 %v8330_v62, %v18253_v50  ;;  %11086 = vmatprep.subr.bf16.mxu1 %v14638_v18  ;;  %v14609_v26 = vld [vmem:[%s16001_s25 + $0x470] ss:$12 sps:$4 sm:$0xff]  }
0x182a   : > { %v8332_v8 = vpop.f32.mrf.mxu1  ;;  %v14610_v18 = vld [vmem:[%s16001_s25 + $0x3b0] ss:$12 sps:$4 sm:$0xff]  }
0x182b   : > { %v8458_v63 = vmul.f32 0.044715, %v18260_v37  ;;  %v18265_v22 = vadd.f32 %v8383_v29, %v8331_v12  ;;  %12903 = vmatpush3.bf16.msra.mxu0 %v14600_v47  ;;  %v8333_v52 = vadd.f32 %v8332_v8, %v18246_v11  ;;  %v14614_v47 = vld [vmem:[%s16001_s25 + $0x458] ss:$12 sps:$4 sm:$0xff]  }
0x182c   : > { %v8334_v27 = vpop.f32.mrf.mxu1  ;;  %12904 = vmatprep.subr.bf16.mxu0 %v14604_v36  ;;  %11087 = vmatpush2.bf16.msra.mxu1 %v14636_v42 }
0x182d   : > { %v8506_v55 = vmul.f32 %v8458_v63, %v18260_v37  ;;  %v8459_v43 = vmul.f32 0.044715, %v18265_v22  ;;  %v18273_v51 = vadd.f32 %v8385_v1, %v8333_v52  ;;  %v8335_v29 = vadd.f32 %v8334_v27, %v18253_v50  ;;  %11088 = vmatprep.subr.bf16.mxu1 %v14643_v45  ;;  %v8395_v63 = vpop.f32.mrf.mxu0 }
0x182e   : > { %v8338_v4 = vpop.f32.mrf.mxu1 }
0x182f   : > { %v8554_v17 = vmul.f32 %v8506_v55, %v18260_v37  ;;  %v8507_v10 = vmul.f32 %v8459_v43, %v18265_v22  ;;  %v8470_v40 = vmul.f32 0.044715, %v18273_v51  ;;  %12905 = vmatpush3.bf16.msra.mxu0 %v14605_v46  ;;  %v18281_v35 = vadd.f32 %v8387_v14, %v8335_v29 }
0x1830   : > { %v8339_v31 = vadd.f32 %v8338_v4, %v18246_v11  ;;  %v8340_v1 = vpop.f32.mrf.mxu1  ;;  %12946 = vmatprep.subr.bf16.mxu0 %v14609_v26  ;;  %11089 = vmatpush2.bf16.msra.mxu1 %v14641_v15  ;;  %v14615_v15 = vld [vmem:[%s16001_s25 + $0x398] ss:$12 sps:$4 sm:$0xff]  }
0x1831   : > { %v8602_v62 = vadd.f32 %v8554_v17, %v18260_v37  ;;  %v8518_v36 = vmul.f32 %v8470_v40, %v18273_v51  ;;  %v8341_v42 = vadd.f32 %v8340_v1, %v18253_v50  ;;  %v8555_v12 = vmul.f32 %v8507_v10, %v18265_v22  ;;  %12918 = vmatprep.subr.bf16.mxu1 %v14646_v6  ;;  %v8397_v40 = vpop.f32.mrf.mxu0 }
0x1832   : > { %v8471_v45 = vmul.f32 0.044715, %v18281_v35  ;;  %v18290_v14 = vadd.f32 %v8391_v25, %v8339_v31  ;;  %11144 = vmatmul.mubr.bf16.vlgmr.msra.gmra.mxu0 %v17798_v34  ;;  %v8342_v8 = vpop.f32.mrf.mxu1  ;;  %v14619_v34 = vld [vmem:[%s16001_s25 + $0x440] ss:$12 sps:$4 sm:$0xff]  }
0x1833   : > { %v8650_v52 = vmul.f32 0.7978846, %v8602_v62  ;;  %v8566_v46 = vmul.f32 %v8518_v36, %v18273_v51  ;;  %v18294_v27 = vadd.f32 %v8393_v58, %v8341_v42  ;;  %11151 = vmatprep.mubr.bf16.mxu0 %v17807_v2  ;;  %12947 = vmatpush3.bf16.msra.mxu0 %v14610_v18  ;;  %v8343_v26 = vadd.f32 %v8342_v8, %v18246_v11  ;;  %v14624_v42 = vld [vmem:[%s16001_s25 + $0x428] ss:$12 sps:$4 sm:$0xff]  }
0x1834   : > { %v8519_v55 = vmul.f32 %v8471_v45, %v18281_v35  ;;  %v8482_v25 = vmul.f32 0.044715, %v18290_v14  ;;  %v8344_v43 = vpop.f32.mrf.mxu1  ;;  %12948 = vmatprep.subr.bf16.mxu0 %v14614_v47  ;;  %v8603_v29 = vadd.f32 %v8555_v12, %v18265_v22  ;;  %v14620_v47 = vld [vmem:[%s16001_s25 + $0x380] ss:$12 sps:$4 sm:$0xff]  }
0x1835   : > { %v8614_v6 = vadd.f32 %v8566_v46, %v18273_v51  ;;  %v8483_v4 = vmul.f32 0.044715, %v18294_v27  ;;  %v18305_v2 = vadd.f32 %v8395_v63, %v8343_v26  ;;  %v8345_v58 = vadd.f32 %v8344_v43, %v18253_v50  ;;  %v14625_v26 = vld [vmem:[%s16001_s25 + $0x368] ss:$12 sps:$4 sm:$0xff]  }
0x1836   : > { %v8530_v11 = vmul.f32 %v8482_v25, %v18290_v14  ;;  %v8567_v17 = vmul.f32 %v8519_v55, %v18281_v35  ;;  %v8651_v10 = vmul.f32 0.7978846, %v8603_v29  ;;  %14902 = vtanh.f32 %v8650_v52  ;;  %v14629_v25 = vld [vmem:[%s16001_s25 + $0x410] ss:$12 sps:$4 sm:$0xff]  }
0x1837   : > { %v8662_v18 = vmul.f32 0.7978846, %v8614_v6  ;;  %v8531_v31 = vmul.f32 %v8483_v4, %v18294_v27  ;;  %v8494_v1 = vmul.f32 0.044715, %v18305_v2  ;;  %12949 = vmatpush3.bf16.msra.mxu0 %v14615_v15  ;;  %v18314_v36 = vadd.f32 %v8397_v40, %v8345_v58  ;;  %v14630_v6 = vld [vmem:[%s16001_s25 + $0x350] ss:$12 sps:$4 sm:$0xff]  }
0x1838   : > { %v8578_v62 = vmul.f32 %v8530_v11, %v18290_v14  ;;  %12950 = vmatprep.subr.bf16.mxu0 %v14619_v34  ;;  %v8615_v50 = vadd.f32 %v8567_v17, %v18281_v35  ;;  %14904 = vtanh.f32 %v8651_v10  ;;  %v14634_v4 = vld [vmem:[%s16001_s25 + $0x3f8] ss:$12 sps:$4 sm:$0xff]   ;;  %v14639_v40 = vld [vmem:[%s16001_s25 + $0x3e0] ss:$12 sps:$4 sm:$0xff]  }
0x1839   : > { %14906 = vtanh.f32 %v8662_v18  ;;  %v8542_v12 = vmul.f32 %v8494_v1, %v18305_v2  ;;  %v8579_v45 = vmul.f32 %v8531_v31, %v18294_v27  ;;  %v8495_v63 = vmul.f32 0.044715, %v18314_v36  ;;  %v14635_v17 = vld [vmem:[%s16001_s25 + $0x338] ss:$12 sps:$4 sm:$0xff]  }
0x183a   : > { %v8626_v8 = vadd.f32 %v8578_v62, %v18290_v14  ;;  %11152 = vmatmul.mubr.bf16.gmra.mxu0 %v17835_v3  ;;  %v8663_v52 = vmul.f32 0.7978846, %v8615_v50  ;;  %v14644_v62 = vld [vmem:[%s16001_s25 + $0x3c8] ss:$12 sps:$4 sm:$0xff]  }
0x183b   : > { %v8590_v46 = vmul.f32 %v8542_v12, %v18305_v2  ;;  %12951 = vmatpush3.bf16.msra.mxu0 %v14620_v47  ;;  %11241 = vmatprep.mubr.bf16.mxu0 %v17947_v59  ;;  %v8627_v15 = vadd.f32 %v8579_v45, %v18294_v27  ;;  %v8543_v55 = vmul.f32 %v8495_v63, %v18314_v36  ;;  %v14640_v47 = vld [vmem:[%s16001_s25 + $0x320] ss:$12 sps:$4 sm:$0xff]   ;;  %v8422_v45 = vmul.f32 0.5, %v18273_v51 }
0x183c   : > { %12952 = vmatprep.subr.bf16.mxu0 %v14624_v42  ;;  %14908 = vtanh.f32 %v8663_v52  ;;  %v8674_v43 = vmul.f32 0.7978846, %v8626_v8  ;;  %v8411_v8 = vmul.f32 0.5, %v18265_v22  ;;  %v8423_v63 = vmul.f32 0.5, %v18281_v35  ;;  %v14647_v35 = vld [vmem:[%s16001_s25 + $0x230] ss:$12 sps:$4 sm:$0xff]  }
0x183d   : > { %v8638_v3 = vadd.f32 %v8590_v46, %v18305_v2  ;;  %v8675_v34 = vmul.f32 0.7978846, %v8627_v15  ;;  %v8591_v29 = vmul.f32 %v8543_v55, %v18314_v36  ;;  %v8410_v46 = vmul.f32 0.5, %v18260_v37  ;;  %v14645_v15 = vld [vmem:[%s16001_s25 + $0x308] ss:$12 sps:$4 sm:$0xff]  }
0x183e   : > { %14910 = vtanh.f32 %v8674_v43 }
0x183f   : > { %12953 = vmatpush3.bf16.msra.mxu0 %v14625_v26  ;;  %v8686_v59 = vmul.f32 0.7978846, %v8638_v3  ;;  %v8639_v11 = vadd.f32 %v8591_v29, %v18314_v36  ;;  %14912 = vtanh.f32 %v8675_v34  ;;  %v14648_v3 = vld [vmem:[%s16001_s25 + $0x770] ss:$12 sps:$4 sm:$0xff]  }
0x1840   : > { %12954 = vmatprep.subr.bf16.mxu0 %v14629_v25 }
0x1841   : > { %14914 = vtanh.f32 %v8686_v59  ;;  %v8687_v58 = vmul.f32 0.7978846, %v8639_v11  ;;  %v14652_v11 = vld [vmem:[%s16001_s25 + $0x758] ss:$12 sps:$4 sm:$0xff]  }
0x1843   : > { %12955 = vmatpush3.bf16.msra.mxu0 %v14630_v6  ;;  %v14903_v10 = vpop.eup %14902  ;;  %14916 = vtanh.f32 %v8687_v58  ;;  %v14649_v6 = vld [vmem:[%s16001_s25 + $0x6b0] ss:$12 sps:$4 sm:$0xff]  }
0x1844   : > { %12956 = vmatprep.subr.bf16.mxu0 %v14634_v4  ;;  %v8746_v12 = vadd.f32 1.0, %v14903_v10  ;;  %v14650_v4 = vld [vmem:[%s16001_s25 + $0x2d8] ss:$12 sps:$4 sm:$0xff]   ;;  %v8446_v10 = vmul.f32 0.5, %v18305_v2  ;;  %v8434_v2 = vmul.f32 0.5, %v18290_v14 }
0x1845   : > { %v14905_v18 = vpop.eup %14904  ;;  %v14657_v14 = vld [vmem:[%s16001_s25 + $0x680] ss:$12 sps:$4 sm:$0xff]  }
0x1846   : > { %v14907_v31 = vpop.eup %14906  ;;  %v8747_v42 = vadd.f32 1.0, %v14905_v18  ;;  %v8794_v34 = vmul.f32 %v8746_v12, %v8410_v46  ;;  %v14651_v18 = vld [vmem:[%s16001_s25 + $0x218] ss:$12 sps:$4 sm:$0xff]   ;;  %v14659_v46 = vld [vmem:[%s16001_s25 + $0x1e8] ss:$12 sps:$4 sm:$0xff]  }
0x1847   : > { %v8758_v1 = vadd.f32 1.0, %v14907_v31  ;;  %12957 = vmatpush3.bf16.msra.mxu0 %v14635_v17  ;;  %v8435_v31 = vmul.f32 0.5, %v18294_v27  ;;  %v14656_v27 = vld [vmem:[%s16001_s25 + $0x740] ss:$12 sps:$4 sm:$0xff]  }
0x1848   : > { %12958 = vmatprep.subr.bf16.mxu0 %v14639_v40  ;;  %v8795_v25 = vmul.f32 %v8747_v42, %v8411_v8  ;;  %v14654_v42 = vld [vmem:[%s16001_s25 + $0x2c0] ss:$12 sps:$4 sm:$0xff]  }
0x1849   : > { %v14909_v50 = vpop.eup %14908  ;;  %v8806_v26 = vmul.f32 %v8758_v1, %v8422_v45  ;;  %v8447_v1 = vmul.f32 0.5, %v18314_v36 }
0x184a   : > { %v8759_v52 = vadd.f32 1.0, %v14909_v50 }
0x184b   : > { %12959 = vmatpush3.bf16.msra.mxu0 %v14640_v47  ;;  %v14911_v55 = vpop.eup %14910  ;;  %v18347_v37 = vpack.c.bf16 %v8806_v26, %v8794_v34  ;;  %v14661_v26 = vld [vmem:[%s16001_s25 + $0x668] ss:$12 sps:$4 sm:$0xff]   ;;  %v14672_v34 = vld [vmem:[%s16001_s25 + $0x6e0] ss:$12 sps:$4 sm:$0xff]  }
0x184c   : > { %12960 = vmatprep.subr.bf16.mxu0 %v14644_v62  ;;  %v8807_v43 = vmul.f32 %v8759_v52, %v8423_v63  ;;  %v14913_v51 = vpop.eup %14912  ;;  %v8770_v40 = vadd.f32 1.0, %v14911_v55  ;;  %v14653_v62 = vld [vmem:[%s16001_s25 + $0x698] ss:$12 sps:$4 sm:$0xff]   ;;  %v14658_v63 = vld [vmem:[%s16001_s25 + $0x2a8] ss:$12 sps:$4 sm:$0xff]  }
0x184d   : > { %v8771_v58 = vadd.f32 1.0, %v14913_v51  ;;  %v14660_v52 = vld [vmem:[%s16001_s25 + $0x728] ss:$12 sps:$4 sm:$0xff]   ;;  %v14664_v55 = vld [vmem:[%s16001_s25 + $0x710] ss:$12 sps:$4 sm:$0xff]  }
0x184e   : > { %v14915_v22 = vpop.eup %14914  ;;  %v18344_v29 = vpack.c.bf16 %v8807_v43, %v8795_v25  ;;  %v8818_v36 = vmul.f32 %v8770_v40, %v8434_v2  ;;  %v14663_v25 = vld [vmem:[%s16001_s25 + $0x1d0] ss:$12 sps:$4 sm:$0xff]   ;;  %v14668_v43 = vld [vmem:[%s16001_s25 + $0x6f8] ss:$12 sps:$4 sm:$0xff]   ;;  %v14670_v51 = vld [vmem:[%s16001_s25 + $0x260] ss:$12 sps:$4 sm:$0xff]  }
0x184f   : > { %12961 = vmatpush3.bf16.msra.mxu0 %v14645_v15  ;;  %v8782_v59 = vadd.f32 1.0, %v14915_v22  ;;  %v14662_v15 = vld [vmem:[%s16001_s25 + $0x290] ss:$12 sps:$4 sm:$0xff]   ;;  %v14671_v22 = vld [vmem:[%s16001_s25 + $0x1a0] ss:$12 sps:$4 sm:$0xff]  }
0x1850   : > { %11090 = vmatprep.mubr.bf16.mxu1 %v18344_v29  ;;  %13002 = vmatprep.subr.bf16.mxu0 %v14648_v3  ;;  %v14917_v17 = vpop.eup %14916  ;;  %v14669_v3 = vld [vmem:[%s16001_s25 + $0x638] ss:$12 sps:$4 sm:$0xff]   ;;  %v14695_v2 = vld [vmem:[%s16001_s25 + $0x830] ss:$12 sps:$4 sm:$0xff]  }
0x1851   : > { %11091 = vmatmul.mubr.bf16.vlgmr.msra.gmra.mxu1 %v18347_v37  ;;  %v8783_v47 = vadd.f32 1.0, %v14917_v17  ;;  %v8830_v50 = vmul.f32 %v8782_v59, %v8446_v10  ;;  %v14676_v59 = vld [vmem:[%s16001_s25 + $0x6c8] ss:$12 sps:$4 sm:$0xff]   ;;  %v14679_v17 = vld [vmem:[%s16001_s25 + $0x530] ss:$12 sps:$4 sm:$0xff]  }
0x1852   : > { %12919 = vmatpush3.bf16.msra.mxu1 %v14647_v35  ;;  %11242 = vmatmul.mubr.bf16.vlgmr.msra.gmra.mxu0 %v17983_v32  ;;  %v8819_v32 = vmul.f32 %v8771_v58, %v8435_v31  ;;  %v14673_v35 = vld [vmem:[%s16001_s25 + $0x620] ss:$12 sps:$4 sm:$0xff]   ;;  %v14678_v58 = vld [vmem:[%s16001_s25 + $0x5f0] ss:$12 sps:$4 sm:$0xff]   ;;  %v14680_v10 = vld [vmem:[%s16001_s25 + $0x5d8] ss:$12 sps:$4 sm:$0xff]  }
0x1853   : > { %11249 = vmatprep.mubr.bf16.mxu0 %v17989_v13  ;;  %13003 = vmatpush3.bf16.msra.mxu0 %v14649_v6  ;;  %v8831_v12 = vmul.f32 %v8783_v47, %v8447_v1  ;;  %v14655_v13 = vld [vmem:[%s16001_s25 + $0x200] ss:$12 sps:$4 sm:$0xff]   ;;  %v18367_v8 = vpack.c.bf16 %v8830_v50, %v8818_v36  ;;  %v14674_v6 = vld [vmem:[%s16001_s25 + $0x248] ss:$12 sps:$4 sm:$0xff]   ;;  %v14681_v40 = vld [vmem:[%s16001_s25 + $0x518] ss:$12 sps:$4 sm:$0xff]  }
0x1854   : > { %12920 = vmatprep.subr.bf16.mxu1 %v14650_v4  ;;  %13004 = vmatprep.subr.bf16.mxu0 %v14652_v11  ;;  %v14675_v4 = vld [vmem:[%s16001_s25 + $0x188] ss:$12 sps:$4 sm:$0xff]   ;;  %v14683_v31 = vld [vmem:[%s16001_s25 + $0x500] ss:$12 sps:$4 sm:$0xff]   ;;  %v14696_v50 = vld [vmem:[%s16001_s25 + $0x8d8] ss:$12 sps:$4 sm:$0xff]  }
0x1855   : > { %v18364_v45 = vpack.c.bf16 %v8831_v12, %v8819_v32  ;;  %v14677_v11 = vld [vmem:[%s16001_s25 + $0x608] ss:$12 sps:$4 sm:$0xff]   ;;  %v14690_v47 = vld [vmem:[%s16001_s25 + $0x560] ss:$12 sps:$4 sm:$0xff]   ;;  %v14697_v32 = vld [vmem:[%s16001_s25 + $0x818] ss:$12 sps:$4 sm:$0xff]  }
0x1856   : > { %12921 = vmatpush3.bf16.msra.mxu1 %v14651_v18  ;;  %v14682_v18 = vld [vmem:[%s16001_s25 + $0x5c0] ss:$12 sps:$4 sm:$0xff]   ;;  %v14684_v1 = vld [vmem:[%s16001_s25 + $0x5a8] ss:$12 sps:$4 sm:$0xff]  }
0x1857   : > { %13005 = vmatpush3.bf16.msra.mxu0 %v14653_v62  ;;  %12922 = vmatprep.subr.bf16.mxu1 %v14654_v42  ;;  %v14693_v62 = vld [vmem:[%s16001_s25 + $0x488] ss:$12 sps:$4 sm:$0xff]   ;;  %v14694_v42 = vld [vmem:[%s16001_s25 + $0x8f0] ss:$12 sps:$4 sm:$0xff]   ;;  %v14698_v12 = vld [vmem:[%s16001_s25 + $0x8c0] ss:$12 sps:$4 sm:$0xff]  }
0x1858   : > { %11100 = vmatprep.mubr.bf16.mxu1 %v18364_v45  ;;  %13006 = vmatprep.subr.bf16.mxu0 %v14656_v27  ;;  %v14699_v27 = vld [vmem:[%s16001_s25 + $0x800] ss:$12 sps:$4 sm:$0xff]   ;;  %v14700_v36 = vld [vmem:[%s16001_s25 + $0x8a8] ss:$12 sps:$4 sm:$0xff]  }
0x1859   : > { %11101 = vmatmul.mubr.bf16.gmra.mxu1 %v18367_v8 }
0x185a   : > { %12923 = vmatpush3.bf16.msra.mxu1 %v14655_v13  ;;  %11250 = vmatmul.mubr.bf16.gmra.mxu0 %v18009_v19  ;;  %v14665_v19 = vld [vmem:[%s16001_s25 + $0x650] ss:$12 sps:$4 sm:$0xff]  }
0x185b   : > { %11192 = vmatprep.mubr.bf16.mxu1 %v17845_v56  ;;  %13007 = vmatpush3.bf16.msra.mxu0 %v14657_v14  ;;  %v14666_v56 = vld [vmem:[%s16001_s25 + $0x278] ss:$12 sps:$4 sm:$0xff]   ;;  %v14703_v13 = vld [vmem:[%s16001_s25 + $0x7d0] ss:$12 sps:$4 sm:$0xff]  }
0x185c   : > { %11339 = vmatprep.mubr.bf16.mxu0 %v18206_v24  ;;  %12924 = vmatprep.subr.bf16.mxu1 %v14658_v63  ;;  %v14667_v24 = vld [vmem:[%s16001_s25 + $0x1b8] ss:$12 sps:$4 sm:$0xff]  }
0x185d   : > { %13008 = vmatprep.subr.bf16.mxu0 %v14660_v52  ;;  %v14704_v14 = vld [vmem:[%s16001_s25 + $0x878] ss:$12 sps:$4 sm:$0xff]   ;;  %v14706_v52 = vld [vmem:[%s16001_s25 + $0x860] ss:$12 sps:$4 sm:$0xff]  }
0x185e   : > { %12925 = vmatpush3.bf16.msra.mxu1 %v14659_v46  ;;  %v14705_v63 = vld [vmem:[%s16001_s25 + $0x7b8] ss:$12 sps:$4 sm:$0xff]   ;;  %v14707_v46 = vld [vmem:[%s16001_s25 + $0x7a0] ss:$12 sps:$4 sm:$0xff]  }
0x185f   : > { %13009 = vmatpush3.bf16.msra.mxu0 %v14661_v26  ;;  %12926 = vmatprep.subr.bf16.mxu1 %v14662_v15  ;;  %v14709_v26 = vld [vmem:[%s16001_s25 + $0x788] ss:$12 sps:$4 sm:$0xff]  }
0x1860   : > { %13010 = vmatprep.subr.bf16.mxu0 %v14664_v55 }
0x1862   : > { %12927 = vmatpush3.bf16.msra.mxu1 %v14663_v25 }
0x1863   : > { %13011 = vmatpush3.bf16.msra.mxu0 %v14665_v19  ;;  %12928 = vmatprep.subr.bf16.mxu1 %v14666_v56 }
0x1864   : > { %13012 = vmatprep.subr.bf16.mxu0 %v14668_v43 }
0x1866   : > { %12929 = vmatpush3.bf16.msra.mxu1 %v14667_v24  ;;  %v10880_v56 = vpop.f32.mrf.mxu1 }
0x1867   : > { %13013 = vmatpush3.bf16.msra.mxu0 %v14669_v3  ;;  %12930 = vmatprep.subr.bf16.mxu1 %v14670_v51 }
0x1868   : > { %13014 = vmatprep.subr.bf16.mxu0 %v14672_v34  ;;  %v10882_v24 = vpop.f32.mrf.mxu1 }
0x186a   : > { %12931 = vmatpush3.bf16.msra.mxu1 %v14671_v22  ;;  %v10884_v51 = vpop.f32.mrf.mxu1 }
0x186b   : > { %13015 = vmatpush3.bf16.msra.mxu0 %v14673_v35  ;;  %12932 = vmatprep.subr.bf16.mxu1 %v14674_v6 }
0x186c   : > { %13016 = vmatprep.subr.bf16.mxu0 %v14676_v59  ;;  %v10886_v22 = vpop.f32.mrf.mxu1 }
0x186e   : > { %12933 = vmatpush3.bf16.msra.mxu1 %v14675_v4  ;;  %v10890_v6 = vpop.f32.mrf.mxu1 }
0x186f   : > { %13017 = vmatpush3.bf16.msra.mxu0 %v14677_v11  ;;  %12974 = vmatprep.subr.bf16.mxu1 %v14678_v58 }
0x1870   : > { %v10892_v59 = vpop.f32.mrf.mxu1 }
0x1871   : > { %11193 = vmatmul.mubr.bf16.vlgmr.msra.gmra.mxu1 %v17913_v16  ;;  %v14685_v16 = vld [vmem:[%s16001_s25 + $0x4e8] ss:$12 sps:$4 sm:$0xff]  }
0x1872   : > { %11200 = vmatprep.mubr.bf16.mxu1 %v17919_v33  ;;  %12975 = vmatpush3.bf16.msra.mxu1 %v14679_v17  ;;  %v14686_v33 = vld [vmem:[%s16001_s25 + $0x590] ss:$12 sps:$4 sm:$0xff]   ;;  %v10894_v4 = vpop.f32.mrf.mxu1 }
0x1873   : > { %11340 = vmatmul.mubr.bf16.vlgmr.msra.gmra.mxu0 %v18210_v30  ;;  %12976 = vmatprep.subr.bf16.mxu1 %v14680_v10  ;;  %v14687_v30 = vld [vmem:[%s16001_s25 + $0x4d0] ss:$12 sps:$4 sm:$0xff]  }
0x1874   : > { %11347 = vmatprep.mubr.bf16.mxu0 %v18224_v5  ;;  %v14688_v5 = vld [vmem:[%s16001_s25 + $0x578] ss:$12 sps:$4 sm:$0xff]   ;;  %v10896_v11 = vpop.f32.mrf.mxu1 }
0x1876   : > { %12977 = vmatpush3.bf16.msra.mxu1 %v14681_v40 }
0x1877   : > { %12978 = vmatprep.subr.bf16.mxu1 %v14682_v18 }
0x1879   : > { %11201 = vmatmul.mubr.bf16.gmra.mxu1 %v17940_v60  ;;  %v14689_v60 = vld [vmem:[%s16001_s25 + $0x4b8] ss:$12 sps:$4 sm:$0xff]  }
0x187a   : > { %12979 = vmatpush3.bf16.msra.mxu1 %v14683_v31  ;;  %11290 = vmatprep.mubr.bf16.mxu1 %v18120_v57  ;;  %v14691_v57 = vld [vmem:[%s16001_s25 + $0x4a0] ss:$12 sps:$4 sm:$0xff]  }
0x187b   : > { %11348 = vmatmul.mubr.bf16.gmra.mxu0 %v18227_v28  ;;  %12980 = vmatprep.subr.bf16.mxu1 %v14684_v1  ;;  %v14692_v28 = vld [vmem:[%s16001_s25 + $0x548] ss:$12 sps:$4 sm:$0xff]  }
0x187e   : > { %12981 = vmatpush3.bf16.msra.mxu1 %v14685_v16 }
0x187f   : > { %12982 = vmatprep.subr.bf16.mxu1 %v14686_v33 }
0x1882   : > { %12983 = vmatpush3.bf16.msra.mxu1 %v14687_v30  ;;  %v18445_v30 = vld [vmem:[%s799_s21] sm:$0x7] }
0x1883   : > { %12984 = vmatprep.subr.bf16.mxu1 %v14688_v5  ;;  %18657 = vst [vmem:[#allocation42_spill] sm:$0xff] %v18445_v30 }
0x1886   : > { %12985 = vmatpush3.bf16.msra.mxu1 %v14689_v60 }
0x1887   : > { %12986 = vmatprep.subr.bf16.mxu1 %v14690_v47  ;;  %v9245_v47 = vrot.slane %v18445_v30, %v18639_v39 }
0x188a   : > { %12987 = vmatpush3.bf16.msra.mxu1 %v14691_v57  ;;  %v9249_v57 = vrot.slane %v18445_v30, %v18636_v44 }
0x188b   : > { %12988 = vmatprep.subr.bf16.mxu1 %v14692_v28 }
0x188e   : > { %12989 = vmatpush3.bf16.msra.mxu1 %v14693_v62 }
0x188f   : > { %13030 = vmatprep.subr.bf16.mxu1 %v14694_v42 }
0x1891   : > { %11291 = vmatmul.mubr.bf16.vlgmr.msra.gmra.mxu1 %v18126_v38  ;;  %v14701_v38 = vld [vmem:[%s16001_s25 + $0x7e8] ss:$12 sps:$4 sm:$0xff]  }
0x1892   : > { %11298 = vmatprep.mubr.bf16.mxu1 %v18162_v48  ;;  %13031 = vmatpush3.bf16.msra.mxu1 %v14695_v2  ;;  %v14702_v48 = vld [vmem:[%s16001_s25 + $0x890] ss:$12 sps:$4 sm:$0xff]  }
0x1893   : > { %13032 = vmatprep.subr.bf16.mxu1 %v14696_v50 }
0x1896   : > { %13033 = vmatpush3.bf16.msra.mxu1 %v14697_v32 }
0x1897   : > { %13034 = vmatprep.subr.bf16.mxu1 %v14698_v12 }
0x1899   : > { %11299 = vmatmul.mubr.bf16.gmra.mxu1 %v18158_v21  ;;  %v14708_v21 = vld [vmem:[%s16001_s25 + $0x848] ss:$12 sps:$4 sm:$0xff]  }
0x189a   : > { %13035 = vmatpush3.bf16.msra.mxu1 %v14699_v27  ;;  %11388 = vmatprep.mubr.bf16.mxu1 %v18344_v29  ;;  %v10827_v29 = vpop.f32.mrf.mxu0 }
0x189b   : > { %13036 = vmatprep.subr.bf16.mxu1 %v14700_v36  ;;  %v10828_v42 = vadd.f32 %v10827_v29, %v9245_v47 }
0x189c   : > { %v10829_v15 = vpop.f32.mrf.mxu0 }
0x189d   : > { %v10830_v2 = vadd.f32 %v10829_v15, %v9249_v57  ;;  %v10881_v50 = vadd.f32 %v10880_v56, %v10828_v42 }
0x189e   : > { %13037 = vmatpush3.bf16.msra.mxu1 %v14701_v38  ;;  %v10831_v55 = vpop.f32.mrf.mxu0 }
0x189f   : > { %13038 = vmatprep.subr.bf16.mxu1 %v14702_v48  ;;  %v10832_v27 = vadd.f32 %v10831_v55, %v9245_v47  ;;  %v10883_v36 = vadd.f32 %v10882_v24, %v10830_v2 }
0x18a0   : > { %v10833_v25 = vpop.f32.mrf.mxu0 }
0x18a1   : > { %v10834_v48 = vadd.f32 %v10833_v25, %v9249_v57 }
0x18a2   : > { %13039 = vmatpush3.bf16.msra.mxu1 %v14703_v13  ;;  %v10837_v19 = vpop.f32.mrf.mxu0  ;;  %v10885_v13 = vadd.f32 %v10884_v51, %v10832_v27 }
0x18a3   : > { %13040 = vmatprep.subr.bf16.mxu1 %v14704_v14 }
0x18a4   : > { %v10839_v43 = vpop.f32.mrf.mxu0 }
0x18a5   : > { %v10840_v30 = vadd.f32 %v10839_v43, %v9249_v57 }
0x18a6   : > { %13041 = vmatpush3.bf16.msra.mxu1 %v14705_v63  ;;  %v10841_v3 = vpop.f32.mrf.mxu0 }
0x18a7   : > { %13042 = vmatprep.subr.bf16.mxu1 %v14706_v52  ;;  %v10838_v52 = vadd.f32 %v10837_v19, %v9245_v47  ;;  %v10842_v24 = vadd.f32 %v10841_v3, %v9245_v47 }
0x18a8   : > { %v10843_v34 = vpop.f32.mrf.mxu0 }
0x18a9   : > { %v10891_v29 = vadd.f32 %v10890_v6, %v10838_v52 }
0x18aa   : > { %13043 = vmatpush3.bf16.msra.mxu1 %v14707_v46  ;;  %v10933_v35 = vpop.f32.mrf.mxu0 }
0x18ab   : > { %13044 = vmatprep.subr.bf16.mxu1 %v14708_v21  ;;  %v10934_v38 = vadd.f32 %v10933_v35, %v10881_v50  ;;  %v10887_v21 = vadd.f32 %v10886_v22, %v10834_v48  ;;  %v10893_v35 = vadd.f32 %v10892_v59, %v10840_v30 }
0x18ae   : > { %13045 = vmatpush3.bf16.msra.mxu1 %v14709_v26 }
0x18b1   : > { %11389 = vmatmul.mubr.bf16.vlgmr.msra.gmra.mxu1 %v18347_v37  ;;  %v10935_v37 = vpop.f32.mrf.mxu0 }
0x18b2   : > { %11396 = vmatprep.mubr.bf16.mxu1 %v18364_v45  ;;  %v10986_v17 = vpop.f32.mrf.mxu1  ;;  %v10936_v14 = vadd.f32 %v10935_v37, %v10883_v36 }
0x18b3   : > { %v10937_v45 = vpop.f32.mrf.mxu0  ;;  %v10987_v63 = vadd.f32 %v10986_v17, %v10934_v38 }
0x18b4   : > { %v10988_v40 = vpop.f32.mrf.mxu1  ;;  %v10938_v26 = vadd.f32 %v10937_v45, %v10885_v13  ;;  %v10844_v45 = vadd.f32 %v10843_v34, %v9249_v57 }
0x18b5   : > { %v10989_v44 = vadd.f32 %v10988_v40, %v10936_v14  ;;  %v10895_v40 = vadd.f32 %v10894_v4, %v10842_v24 }
0x18b6   : > { %v10990_v31 = vpop.f32.mrf.mxu1  ;;  %v10897_v3 = vadd.f32 %v10896_v11, %v10844_v45 }
0x18b7   : > { %v10991_v42 = vadd.f32 %v10990_v31, %v10938_v26 }
0x18b8   : > { %v10992_v16 = vpop.f32.mrf.mxu1 }
0x18b9   : > { %11397 = vmatmul.mubr.bf16.gmra.mxu1 %v18367_v8  ;;  %v10939_v8 = vpop.f32.mrf.mxu0 }
0x18ba   : > { %v10996_v5 = vpop.f32.mrf.mxu1  ;;  %v10940_v56 = vadd.f32 %v10939_v8, %v10887_v21 }
0x18bb   : > { %v10943_v58 = vpop.f32.mrf.mxu0 }
0x18bc   : > { %v10998_v28 = vpop.f32.mrf.mxu1  ;;  %v10944_v25 = vadd.f32 %v10943_v58, %v10891_v29  ;;  %v10993_v17 = vadd.f32 %v10992_v16, %v10940_v56 }
0x18bd   : > { %v10945_v10 = vpop.f32.mrf.mxu0 }
0x18be   : > { %v11000_v32 = vpop.f32.mrf.mxu1  ;;  %v10997_v6 = vadd.f32 %v10996_v5, %v10944_v25 }
0x18bf   : > { %v10947_v18 = vpop.f32.mrf.mxu0 }
0x18c0   : > { %v11002_v46 = vpop.f32.mrf.mxu1  ;;  %v10948_v59 = vadd.f32 %v10947_v18, %v10895_v40 }
0x18c1   : > { %v18441_v1 = vpop.f32.mrf.mxu0 }
0x18c2   : > { %v10950_v34 = vadd.f32 %v18441_v1, %v10897_v3 }
0x18c4   : > { %v11003_v18 = vadd.f32 %v11002_v46, %v10950_v34 }
0x18d2   : > { %v11039_v33 = vpop.f32.mrf.mxu0 }
0x18d3   : > { %v11040_v7 = vadd.f32 %v11039_v33, %v10987_v63  ;;  %v10946_v33 = vadd.f32 %v10945_v10, %v10893_v35  ;;  %v11001_v10 = vadd.f32 %v11000_v32, %v10948_v59 }
0x18d4   : > { %v11041_v60 = vpop.f32.mrf.mxu0 }
0x18d5   : > { %v11042_v23 = vadd.f32 %v11041_v60, %v10989_v44  ;;  %v10999_v30 = vadd.f32 %v10998_v28, %v10946_v33 }
0x18d6   : > { %v11043_v62 = vpop.f32.mrf.mxu0 }
0x18d7   : > { %v11044_v19 = vadd.f32 %v11043_v62, %v10991_v42 }
0x18d8   : > { %v11045_v12 = vpop.f32.mrf.mxu0 }
0x18d9   : > { %v11046_v50 = vadd.f32 %v11045_v12, %v10993_v17 }
0x18da   : > { %v11049_v39 = vpop.f32.mrf.mxu0 }
0x18db   : > { %v11050_v16 = vadd.f32 %v11049_v39, %v10997_v6  ;;  %v18659_v6 = vld [vmem:[#allocation42_spill] sm:$0xff] }
0x18dc   : > { %v11051_v51 = vpop.f32.mrf.mxu0 }
0x18dd   : > { %v11052_v5 = vadd.f32 %v11051_v51, %v10999_v30 }
0x18de   : > { %v11053_v58 = vpop.f32.mrf.mxu0 }
0x18df   : > { %v11054_v57 = vadd.f32 %v11053_v58, %v11001_v10 }
0x18e0   : > { %v11055_v47 = vpop.f32.mrf.mxu0 }
0x18f2   : > { %v12906_v48 = vpop.f32.mrf.mxu0 }
0x18f4   : > { %v12907_v13 = vpop.f32.mrf.mxu0 }
0x18f6   : > { %v12909_v14 = vpop.f32.mrf.mxu0 }
0x1911   : > { %v11092_v15 = vpop.f32.mrf.mxu1 }
0x1912   : > { %v11093_v55 = vadd.f32 %v11092_v15, %v11040_v7 }
0x1913   : > { %v11094_v37 = vpop.f32.mrf.mxu1 }
0x1914   : > { %v11405_v2 = vadd.f32 %v11093_v55, %v17115_v20  ;;  %v11095_v22 = vadd.f32 %v11094_v37, %v11042_v23 }
0x1915   : > { %v11096_v43 = vpop.f32.mrf.mxu1 }
0x1916   : > { %11417 = vst [vmem:[#allocation25] sm:$0xff] %v11405_v2  ;;  %v11406_v8 = vadd.f32 %v11095_v22, %v17107_v53  ;;  %v11097_v7 = vadd.f32 %v11096_v43, %v11044_v19  ;;  %v18658_v43 = vld [vmem:[#allocation56_spill] sm:$0xff] }
0x1917   : > { %v11098_v31 = vpop.f32.mrf.mxu1 }
0x1918   : > { %11418 = vst [vmem:[#allocation25 + $0x8] sm:$0xff] %v11406_v8  ;;  %v11408_v20 = vadd.f32 %v11097_v7, %v17123_v41  ;;  %v11099_v23 = vadd.f32 %v11098_v31, %v11046_v50  ;;  %v11056_v41 = vadd.f32 %v11055_v47, %v11003_v18  ;;  %v9253_v50 = vrot.slane %v18659_v6, %v18658_v43 }
0x1919   : > { %v11102_v4 = vpop.f32.mrf.mxu1  ;;  %v12908_v8 = vadd.f32 %v12907_v13, %v12906_v48 }
0x191a   : > { %11420 = vst [vmem:[#allocation25 + $0x18] sm:$0xff] %v11408_v20  ;;  %v11409_v60 = vadd.f32 %v11099_v23, %v17119_v61  ;;  %v11103_v53 = vadd.f32 %v11102_v4, %v11050_v16 }
0x191b   : > { %v11104_v11 = vpop.f32.mrf.mxu1  ;;  %v11146_v31 = vadd.f32 %v12908_v8, %v9253_v50 }
0x191c   : > { %11421 = vst [vmem:[#allocation25 + $0x20] sm:$0xff] %v11409_v60  ;;  %v11411_v28 = vadd.f32 %v11103_v53, %v17134_v49  ;;  %v11105_v62 = vadd.f32 %v11104_v11, %v11052_v5  ;;  %v12910_v49 = vpop.f32.mrf.mxu0 }
0x191d   : > { %v11106_v12 = vpop.f32.mrf.mxu1  ;;  %v12911_v3 = vadd.f32 %v12910_v49, %v12909_v14 }
0x191e   : > { %11423 = vst [vmem:[#allocation25 + $0x30] sm:$0xff] %v11411_v28  ;;  %v11412_v1 = vadd.f32 %v11105_v62, %v17139_v54  ;;  %v11107_v27 = vadd.f32 %v11106_v12, %v11054_v57  ;;  %v12912_v63 = vpop.f32.mrf.mxu0 }
0x191f   : > { %v11108_v32 = vpop.f32.mrf.mxu1  ;;  %v11149_v20 = vadd.f32 %v12911_v3, %v9253_v50  ;;  %v18663_v3 = vld [vmem:[#allocation55_spill] sm:$0xff] }
0x1920   : > { %11424 = vst [vmem:[#allocation25 + $0x38] sm:$0xff] %v11412_v1  ;;  %v11414_v36 = vadd.f32 %v11107_v27, %v17151_v9  ;;  %v11109_v61 = vadd.f32 %v11108_v32, %v11056_v41  ;;  %v12913_v46 = vpop.f32.mrf.mxu0 }
0x1921   : > { %v12914_v4 = vadd.f32 %v12913_v46, %v12912_v63 }
0x1922   : > { %11426 = vst [vmem:[#allocation25 + $0x48] sm:$0xff] %v11414_v36  ;;  %v11415_v38 = vadd.f32 %v11109_v61, %v17153_v0  ;;  %v12915_v21 = vpop.f32.mrf.mxu0 }
0x1923   : > { %v11154_v12 = vadd.f32 %v12914_v4, %v9253_v50 }
0x1924   : > { %11427 = vst [vmem:[#allocation25 + $0x50] sm:$0xff] %v11415_v38  ;;  %v12916_v26 = vpop.f32.mrf.mxu0 }
0x1925   : > { %v12917_v11 = vadd.f32 %v12916_v26, %v12915_v21 }
0x1926   : > { %v12962_v44 = vpop.f32.mrf.mxu0 }
0x1927   : > { %v11157_v38 = vadd.f32 %v12917_v11, %v9253_v50 }
0x1928   : > { %v12963_v15 = vpop.f32.mrf.mxu0 }
0x1929   : > { %v12964_v10 = vadd.f32 %v12963_v15, %v12962_v44 }
0x192a   : > { %v12965_v56 = vpop.f32.mrf.mxu0 }
0x192c   : > { %v12966_v55 = vpop.f32.mrf.mxu0 }
0x192d   : > { %v12967_v18 = vadd.f32 %v12966_v55, %v12965_v56 }
0x192e   : > { %v12968_v24 = vpop.f32.mrf.mxu0 }
0x1930   : > { %v12969_v51 = vpop.f32.mrf.mxu0 }
0x1931   : > { %v12934_v52 = vpop.f32.mrf.mxu1  ;;  %v12970_v49 = vadd.f32 %v12969_v51, %v12968_v24 }
0x1932   : > { %v12971_v17 = vpop.f32.mrf.mxu0 }
0x1933   : > { %v12935_v39 = vpop.f32.mrf.mxu1 }
0x1934   : > { %v12972_v2 = vpop.f32.mrf.mxu0  ;;  %v12936_v7 = vadd.f32 %v12935_v39, %v12934_v52 }
0x1935   : > { %v12937_v54 = vpop.f32.mrf.mxu1 }
0x1936   : > { %v13018_v22 = vpop.f32.mrf.mxu0  ;;  %v11195_v16 = vadd.f32 %v12936_v7, %v11146_v31 }
0x1937   : > { %v12938_v29 = vpop.f32.mrf.mxu1 }
0x1938   : > { %v13019_v40 = vpop.f32.mrf.mxu0  ;;  %v12939_v30 = vadd.f32 %v12938_v29, %v12937_v54  ;;  %v11244_v47 = vadd.f32 %v12964_v10, %v11195_v16  ;;  %v12973_v29 = vadd.f32 %v12972_v2, %v12971_v17  ;;  %v18664_v16 = vld [vmem:[#allocation43_spill] sm:$0xff] }
0x1939   : > { %v12940_v9 = vpop.f32.mrf.mxu1  ;;  %v13020_v32 = vadd.f32 %v13019_v40, %v13018_v22 }
0x193a   : > { %v13021_v59 = vpop.f32.mrf.mxu0  ;;  %v11198_v60 = vadd.f32 %v12939_v30, %v11149_v20 }
0x193b   : > { %v12941_v42 = vpop.f32.mrf.mxu1 }
0x193c   : > { %v13022_v23 = vpop.f32.mrf.mxu0  ;;  %v12942_v53 = vadd.f32 %v12941_v42, %v12940_v9  ;;  %v11247_v1 = vadd.f32 %v12967_v18, %v11198_v60 }
0x193d   : > { %v12943_v0 = vpop.f32.mrf.mxu1  ;;  %v13023_v39 = vadd.f32 %v13022_v23, %v13021_v59 }
0x193e   : > { %v13024_v57 = vpop.f32.mrf.mxu0  ;;  %v11203_v36 = vadd.f32 %v12942_v53, %v11154_v12 }
0x193f   : > { %v12944_v35 = vpop.f32.mrf.mxu1 }
0x1940   : > { %v12945_v61 = vadd.f32 %v12944_v35, %v12943_v0  ;;  %v13025_v48 = vpop.f32.mrf.mxu0  ;;  %v11252_v26 = vadd.f32 %v12970_v49, %v11203_v36  ;;  %v18660_v0 = vld [vmem:[#allocation58_spill] sm:$0xff] }
0x1942   : > { %v11206_v54 = vadd.f32 %v12945_v61, %v11157_v38  ;;  %v13027_v15 = vpop.f32.mrf.mxu0 }
0x1944   : > { %v11255_v24 = vadd.f32 %v12973_v29, %v11206_v54  ;;  %v13028_v22 = vpop.f32.mrf.mxu0 }
0x1945   : > { %v13029_v50 = vadd.f32 %v13028_v22, %v13027_v15 }
0x1951   : > { %v12990_v25 = vpop.f32.mrf.mxu1 }
0x1953   : > { %v12991_v37 = vpop.f32.mrf.mxu1 }
0x1954   : > { %v12992_v5 = vadd.f32 %v12991_v37, %v12990_v25 }
0x1955   : > { %v12993_v19 = vpop.f32.mrf.mxu1 }
0x1956   : > { %v11293_v41 = vadd.f32 %v12992_v5, %v11244_v47 }
0x1957   : > { %v12994_v45 = vpop.f32.mrf.mxu1 }
0x1958   : > { %v12995_v28 = vadd.f32 %v12994_v45, %v12993_v19  ;;  %v11342_v52 = vadd.f32 %v13020_v32, %v11293_v41  ;;  %v13026_v19 = vadd.f32 %v13025_v48, %v13024_v57 }
0x1959   : > { %v12996_v33 = vpop.f32.mrf.mxu1 }
0x195a   : > { %v11296_v13 = vadd.f32 %v12995_v28, %v11247_v1 }
0x195b   : > { %v12997_v58 = vpop.f32.mrf.mxu1 }
0x195c   : > { %v12998_v63 = vadd.f32 %v12997_v58, %v12996_v33  ;;  %v11345_v9 = vadd.f32 %v13023_v39, %v11296_v13  ;;  %v18661_v33 = vld [vmem:[#allocation59_spill] sm:$0xff] }
0x195d   : > { %v12999_v34 = vpop.f32.mrf.mxu1 }
0x195e   : > { %v11301_v42 = vadd.f32 %v12998_v63, %v11252_v26 }
0x195f   : > { %v13000_v62 = vpop.f32.mrf.mxu1 }
0x1960   : > { %v13001_v55 = vadd.f32 %v13000_v62, %v12999_v34  ;;  %v11350_v17 = vadd.f32 %v13026_v19, %v11301_v42 }
0x1962   : > { %v11304_v40 = vadd.f32 %v13001_v55, %v11255_v24 }
0x1964   : > { %v11353_v58 = vadd.f32 %v13029_v50, %v11304_v40 }
0x1971   : > { %v13046_v27 = vpop.f32.mrf.mxu1 }
0x1973   : > { %v13047_v14 = vpop.f32.mrf.mxu1 }
0x1974   : > { %v13048_v46 = vadd.f32 %v13047_v14, %v13046_v27 }
0x1975   : > { %v13049_v21 = vpop.f32.mrf.mxu1 }
0x1976   : > { %v11391_v44 = vadd.f32 %v13048_v46, %v11342_v52 }
0x1977   : > { %v13050_v56 = vpop.f32.mrf.mxu1 }
0x1978   : > { %v11407_v35 = vadd.f32 %v11391_v44, %v18660_v0  ;;  %v13051_v25 = vadd.f32 %v13050_v56, %v13049_v21 }
0x1979   : > { %v13052_v37 = vpop.f32.mrf.mxu1 }
0x197a   : > { %11419 = vst [vmem:[#allocation25 + $0x10] sm:$0xff] %v11407_v35  ;;  %v11394_v51 = vadd.f32 %v13051_v25, %v11345_v9 }
0x197b   : > { %v13053_v45 = vpop.f32.mrf.mxu1 }
0x197c   : > { %v11410_v43 = vadd.f32 %v11394_v51, %v18661_v33  ;;  %v13054_v2 = vadd.f32 %v13053_v45, %v13052_v37 }
0x197d   : > { %v13055_v6 = vpop.f32.mrf.mxu1 }
0x197e   : > { %11422 = vst [vmem:[#allocation25 + $0x28] sm:$0xff] %v11410_v43  ;;  %v11399_v8 = vadd.f32 %v13054_v2, %v11350_v17 }
0x197f   : > { %v13056_v7 = vpop.f32.mrf.mxu1 }
0x1980   : > { %v11413_v59 = vadd.f32 %v11399_v8, %v18663_v3  ;;  %v13057_v31 = vadd.f32 %v13056_v7, %v13055_v6 }
0x1982   : > { %11425 = vst [vmem:[#allocation25 + $0x40] sm:$0xff] %v11413_v59  ;;  %v11402_v30 = vadd.f32 %v13057_v31, %v11353_v58 }
0x1984   : > { %v11416_v20 = vadd.f32 %v11402_v30, %v18664_v16 }
0x1986   : > { %11428 = vst [vmem:[#allocation25 + $0x58] sm:$0xff] %v11416_v20 }
0x1987   : > { %15322 = shalt.err (!%p15319_p12)
}
0x1988   : > { %s15428_s16 = smov 384   ;;  %s15429_s1 = smov 24  }
0x1989   : > { %s18665_s24 = sld [smem:[#allocation66_spill]] }
0x198f   : > { %13380 = dma.vmem_to_hbm [thread:$0]  (%p13434_p3), %s11436_s23, 1536, %s18665_s24, [#allocation4], %s15428_s16, %s15428_s16, %s15429_s1  }
0x1990   : > { %15382 = dma.done.wait (%p13434_p3), [#allocation4], 1536  }
0x1991   : > { %15384 = vsyncadd (%p13434_p3), [#allocation4], 4294965760 }
0x1992 PF: > { %s18666_s16 = sld [smem:[#allocation38_spill]] }
0x1993   : > { %s18667_s29 = sld [smem:[#allocation35_spill]] }
0x1994   : > { %s18668_s30 = sld [smem:[#allocation36_spill]] }
0x1995   : > { %s18669_s15 = sld [smem:[#allocation39_spill]] }
0x1998   : > { %p42_p1 = scmp.ge.s32.totalorder %s18666_s16, 14  }
0x199a   :  { %44 = sbr.rel (!%p42_p1) target bundleno = 24 (0x18), region = 250 }
0x199f   :  { %11451 = vsyncpa [#allocation3], 1 }
0x19a0   :  { %11453 = vsyncpa [#allocation3 + $0x1], 1 }
0x19a1   :  { %11454 = vsyncpa [#allocation6], 1 }
0x19a2   :  { %11455 = vsyncpa [#allocation9], 1 }
0x19a3   :  { %11457 = vsyncpa [#allocation9 + $0x1], 1 }
0x19a4   :  { %11458 = vsyncpa [#allocation12], 1 }
0x19a5   :  { %11460 = vsyncpa [#allocation12 + $0x1], 1 }
0x19a6   :  { %11461 = vsyncpa [#allocation15], 1 }
0x19a7   :  { %11463 = vsyncpa [#allocation15 + $0x1], 1 }
0x19a8   :  { %11464 = vsyncpa [#allocation18], 1 }
0x19a9   :  { %11466 = vsyncpa [#allocation18 + $0x1], 1 }
0x19aa   :  { %11467 = vsyncpa [#allocation21], 1 }
0x19ab   :  { %11469 = vsyncpa [#allocation21 + $0x1], 1 }
0x19ac   :  { %11470 = vsyncpa [#allocation24], 1 }
0x19ad   :  { %11472 = vsyncpa [#allocation24 + $0x1], 1 }
0x19ae   :  { %11473 = vsyncpa [#allocation4], 1 }
0x19af   :  { %11475 = vsyncpa [#allocation4 + $0x1], 1 }

</bundles_post_ra>
